<compile_context>
chip_gen: v7x
topology: tpu7x:2x2x1
jax: 0.10.0
libtpu: 0.0.40
codegen_flags: <defaults>
</compile_context>

<pallas_src>
import functools
import math

import jax
import jax.numpy as jnp
from jax import lax
from jax.experimental import pallas as pl
from jax.experimental.pallas import tpu as pltpu

_VMEM = pl.BlockSpec(memory_space=pltpu.MemorySpace.VMEM)

_PER_LAYER = 26  # flattened parameter arrays per decoder layer


# --------------------------- in-kernel helpers (traced) ---------------------------


def _layernorm(x, g, b, eps):
    # x: (N, D) f32; g/b: (1, D) f32
    mu = jnp.mean(x, axis=-1, keepdims=True)
    var = jnp.mean(jnp.square(x - mu), axis=-1, keepdims=True)
    return (x - mu) * lax.rsqrt(var + eps) * g + b


# --------------------------------- fused kernel ---------------------------------


def _fused_forward_kernel(*refs, batch, s_tgt, s_mem, heads, num_layers, eps):
    out_ref = refs[-1]
    tgt_ref, mem_ref, lm_ref, selfm_ref, crossm_ref = refs[:5]
    params = refs[5:-1]

    d_model = tgt_ref.shape[-1]
    dh = d_model // heads
    scale = 1.0 / math.sqrt(dh)

    # Hoisted once, reused by every layer.
    lm_f32 = lm_ref[...]                       # (H, 1, D) one-hot head lane masks
    lm_bf = lm_f32.astype(jnp.bfloat16)
    self_ok = selfm_ref[...] > 0.0             # (B*S, B*S)  same-batch & causal
    cross_ok = crossm_ref[...] > 0.0           # (B*S, B*Sm) same-batch

    xf = tgt_ref[...].astype(jnp.float32)      # (B*S, D) residual stream (f32)
    mem_bf = mem_ref[...].astype(jnp.bfloat16)  # (B*Sm, D) matmul input (bf16)

    def mm(a, w_bf16, b_f32):
        # bf16 MXU inputs, f32 accumulation, bias folded in.
        return jnp.dot(a.astype(jnp.bfloat16), w_bf16,
                       preferred_element_type=jnp.float32) + b_f32

    def attention(q, k, v, mask):
        """Multi-head attention on flat (rows, D) slabs.

        Per-head structure is expressed via one-hot lane masks on Q plus a
        same-batch mask on the scores, so both matmuls are single batched
        einsums with the head axis as the dot_general batch dim (no 8-lane
        slices, no lane concats, no reshapes/transposes of tiled dims)."""
        nk = k.shape[0]
        q_h = q.astype(jnp.bfloat16)[None, :, :] * lm_bf                 # (H, Nq, D)
        k_h = jnp.broadcast_to(k.astype(jnp.bfloat16)[None, :, :],
                               (heads, nk, d_model))                     # (H, Nk, D)
        v_h = jnp.broadcast_to(v.astype(jnp.bfloat16)[None, :, :],
                               (heads, nk, d_model))                     # (H, Nk, D)
        s = jnp.einsum('hqd,hkd->hqk', q_h, k_h,
                       preferred_element_type=jnp.float32) * scale       # (H, Nq, Nk)
        s = jnp.where(mask[None, :, :], s, -jnp.inf)
        m = jnp.max(s, axis=-1, keepdims=True)
        p = jnp.exp(s - m)
        denom = jnp.sum(p, axis=-1, keepdims=True)
        o = jnp.einsum('hqk,hkd->hqd', p.astype(jnp.bfloat16), v_h,
                       preferred_element_type=jnp.float32)               # (H, Nq, D)
        o = o * pl.reciprocal(denom, approx=True)
        # keep only head h's lanes from slab h, merge heads by summation
        return jnp.sum(o * lm_f32, axis=0)                               # (Nq, D)

    for li in range(num_layers):
        (ln1_g, ln1_b, wq1, bq1, wk1, bk1, wv1, bv1, wo1, bo1,
         ln2_g, ln2_b, wq2, bq2, wk2, bk2, wv2, bv2, wo2, bo2,
         ln3_g, ln3_b, wf1, bf1, wf2, bf2) = [
            r[...] for r in params[li * _PER_LAYER:(li + 1) * _PER_LAYER]]

        # ---- self-attention block (pre-norm, causal), residual add fused ----
        n1 = _layernorm(xf, ln1_g, ln1_b, eps)
        o = attention(mm(n1, wq1, bq1), mm(n1, wk1, bk1), mm(n1, wv1, bv1),
                      self_ok)
        xf = xf + mm(o, wo1, bo1)

        # ---- cross-attention block (pre-norm, no causal mask) ----
        n2 = _layernorm(xf, ln2_g, ln2_b, eps)
        o = attention(mm(n2, wq2, bq2), mm(mem_bf, wk2, bk2), mm(mem_bf, wv2, bv2),
                      cross_ok)
        xf = xf + mm(o, wo2, bo2)

        # ---- feed-forward block (pre-norm, Mish; dropout = identity in eval) ----
        n3 = _layernorm(xf, ln3_g, ln3_b, eps)
        h1 = mm(n3, wf1, bf1)
        # mish(x) = x * tanh(softplus(x)) = x * n/(n+2), n = e^x (e^x + 2)
        # single exp; clamp at 20 so e^{2x} cannot overflow (mish(x)==x there)
        u = jnp.exp(jnp.minimum(h1, 20.0))
        n = u * (u + 2.0)
        h1 = h1 * n * pl.reciprocal(n + 2.0, approx=True)
        xf = xf + mm(h1, wf2, bf2)

    # ---- fused category heads: one lane-dense (>=128-wide) projection ----
    w_cat = params[num_layers * _PER_LAYER][...]
    b_cat = params[num_layers * _PER_LAYER + 1][...]
    out_ref[...] = mm(xf, w_cat, b_cat).astype(out_ref.dtype)


# ------------------------------- host-side wrapper -------------------------------


def event_predictor_forward(flat_params, tgt, memory, *, num_heads, num_layers,
                            head_sizes, c_pad):
    B, S, D = tgt.shape
    Bm, Sm, _ = memory.shape
    dh = D // num_heads

    # One-hot head lane masks (H, 1, D) and attention masks, built outside the
    # kernel (constants at trace time; no in-kernel iota / int div-mod work).
    lane_masks = (jnp.arange(D, dtype=jnp.int32)[None, :] // dh
                  == jnp.arange(num_heads, dtype=jnp.int32)[:, None]
                  ).astype(jnp.float32).reshape(num_heads, 1, D)
    r = jnp.arange(B * S, dtype=jnp.int32)
    rm = jnp.arange(Bm * Sm, dtype=jnp.int32)
    self_mask = (((r[:, None] // S) == (r[None, :] // S)) &
                 ((r[:, None] % S) >= (r[None, :] % S))).astype(jnp.float32)
    cross_mask = ((r[:, None] // S) == (rm[None, :] // Sm)).astype(jnp.float32)

    kernel = functools.partial(
        _fused_forward_kernel, batch=B, s_tgt=S, s_mem=Sm, heads=num_heads,
        num_layers=num_layers, eps=1e-5)

    inputs = [tgt.reshape(B * S, D), memory.reshape(Bm * Sm, D),
              lane_masks, self_mask, cross_mask, *flat_params]
    io_bytes = sum(int(x.size) * x.dtype.itemsize for x in inputs) + B * S * c_pad * 4
    vmem_limit = int(min(max(4 * io_bytes + (4 << 20), 16 << 20), 48 << 20))

    # TODO(synk): add a row grid over B*S + "parallel" dimension_semantics and
    #             per-layer weight streaming once shapes exceed toy sizes.
    out = pl.pallas_call(
        kernel,
        out_shape=jax.ShapeDtypeStruct((B * S, c_pad), jnp.float32),
        in_specs=[_VMEM] * len(inputs),
        out_specs=_VMEM,
        compiler_params=pltpu.CompilerParams(vmem_limit_bytes=vmem_limit),
    )(*inputs)
    out = out.reshape(B, S, c_pad)

    # forward() only applies the category heads (fact_proj / out_proj unused).
    results, off = [], 0
    for c in head_sizes:
        results.append(out[:, :, off:off + c])
        off += c
    return results


def prepare_params(params, d_model):
    """One-time conversion of PyTorch-convention params ((out,in) f32 weights)
    into the flat, pre-transposed (in,out) bf16 layout the fused kernel expects.
    QKV / cross-attn in-proj weights are split host-side (no in-kernel lane
    splits); category heads are fused and padded to a lane-dense (>=128) width."""

    def wt(w):   # pre-transposed matmul weight, bf16 for the MXU
        return jnp.asarray(w, jnp.float32).T.astype(jnp.bfloat16)

    def row(b):  # bias / LN params stay f32, 2-D for VMEM
        return jnp.asarray(b, jnp.float32).reshape(1, -1)

    D = d_model
    flat = []
    for lp in params["layers"]:
        sa_w, sa_b = lp["sa_in_w"], lp["sa_in_b"]
        ca_w, ca_b = lp["ca_in_w"], lp["ca_in_b"]
        flat += [row(lp["ln1_g"]), row(lp["ln1_b"]),
                 wt(sa_w[:D]), row(sa_b[:D]),            # self-attn Q
                 wt(sa_w[D:2 * D]), row(sa_b[D:2 * D]),  # self-attn K
                 wt(sa_w[2 * D:]), row(sa_b[2 * D:]),    # self-attn V
                 wt(lp["sa_out_w"]), row(lp["sa_out_b"]),
                 row(lp["ln2_g"]), row(lp["ln2_b"]),
                 wt(ca_w[:D]), row(ca_b[:D]),            # cross-attn Q
                 wt(ca_w[D:2 * D]), row(ca_b[D:2 * D]),  # cross-attn K
                 wt(ca_w[2 * D:]), row(ca_b[2 * D:]),    # cross-attn V
                 wt(lp["ca_out_w"]), row(lp["ca_out_b"]),
                 row(lp["ln3_g"]), row(lp["ln3_b"]),
                 wt(lp["ff_w1"]), row(lp["ff_b1"]),
                 wt(lp["ff_w2"]), row(lp["ff_b2"])]
        assert len(flat) % _PER_LAYER == 0

    w_cat = jnp.concatenate([w for (w, _) in params["cat_heads"]], axis=0)
    b_cat = jnp.concatenate([b for (_, b) in params["cat_heads"]], axis=0)
    total = int(w_cat.shape[0])
    c_pad = max(128, ((total + 127) // 128) * 128)
    w_pad = jnp.zeros((c_pad, D), jnp.float32).at[:total, :].set(w_cat)
    b_pad = jnp.zeros((c_pad,), jnp.float32).at[:total].set(b_cat)
    flat += [wt(w_pad), row(b_pad)]

    head_sizes = tuple(int(w.shape[0]) for (w, _) in params["cat_heads"])
    return flat, head_sizes, c_pad


# ------------------------------ parameter init ------------------------------


def init_params(key, d_categories, d_input, d_facts, d_model, decoder_layers,
                d_ff=2048):
    """Deterministic synthetic init matching the PyTorch module's shapes.
    d_ff=2048 matches nn.TransformerDecoderLayer's default dim_feedforward."""

    def dense(k, dout, din):
        kw, kb = jax.random.split(k)
        lim = 1.0 / (din ** 0.5)
        w = jax.random.uniform(kw, (dout, din), jnp.float32, -lim, lim)
        b = jax.random.uniform(kb, (dout,), jnp.float32, -lim, lim)
        return w, b

    keys = jax.random.split(key, decoder_layers + 3)
    layers = []
    for li in range(decoder_layers):
        k = jax.random.split(keys[li], 6)
        sa_in_w, sa_in_b = dense(k[0], 3 * d_model, d_model)
        sa_out_w, sa_out_b = dense(k[1], d_model, d_model)
        ca_in_w, ca_in_b = dense(k[2], 3 * d_model, d_model)
        ca_out_w, ca_out_b = dense(k[3], d_model, d_model)
        ff_w1, ff_b1 = dense(k[4], d_ff, d_model)
        ff_w2, ff_b2 = dense(k[5], d_model, d_ff)
        ones = jnp.ones((d_model,), jnp.float32)
        zeros = jnp.zeros((d_model,), jnp.float32)
        layers.append(dict(
            ln1_g=ones, ln1_b=zeros, ln2_g=ones, ln2_b=zeros,
            ln3_g=ones, ln3_b=zeros,
            sa_in_w=sa_in_w, sa_in_b=sa_in_b, sa_out_w=sa_out_w, sa_out_b=sa_out_b,
            ca_in_w=ca_in_w, ca_in_b=ca_in_b, ca_out_w=ca_out_w, ca_out_b=ca_out_b,
            ff_w1=ff_w1, ff_b1=ff_b1, ff_w2=ff_w2, ff_b2=ff_b2,
        ))

    head_keys = jax.random.split(keys[decoder_layers], max(len(d_categories), 1))
    cat_heads = [dense(head_keys[i], c, d_model) for i, c in enumerate(d_categories)]
    # fact_proj / out_proj exist in __init__ but are not used by forward().
    fact_proj = dense(keys[decoder_layers + 1], d_facts, d_model)
    out_proj = dense(keys[decoder_layers + 2], d_input, d_model)

    return dict(layers=layers, cat_heads=cat_heads,
                fact_proj=fact_proj, out_proj=out_proj)


# ----------------------------------- main -----------------------------------


if __name__ == "__main__":
    key = jax.random.PRNGKey(0)
    B, S_tgt, S_mem = 2, 8, 8
    d_model, num_heads, decoder_layers = 32, 4, 2
    d_categories = [5, 7]
    d_input, d_facts = 16, 12

    kp, kt, km = jax.random.split(key, 3)
    params = init_params(kp, d_categories, d_input, d_facts, d_model, decoder_layers)
    tgt = jax.random.normal(kt, (B, S_tgt, d_model), jnp.float32)
    memory = jax.random.normal(km, (B, S_mem, d_model), jnp.float32)

    flat_params, head_sizes, c_pad = prepare_params(params, d_model)

    fwd = jax.jit(functools.partial(
        event_predictor_forward, num_heads=num_heads, num_layers=decoder_layers,
        head_sizes=head_sizes, c_pad=c_pad))
    outs = fwd(flat_params, tgt, memory)
    outs = jax.block_until_ready(outs)

    expected = [(B, S_tgt, c) for c in d_categories]
    assert [tuple(o.shape) for o in outs] == expected, (outs, expected)
    assert all(bool(jnp.all(jnp.isfinite(o))) for o in outs)
    print("KERNEL_OK")
</pallas_src>

<mosaic_0001>
module attributes {stable_mosaic.version = 11 : i64} {
  func.func @_fused_forward_kernel(%arg0: memref<16x32xf32, #tpu.memory_space<vmem>>, %arg1: memref<16x32xf32, #tpu.memory_space<vmem>>, %arg2: memref<4x1x32xf32, #tpu.memory_space<vmem>>, %arg3: memref<16x16xf32, #tpu.memory_space<vmem>>, %arg4: memref<16x16xf32, #tpu.memory_space<vmem>>, %arg5: memref<1x32xf32, #tpu.memory_space<vmem>>, %arg6: memref<1x32xf32, #tpu.memory_space<vmem>>, %arg7: memref<32x32xbf16, #tpu.memory_space<vmem>>, %arg8: memref<1x32xf32, #tpu.memory_space<vmem>>, %arg9: memref<32x32xbf16, #tpu.memory_space<vmem>>, %arg10: memref<1x32xf32, #tpu.memory_space<vmem>>, %arg11: memref<32x32xbf16, #tpu.memory_space<vmem>>, %arg12: memref<1x32xf32, #tpu.memory_space<vmem>>, %arg13: memref<32x32xbf16, #tpu.memory_space<vmem>>, %arg14: memref<1x32xf32, #tpu.memory_space<vmem>>, %arg15: memref<1x32xf32, #tpu.memory_space<vmem>>, %arg16: memref<1x32xf32, #tpu.memory_space<vmem>>, %arg17: memref<32x32xbf16, #tpu.memory_space<vmem>>, %arg18: memref<1x32xf32, #tpu.memory_space<vmem>>, %arg19: memref<32x32xbf16, #tpu.memory_space<vmem>>, %arg20: memref<1x32xf32, #tpu.memory_space<vmem>>, %arg21: memref<32x32xbf16, #tpu.memory_space<vmem>>, %arg22: memref<1x32xf32, #tpu.memory_space<vmem>>, %arg23: memref<32x32xbf16, #tpu.memory_space<vmem>>, %arg24: memref<1x32xf32, #tpu.memory_space<vmem>>, %arg25: memref<1x32xf32, #tpu.memory_space<vmem>>, %arg26: memref<1x32xf32, #tpu.memory_space<vmem>>, %arg27: memref<32x2048xbf16, #tpu.memory_space<vmem>>, %arg28: memref<1x2048xf32, #tpu.memory_space<vmem>>, %arg29: memref<2048x32xbf16, #tpu.memory_space<vmem>>, %arg30: memref<1x32xf32, #tpu.memory_space<vmem>>, %arg31: memref<1x32xf32, #tpu.memory_space<vmem>>, %arg32: memref<1x32xf32, #tpu.memory_space<vmem>>, %arg33: memref<32x32xbf16, #tpu.memory_space<vmem>>, %arg34: memref<1x32xf32, #tpu.memory_space<vmem>>, %arg35: memref<32x32xbf16, #tpu.memory_space<vmem>>, %arg36: memref<1x32xf32, #tpu.memory_space<vmem>>, %arg37: memref<32x32xbf16, #tpu.memory_space<vmem>>, %arg38: memref<1x32xf32, #tpu.memory_space<vmem>>, %arg39: memref<32x32xbf16, #tpu.memory_space<vmem>>, %arg40: memref<1x32xf32, #tpu.memory_space<vmem>>, %arg41: memref<1x32xf32, #tpu.memory_space<vmem>>, %arg42: memref<1x32xf32, #tpu.memory_space<vmem>>, %arg43: memref<32x32xbf16, #tpu.memory_space<vmem>>, %arg44: memref<1x32xf32, #tpu.memory_space<vmem>>, %arg45: memref<32x32xbf16, #tpu.memory_space<vmem>>, %arg46: memref<1x32xf32, #tpu.memory_space<vmem>>, %arg47: memref<32x32xbf16, #tpu.memory_space<vmem>>, %arg48: memref<1x32xf32, #tpu.memory_space<vmem>>, %arg49: memref<32x32xbf16, #tpu.memory_space<vmem>>, %arg50: memref<1x32xf32, #tpu.memory_space<vmem>>, %arg51: memref<1x32xf32, #tpu.memory_space<vmem>>, %arg52: memref<1x32xf32, #tpu.memory_space<vmem>>, %arg53: memref<32x2048xbf16, #tpu.memory_space<vmem>>, %arg54: memref<1x2048xf32, #tpu.memory_space<vmem>>, %arg55: memref<2048x32xbf16, #tpu.memory_space<vmem>>, %arg56: memref<1x32xf32, #tpu.memory_space<vmem>>, %arg57: memref<32x128xbf16, #tpu.memory_space<vmem>>, %arg58: memref<1x128xf32, #tpu.memory_space<vmem>>, %arg59: memref<16x128xf32, #tpu.memory_space<vmem>>) attributes {dimension_semantics = [], scalar_prefetch = 0 : i64, scratch_operands = 0 : i64, tpu.core_type = #tpu.core_type<tc>} {
    %c0 = arith.constant 0 : index
    %c0_0 = arith.constant 0 : index
    %c0_1 = arith.constant 0 : index
    %0 = vector.load %arg2[%c0, %c0_0, %c0_1] : memref<4x1x32xf32, #tpu.memory_space<vmem>>, vector<4x1x32xf32>
    %1 = arith.truncf %0 : vector<4x1x32xf32> to vector<4x1x32xbf16>
    %c0_2 = arith.constant 0 : index
    %c0_3 = arith.constant 0 : index
    %2 = vector.load %arg3[%c0_2, %c0_3] : memref<16x16xf32, #tpu.memory_space<vmem>>, vector<16x16xf32>
    %cst = arith.constant 0.000000e+00 : f32
    %3 = vector.broadcast %cst : f32 to vector<16x16xf32>
    %4 = arith.cmpf ogt, %2, %3 : vector<16x16xf32>
    %c0_4 = arith.constant 0 : index
    %c0_5 = arith.constant 0 : index
    %5 = vector.load %arg4[%c0_4, %c0_5] : memref<16x16xf32, #tpu.memory_space<vmem>>, vector<16x16xf32>
    %cst_6 = arith.constant 0.000000e+00 : f32
    %6 = vector.broadcast %cst_6 : f32 to vector<16x16xf32>
    %7 = arith.cmpf ogt, %5, %6 : vector<16x16xf32>
    %c0_7 = arith.constant 0 : index
    %c0_8 = arith.constant 0 : index
    %8 = vector.load %arg0[%c0_7, %c0_8] : memref<16x32xf32, #tpu.memory_space<vmem>>, vector<16x32xf32>
    %c0_9 = arith.constant 0 : index
    %c0_10 = arith.constant 0 : index
    %9 = vector.load %arg1[%c0_9, %c0_10] : memref<16x32xf32, #tpu.memory_space<vmem>>, vector<16x32xf32>
    %10 = arith.truncf %9 : vector<16x32xf32> to vector<16x32xbf16>
    %c0_11 = arith.constant 0 : index
    %c0_12 = arith.constant 0 : index
    %11 = vector.load %arg5[%c0_11, %c0_12] : memref<1x32xf32, #tpu.memory_space<vmem>>, vector<1x32xf32>
    %c0_13 = arith.constant 0 : index
    %c0_14 = arith.constant 0 : index
    %12 = vector.load %arg6[%c0_13, %c0_14] : memref<1x32xf32, #tpu.memory_space<vmem>>, vector<1x32xf32>
    %c0_15 = arith.constant 0 : index
    %c0_16 = arith.constant 0 : index
    %13 = vector.load %arg7[%c0_15, %c0_16] : memref<32x32xbf16, #tpu.memory_space<vmem>>, vector<32x32xbf16>
    %c0_17 = arith.constant 0 : index
    %c0_18 = arith.constant 0 : index
    %14 = vector.load %arg8[%c0_17, %c0_18] : memref<1x32xf32, #tpu.memory_space<vmem>>, vector<1x32xf32>
    %c0_19 = arith.constant 0 : index
    %c0_20 = arith.constant 0 : index
    %15 = vector.load %arg9[%c0_19, %c0_20] : memref<32x32xbf16, #tpu.memory_space<vmem>>, vector<32x32xbf16>
    %c0_21 = arith.constant 0 : index
    %c0_22 = arith.constant 0 : index
    %16 = vector.load %arg10[%c0_21, %c0_22] : memref<1x32xf32, #tpu.memory_space<vmem>>, vector<1x32xf32>
    %c0_23 = arith.constant 0 : index
    %c0_24 = arith.constant 0 : index
    %17 = vector.load %arg11[%c0_23, %c0_24] : memref<32x32xbf16, #tpu.memory_space<vmem>>, vector<32x32xbf16>
    %c0_25 = arith.constant 0 : index
    %c0_26 = arith.constant 0 : index
    %18 = vector.load %arg12[%c0_25, %c0_26] : memref<1x32xf32, #tpu.memory_space<vmem>>, vector<1x32xf32>
    %c0_27 = arith.constant 0 : index
    %c0_28 = arith.constant 0 : index
    %19 = vector.load %arg13[%c0_27, %c0_28] : memref<32x32xbf16, #tpu.memory_space<vmem>>, vector<32x32xbf16>
    %c0_29 = arith.constant 0 : index
    %c0_30 = arith.constant 0 : index
    %20 = vector.load %arg14[%c0_29, %c0_30] : memref<1x32xf32, #tpu.memory_space<vmem>>, vector<1x32xf32>
    %c0_31 = arith.constant 0 : index
    %c0_32 = arith.constant 0 : index
    %21 = vector.load %arg15[%c0_31, %c0_32] : memref<1x32xf32, #tpu.memory_space<vmem>>, vector<1x32xf32>
    %c0_33 = arith.constant 0 : index
    %c0_34 = arith.constant 0 : index
    %22 = vector.load %arg16[%c0_33, %c0_34] : memref<1x32xf32, #tpu.memory_space<vmem>>, vector<1x32xf32>
    %c0_35 = arith.constant 0 : index
    %c0_36 = arith.constant 0 : index
    %23 = vector.load %arg17[%c0_35, %c0_36] : memref<32x32xbf16, #tpu.memory_space<vmem>>, vector<32x32xbf16>
    %c0_37 = arith.constant 0 : index
    %c0_38 = arith.constant 0 : index
    %24 = vector.load %arg18[%c0_37, %c0_38] : memref<1x32xf32, #tpu.memory_space<vmem>>, vector<1x32xf32>
    %c0_39 = arith.constant 0 : index
    %c0_40 = arith.constant 0 : index
    %25 = vector.load %arg19[%c0_39, %c0_40] : memref<32x32xbf16, #tpu.memory_space<vmem>>, vector<32x32xbf16>
    %c0_41 = arith.constant 0 : index
    %c0_42 = arith.constant 0 : index
    %26 = vector.load %arg20[%c0_41, %c0_42] : memref<1x32xf32, #tpu.memory_space<vmem>>, vector<1x32xf32>
    %c0_43 = arith.constant 0 : index
    %c0_44 = arith.constant 0 : index
    %27 = vector.load %arg21[%c0_43, %c0_44] : memref<32x32xbf16, #tpu.memory_space<vmem>>, vector<32x32xbf16>
    %c0_45 = arith.constant 0 : index
    %c0_46 = arith.constant 0 : index
    %28 = vector.load %arg22[%c0_45, %c0_46] : memref<1x32xf32, #tpu.memory_space<vmem>>, vector<1x32xf32>
    %c0_47 = arith.constant 0 : index
    %c0_48 = arith.constant 0 : index
    %29 = vector.load %arg23[%c0_47, %c0_48] : memref<32x32xbf16, #tpu.memory_space<vmem>>, vector<32x32xbf16>
    %c0_49 = arith.constant 0 : index
    %c0_50 = arith.constant 0 : index
    %30 = vector.load %arg24[%c0_49, %c0_50] : memref<1x32xf32, #tpu.memory_space<vmem>>, vector<1x32xf32>
    %c0_51 = arith.constant 0 : index
    %c0_52 = arith.constant 0 : index
    %31 = vector.load %arg25[%c0_51, %c0_52] : memref<1x32xf32, #tpu.memory_space<vmem>>, vector<1x32xf32>
    %c0_53 = arith.constant 0 : index
    %c0_54 = arith.constant 0 : index
    %32 = vector.load %arg26[%c0_53, %c0_54] : memref<1x32xf32, #tpu.memory_space<vmem>>, vector<1x32xf32>
    %c0_55 = arith.constant 0 : index
    %c0_56 = arith.constant 0 : index
    %33 = vector.load %arg27[%c0_55, %c0_56] : memref<32x2048xbf16, #tpu.memory_space<vmem>>, vector<32x2048xbf16>
    %c0_57 = arith.constant 0 : index
    %c0_58 = arith.constant 0 : index
    %34 = vector.load %arg28[%c0_57, %c0_58] : memref<1x2048xf32, #tpu.memory_space<vmem>>, vector<1x2048xf32>
    %c0_59 = arith.constant 0 : index
    %c0_60 = arith.constant 0 : index
    %35 = vector.load %arg29[%c0_59, %c0_60] : memref<2048x32xbf16, #tpu.memory_space<vmem>>, vector<2048x32xbf16>
    %c0_61 = arith.constant 0 : index
    %c0_62 = arith.constant 0 : index
    %36 = vector.load %arg30[%c0_61, %c0_62] : memref<1x32xf32, #tpu.memory_space<vmem>>, vector<1x32xf32>
    %cst_63 = arith.constant dense<0.000000e+00> : vector<16xf32>
    %37 = vector.multi_reduction <add>, %8, %cst_63 [1] : vector<16x32xf32> to vector<16xf32>
    %38 = vector.shape_cast %37 : vector<16xf32> to vector<16x1xf32>
    %cst_64 = arith.constant 3.200000e+01 : f32
    %39 = vector.broadcast %cst_64 : f32 to vector<16x1xf32>
    %40 = arith.divf %38, %39 : vector<16x1xf32>
    %41 = vector.broadcast %40 : vector<16x1xf32> to vector<16x32xf32>
    %42 = arith.subf %8, %41 : vector<16x32xf32>
    %43 = arith.mulf %42, %42 : vector<16x32xf32>
    %cst_65 = arith.constant dense<0.000000e+00> : vector<16xf32>
    %44 = vector.multi_reduction <add>, %43, %cst_65 [1] : vector<16x32xf32> to vector<16xf32>
    %45 = vector.shape_cast %44 : vector<16xf32> to vector<16x1xf32>
    %cst_66 = arith.constant 3.200000e+01 : f32
    %46 = vector.broadcast %cst_66 : f32 to vector<16x1xf32>
    %47 = arith.divf %45, %46 : vector<16x1xf32>
    %48 = vector.broadcast %40 : vector<16x1xf32> to vector<16x32xf32>
    %49 = arith.subf %8, %48 : vector<16x32xf32>
    %cst_67 = arith.constant 9.99999974E-6 : f32
    %50 = vector.broadcast %cst_67 : f32 to vector<16x1xf32>
    %51 = arith.addf %47, %50 : vector<16x1xf32>
    %52 = math.rsqrt %51 : vector<16x1xf32>
    %53 = vector.broadcast %52 : vector<16x1xf32> to vector<16x32xf32>
    %54 = arith.mulf %49, %53 : vector<16x32xf32>
    %55 = vector.broadcast %11 : vector<1x32xf32> to vector<16x32xf32>
    %56 = arith.mulf %54, %55 : vector<16x32xf32>
    %57 = vector.broadcast %12 : vector<1x32xf32> to vector<16x32xf32>
    %58 = arith.addf %56, %57 : vector<16x32xf32>
    %59 = arith.truncf %58 : vector<16x32xf32> to vector<16x32xbf16>
    %cst_68 = arith.constant dense<0.000000e+00> : vector<16x32xf32>
    %60 = tpu.matmul %59, %13, %cst_68 {dimension_numbers = #tpu.dot_dimension_numbers<[1], [0], [0], [1], [0, 0, 1, 1], [], []>} : vector<16x32xbf16>, vector<32x32xbf16>, vector<16x32xf32> -> vector<16x32xf32>
    %61 = vector.broadcast %14 : vector<1x32xf32> to vector<16x32xf32>
    %62 = arith.addf %60, %61 : vector<16x32xf32>
    %63 = arith.truncf %58 : vector<16x32xf32> to vector<16x32xbf16>
    %cst_69 = arith.constant dense<0.000000e+00> : vector<16x32xf32>
    %64 = tpu.matmul %63, %15, %cst_69 {dimension_numbers = #tpu.dot_dimension_numbers<[1], [0], [0], [1], [0, 0, 1, 1], [], []>} : vector<16x32xbf16>, vector<32x32xbf16>, vector<16x32xf32> -> vector<16x32xf32>
    %65 = vector.broadcast %16 : vector<1x32xf32> to vector<16x32xf32>
    %66 = arith.addf %64, %65 : vector<16x32xf32>
    %67 = arith.truncf %58 : vector<16x32xf32> to vector<16x32xbf16>
    %cst_70 = arith.constant dense<0.000000e+00> : vector<16x32xf32>
    %68 = tpu.matmul %67, %17, %cst_70 {dimension_numbers = #tpu.dot_dimension_numbers<[1], [0], [0], [1], [0, 0, 1, 1], [], []>} : vector<16x32xbf16>, vector<32x32xbf16>, vector<16x32xf32> -> vector<16x32xf32>
    %69 = vector.broadcast %18 : vector<1x32xf32> to vector<16x32xf32>
    %70 = arith.addf %68, %69 : vector<16x32xf32>
    %71 = arith.truncf %62 : vector<16x32xf32> to vector<16x32xbf16>
    %72 = vector.shape_cast %71 : vector<16x32xbf16> to vector<1x16x32xbf16>
    %73 = vector.broadcast %72 : vector<1x16x32xbf16> to vector<4x16x32xbf16>
    %74 = vector.broadcast %1 : vector<4x1x32xbf16> to vector<4x16x32xbf16>
    %75 = arith.mulf %73, %74 : vector<4x16x32xbf16>
    %76 = arith.truncf %66 : vector<16x32xf32> to vector<16x32xbf16>
    %77 = vector.shape_cast %76 : vector<16x32xbf16> to vector<1x16x32xbf16>
    %78 = vector.shape_cast %77 : vector<1x16x32xbf16> to vector<1x16x32xbf16>
    %79 = vector.broadcast %78 : vector<1x16x32xbf16> to vector<4x16x32xbf16>
    %80 = arith.truncf %70 : vector<16x32xf32> to vector<16x32xbf16>
    %81 = vector.shape_cast %80 : vector<16x32xbf16> to vector<1x16x32xbf16>
    %82 = vector.shape_cast %81 : vector<1x16x32xbf16> to vector<1x16x32xbf16>
    %83 = vector.broadcast %82 : vector<1x16x32xbf16> to vector<4x16x32xbf16>
    "tpu.trace_start"() <{level = 10 : i32, message = "hqd,hkd->hqk"}> : () -> ()
    %cst_71 = arith.constant dense<0.000000e+00> : vector<4x16x16xf32>
    %84 = tpu.matmul %75, %79, %cst_71 {dimension_numbers = #tpu.dot_dimension_numbers<[2], [2], [1], [1], [0, 0, 0, 1, 1, 1], [0], [0]>} : vector<4x16x32xbf16>, vector<4x16x32xbf16>, vector<4x16x16xf32> -> vector<4x16x16xf32>
    "tpu.trace_stop"() : () -> ()
    %cst_72 = arith.constant 0.353553385 : f32
    %85 = vector.broadcast %cst_72 : f32 to vector<4x16x16xf32>
    %86 = arith.mulf %84, %85 : vector<4x16x16xf32>
    %87 = vector.shape_cast %4 : vector<16x16xi1> to vector<1x16x16xi1>
    %cst_73 = arith.constant 0xFF800000 : f32
    %88 = vector.shape_cast %87 : vector<1x16x16xi1> to vector<1x16x16xi1>
    %89 = vector.broadcast %88 : vector<1x16x16xi1> to vector<4x16x16xi1>
    %90 = vector.broadcast %cst_73 : f32 to vector<4x16x16xf32>
    %91 = arith.select %89, %86, %90 : vector<4x16x16xi1>, vector<4x16x16xf32>
    %cst_74 = arith.constant dense<0xFF800000> : vector<4x16xf32>
    %92 = vector.multi_reduction <maximumf>, %91, %cst_74 [2] : vector<4x16x16xf32> to vector<4x16xf32>
    %93 = vector.shape_cast %92 : vector<4x16xf32> to vector<4x16x1xf32>
    %94 = vector.broadcast %93 : vector<4x16x1xf32> to vector<4x16x16xf32>
    %95 = arith.subf %91, %94 : vector<4x16x16xf32>
    %96 = math.exp %95 : vector<4x16x16xf32>
    %cst_75 = arith.constant dense<0.000000e+00> : vector<4x16xf32>
    %97 = vector.multi_reduction <add>, %96, %cst_75 [2] : vector<4x16x16xf32> to vector<4x16xf32>
    %98 = vector.shape_cast %97 : vector<4x16xf32> to vector<4x16x1xf32>
    %99 = arith.truncf %96 : vector<4x16x16xf32> to vector<4x16x16xbf16>
    "tpu.trace_start"() <{level = 10 : i32, message = "hqk,hkd->hqd"}> : () -> ()
    %cst_76 = arith.constant dense<0.000000e+00> : vector<4x16x32xf32>
    %100 = tpu.matmul %99, %83, %cst_76 {dimension_numbers = #tpu.dot_dimension_numbers<[2], [1], [1], [2], [0, 0, 0, 1, 1, 2], [0], [0]>} : vector<4x16x16xbf16>, vector<4x16x32xbf16>, vector<4x16x32xf32> -> vector<4x16x32xf32>
    "tpu.trace_stop"() : () -> ()
    %101 = tpu.reciprocal %98 {approx = true} : vector<4x16x1xf32> -> vector<4x16x1xf32>
    %102 = vector.broadcast %101 : vector<4x16x1xf32> to vector<4x16x32xf32>
    %103 = arith.mulf %100, %102 : vector<4x16x32xf32>
    %104 = vector.broadcast %0 : vector<4x1x32xf32> to vector<4x16x32xf32>
    %105 = arith.mulf %103, %104 : vector<4x16x32xf32>
    %cst_77 = arith.constant dense<0.000000e+00> : vector<16x32xf32>
    %106 = vector.multi_reduction <add>, %105, %cst_77 [0] : vector<4x16x32xf32> to vector<16x32xf32>
    %107 = arith.truncf %106 : vector<16x32xf32> to vector<16x32xbf16>
    %cst_78 = arith.constant dense<0.000000e+00> : vector<16x32xf32>
    %108 = tpu.matmul %107, %19, %cst_78 {dimension_numbers = #tpu.dot_dimension_numbers<[1], [0], [0], [1], [0, 0, 1, 1], [], []>} : vector<16x32xbf16>, vector<32x32xbf16>, vector<16x32xf32> -> vector<16x32xf32>
    %109 = vector.broadcast %20 : vector<1x32xf32> to vector<16x32xf32>
    %110 = arith.addf %108, %109 : vector<16x32xf32>
    %111 = arith.addf %8, %110 : vector<16x32xf32>
    %cst_79 = arith.constant dense<0.000000e+00> : vector<16xf32>
    %112 = vector.multi_reduction <add>, %111, %cst_79 [1] : vector<16x32xf32> to vector<16xf32>
    %113 = vector.shape_cast %112 : vector<16xf32> to vector<16x1xf32>
    %cst_80 = arith.constant 3.200000e+01 : f32
    %114 = vector.broadcast %cst_80 : f32 to vector<16x1xf32>
    %115 = arith.divf %113, %114 : vector<16x1xf32>
    %116 = vector.broadcast %115 : vector<16x1xf32> to vector<16x32xf32>
    %117 = arith.subf %111, %116 : vector<16x32xf32>
    %118 = arith.mulf %117, %117 : vector<16x32xf32>
    %cst_81 = arith.constant dense<0.000000e+00> : vector<16xf32>
    %119 = vector.multi_reduction <add>, %118, %cst_81 [1] : vector<16x32xf32> to vector<16xf32>
    %120 = vector.shape_cast %119 : vector<16xf32> to vector<16x1xf32>
    %cst_82 = arith.constant 3.200000e+01 : f32
    %121 = vector.broadcast %cst_82 : f32 to vector<16x1xf32>
    %122 = arith.divf %120, %121 : vector<16x1xf32>
    %123 = vector.broadcast %115 : vector<16x1xf32> to vector<16x32xf32>
    %124 = arith.subf %111, %123 : vector<16x32xf32>
    %cst_83 = arith.constant 9.99999974E-6 : f32
    %125 = vector.broadcast %cst_83 : f32 to vector<16x1xf32>
    %126 = arith.addf %122, %125 : vector<16x1xf32>
    %127 = math.rsqrt %126 : vector<16x1xf32>
    %128 = vector.broadcast %127 : vector<16x1xf32> to vector<16x32xf32>
    %129 = arith.mulf %124, %128 : vector<16x32xf32>
    %130 = vector.broadcast %21 : vector<1x32xf32> to vector<16x32xf32>
    %131 = arith.mulf %129, %130 : vector<16x32xf32>
    %132 = vector.broadcast %22 : vector<1x32xf32> to vector<16x32xf32>
    %133 = arith.addf %131, %132 : vector<16x32xf32>
    %134 = arith.truncf %133 : vector<16x32xf32> to vector<16x32xbf16>
    %cst_84 = arith.constant dense<0.000000e+00> : vector<16x32xf32>
    %135 = tpu.matmul %134, %23, %cst_84 {dimension_numbers = #tpu.dot_dimension_numbers<[1], [0], [0], [1], [0, 0, 1, 1], [], []>} : vector<16x32xbf16>, vector<32x32xbf16>, vector<16x32xf32> -> vector<16x32xf32>
    %136 = vector.broadcast %24 : vector<1x32xf32> to vector<16x32xf32>
    %137 = arith.addf %135, %136 : vector<16x32xf32>
    %cst_85 = arith.constant dense<0.000000e+00> : vector<16x32xf32>
    %138 = tpu.matmul %10, %25, %cst_85 {dimension_numbers = #tpu.dot_dimension_numbers<[1], [0], [0], [1], [0, 0, 1, 1], [], []>} : vector<16x32xbf16>, vector<32x32xbf16>, vector<16x32xf32> -> vector<16x32xf32>
    %139 = vector.broadcast %26 : vector<1x32xf32> to vector<16x32xf32>
    %140 = arith.addf %138, %139 : vector<16x32xf32>
    %cst_86 = arith.constant dense<0.000000e+00> : vector<16x32xf32>
    %141 = tpu.matmul %10, %27, %cst_86 {dimension_numbers = #tpu.dot_dimension_numbers<[1], [0], [0], [1], [0, 0, 1, 1], [], []>} : vector<16x32xbf16>, vector<32x32xbf16>, vector<16x32xf32> -> vector<16x32xf32>
    %142 = vector.broadcast %28 : vector<1x32xf32> to vector<16x32xf32>
    %143 = arith.addf %141, %142 : vector<16x32xf32>
    %144 = arith.truncf %137 : vector<16x32xf32> to vector<16x32xbf16>
    %145 = vector.shape_cast %144 : vector<16x32xbf16> to vector<1x16x32xbf16>
    %146 = vector.broadcast %145 : vector<1x16x32xbf16> to vector<4x16x32xbf16>
    %147 = vector.broadcast %1 : vector<4x1x32xbf16> to vector<4x16x32xbf16>
    %148 = arith.mulf %146, %147 : vector<4x16x32xbf16>
    %149 = arith.truncf %140 : vector<16x32xf32> to vector<16x32xbf16>
    %150 = vector.shape_cast %149 : vector<16x32xbf16> to vector<1x16x32xbf16>
    %151 = vector.shape_cast %150 : vector<1x16x32xbf16> to vector<1x16x32xbf16>
    %152 = vector.broadcast %151 : vector<1x16x32xbf16> to vector<4x16x32xbf16>
    %153 = arith.truncf %143 : vector<16x32xf32> to vector<16x32xbf16>
    %154 = vector.shape_cast %153 : vector<16x32xbf16> to vector<1x16x32xbf16>
    %155 = vector.shape_cast %154 : vector<1x16x32xbf16> to vector<1x16x32xbf16>
    %156 = vector.broadcast %155 : vector<1x16x32xbf16> to vector<4x16x32xbf16>
    "tpu.trace_start"() <{level = 10 : i32, message = "hqd,hkd->hqk"}> : () -> ()
    %cst_87 = arith.constant dense<0.000000e+00> : vector<4x16x16xf32>
    %157 = tpu.matmul %148, %152, %cst_87 {dimension_numbers = #tpu.dot_dimension_numbers<[2], [2], [1], [1], [0, 0, 0, 1, 1, 1], [0], [0]>} : vector<4x16x32xbf16>, vector<4x16x32xbf16>, vector<4x16x16xf32> -> vector<4x16x16xf32>
    "tpu.trace_stop"() : () -> ()
    %cst_88 = arith.constant 0.353553385 : f32
    %158 = vector.broadcast %cst_88 : f32 to vector<4x16x16xf32>
    %159 = arith.mulf %157, %158 : vector<4x16x16xf32>
    %160 = vector.shape_cast %7 : vector<16x16xi1> to vector<1x16x16xi1>
    %cst_89 = arith.constant 0xFF800000 : f32
    %161 = vector.shape_cast %160 : vector<1x16x16xi1> to vector<1x16x16xi1>
    %162 = vector.broadcast %161 : vector<1x16x16xi1> to vector<4x16x16xi1>
    %163 = vector.broadcast %cst_89 : f32 to vector<4x16x16xf32>
    %164 = arith.select %162, %159, %163 : vector<4x16x16xi1>, vector<4x16x16xf32>
    %cst_90 = arith.constant dense<0xFF800000> : vector<4x16xf32>
    %165 = vector.multi_reduction <maximumf>, %164, %cst_90 [2] : vector<4x16x16xf32> to vector<4x16xf32>
    %166 = vector.shape_cast %165 : vector<4x16xf32> to vector<4x16x1xf32>
    %167 = vector.broadcast %166 : vector<4x16x1xf32> to vector<4x16x16xf32>
    %168 = arith.subf %164, %167 : vector<4x16x16xf32>
    %169 = math.exp %168 : vector<4x16x16xf32>
    %cst_91 = arith.constant dense<0.000000e+00> : vector<4x16xf32>
    %170 = vector.multi_reduction <add>, %169, %cst_91 [2] : vector<4x16x16xf32> to vector<4x16xf32>
    %171 = vector.shape_cast %170 : vector<4x16xf32> to vector<4x16x1xf32>
    %172 = arith.truncf %169 : vector<4x16x16xf32> to vector<4x16x16xbf16>
    "tpu.trace_start"() <{level = 10 : i32, message = "hqk,hkd->hqd"}> : () -> ()
    %cst_92 = arith.constant dense<0.000000e+00> : vector<4x16x32xf32>
    %173 = tpu.matmul %172, %156, %cst_92 {dimension_numbers = #tpu.dot_dimension_numbers<[2], [1], [1], [2], [0, 0, 0, 1, 1, 2], [0], [0]>} : vector<4x16x16xbf16>, vector<4x16x32xbf16>, vector<4x16x32xf32> -> vector<4x16x32xf32>
    "tpu.trace_stop"() : () -> ()
    %174 = tpu.reciprocal %171 {approx = true} : vector<4x16x1xf32> -> vector<4x16x1xf32>
    %175 = vector.broadcast %174 : vector<4x16x1xf32> to vector<4x16x32xf32>
    %176 = arith.mulf %173, %175 : vector<4x16x32xf32>
    %177 = vector.broadcast %0 : vector<4x1x32xf32> to vector<4x16x32xf32>
    %178 = arith.mulf %176, %177 : vector<4x16x32xf32>
    %cst_93 = arith.constant dense<0.000000e+00> : vector<16x32xf32>
    %179 = vector.multi_reduction <add>, %178, %cst_93 [0] : vector<4x16x32xf32> to vector<16x32xf32>
    %180 = arith.truncf %179 : vector<16x32xf32> to vector<16x32xbf16>
    %cst_94 = arith.constant dense<0.000000e+00> : vector<16x32xf32>
    %181 = tpu.matmul %180, %29, %cst_94 {dimension_numbers = #tpu.dot_dimension_numbers<[1], [0], [0], [1], [0, 0, 1, 1], [], []>} : vector<16x32xbf16>, vector<32x32xbf16>, vector<16x32xf32> -> vector<16x32xf32>
    %182 = vector.broadcast %30 : vector<1x32xf32> to vector<16x32xf32>
    %183 = arith.addf %181, %182 : vector<16x32xf32>
    %184 = arith.addf %111, %183 : vector<16x32xf32>
    %cst_95 = arith.constant dense<0.000000e+00> : vector<16xf32>
    %185 = vector.multi_reduction <add>, %184, %cst_95 [1] : vector<16x32xf32> to vector<16xf32>
    %186 = vector.shape_cast %185 : vector<16xf32> to vector<16x1xf32>
    %cst_96 = arith.constant 3.200000e+01 : f32
    %187 = vector.broadcast %cst_96 : f32 to vector<16x1xf32>
    %188 = arith.divf %186, %187 : vector<16x1xf32>
    %189 = vector.broadcast %188 : vector<16x1xf32> to vector<16x32xf32>
    %190 = arith.subf %184, %189 : vector<16x32xf32>
    %191 = arith.mulf %190, %190 : vector<16x32xf32>
    %cst_97 = arith.constant dense<0.000000e+00> : vector<16xf32>
    %192 = vector.multi_reduction <add>, %191, %cst_97 [1] : vector<16x32xf32> to vector<16xf32>
    %193 = vector.shape_cast %192 : vector<16xf32> to vector<16x1xf32>
    %cst_98 = arith.constant 3.200000e+01 : f32
    %194 = vector.broadcast %cst_98 : f32 to vector<16x1xf32>
    %195 = arith.divf %193, %194 : vector<16x1xf32>
    %196 = vector.broadcast %188 : vector<16x1xf32> to vector<16x32xf32>
    %197 = arith.subf %184, %196 : vector<16x32xf32>
    %cst_99 = arith.constant 9.99999974E-6 : f32
    %198 = vector.broadcast %cst_99 : f32 to vector<16x1xf32>
    %199 = arith.addf %195, %198 : vector<16x1xf32>
    %200 = math.rsqrt %199 : vector<16x1xf32>
    %201 = vector.broadcast %200 : vector<16x1xf32> to vector<16x32xf32>
    %202 = arith.mulf %197, %201 : vector<16x32xf32>
    %203 = vector.broadcast %31 : vector<1x32xf32> to vector<16x32xf32>
    %204 = arith.mulf %202, %203 : vector<16x32xf32>
    %205 = vector.broadcast %32 : vector<1x32xf32> to vector<16x32xf32>
    %206 = arith.addf %204, %205 : vector<16x32xf32>
    %207 = arith.truncf %206 : vector<16x32xf32> to vector<16x32xbf16>
    %cst_100 = arith.constant dense<0.000000e+00> : vector<16x2048xf32>
    %208 = tpu.matmul %207, %33, %cst_100 {dimension_numbers = #tpu.dot_dimension_numbers<[1], [0], [0], [1], [0, 0, 1, 1], [], []>} : vector<16x32xbf16>, vector<32x2048xbf16>, vector<16x2048xf32> -> vector<16x2048xf32>
    %209 = vector.broadcast %34 : vector<1x2048xf32> to vector<16x2048xf32>
    %210 = arith.addf %208, %209 : vector<16x2048xf32>
    %cst_101 = arith.constant 2.000000e+01 : f32
    %211 = vector.broadcast %cst_101 : f32 to vector<16x2048xf32>
    %212 = arith.minimumf %210, %211 : vector<16x2048xf32>
    %213 = math.exp %212 : vector<16x2048xf32>
    %cst_102 = arith.constant 2.000000e+00 : f32
    %214 = vector.broadcast %cst_102 : f32 to vector<16x2048xf32>
    %215 = arith.addf %213, %214 : vector<16x2048xf32>
    %216 = arith.mulf %213, %215 : vector<16x2048xf32>
    %217 = arith.mulf %210, %216 : vector<16x2048xf32>
    %cst_103 = arith.constant 2.000000e+00 : f32
    %218 = vector.broadcast %cst_103 : f32 to vector<16x2048xf32>
    %219 = arith.addf %216, %218 : vector<16x2048xf32>
    %220 = tpu.reciprocal %219 {approx = true} : vector<16x2048xf32> -> vector<16x2048xf32>
    %221 = arith.mulf %217, %220 : vector<16x2048xf32>
    %222 = arith.truncf %221 : vector<16x2048xf32> to vector<16x2048xbf16>
    %cst_104 = arith.constant dense<0.000000e+00> : vector<16x32xf32>
    %223 = tpu.matmul %222, %35, %cst_104 {dimension_numbers = #tpu.dot_dimension_numbers<[1], [0], [0], [1], [0, 0, 1, 1], [], []>} : vector<16x2048xbf16>, vector<2048x32xbf16>, vector<16x32xf32> -> vector<16x32xf32>
    %224 = vector.broadcast %36 : vector<1x32xf32> to vector<16x32xf32>
    %225 = arith.addf %223, %224 : vector<16x32xf32>
    %226 = arith.addf %184, %225 : vector<16x32xf32>
    %c0_105 = arith.constant 0 : index
    %c0_106 = arith.constant 0 : index
    %227 = vector.load %arg31[%c0_105, %c0_106] : memref<1x32xf32, #tpu.memory_space<vmem>>, vector<1x32xf32>
    %c0_107 = arith.constant 0 : index
    %c0_108 = arith.constant 0 : index
    %228 = vector.load %arg32[%c0_107, %c0_108] : memref<1x32xf32, #tpu.memory_space<vmem>>, vector<1x32xf32>
    %c0_109 = arith.constant 0 : index
    %c0_110 = arith.constant 0 : index
    %229 = vector.load %arg33[%c0_109, %c0_110] : memref<32x32xbf16, #tpu.memory_space<vmem>>, vector<32x32xbf16>
    %c0_111 = arith.constant 0 : index
    %c0_112 = arith.constant 0 : index
    %230 = vector.load %arg34[%c0_111, %c0_112] : memref<1x32xf32, #tpu.memory_space<vmem>>, vector<1x32xf32>
    %c0_113 = arith.constant 0 : index
    %c0_114 = arith.constant 0 : index
    %231 = vector.load %arg35[%c0_113, %c0_114] : memref<32x32xbf16, #tpu.memory_space<vmem>>, vector<32x32xbf16>
    %c0_115 = arith.constant 0 : index
    %c0_116 = arith.constant 0 : index
    %232 = vector.load %arg36[%c0_115, %c0_116] : memref<1x32xf32, #tpu.memory_space<vmem>>, vector<1x32xf32>
    %c0_117 = arith.constant 0 : index
    %c0_118 = arith.constant 0 : index
    %233 = vector.load %arg37[%c0_117, %c0_118] : memref<32x32xbf16, #tpu.memory_space<vmem>>, vector<32x32xbf16>
    %c0_119 = arith.constant 0 : index
    %c0_120 = arith.constant 0 : index
    %234 = vector.load %arg38[%c0_119, %c0_120] : memref<1x32xf32, #tpu.memory_space<vmem>>, vector<1x32xf32>
    %c0_121 = arith.constant 0 : index
    %c0_122 = arith.constant 0 : index
    %235 = vector.load %arg39[%c0_121, %c0_122] : memref<32x32xbf16, #tpu.memory_space<vmem>>, vector<32x32xbf16>
    %c0_123 = arith.constant 0 : index
    %c0_124 = arith.constant 0 : index
    %236 = vector.load %arg40[%c0_123, %c0_124] : memref<1x32xf32, #tpu.memory_space<vmem>>, vector<1x32xf32>
    %c0_125 = arith.constant 0 : index
    %c0_126 = arith.constant 0 : index
    %237 = vector.load %arg41[%c0_125, %c0_126] : memref<1x32xf32, #tpu.memory_space<vmem>>, vector<1x32xf32>
    %c0_127 = arith.constant 0 : index
    %c0_128 = arith.constant 0 : index
    %238 = vector.load %arg42[%c0_127, %c0_128] : memref<1x32xf32, #tpu.memory_space<vmem>>, vector<1x32xf32>
    %c0_129 = arith.constant 0 : index
    %c0_130 = arith.constant 0 : index
    %239 = vector.load %arg43[%c0_129, %c0_130] : memref<32x32xbf16, #tpu.memory_space<vmem>>, vector<32x32xbf16>
    %c0_131 = arith.constant 0 : index
    %c0_132 = arith.constant 0 : index
    %240 = vector.load %arg44[%c0_131, %c0_132] : memref<1x32xf32, #tpu.memory_space<vmem>>, vector<1x32xf32>
    %c0_133 = arith.constant 0 : index
    %c0_134 = arith.constant 0 : index
    %241 = vector.load %arg45[%c0_133, %c0_134] : memref<32x32xbf16, #tpu.memory_space<vmem>>, vector<32x32xbf16>
    %c0_135 = arith.constant 0 : index
    %c0_136 = arith.constant 0 : index
    %242 = vector.load %arg46[%c0_135, %c0_136] : memref<1x32xf32, #tpu.memory_space<vmem>>, vector<1x32xf32>
    %c0_137 = arith.constant 0 : index
    %c0_138 = arith.constant 0 : index
    %243 = vector.load %arg47[%c0_137, %c0_138] : memref<32x32xbf16, #tpu.memory_space<vmem>>, vector<32x32xbf16>
    %c0_139 = arith.constant 0 : index
    %c0_140 = arith.constant 0 : index
    %244 = vector.load %arg48[%c0_139, %c0_140] : memref<1x32xf32, #tpu.memory_space<vmem>>, vector<1x32xf32>
    %c0_141 = arith.constant 0 : index
    %c0_142 = arith.constant 0 : index
    %245 = vector.load %arg49[%c0_141, %c0_142] : memref<32x32xbf16, #tpu.memory_space<vmem>>, vector<32x32xbf16>
    %c0_143 = arith.constant 0 : index
    %c0_144 = arith.constant 0 : index
    %246 = vector.load %arg50[%c0_143, %c0_144] : memref<1x32xf32, #tpu.memory_space<vmem>>, vector<1x32xf32>
    %c0_145 = arith.constant 0 : index
    %c0_146 = arith.constant 0 : index
    %247 = vector.load %arg51[%c0_145, %c0_146] : memref<1x32xf32, #tpu.memory_space<vmem>>, vector<1x32xf32>
    %c0_147 = arith.constant 0 : index
    %c0_148 = arith.constant 0 : index
    %248 = vector.load %arg52[%c0_147, %c0_148] : memref<1x32xf32, #tpu.memory_space<vmem>>, vector<1x32xf32>
    %c0_149 = arith.constant 0 : index
    %c0_150 = arith.constant 0 : index
    %249 = vector.load %arg53[%c0_149, %c0_150] : memref<32x2048xbf16, #tpu.memory_space<vmem>>, vector<32x2048xbf16>
    %c0_151 = arith.constant 0 : index
    %c0_152 = arith.constant 0 : index
    %250 = vector.load %arg54[%c0_151, %c0_152] : memref<1x2048xf32, #tpu.memory_space<vmem>>, vector<1x2048xf32>
    %c0_153 = arith.constant 0 : index
    %c0_154 = arith.constant 0 : index
    %251 = vector.load %arg55[%c0_153, %c0_154] : memref<2048x32xbf16, #tpu.memory_space<vmem>>, vector<2048x32xbf16>
    %c0_155 = arith.constant 0 : index
    %c0_156 = arith.constant 0 : index
    %252 = vector.load %arg56[%c0_155, %c0_156] : memref<1x32xf32, #tpu.memory_space<vmem>>, vector<1x32xf32>
    %cst_157 = arith.constant dense<0.000000e+00> : vector<16xf32>
    %253 = vector.multi_reduction <add>, %226, %cst_157 [1] : vector<16x32xf32> to vector<16xf32>
    %254 = vector.shape_cast %253 : vector<16xf32> to vector<16x1xf32>
    %cst_158 = arith.constant 3.200000e+01 : f32
    %255 = vector.broadcast %cst_158 : f32 to vector<16x1xf32>
    %256 = arith.divf %254, %255 : vector<16x1xf32>
    %257 = vector.broadcast %256 : vector<16x1xf32> to vector<16x32xf32>
    %258 = arith.subf %226, %257 : vector<16x32xf32>
    %259 = arith.mulf %258, %258 : vector<16x32xf32>
    %cst_159 = arith.constant dense<0.000000e+00> : vector<16xf32>
    %260 = vector.multi_reduction <add>, %259, %cst_159 [1] : vector<16x32xf32> to vector<16xf32>
    %261 = vector.shape_cast %260 : vector<16xf32> to vector<16x1xf32>
    %cst_160 = arith.constant 3.200000e+01 : f32
    %262 = vector.broadcast %cst_160 : f32 to vector<16x1xf32>
    %263 = arith.divf %261, %262 : vector<16x1xf32>
    %264 = vector.broadcast %256 : vector<16x1xf32> to vector<16x32xf32>
    %265 = arith.subf %226, %264 : vector<16x32xf32>
    %cst_161 = arith.constant 9.99999974E-6 : f32
    %266 = vector.broadcast %cst_161 : f32 to vector<16x1xf32>
    %267 = arith.addf %263, %266 : vector<16x1xf32>
    %268 = math.rsqrt %267 : vector<16x1xf32>
    %269 = vector.broadcast %268 : vector<16x1xf32> to vector<16x32xf32>
    %270 = arith.mulf %265, %269 : vector<16x32xf32>
    %271 = vector.broadcast %227 : vector<1x32xf32> to vector<16x32xf32>
    %272 = arith.mulf %270, %271 : vector<16x32xf32>
    %273 = vector.broadcast %228 : vector<1x32xf32> to vector<16x32xf32>
    %274 = arith.addf %272, %273 : vector<16x32xf32>
    %275 = arith.truncf %274 : vector<16x32xf32> to vector<16x32xbf16>
    %cst_162 = arith.constant dense<0.000000e+00> : vector<16x32xf32>
    %276 = tpu.matmul %275, %229, %cst_162 {dimension_numbers = #tpu.dot_dimension_numbers<[1], [0], [0], [1], [0, 0, 1, 1], [], []>} : vector<16x32xbf16>, vector<32x32xbf16>, vector<16x32xf32> -> vector<16x32xf32>
    %277 = vector.broadcast %230 : vector<1x32xf32> to vector<16x32xf32>
    %278 = arith.addf %276, %277 : vector<16x32xf32>
    %279 = arith.truncf %274 : vector<16x32xf32> to vector<16x32xbf16>
    %cst_163 = arith.constant dense<0.000000e+00> : vector<16x32xf32>
    %280 = tpu.matmul %279, %231, %cst_163 {dimension_numbers = #tpu.dot_dimension_numbers<[1], [0], [0], [1], [0, 0, 1, 1], [], []>} : vector<16x32xbf16>, vector<32x32xbf16>, vector<16x32xf32> -> vector<16x32xf32>
    %281 = vector.broadcast %232 : vector<1x32xf32> to vector<16x32xf32>
    %282 = arith.addf %280, %281 : vector<16x32xf32>
    %283 = arith.truncf %274 : vector<16x32xf32> to vector<16x32xbf16>
    %cst_164 = arith.constant dense<0.000000e+00> : vector<16x32xf32>
    %284 = tpu.matmul %283, %233, %cst_164 {dimension_numbers = #tpu.dot_dimension_numbers<[1], [0], [0], [1], [0, 0, 1, 1], [], []>} : vector<16x32xbf16>, vector<32x32xbf16>, vector<16x32xf32> -> vector<16x32xf32>
    %285 = vector.broadcast %234 : vector<1x32xf32> to vector<16x32xf32>
    %286 = arith.addf %284, %285 : vector<16x32xf32>
    %287 = arith.truncf %278 : vector<16x32xf32> to vector<16x32xbf16>
    %288 = vector.shape_cast %287 : vector<16x32xbf16> to vector<1x16x32xbf16>
    %289 = vector.broadcast %288 : vector<1x16x32xbf16> to vector<4x16x32xbf16>
    %290 = vector.broadcast %1 : vector<4x1x32xbf16> to vector<4x16x32xbf16>
    %291 = arith.mulf %289, %290 : vector<4x16x32xbf16>
    %292 = arith.truncf %282 : vector<16x32xf32> to vector<16x32xbf16>
    %293 = vector.shape_cast %292 : vector<16x32xbf16> to vector<1x16x32xbf16>
    %294 = vector.shape_cast %293 : vector<1x16x32xbf16> to vector<1x16x32xbf16>
    %295 = vector.broadcast %294 : vector<1x16x32xbf16> to vector<4x16x32xbf16>
    %296 = arith.truncf %286 : vector<16x32xf32> to vector<16x32xbf16>
    %297 = vector.shape_cast %296 : vector<16x32xbf16> to vector<1x16x32xbf16>
    %298 = vector.shape_cast %297 : vector<1x16x32xbf16> to vector<1x16x32xbf16>
    %299 = vector.broadcast %298 : vector<1x16x32xbf16> to vector<4x16x32xbf16>
    "tpu.trace_start"() <{level = 10 : i32, message = "hqd,hkd->hqk"}> : () -> ()
    %cst_165 = arith.constant dense<0.000000e+00> : vector<4x16x16xf32>
    %300 = tpu.matmul %291, %295, %cst_165 {dimension_numbers = #tpu.dot_dimension_numbers<[2], [2], [1], [1], [0, 0, 0, 1, 1, 1], [0], [0]>} : vector<4x16x32xbf16>, vector<4x16x32xbf16>, vector<4x16x16xf32> -> vector<4x16x16xf32>
    "tpu.trace_stop"() : () -> ()
    %cst_166 = arith.constant 0.353553385 : f32
    %301 = vector.broadcast %cst_166 : f32 to vector<4x16x16xf32>
    %302 = arith.mulf %300, %301 : vector<4x16x16xf32>
    %303 = vector.shape_cast %4 : vector<16x16xi1> to vector<1x16x16xi1>
    %cst_167 = arith.constant 0xFF800000 : f32
    %304 = vector.shape_cast %303 : vector<1x16x16xi1> to vector<1x16x16xi1>
    %305 = vector.broadcast %304 : vector<1x16x16xi1> to vector<4x16x16xi1>
    %306 = vector.broadcast %cst_167 : f32 to vector<4x16x16xf32>
    %307 = arith.select %305, %302, %306 : vector<4x16x16xi1>, vector<4x16x16xf32>
    %cst_168 = arith.constant dense<0xFF800000> : vector<4x16xf32>
    %308 = vector.multi_reduction <maximumf>, %307, %cst_168 [2] : vector<4x16x16xf32> to vector<4x16xf32>
    %309 = vector.shape_cast %308 : vector<4x16xf32> to vector<4x16x1xf32>
    %310 = vector.broadcast %309 : vector<4x16x1xf32> to vector<4x16x16xf32>
    %311 = arith.subf %307, %310 : vector<4x16x16xf32>
    %312 = math.exp %311 : vector<4x16x16xf32>
    %cst_169 = arith.constant dense<0.000000e+00> : vector<4x16xf32>
    %313 = vector.multi_reduction <add>, %312, %cst_169 [2] : vector<4x16x16xf32> to vector<4x16xf32>
    %314 = vector.shape_cast %313 : vector<4x16xf32> to vector<4x16x1xf32>
    %315 = arith.truncf %312 : vector<4x16x16xf32> to vector<4x16x16xbf16>
    "tpu.trace_start"() <{level = 10 : i32, message = "hqk,hkd->hqd"}> : () -> ()
    %cst_170 = arith.constant dense<0.000000e+00> : vector<4x16x32xf32>
    %316 = tpu.matmul %315, %299, %cst_170 {dimension_numbers = #tpu.dot_dimension_numbers<[2], [1], [1], [2], [0, 0, 0, 1, 1, 2], [0], [0]>} : vector<4x16x16xbf16>, vector<4x16x32xbf16>, vector<4x16x32xf32> -> vector<4x16x32xf32>
    "tpu.trace_stop"() : () -> ()
    %317 = tpu.reciprocal %314 {approx = true} : vector<4x16x1xf32> -> vector<4x16x1xf32>
    %318 = vector.broadcast %317 : vector<4x16x1xf32> to vector<4x16x32xf32>
    %319 = arith.mulf %316, %318 : vector<4x16x32xf32>
    %320 = vector.broadcast %0 : vector<4x1x32xf32> to vector<4x16x32xf32>
    %321 = arith.mulf %319, %320 : vector<4x16x32xf32>
    %cst_171 = arith.constant dense<0.000000e+00> : vector<16x32xf32>
    %322 = vector.multi_reduction <add>, %321, %cst_171 [0] : vector<4x16x32xf32> to vector<16x32xf32>
    %323 = arith.truncf %322 : vector<16x32xf32> to vector<16x32xbf16>
    %cst_172 = arith.constant dense<0.000000e+00> : vector<16x32xf32>
    %324 = tpu.matmul %323, %235, %cst_172 {dimension_numbers = #tpu.dot_dimension_numbers<[1], [0], [0], [1], [0, 0, 1, 1], [], []>} : vector<16x32xbf16>, vector<32x32xbf16>, vector<16x32xf32> -> vector<16x32xf32>
    %325 = vector.broadcast %236 : vector<1x32xf32> to vector<16x32xf32>
    %326 = arith.addf %324, %325 : vector<16x32xf32>
    %327 = arith.addf %226, %326 : vector<16x32xf32>
    %cst_173 = arith.constant dense<0.000000e+00> : vector<16xf32>
    %328 = vector.multi_reduction <add>, %327, %cst_173 [1] : vector<16x32xf32> to vector<16xf32>
    %329 = vector.shape_cast %328 : vector<16xf32> to vector<16x1xf32>
    %cst_174 = arith.constant 3.200000e+01 : f32
    %330 = vector.broadcast %cst_174 : f32 to vector<16x1xf32>
    %331 = arith.divf %329, %330 : vector<16x1xf32>
    %332 = vector.broadcast %331 : vector<16x1xf32> to vector<16x32xf32>
    %333 = arith.subf %327, %332 : vector<16x32xf32>
    %334 = arith.mulf %333, %333 : vector<16x32xf32>
    %cst_175 = arith.constant dense<0.000000e+00> : vector<16xf32>
    %335 = vector.multi_reduction <add>, %334, %cst_175 [1] : vector<16x32xf32> to vector<16xf32>
    %336 = vector.shape_cast %335 : vector<16xf32> to vector<16x1xf32>
    %cst_176 = arith.constant 3.200000e+01 : f32
    %337 = vector.broadcast %cst_176 : f32 to vector<16x1xf32>
    %338 = arith.divf %336, %337 : vector<16x1xf32>
    %339 = vector.broadcast %331 : vector<16x1xf32> to vector<16x32xf32>
    %340 = arith.subf %327, %339 : vector<16x32xf32>
    %cst_177 = arith.constant 9.99999974E-6 : f32
    %341 = vector.broadcast %cst_177 : f32 to vector<16x1xf32>
    %342 = arith.addf %338, %341 : vector<16x1xf32>
    %343 = math.rsqrt %342 : vector<16x1xf32>
    %344 = vector.broadcast %343 : vector<16x1xf32> to vector<16x32xf32>
    %345 = arith.mulf %340, %344 : vector<16x32xf32>
    %346 = vector.broadcast %237 : vector<1x32xf32> to vector<16x32xf32>
    %347 = arith.mulf %345, %346 : vector<16x32xf32>
    %348 = vector.broadcast %238 : vector<1x32xf32> to vector<16x32xf32>
    %349 = arith.addf %347, %348 : vector<16x32xf32>
    %350 = arith.truncf %349 : vector<16x32xf32> to vector<16x32xbf16>
    %cst_178 = arith.constant dense<0.000000e+00> : vector<16x32xf32>
    %351 = tpu.matmul %350, %239, %cst_178 {dimension_numbers = #tpu.dot_dimension_numbers<[1], [0], [0], [1], [0, 0, 1, 1], [], []>} : vector<16x32xbf16>, vector<32x32xbf16>, vector<16x32xf32> -> vector<16x32xf32>
    %352 = vector.broadcast %240 : vector<1x32xf32> to vector<16x32xf32>
    %353 = arith.addf %351, %352 : vector<16x32xf32>
    %cst_179 = arith.constant dense<0.000000e+00> : vector<16x32xf32>
    %354 = tpu.matmul %10, %241, %cst_179 {dimension_numbers = #tpu.dot_dimension_numbers<[1], [0], [0], [1], [0, 0, 1, 1], [], []>} : vector<16x32xbf16>, vector<32x32xbf16>, vector<16x32xf32> -> vector<16x32xf32>
    %355 = vector.broadcast %242 : vector<1x32xf32> to vector<16x32xf32>
    %356 = arith.addf %354, %355 : vector<16x32xf32>
    %cst_180 = arith.constant dense<0.000000e+00> : vector<16x32xf32>
    %357 = tpu.matmul %10, %243, %cst_180 {dimension_numbers = #tpu.dot_dimension_numbers<[1], [0], [0], [1], [0, 0, 1, 1], [], []>} : vector<16x32xbf16>, vector<32x32xbf16>, vector<16x32xf32> -> vector<16x32xf32>
    %358 = vector.broadcast %244 : vector<1x32xf32> to vector<16x32xf32>
    %359 = arith.addf %357, %358 : vector<16x32xf32>
    %360 = arith.truncf %353 : vector<16x32xf32> to vector<16x32xbf16>
    %361 = vector.shape_cast %360 : vector<16x32xbf16> to vector<1x16x32xbf16>
    %362 = vector.broadcast %361 : vector<1x16x32xbf16> to vector<4x16x32xbf16>
    %363 = vector.broadcast %1 : vector<4x1x32xbf16> to vector<4x16x32xbf16>
    %364 = arith.mulf %362, %363 : vector<4x16x32xbf16>
    %365 = arith.truncf %356 : vector<16x32xf32> to vector<16x32xbf16>
    %366 = vector.shape_cast %365 : vector<16x32xbf16> to vector<1x16x32xbf16>
    %367 = vector.shape_cast %366 : vector<1x16x32xbf16> to vector<1x16x32xbf16>
    %368 = vector.broadcast %367 : vector<1x16x32xbf16> to vector<4x16x32xbf16>
    %369 = arith.truncf %359 : vector<16x32xf32> to vector<16x32xbf16>
    %370 = vector.shape_cast %369 : vector<16x32xbf16> to vector<1x16x32xbf16>
    %371 = vector.shape_cast %370 : vector<1x16x32xbf16> to vector<1x16x32xbf16>
    %372 = vector.broadcast %371 : vector<1x16x32xbf16> to vector<4x16x32xbf16>
    "tpu.trace_start"() <{level = 10 : i32, message = "hqd,hkd->hqk"}> : () -> ()
    %cst_181 = arith.constant dense<0.000000e+00> : vector<4x16x16xf32>
    %373 = tpu.matmul %364, %368, %cst_181 {dimension_numbers = #tpu.dot_dimension_numbers<[2], [2], [1], [1], [0, 0, 0, 1, 1, 1], [0], [0]>} : vector<4x16x32xbf16>, vector<4x16x32xbf16>, vector<4x16x16xf32> -> vector<4x16x16xf32>
    "tpu.trace_stop"() : () -> ()
    %cst_182 = arith.constant 0.353553385 : f32
    %374 = vector.broadcast %cst_182 : f32 to vector<4x16x16xf32>
    %375 = arith.mulf %373, %374 : vector<4x16x16xf32>
    %376 = vector.shape_cast %7 : vector<16x16xi1> to vector<1x16x16xi1>
    %cst_183 = arith.constant 0xFF800000 : f32
    %377 = vector.shape_cast %376 : vector<1x16x16xi1> to vector<1x16x16xi1>
    %378 = vector.broadcast %377 : vector<1x16x16xi1> to vector<4x16x16xi1>
    %379 = vector.broadcast %cst_183 : f32 to vector<4x16x16xf32>
    %380 = arith.select %378, %375, %379 : vector<4x16x16xi1>, vector<4x16x16xf32>
    %cst_184 = arith.constant dense<0xFF800000> : vector<4x16xf32>
    %381 = vector.multi_reduction <maximumf>, %380, %cst_184 [2] : vector<4x16x16xf32> to vector<4x16xf32>
    %382 = vector.shape_cast %381 : vector<4x16xf32> to vector<4x16x1xf32>
    %383 = vector.broadcast %382 : vector<4x16x1xf32> to vector<4x16x16xf32>
    %384 = arith.subf %380, %383 : vector<4x16x16xf32>
    %385 = math.exp %384 : vector<4x16x16xf32>
    %cst_185 = arith.constant dense<0.000000e+00> : vector<4x16xf32>
    %386 = vector.multi_reduction <add>, %385, %cst_185 [2] : vector<4x16x16xf32> to vector<4x16xf32>
    %387 = vector.shape_cast %386 : vector<4x16xf32> to vector<4x16x1xf32>
    %388 = arith.truncf %385 : vector<4x16x16xf32> to vector<4x16x16xbf16>
    "tpu.trace_start"() <{level = 10 : i32, message = "hqk,hkd->hqd"}> : () -> ()
    %cst_186 = arith.constant dense<0.000000e+00> : vector<4x16x32xf32>
    %389 = tpu.matmul %388, %372, %cst_186 {dimension_numbers = #tpu.dot_dimension_numbers<[2], [1], [1], [2], [0, 0, 0, 1, 1, 2], [0], [0]>} : vector<4x16x16xbf16>, vector<4x16x32xbf16>, vector<4x16x32xf32> -> vector<4x16x32xf32>
    "tpu.trace_stop"() : () -> ()
    %390 = tpu.reciprocal %387 {approx = true} : vector<4x16x1xf32> -> vector<4x16x1xf32>
    %391 = vector.broadcast %390 : vector<4x16x1xf32> to vector<4x16x32xf32>
    %392 = arith.mulf %389, %391 : vector<4x16x32xf32>
    %393 = vector.broadcast %0 : vector<4x1x32xf32> to vector<4x16x32xf32>
    %394 = arith.mulf %392, %393 : vector<4x16x32xf32>
    %cst_187 = arith.constant dense<0.000000e+00> : vector<16x32xf32>
    %395 = vector.multi_reduction <add>, %394, %cst_187 [0] : vector<4x16x32xf32> to vector<16x32xf32>
    %396 = arith.truncf %395 : vector<16x32xf32> to vector<16x32xbf16>
    %cst_188 = arith.constant dense<0.000000e+00> : vector<16x32xf32>
    %397 = tpu.matmul %396, %245, %cst_188 {dimension_numbers = #tpu.dot_dimension_numbers<[1], [0], [0], [1], [0, 0, 1, 1], [], []>} : vector<16x32xbf16>, vector<32x32xbf16>, vector<16x32xf32> -> vector<16x32xf32>
    %398 = vector.broadcast %246 : vector<1x32xf32> to vector<16x32xf32>
    %399 = arith.addf %397, %398 : vector<16x32xf32>
    %400 = arith.addf %327, %399 : vector<16x32xf32>
    %cst_189 = arith.constant dense<0.000000e+00> : vector<16xf32>
    %401 = vector.multi_reduction <add>, %400, %cst_189 [1] : vector<16x32xf32> to vector<16xf32>
    %402 = vector.shape_cast %401 : vector<16xf32> to vector<16x1xf32>
    %cst_190 = arith.constant 3.200000e+01 : f32
    %403 = vector.broadcast %cst_190 : f32 to vector<16x1xf32>
    %404 = arith.divf %402, %403 : vector<16x1xf32>
    %405 = vector.broadcast %404 : vector<16x1xf32> to vector<16x32xf32>
    %406 = arith.subf %400, %405 : vector<16x32xf32>
    %407 = arith.mulf %406, %406 : vector<16x32xf32>
    %cst_191 = arith.constant dense<0.000000e+00> : vector<16xf32>
    %408 = vector.multi_reduction <add>, %407, %cst_191 [1] : vector<16x32xf32> to vector<16xf32>
    %409 = vector.shape_cast %408 : vector<16xf32> to vector<16x1xf32>
    %cst_192 = arith.constant 3.200000e+01 : f32
    %410 = vector.broadcast %cst_192 : f32 to vector<16x1xf32>
    %411 = arith.divf %409, %410 : vector<16x1xf32>
    %412 = vector.broadcast %404 : vector<16x1xf32> to vector<16x32xf32>
    %413 = arith.subf %400, %412 : vector<16x32xf32>
    %cst_193 = arith.constant 9.99999974E-6 : f32
    %414 = vector.broadcast %cst_193 : f32 to vector<16x1xf32>
    %415 = arith.addf %411, %414 : vector<16x1xf32>
    %416 = math.rsqrt %415 : vector<16x1xf32>
    %417 = vector.broadcast %416 : vector<16x1xf32> to vector<16x32xf32>
    %418 = arith.mulf %413, %417 : vector<16x32xf32>
    %419 = vector.broadcast %247 : vector<1x32xf32> to vector<16x32xf32>
    %420 = arith.mulf %418, %419 : vector<16x32xf32>
    %421 = vector.broadcast %248 : vector<1x32xf32> to vector<16x32xf32>
    %422 = arith.addf %420, %421 : vector<16x32xf32>
    %423 = arith.truncf %422 : vector<16x32xf32> to vector<16x32xbf16>
    %cst_194 = arith.constant dense<0.000000e+00> : vector<16x2048xf32>
    %424 = tpu.matmul %423, %249, %cst_194 {dimension_numbers = #tpu.dot_dimension_numbers<[1], [0], [0], [1], [0, 0, 1, 1], [], []>} : vector<16x32xbf16>, vector<32x2048xbf16>, vector<16x2048xf32> -> vector<16x2048xf32>
    %425 = vector.broadcast %250 : vector<1x2048xf32> to vector<16x2048xf32>
    %426 = arith.addf %424, %425 : vector<16x2048xf32>
    %cst_195 = arith.constant 2.000000e+01 : f32
    %427 = vector.broadcast %cst_195 : f32 to vector<16x2048xf32>
    %428 = arith.minimumf %426, %427 : vector<16x2048xf32>
    %429 = math.exp %428 : vector<16x2048xf32>
    %cst_196 = arith.constant 2.000000e+00 : f32
    %430 = vector.broadcast %cst_196 : f32 to vector<16x2048xf32>
    %431 = arith.addf %429, %430 : vector<16x2048xf32>
    %432 = arith.mulf %429, %431 : vector<16x2048xf32>
    %433 = arith.mulf %426, %432 : vector<16x2048xf32>
    %cst_197 = arith.constant 2.000000e+00 : f32
    %434 = vector.broadcast %cst_197 : f32 to vector<16x2048xf32>
    %435 = arith.addf %432, %434 : vector<16x2048xf32>
    %436 = tpu.reciprocal %435 {approx = true} : vector<16x2048xf32> -> vector<16x2048xf32>
    %437 = arith.mulf %433, %436 : vector<16x2048xf32>
    %438 = arith.truncf %437 : vector<16x2048xf32> to vector<16x2048xbf16>
    %cst_198 = arith.constant dense<0.000000e+00> : vector<16x32xf32>
    %439 = tpu.matmul %438, %251, %cst_198 {dimension_numbers = #tpu.dot_dimension_numbers<[1], [0], [0], [1], [0, 0, 1, 1], [], []>} : vector<16x2048xbf16>, vector<2048x32xbf16>, vector<16x32xf32> -> vector<16x32xf32>
    %440 = vector.broadcast %252 : vector<1x32xf32> to vector<16x32xf32>
    %441 = arith.addf %439, %440 : vector<16x32xf32>
    %442 = arith.addf %400, %441 : vector<16x32xf32>
    %c0_199 = arith.constant 0 : index
    %c0_200 = arith.constant 0 : index
    %443 = vector.load %arg57[%c0_199, %c0_200] : memref<32x128xbf16, #tpu.memory_space<vmem>>, vector<32x128xbf16>
    %c0_201 = arith.constant 0 : index
    %c0_202 = arith.constant 0 : index
    %444 = vector.load %arg58[%c0_201, %c0_202] : memref<1x128xf32, #tpu.memory_space<vmem>>, vector<1x128xf32>
    %445 = arith.truncf %442 : vector<16x32xf32> to vector<16x32xbf16>
    %cst_203 = arith.constant dense<0.000000e+00> : vector<16x128xf32>
    %446 = tpu.matmul %445, %443, %cst_203 {dimension_numbers = #tpu.dot_dimension_numbers<[1], [0], [0], [1], [0, 0, 1, 1], [], []>} : vector<16x32xbf16>, vector<32x128xbf16>, vector<16x128xf32> -> vector<16x128xf32>
    %447 = vector.broadcast %444 : vector<1x128xf32> to vector<16x128xf32>
    %448 = arith.addf %446, %447 : vector<16x128xf32>
    %c0_204 = arith.constant 0 : index
    %c0_205 = arith.constant 0 : index
    %449 = vector.load %arg59[%c0_204, %c0_205] : memref<16x128xf32, #tpu.memory_space<vmem>>, vector<16x128xf32>
    tpu.vector_store %arg59[%c0_204, %c0_205], %448 {strides = array<i32>} : memref<16x128xf32, #tpu.memory_space<vmem>>, vector<16x128xf32>,
    return
  }
}

</mosaic_0001>

<bundles_post_ra>
// kernel: event_predictor_forward.1
= control target key start
LH: loop header
LB: loop body
LE: loop exit
PB: predicated region body
PF: predicated region fallthrough
CT: control target
= control target key end

     0   :  { %s10886_s6 = smov 1   ;;  %s10887_s10 = smov 2   ;;  %s13283_s0 = inlined_call_operand.smem [shape: u32[60], index: -1, kind: input, shape index: {}] }
   0x1   :  { %s10971_s5 = sld [smem:[%s13283_s0]]   ;;  %s10888_s14 = smov 3  }
   0x2   :  { %s10976_s9 = sld [smem:[%s13283_s0 + %s10886_s6]]   ;;  %s10889_s18 = smov 4  }
   0x3   :  { %s10981_s13 = sld [smem:[%s13283_s0 + %s10887_s10]]   ;;  %s10890_s22 = smov 5  }
   0x4   :  { %s10986_s17 = sld [smem:[%s13283_s0 + %s10888_s14]]   ;;  %s10891_s26 = smov 6  }
   0x5   :  { %s10991_s21 = sld [smem:[%s13283_s0 + %s10889_s18]]   ;;  %s10892_s30 = smov 7  }
   0x6   :  { %s10996_s25 = sld [smem:[%s13283_s0 + %s10890_s22]]   ;;  %s10893_s4 = smov 8  }
   0x7   :  { %s11001_s29 = sld [smem:[%s13283_s0 + %s10891_s26]]   ;;  %s10894_s10 = smov 9  }
   0x8   :  { %13377 = sst [smem:[#allocation33_spill]] %s10976_s9  ;;  %s10895_s15 = smov 10  }
   0x9   :  { %13378 = sst [smem:[#allocation34_spill]] %s10981_s13  ;;  %s10896_s20 = smov 11  }
   0xa   :  { %13379 = sst [smem:[#allocation35_spill]] %s10986_s17  ;;  %s10897_s26 = smov 12  }
   0xb   :  { %13380 = sst [smem:[#allocation36_spill]] %s10991_s21  ;;  %s10898_s1 = smov 13  }
   0xc   :  { %13381 = sst [smem:[#allocation37_spill]] %s10996_s25  ;;  %s10899_s7 = smov 14  }
   0xd   :  { %13382 = sst [smem:[#allocation38_spill]] %s11001_s29  ;;  %s10901_s22 = smov 16  }
   0xe   :  { %s11006_s3 = sld [smem:[%s13283_s0 + %s10892_s30]]   ;;  %s10902_s28 = smov 17  }
   0xf   :  { %s11011_s8 = sld [smem:[%s13283_s0 + %s10893_s4]]  }
  0x10   :  { %s11016_s14 = sld [smem:[%s13283_s0 + %s10894_s10]]  }
  0x11   :  { %s11021_s19 = sld [smem:[%s13283_s0 + %s10895_s15]]   ;;  %s10900_s15 = smov 15  }
  0x12   :  { %s11026_s24 = sld [smem:[%s13283_s0 + %s10896_s20]]  }
  0x13   :  { %s11031_s30 = sld [smem:[%s13283_s0 + %s10897_s26]]  }
  0x14   :  { %13383 = sst [smem:[#allocation39_spill]] %s11006_s3 }
  0x15   :  { %13384 = sst [smem:[#allocation40_spill]] %s11011_s8 }
  0x16   :  { %13385 = sst [smem:[#allocation41_spill]] %s11016_s14 }
  0x17   :  { %13386 = sst [smem:[#allocation42_spill]] %s11021_s19 }
  0x18   :  { %13387 = sst [smem:[#allocation43_spill]] %s11026_s24 }
  0x19   :  { %13388 = sst [smem:[#allocation44_spill]] %s11031_s30 }
  0x1a   :  { %s11036_s6 = sld [smem:[%s13283_s0 + %s10898_s1]]  }
  0x1b   :  { %s11041_s12 = sld [smem:[%s13283_s0 + %s10899_s7]]   ;;  %s10903_s7 = smov 18  }
  0x1c   :  { %s11046_s20 = sld [smem:[%s13283_s0 + %s10900_s15]]   ;;  %s10904_s15 = smov 19  }
  0x1d   :  { %s11051_s27 = sld [smem:[%s13283_s0 + %s10901_s22]]   ;;  %s10905_s22 = smov 20  }
  0x1e   :  { %s11056_s4 = sld [smem:[%s13283_s0 + %s10902_s28]]   ;;  %s10906_s28 = smov 21  }
  0x1f   :  { %s11061_s21 = sld [smem:[%s13283_s0 + %s10903_s7]]   ;;  %s10907_s7 = smov 22  }
  0x20   :  { %13389 = sst [smem:[#allocation45_spill]] %s11036_s6 }
  0x21   :  { %13390 = sst [smem:[#allocation46_spill]] %s11041_s12 }
  0x22   :  { %13391 = sst [smem:[#allocation47_spill]] %s11046_s20 }
  0x23   :  { %13392 = sst [smem:[#allocation48_spill]] %s11051_s27 }
  0x24   :  { %13393 = sst [smem:[#allocation49_spill]] %s11056_s4 }
  0x25   :  { %13394 = sst [smem:[#allocation50_spill]] %s11061_s21 }
  0x26   :  { %s11066_s20 = sld [smem:[%s13283_s0 + %s10904_s15]]   ;;  %s10908_s15 = smov 23  }
  0x27   :  { %s11071_s27 = sld [smem:[%s13283_s0 + %s10905_s22]]   ;;  %s10909_s22 = smov 24  }
  0x28   :  { %s11076_s4 = sld [smem:[%s13283_s0 + %s10906_s28]]   ;;  %s10910_s28 = smov 25  }
  0x29   :  { %s11081_s21 = sld [smem:[%s13283_s0 + %s10907_s7]]   ;;  %s10911_s7 = smov 26  }
  0x2a   :  { %s11086_s9 = sld [smem:[%s13283_s0 + %s10908_s15]]   ;;  %s10912_s15 = smov 27  }
  0x2c   :  { %13395 = sst [smem:[#allocation51_spill]] %s11066_s20 }
  0x2d   :  { %13396 = sst [smem:[#allocation52_spill]] %s11071_s27 }
  0x2e   :  { %13397 = sst [smem:[#allocation53_spill]] %s11076_s4 }
  0x2f   :  { %13398 = sst [smem:[#allocation54_spill]] %s11081_s21 }
  0x30   :  { %13399 = sst [smem:[#allocation55_spill]] %s11086_s9 }
  0x31   :  { %s11091_s27 = sld [smem:[%s13283_s0 + %s10909_s22]]   ;;  %s10913_s22 = smov 28  }
  0x32   :  { %s11096_s4 = sld [smem:[%s13283_s0 + %s10910_s28]]   ;;  %s10914_s28 = smov 29  }
  0x33   :  { %s11101_s21 = sld [smem:[%s13283_s0 + %s10911_s7]]   ;;  %s10915_s7 = smov 30  }
  0x34   :  { %s11106_s9 = sld [smem:[%s13283_s0 + %s10912_s15]]   ;;  %s10916_s15 = smov 31  }
  0x37   :  { %13400 = sst [smem:[#allocation56_spill]] %s11091_s27 }
  0x38   :  { %13401 = sst [smem:[#allocation57_spill]] %s11096_s4 }
  0x39   :  { %13402 = sst [smem:[#allocation58_spill]] %s11101_s21 }
  0x3a   :  { %13403 = sst [smem:[#allocation59_spill]] %s11106_s9 }
  0x3b   :  { %s11111_s27 = sld [smem:[%s13283_s0 + %s10913_s22]]   ;;  %s10917_s22 = smov 32  }
  0x3c   :  { %s11116_s4 = sld [smem:[%s13283_s0 + %s10914_s28]]   ;;  %s10918_s28 = smov 33  }
  0x3d   :  { %s11121_s21 = sld [smem:[%s13283_s0 + %s10915_s7]]   ;;  %s10919_s7 = smov 34  }
  0x3e   :  { %s11126_s9 = sld [smem:[%s13283_s0 + %s10916_s15]]   ;;  %s10920_s15 = smov 35  }
  0x41   :  { %13404 = sst [smem:[#allocation60_spill]] %s11111_s27 }
  0x42   :  { %13405 = sst [smem:[#allocation61_spill]] %s11116_s4 }
  0x43   :  { %13406 = sst [smem:[#allocation62_spill]] %s11121_s21 }
  0x44   :  { %13407 = sst [smem:[#allocation63_spill]] %s11126_s9 }
  0x45   :  { %s11131_s27 = sld [smem:[%s13283_s0 + %s10917_s22]]   ;;  %s10921_s22 = smov 36  }
  0x46   :  { %s11136_s4 = sld [smem:[%s13283_s0 + %s10918_s28]]   ;;  %s10922_s28 = smov 37  }
  0x47   :  { %s11141_s21 = sld [smem:[%s13283_s0 + %s10919_s7]]   ;;  %s10923_s7 = smov 38  }
  0x48   :  { %s11146_s9 = sld [smem:[%s13283_s0 + %s10920_s15]]   ;;  %s10924_s15 = smov 39  }
  0x49   :  { %s11151_s20 = sld [smem:[%s13283_s0 + %s10921_s22]]   ;;  %s10925_s22 = smov 40  }
  0x4a   :  { %s11161_s12 = sld [smem:[%s13283_s0 + %s10923_s7]]   ;;  %s10927_s7 = smov 42  }
  0x4b   :  { %s11171_s6 = sld [smem:[%s13283_s0 + %s10925_s22]]   ;;  %s10929_s22 = smov 44  }
  0x4c   :  { %13408 = sst [smem:[#allocation64_spill]] %s11136_s4 }
  0x4d   :  { %s11156_s4 = sld [smem:[%s13283_s0 + %s10922_s28]]   ;;  %s10926_s28 = smov 41  }
  0x4e   :  { %13409 = sst [smem:[#allocation65_spill]] %s11146_s9 }
  0x4f   :  { %s11166_s9 = sld [smem:[%s13283_s0 + %s10924_s15]]   ;;  %s10928_s15 = smov 43  }
  0x50   :  { %s11181_s17 = sld [smem:[%s13283_s0 + %s10927_s7]]   ;;  %s10931_s7 = smov 46  }
  0x51   :  { %s11191_s30 = sld [smem:[%s13283_s0 + %s10929_s22]]   ;;  %s10933_s22 = smov 48  }
  0x52   :  { %s11201_s8 = sld [smem:[%s13283_s0 + %s10931_s7]]   ;;  %s10935_s7 = smov 50  }
  0x53   :  { %13410 = sst [smem:[#allocation66_spill]] %s11156_s4 }
  0x54   :  { %s11176_s4 = sld [smem:[%s13283_s0 + %s10926_s28]]   ;;  %s10930_s28 = smov 45  }
  0x55   :  { %13411 = sst [smem:[#allocation67_spill]] %s11166_s9 }
  0x56   :  { %s11186_s9 = sld [smem:[%s13283_s0 + %s10928_s15]]   ;;  %s10932_s15 = smov 47  }
  0x57   :  { %s11196_s19 = sld [smem:[%s13283_s0 + %s10930_s28]]   ;;  %s10934_s28 = smov 49  }
  0x58   :  { %s11211_s13 = sld [smem:[%s13283_s0 + %s10933_s22]]   ;;  %s10937_s22 = smov 52  }
  0x59   :  { %s11221_s24 = sld [smem:[%s13283_s0 + %s10935_s7]]   ;;  %s10939_s7 = smov 54  }
  0x5a   :  { %s11231_s29 = sld [smem:[%s13283_s0 + %s10937_s22]]   ;;  %s10941_s22 = smov 56  }
  0x5b   :  { %s11241_s25 = sld [smem:[%s13283_s0 + %s10939_s7]]   ;;  %s10943_s7 = smov 58  }
  0x5c   :  { %13412 = sst [smem:[#allocation68_spill]] %s11186_s9 }
  0x5d   :  { %13413 = sst [smem:[#allocation69_spill]] %s11196_s19 }
  0x5e   :  { %s11206_s9 = sld [smem:[%s13283_s0 + %s10932_s15]]   ;;  %s10936_s15 = smov 51  }
  0x5f   :  { %s11216_s19 = sld [smem:[%s13283_s0 + %s10934_s28]]   ;;  %s10938_s28 = smov 53  }
  0x60   :  { %s11251_s3 = sld [smem:[%s13283_s0 + %s10941_s22]]  }
  0x61   :  { %13417 = sst [smem:[#allocation73_spill]] %s11241_s25 }
  0x62   :  { %s11261_s25 = sld [smem:[%s13283_s0 + %s10943_s7]]  }
  0x64   :  { %13414 = sst [smem:[#allocation70_spill]] %s11206_s9 }
  0x65   :  { %13415 = sst [smem:[#allocation71_spill]] %s11216_s19 }
  0x66   :  { %s11226_s9 = sld [smem:[%s13283_s0 + %s10936_s15]]   ;;  %s10940_s15 = smov 55  }
  0x67   :  { %s11236_s19 = sld [smem:[%s13283_s0 + %s10938_s28]]   ;;  %s10942_s28 = smov 57  }
  0x68   :  { %s11246_s14 = sld [smem:[%s13283_s0 + %s10940_s15]]   ;;  %s10944_s15 = smov 59  }
  0x6d   :  { %13416 = sst [smem:[#allocation72_spill]] %s11236_s19 }
  0x6e   :  { %13418 = sst [smem:[#allocation74_spill]] %s11246_s14 }
  0x6f   :  { %s11256_s19 = sld [smem:[%s13283_s0 + %s10942_s28]]  }
  0x70   :  { %s11266_s14 = sld [smem:[%s13283_s0 + %s10944_s15]]  }
  0x71   :  { %124 = vsyncpa [#allocation3], 0 }
  0x72   :  { %125 = vsyncpa [#allocation5], 0 }
  0x73   :  { %126 = vsyncpa [#allocation8], 0 }
  0x74   :  { %127 = vsyncpa [#allocation11], 0 }
  0x75   :  { %128 = vsyncpa [#allocation14], 0 }
  0x76   :  { %129 = vsyncpa [#allocation17], 0 }
  0x77   :  { %130 = vsyncpa [#allocation20], 0 }
  0x78   :  { %131 = vsyncpa [#allocation23], 0  ;;  %s10945_s22 = smov [#allocation4]   ;;  %s10946_s26 = smov [#allocation7]  }
  0x79   :  { %s214_s23 = sshll.u32 %s10945_s22, 4  ;;  %s238_s28 = sshll.u32 %s10946_s26, 4  ;;  %s215_s23 = int_to_ptr.vmem [resolvable:$true] %s214_s23  ;;  %s239_s28 = int_to_ptr.vmem [resolvable:$true] %s238_s28 }
  0x7a   :  { %s10540_s1 = scalar_lea.hbm %s11141_s21, 16 }
  0x7b   :  { %p10541_p0 = scmp.ne.s32.totalorder %s11141_s21, %s10540_s1  ;;  %p10544_p1 = scmp.lt.u32.totalorder %s10540_s1, %s11141_s21 }
  0x7d   :  { %p10546_p2 = pnand %p10544_p1, %p10541_p0 }
  0x7f   :  { %10549 = shalt.err (!%p10546_p2)
}
  0x80   :  { %s10550_s0 = scalar_lea.vmem %s215_s23, 16  ;;  %s10554_s2 = scalar_lea.vmem %s215_s23, 32 }
  0x81   :  { %p10551_p3 = scmp.ne.s32.totalorder %s215_s23, %s10550_s0  ;;  %p10555_p4 = scmp.lt.s32.totalorder %s215_s23, %s215_s23 }
  0x82   :  { %p10556_p5 = scmp.lt.s32.totalorder %s10554_s2, %s10550_s0 }
  0x84   :  { %p10557_p6 = por %p10556_p5, %p10555_p4 }
  0x86   :  { %p10558_p7 = pnand %p10557_p6, %p10551_p3 }
  0x88   :  { %10561 = shalt.err (!%p10558_p7)
}
  0x89   :  { %217 = dma.hbm_to_vmem [thread:$0]  %s11141_s21, 16, %s215_s23, [#allocation5]  }
  0x8a   :  { %s10562_s7 = scalar_lea.hbm %s11161_s12, 16 }
  0x8b   :  { %p10563_p8 = scmp.ne.s32.totalorder %s11161_s12, %s10562_s7  ;;  %p10566_p9 = scmp.lt.u32.totalorder %s10562_s7, %s11161_s12 }
  0x8d   :  { %p10568_p10 = pnand %p10566_p9, %p10563_p8 }
  0x8f   :  { %10571 = shalt.err (!%p10568_p10)
}
  0x90   :  { %s10572_s10 = scalar_lea.vmem %s239_s28, 16  ;;  %s10576_s11 = scalar_lea.vmem %s239_s28, 32 }
  0x91   :  { %p10573_p11 = scmp.ne.s32.totalorder %s239_s28, %s10572_s10  ;;  %p10577_p12 = scmp.lt.s32.totalorder %s239_s28, %s239_s28 }
  0x92   :  { %p10578_p13 = scmp.lt.s32.totalorder %s10576_s11, %s10572_s10 }
  0x94   :  { %p10579_p0 = por %p10578_p13, %p10577_p12 }
  0x96   :  { %p10580_p1 = pnand %p10579_p0, %p10573_p11 }
  0x98   :  { %10583 = shalt.err (!%p10580_p1)
}
  0x99   :  { %241 = dma.hbm_to_vmem [thread:$0]  %s11161_s12, 16, %s239_s28, [#allocation8]  }
  0x9a   :  { %s10947_s15 = smov [#allocation10]   ;;  %s10948_s16 = smov [#allocation13]  }
  0x9b   :  { %s260_s21 = sshll.u32 %s10947_s15, 4  ;;  %s282_s18 = sshll.u32 %s10948_s16, 4  ;;  %s261_s21 = int_to_ptr.vmem [resolvable:$true] %s260_s21  ;;  %s283_s18 = int_to_ptr.vmem [resolvable:$true] %s282_s18 }
  0x9c   :  { %s10584_s22 = scalar_lea.hbm %s11176_s4, 16 }
  0x9d   :  { %p10585_p2 = scmp.ne.s32.totalorder %s11176_s4, %s10584_s22  ;;  %p10588_p3 = scmp.lt.u32.totalorder %s10584_s22, %s11176_s4 }
  0x9f   :  { %p10590_p4 = pnand %p10588_p3, %p10585_p2 }
  0xa1   :  { %10593 = shalt.err (!%p10590_p4)
}
  0xa2   :  { %s10594_s23 = scalar_lea.vmem %s261_s21, 16  ;;  %s10598_s26 = scalar_lea.vmem %s261_s21, 32 }
  0xa3   :  { %p10595_p5 = scmp.ne.s32.totalorder %s261_s21, %s10594_s23  ;;  %p10599_p6 = scmp.lt.s32.totalorder %s261_s21, %s261_s21 }
  0xa4   :  { %p10600_p7 = scmp.lt.s32.totalorder %s10598_s26, %s10594_s23 }
  0xa6   :  { %p10601_p8 = por %p10600_p7, %p10599_p6 }
  0xa8   :  { %p10602_p9 = pnand %p10601_p8, %p10595_p5 }
  0xaa   :  { %10605 = shalt.err (!%p10602_p9)
}
  0xab   :  { %263 = dma.hbm_to_vmem [thread:$0]  %s11176_s4, 16, %s261_s21, [#allocation11]  }
  0xac   :  { %s10606_s12 = scalar_lea.hbm %s11191_s30, 16 }
  0xad   :  { %p10607_p10 = scmp.ne.s32.totalorder %s11191_s30, %s10606_s12  ;;  %p10610_p11 = scmp.lt.u32.totalorder %s10606_s12, %s11191_s30 }
  0xaf   :  { %p10612_p12 = pnand %p10610_p11, %p10607_p10 }
  0xb1   :  { %10615 = shalt.err (!%p10612_p12)
}
  0xb2   :  { %s10616_s28 = scalar_lea.vmem %s283_s18, 16  ;;  %s10620_s1 = scalar_lea.vmem %s283_s18, 32 }
  0xb3   :  { %p10617_p13 = scmp.ne.s32.totalorder %s283_s18, %s10616_s28  ;;  %p10621_p0 = scmp.lt.s32.totalorder %s283_s18, %s283_s18 }
  0xb4   :  { %p10622_p1 = scmp.lt.s32.totalorder %s10620_s1, %s10616_s28 }
  0xb6   :  { %p10623_p2 = por %p10622_p1, %p10621_p0 }
  0xb8   :  { %p10624_p3 = pnand %p10623_p2, %p10617_p13 }
  0xba   :  { %10627 = shalt.err (!%p10624_p3)
}
  0xbb   :  { %285 = dma.hbm_to_vmem [thread:$0]  %s11191_s30, 16, %s283_s18, [#allocation14]  }
  0xbc   :  { %s10949_s0 = smov [#allocation16]   ;;  %s10950_s2 = smov [#allocation19]  }
  0xbd   :  { %s306_s4 = sshll.u32 %s10949_s0, 4  ;;  %s328_s7 = sshll.u32 %s10950_s2, 4  ;;  %s307_s4 = int_to_ptr.vmem [resolvable:$true] %s306_s4  ;;  %s329_s7 = int_to_ptr.vmem [resolvable:$true] %s328_s7 }
  0xbe   :  { %s10628_s10 = scalar_lea.hbm %s11211_s13, 16 }
  0xbf   :  { %p10629_p4 = scmp.ne.s32.totalorder %s11211_s13, %s10628_s10  ;;  %p10632_p5 = scmp.lt.u32.totalorder %s10628_s10, %s11211_s13 }
  0xc1   :  { %p10634_p6 = pnand %p10632_p5, %p10629_p4 }
  0xc3   :  { %10637 = shalt.err (!%p10634_p6)
}
  0xc4   :  { %s10638_s11 = scalar_lea.vmem %s307_s4, 16  ;;  %s10642_s15 = scalar_lea.vmem %s307_s4, 32 }
  0xc5   :  { %p10639_p7 = scmp.ne.s32.totalorder %s307_s4, %s10638_s11  ;;  %p10643_p8 = scmp.lt.s32.totalorder %s307_s4, %s307_s4 }
  0xc6   :  { %p10644_p9 = scmp.lt.s32.totalorder %s10642_s15, %s10638_s11 }
  0xc8   :  { %p10645_p10 = por %p10644_p9, %p10643_p8 }
  0xca   :  { %p10646_p11 = pnand %p10645_p10, %p10639_p7 }
  0xcc   :  { %10649 = shalt.err (!%p10646_p11)
}
  0xcd   :  { %309 = dma.hbm_to_vmem [thread:$0]  %s11211_s13, 16, %s307_s4, [#allocation17]  }
  0xce   :  { %s10650_s30 = scalar_lea.hbm %s11226_s9, 16 }
  0xcf   :  { %p10651_p12 = scmp.ne.s32.totalorder %s11226_s9, %s10650_s30  ;;  %p10654_p13 = scmp.lt.u32.totalorder %s10650_s30, %s11226_s9 }
  0xd1   :  { %p10656_p0 = pnand %p10654_p13, %p10651_p12 }
  0xd3   :  { %10659 = shalt.err (!%p10656_p0)
}
  0xd4   :  { %s10660_s21 = scalar_lea.vmem %s329_s7, 16  ;;  %s10664_s16 = scalar_lea.vmem %s329_s7, 32 }
  0xd5   :  { %p10661_p1 = scmp.ne.s32.totalorder %s329_s7, %s10660_s21  ;;  %p10665_p2 = scmp.lt.s32.totalorder %s329_s7, %s329_s7 }
  0xd6   :  { %p10666_p3 = scmp.lt.s32.totalorder %s10664_s16, %s10660_s21 }
  0xd8   :  { %p10667_p4 = por %p10666_p3, %p10665_p2 }
  0xda   :  { %p10668_p5 = pnand %p10667_p4, %p10661_p1 }
  0xdc   :  { %10671 = shalt.err (!%p10668_p5)
}
  0xdd   :  { %331 = dma.hbm_to_vmem [thread:$0]  %s11226_s9, 16, %s329_s7, [#allocation20]  }
  0xde   :  { %s10951_s18 = smov [#allocation22]   ;;  %s10952_s22 = smov [#allocation2]  }
  0xdf   :  { %s354_s13 = sshll.u32 %s10951_s18, 4  ;;  %s202_s23 = sshll.u32 %s10952_s22, 4  ;;  %s355_s13 = int_to_ptr.vmem [resolvable:$true] %s354_s13  ;;  %s203_s23 = int_to_ptr.vmem [resolvable:$true] %s202_s23 }
  0xe0   :  { %s10672_s26 = scalar_lea.hbm %s11251_s3, 16 }
  0xe1   :  { %p10673_p6 = scmp.ne.s32.totalorder %s11251_s3, %s10672_s26  ;;  %p10676_p7 = scmp.lt.u32.totalorder %s10672_s26, %s11251_s3 }
  0xe3   :  { %p10678_p8 = pnand %p10676_p7, %p10673_p6 }
  0xe5   :  { %10681 = shalt.err (!%p10678_p8)
}
  0xe6   :  { %s10682_s12 = scalar_lea.vmem %s355_s13, 16  ;;  %s10686_s28 = scalar_lea.vmem %s355_s13, 32 }
  0xe7   :  { %p10683_p9 = scmp.ne.s32.totalorder %s355_s13, %s10682_s12  ;;  %p10687_p10 = scmp.lt.s32.totalorder %s355_s13, %s355_s13 }
  0xe8   :  { %p10688_p11 = scmp.lt.s32.totalorder %s10686_s28, %s10682_s12 }
  0xea   :  { %p10689_p12 = por %p10688_p11, %p10687_p10 }
  0xec   :  { %p10690_p13 = pnand %p10689_p12, %p10683_p9 }
  0xee   :  { %10693 = shalt.err (!%p10690_p13)
}
  0xef   :  { %357 = dma.hbm_to_vmem [thread:$0]  %s11251_s3, 16, %s355_s13, [#allocation23]  }
  0xf0   :  { %s10694_s9 = scalar_lea.hbm %s11131_s27, 16 }
  0xf1   :  { %p10695_p0 = scmp.ne.s32.totalorder %s11131_s27, %s10694_s9  ;;  %p10698_p1 = scmp.lt.u32.totalorder %s10694_s9, %s11131_s27 }
  0xf3   :  { %p10700_p2 = pnand %p10698_p1, %p10695_p0 }
  0xf5   :  { %10703 = shalt.err (!%p10700_p2)
}
  0xf6   :  { %s10704_s1 = scalar_lea.vmem %s203_s23, 16  ;;  %s10708_s0 = scalar_lea.vmem %s203_s23, 32 }
  0xf7   :  { %p10705_p3 = scmp.ne.s32.totalorder %s203_s23, %s10704_s1  ;;  %p10709_p4 = scmp.lt.s32.totalorder %s203_s23, %s203_s23 }
  0xf8   :  { %p10710_p5 = scmp.lt.s32.totalorder %s10708_s0, %s10704_s1 }
  0xfa   :  { %p10711_p6 = por %p10710_p5, %p10709_p4 }
  0xfc   :  { %p10712_p7 = pnand %p10711_p6, %p10705_p3 }
  0xfe   :  { %10715 = shalt.err (!%p10712_p7)
}
  0xff   :  { %205 = dma.hbm_to_vmem [thread:$0]  %s11131_s27, 16, %s203_s23, [#allocation3]  }
 0x100   :  { %s10953_s4 = smov [#allocation6]   ;;  %s10954_s2 = smov [#allocation9]  }
 0x101   :  { %s226_s3 = sshll.u32 %s10953_s4, 4  ;;  %s250_s7 = sshll.u32 %s10954_s2, 4  ;;  %s227_s3 = int_to_ptr.vmem [resolvable:$true] %s226_s3  ;;  %s251_s7 = int_to_ptr.vmem [resolvable:$true] %s250_s7 }
 0x102   :  { %s10716_s10 = scalar_lea.hbm %s11151_s20, 16 }
 0x103   :  { %p10717_p8 = scmp.ne.s32.totalorder %s11151_s20, %s10716_s10  ;;  %p10720_p9 = scmp.lt.u32.totalorder %s10716_s10, %s11151_s20 }
 0x105   :  { %p10722_p10 = pnand %p10720_p9, %p10717_p8 }
 0x107   :  { %10725 = shalt.err (!%p10722_p10)
}
 0x108   :  { %s10726_s11 = scalar_lea.vmem %s227_s3, 16  ;;  %s10730_s15 = scalar_lea.vmem %s227_s3, 32 }
 0x109   :  { %p10727_p11 = scmp.ne.s32.totalorder %s227_s3, %s10726_s11  ;;  %p10731_p12 = scmp.lt.s32.totalorder %s227_s3, %s227_s3 }
 0x10a   :  { %p10732_p13 = scmp.lt.s32.totalorder %s10730_s15, %s10726_s11 }
 0x10c   :  { %p10733_p0 = por %p10732_p13, %p10731_p12 }
 0x10e   :  { %p10734_p1 = pnand %p10733_p0, %p10727_p11 }
 0x110   :  { %10737 = shalt.err (!%p10734_p1)
}
 0x111   :  { %229 = dma.hbm_to_vmem [thread:$0]  %s11151_s20, 16, %s227_s3, [#allocation5]  }
 0x112   :  { %s10738_s27 = scalar_lea.hbm %s11171_s6, 16 }
 0x113   :  { %p10739_p2 = scmp.ne.s32.totalorder %s11171_s6, %s10738_s27  ;;  %p10742_p3 = scmp.lt.u32.totalorder %s10738_s27, %s11171_s6 }
 0x115   :  { %p10744_p4 = pnand %p10742_p3, %p10739_p2 }
 0x117   :  { %10747 = shalt.err (!%p10744_p4)
}
 0x118   :  { %s10748_s30 = scalar_lea.vmem %s251_s7, 16  ;;  %s10752_s21 = scalar_lea.vmem %s251_s7, 32 }
 0x119   :  { %p10749_p5 = scmp.ne.s32.totalorder %s251_s7, %s10748_s30  ;;  %p10753_p6 = scmp.lt.s32.totalorder %s251_s7, %s251_s7 }
 0x11a   :  { %p10754_p7 = scmp.lt.s32.totalorder %s10752_s21, %s10748_s30 }
 0x11c   :  { %p10755_p8 = por %p10754_p7, %p10753_p6 }
 0x11e   :  { %p10756_p9 = pnand %p10755_p8, %p10749_p5 }
 0x120   :  { %10759 = shalt.err (!%p10756_p9)
}
 0x121   :  { %253 = dma.hbm_to_vmem [thread:$0]  %s11171_s6, 16, %s251_s7, [#allocation8]  }
 0x122   :  { %s10955_s16 = smov [#allocation12]   ;;  %s10956_s18 = smov [#allocation15]  }
 0x123   :  { %s270_s20 = sshll.u32 %s10955_s16, 4  ;;  %s294_s13 = sshll.u32 %s10956_s18, 4  ;;  %s271_s20 = int_to_ptr.vmem [resolvable:$true] %s270_s20  ;;  %s295_s13 = int_to_ptr.vmem [resolvable:$true] %s294_s13 }
 0x124   :  { %s10760_s22 = scalar_lea.hbm %s11181_s17, 16 }
 0x125   :  { %p10761_p10 = scmp.ne.s32.totalorder %s11181_s17, %s10760_s22  ;;  %p10764_p11 = scmp.lt.u32.totalorder %s10760_s22, %s11181_s17 }
 0x127   :  { %p10766_p12 = pnand %p10764_p11, %p10761_p10 }
 0x129   :  { %10769 = shalt.err (!%p10766_p12)
}
 0x12a   :  { %s10770_s23 = scalar_lea.vmem %s271_s20, 16  ;;  %s10774_s26 = scalar_lea.vmem %s271_s20, 32 }
 0x12b   :  { %p10771_p13 = scmp.ne.s32.totalorder %s271_s20, %s10770_s23  ;;  %p10775_p0 = scmp.lt.s32.totalorder %s271_s20, %s271_s20 }
 0x12c   :  { %p10776_p1 = scmp.lt.s32.totalorder %s10774_s26, %s10770_s23 }
 0x12e   :  { %p10777_p2 = por %p10776_p1, %p10775_p0 }
 0x130   :  { %p10778_p3 = pnand %p10777_p2, %p10771_p13 }
 0x132   :  { %10781 = shalt.err (!%p10778_p3)
}
 0x133   :  { %273 = dma.hbm_to_vmem [thread:$0]  %s11181_s17, 16, %s271_s20, [#allocation11]  }
 0x134   :  { %s10782_s6 = scalar_lea.hbm %s11201_s8, 16 }
 0x135   :  { %p10783_p4 = scmp.ne.s32.totalorder %s11201_s8, %s10782_s6  ;;  %p10786_p5 = scmp.lt.u32.totalorder %s10782_s6, %s11201_s8 }
 0x137   :  { %p10788_p6 = pnand %p10786_p5, %p10783_p4 }
 0x139   :  { %10791 = shalt.err (!%p10788_p6)
}
 0x13a   :  { %s10792_s12 = scalar_lea.vmem %s295_s13, 16  ;;  %s10796_s28 = scalar_lea.vmem %s295_s13, 32 }
 0x13b   :  { %p10793_p7 = scmp.ne.s32.totalorder %s295_s13, %s10792_s12  ;;  %p10797_p8 = scmp.lt.s32.totalorder %s295_s13, %s295_s13 }
 0x13c   :  { %p10798_p9 = scmp.lt.s32.totalorder %s10796_s28, %s10792_s12 }
 0x13e   :  { %p10799_p10 = por %p10798_p9, %p10797_p8 }
 0x140   :  { %p10800_p11 = pnand %p10799_p10, %p10793_p7 }
 0x142   :  { %10803 = shalt.err (!%p10800_p11)
}
 0x143   :  { %297 = dma.hbm_to_vmem [thread:$0]  %s11201_s8, 16, %s295_s13, [#allocation14]  }
 0x144   :  { %s10957_s9 = smov [#allocation18]   ;;  %s10958_s1 = smov [#allocation21]  }
 0x145   :  { %s318_s17 = sshll.u32 %s10957_s9, 4  ;;  %s338_s0 = sshll.u32 %s10958_s1, 4  ;;  %s319_s17 = int_to_ptr.vmem [resolvable:$true] %s318_s17  ;;  %s339_s0 = int_to_ptr.vmem [resolvable:$true] %s338_s0 }
 0x146   :  { %s10804_s4 = scalar_lea.hbm %s11221_s24, 16 }
 0x147   :  { %p10805_p12 = scmp.ne.s32.totalorder %s11221_s24, %s10804_s4  ;;  %p10808_p13 = scmp.lt.u32.totalorder %s10804_s4, %s11221_s24 }
 0x149   :  { %p10810_p0 = pnand %p10808_p13, %p10805_p12 }
 0x14b   :  { %10813 = shalt.err (!%p10810_p0)
}
 0x14c   :  { %s10814_s3 = scalar_lea.vmem %s319_s17, 16  ;;  %s10818_s2 = scalar_lea.vmem %s319_s17, 32 }
 0x14d   :  { %p10815_p1 = scmp.ne.s32.totalorder %s319_s17, %s10814_s3  ;;  %p10819_p2 = scmp.lt.s32.totalorder %s319_s17, %s319_s17 }
 0x14e   :  { %p10820_p3 = scmp.lt.s32.totalorder %s10818_s2, %s10814_s3 }
 0x150   :  { %p10821_p4 = por %p10820_p3, %p10819_p2 }
 0x152   :  { %p10822_p5 = pnand %p10821_p4, %p10815_p1 }
 0x154   :  { %10825 = shalt.err (!%p10822_p5)
}
 0x155   :  { %321 = dma.hbm_to_vmem [thread:$0]  %s11221_s24, 16, %s319_s17, [#allocation17]  }
 0x156   :  { %s10826_s8 = scalar_lea.hbm %s11231_s29, 16 }
 0x157   :  { %p10827_p6 = scmp.ne.s32.totalorder %s11231_s29, %s10826_s8  ;;  %p10830_p7 = scmp.lt.u32.totalorder %s10826_s8, %s11231_s29 }
 0x159   :  { %p10832_p8 = pnand %p10830_p7, %p10827_p6 }
 0x15b   :  { %10835 = shalt.err (!%p10832_p8)
}
 0x15c   :  { %s10836_s7 = scalar_lea.vmem %s339_s0, 16  ;;  %s10840_s10 = scalar_lea.vmem %s339_s0, 32 }
 0x15d   :  { %p10837_p9 = scmp.ne.s32.totalorder %s339_s0, %s10836_s7  ;;  %p10841_p10 = scmp.lt.s32.totalorder %s339_s0, %s339_s0 }
 0x15e   :  { %p10842_p11 = scmp.lt.s32.totalorder %s10840_s10, %s10836_s7 }
 0x160   :  { %p10843_p12 = por %p10842_p11, %p10841_p10 }
 0x162   :  { %p10844_p13 = pnand %p10843_p12, %p10837_p9 }
 0x164   :  { %10847 = shalt.err (!%p10844_p13)
}
 0x165   :  { %341 = dma.hbm_to_vmem [thread:$0]  %s11231_s29, 16, %s339_s0, [#allocation20]  }
 0x166   :  { %s10959_s11 = smov [#allocation24]   ;;  %s10848_s15 = scalar_lea.hbm %s11261_s25, 16 }
 0x167   :  { %s366_s24 = sshll.u32 %s10959_s11, 4  ;;  %p10849_p0 = scmp.ne.s32.totalorder %s11261_s25, %s10848_s15  ;;  %s367_s24 = int_to_ptr.vmem [resolvable:$true] %s366_s24 }
 0x168   :  { %p10852_p1 = scmp.lt.u32.totalorder %s10848_s15, %s11261_s25 }
 0x16a   :  { %p10854_p2 = pnand %p10852_p1, %p10849_p0 }
 0x16c   :  { %10857 = shalt.err (!%p10854_p2)
}
 0x16d   :  { %s10858_s27 = scalar_lea.vmem %s367_s24, 16  ;;  %s10862_s30 = scalar_lea.vmem %s367_s24, 32 }
 0x16e   :  { %p10859_p3 = scmp.ne.s32.totalorder %s367_s24, %s10858_s27  ;;  %p10863_p4 = scmp.lt.s32.totalorder %s367_s24, %s367_s24 }
 0x16f   :  { %p10864_p5 = scmp.lt.s32.totalorder %s10862_s30, %s10858_s27 }
 0x171   :  { %p10865_p6 = por %p10864_p5, %p10863_p4 }
 0x173   :  { %p10866_p7 = pnand %p10865_p6, %p10859_p3 }
 0x175   :  { %10869 = shalt.err (!%p10866_p7)
}
 0x176   :  { %369 = dma.hbm_to_vmem [thread:$0]  %s11261_s25, 16, %s367_s24, [#allocation23]  }
 0x177   :  { %10870 = dma.done.wait [#allocation3], 16  }
 0x178   :  { %10871 = vsyncadd [#allocation3], 4294967280 }
 0x179   :  { %10872 = dma.done.wait [#allocation5], 32  }
 0x17a   :  { %10873 = vsyncadd [#allocation5], 4294967264 }
 0x17b   :  { %10874 = dma.done.wait [#allocation8], 32  }
 0x17c   :  { %10875 = vsyncadd [#allocation8], 4294967264 }
 0x17d   :  { %10876 = dma.done.wait [#allocation11], 32  }
 0x17e   :  { %10877 = vsyncadd [#allocation11], 4294967264 }
 0x17f   :  { %10878 = dma.done.wait [#allocation14], 32  }
 0x180   :  { %10879 = vsyncadd [#allocation14], 4294967264 }
 0x181   :  { %10880 = dma.done.wait [#allocation17], 32  }
 0x182   :  { %10881 = vsyncadd [#allocation17], 4294967264 }
 0x183   :  { %10882 = dma.done.wait [#allocation20], 32  }
 0x184   :  { %10883 = vsyncadd [#allocation20], 4294967264 }
 0x185   :  { %10884 = dma.done.wait [#allocation23], 32  }
 0x186   :  { %10885 = vsyncadd [#allocation23], 4294967264  ;;  %vm774_vm0 = vcmask 261120   ;;  %v432_v0 = vld [vmem:[%s10971_s5] sm:$0xff]  ;;  %v433_v1 = vld [vmem:[%s10971_s5 + $0x8] sm:$0xff]  ;;  %s13419_s25 = sld [smem:[#allocation39_spill]]  ;;  %v1003_v38 = vlaneseq }
 0x187   :  { %v775_v2 = vsel %vm774_vm0, %v432_v0, 0.0  ;;  %v778_v3 = vsel %vm774_vm0, %v433_v1, 0.0  ;;  %s13420_s29 = sld [smem:[#allocation41_spill]]  ;;  %v13312_v16 = vmov 0.0   ;;  %vm10961_vm1 = vmmov 0   ;;  %s13421_s21 = sld [smem:[#allocation37_spill]] }
 0x188   :  { %776 = vadd.xlane.f32.xlu0 %v775_v2  ;;  %9435 = vmatprep.subr.bf16.mxu0 %v13312_v16  ;;  %s13422_s16 = sld [smem:[#allocation38_spill]]  ;;  %s13423_s20 = sld [smem:[#allocation43_spill]]  ;;  %v11375_v50 = vshrl.u32 %v1003_v38, 7  ;;  %vm1233_vm3 = vcmask 130048  }
 0x189   :  { %9443 = vmatprep.subr.bf16.mxu1 %v13312_v16  ;;  %9439 = vmatprep.mubr.msk.bf16.mxu0 %vm10961_vm1, %v13312_v16  ;;  %s13424_s18 = sld [smem:[#allocation34_spill]]  ;;  %s13425_s13 = sld [smem:[#allocation40_spill]] }
 0x18a   :  { %9447 = vmatprep.mubr.msk.bf16.mxu1 %vm10961_vm1, %v13312_v16  ;;  %s13426_s22 = sld [smem:[#allocation42_spill]]  ;;  %s13427_s23 = sld [smem:[#allocation44_spill]]  ;;  %v11381_v62 = vsub.s32 0, %v11375_v50 }
 0x18b   :  { %s13432_s26 = sld [smem:[#allocation35_spill]]  ;;  %s13436_s6 = sld [smem:[#allocation45_spill]] }
 0x18c   :  { %779 = vadd.xlane.f32.xlu0 %v778_v3  ;;  %v9840_v14 = vld [vmem:[%s13419_s25] sm:$0xff]   ;;  %v9842_v17 = vld [vmem:[%s13419_s25 + $0x8] sm:$0xff]   ;;  %13428 = vst [vmem:[#allocation75_spill] sm:$0xff] %v11381_v62  ;;  %s13441_s12 = sld [smem:[#allocation46_spill]]  ;;  %s13442_s28 = sld [smem:[#allocation51_spill]] }
 0x18d   :  { %v9841_v15 = vld [vmem:[%s13420_s29] sm:$0xff]   ;;  %v9843_v18 = vld [vmem:[%s13420_s29 + $0x8] sm:$0xff]   ;;  %9436 = vmatpush3.bf16.msra.mxu0 %v9840_v14  ;;  %s13443_s9 = sld [smem:[#allocation33_spill]]  ;;  %s13446_s17 = sld [smem:[#allocation47_spill]] }
 0x18e   :  { %9444 = vmatpush3.bf16.msra.mxu1 %v9841_v15  ;;  %9437 = vmatprep.subr.bf16.mxu0 %v13312_v16  ;;  %v8518_v27 = vld [vmem:[%s13421_s21] ss:$0 sm:$0xff]  ;;  %v9845_v37 = vld [vmem:[%s13423_s20 + $0x8] sm:$0xff]   ;;  %s13447_s1 = sld [smem:[#allocation48_spill]]  ;;  %s13448_s0 = sld [smem:[#allocation53_spill]] }
 0x18f   :  { %9445 = vmatprep.subr.bf16.mxu1 %v13312_v16  ;;  %v8519_v31 = vld [vmem:[%s13422_s16] ss:$0 sm:$0xff]  ;;  %v11367_v40 = vld [vmem:[%s13424_s18 + $0x1] sm:$0x1]  ;;  %v11378_v60 = vld [vmem:[%s13424_s18 + $0x2] sm:$0x1] }
 0x190   :  { %v9844_v35 = vld [vmem:[%s13423_s20] sm:$0xff]   ;;  %v421_v48 = vpack.c.bf16 %v11367_v40, %v11367_v40  ;;  %s13449_s4 = sld [smem:[#allocation52_spill]]  ;;  %s13450_s3 = sld [smem:[#allocation50_spill]] }
 0x191   :  { %9438 = vmatpush3.bf16.msra.mxu0 %v9842_v17  ;;  %v11364_v39 = vld [vmem:[%s13424_s18] sm:$0x1]  ;;  %s13451_s2 = sld [smem:[#allocation54_spill]]  ;;  %s13452_s8 = sld [smem:[#allocation36_spill]] }
 0x192   :  { %9446 = vmatpush3.bf16.msra.mxu1 %v9843_v18  ;;  %9451 = vmatprep.subr.bf16.mxu0 %v13312_v16  ;;  %v8520_v41 = vld [vmem:[%s13425_s13] ss:$0 sm:$0xff]  ;;  %v420_v47 = vpack.c.bf16 %v11364_v39, %v11364_v39  ;;  %v1008_v63 = vpack.i.b16 %v421_v48, %v421_v48  ;;  %s13455_s7 = sld [smem:[#allocation55_spill]]  ;;  %s13456_s10 = sld [smem:[#allocation56_spill]] }
 0x193   :  { %9459 = vmatprep.subr.bf16.mxu1 %v13312_v16  ;;  %v8524_v43 = vld [vmem:[%s13426_s22] ss:$0 sm:$0xff]  ;;  %s13459_s11 = sld [smem:[#allocation59_spill]]  ;;  %s13460_s24 = sld [smem:[#allocation57_spill]] }
 0x194   :  { %v1001_v61 = vpack.i.b16 %v420_v47, %v420_v47  ;;  %s13461_s15 = sld [smem:[#allocation58_spill]]  ;;  %s13462_s27 = sld [smem:[#allocation61_spill]] }
 0x195   :  { %s13463_s30 = sld [smem:[#allocation60_spill]]  ;;  %s13495_s25 = sld [smem:[#allocation62_spill]] }
 0x196   :  { %s13499_s29 = sld [smem:[#allocation64_spill]]  ;;  %s13500_s21 = sld [smem:[#allocation65_spill]] }
 0x197   :  { %s13501_s16 = sld [smem:[#allocation63_spill]]  ;;  %s13502_s20 = sld [smem:[#allocation66_spill]] }
 0x198   :  { %s13514_s13 = sld [smem:[#allocation69_spill]]  ;;  %s13515_s22 = sld [smem:[#allocation68_spill]] }
 0x215   :  { %v777_v4 = vpop.xlane.xlu0 %776 }
 0x216   :  { %v782_v5 = vmul.f32 0.03125, %v777_v4  ;;  %v422_v4 = vpack.c.bf16 %v11378_v60, %v11378_v60 }
 0x218   :  { %v784_v6 = vsub.f32 %v432_v0, %v782_v5  ;;  %v11384_v0 = vld [vmem:[%s13424_s18 + $0x3] sm:$0x1]  ;;  %v1015_v14 = vpack.i.b16 %v422_v4, %v422_v4  ;;  %s13509_s18 = sld [smem:[#allocation67_spill]] }
 0x219   :  { %v780_v7 = vpop.xlane.xlu0 %779 }
 0x21a   :  { %v783_v8 = vmul.f32 0.03125, %v780_v7  ;;  %v786_v9 = vmul.f32 %v784_v6, %v784_v6  ;;  %v11393_v7 = vrot.slane %v1001_v61, %v11381_v62 }
 0x21c   :  { %v785_v10 = vsub.f32 %v433_v1, %v783_v8  ;;  %v788_v11 = vsel %vm774_vm0, %v786_v9, 0.0  ;;  %v8528_v1 = vld [vmem:[%s13427_s23] ss:$0 sm:$0xff]  ;;  %13429 = vst [vmem:[#allocation76_spill] sm:$0xff] %v11393_v7  ;;  %v11396_v8 = vrot.slane %v1008_v63, %v11381_v62  ;;  %s13517_s23 = sld [smem:[#allocation70_spill]] }
 0x21d   :  { %789 = vadd.xlane.f32.xlu1 %v788_v11 }
 0x21e   :  { %v787_v12 = vmul.f32 %v785_v10, %v785_v10  ;;  %13430 = vst [vmem:[#allocation77_spill] sm:$0xff] %v11396_v8 }
 0x220   :  { %v791_v13 = vsel %vm774_vm0, %v787_v12, 0.0 }
 0x221   :  { %792 = vadd.xlane.f32.xlu1 %v791_v13 }
 0x2aa   :  { %v790_v19 = vpop.xlane.xlu1 %789 }
 0x2ab   :  { %v794_v20 = vmul.f32 0.03125, %v790_v19  ;;  %v11407_v19 = vrot.slane %v1015_v14, %v11381_v62 }
 0x2ad   :  { %v796_v21 = vadd.f32 1e-05, %v794_v20  ;;  %13431 = vst [vmem:[#allocation78_spill] sm:$0xff] %v11407_v19 }
 0x2ae   :  { %v793_v22 = vpop.xlane.xlu1 %792 }
 0x2af   :  { %10130 = vrsqrt.f32 %v796_v21  ;;  %v795_v23 = vmul.f32 0.03125, %v793_v22 }
 0x2b1   :  { %v797_v24 = vadd.f32 1e-05, %v795_v23  ;;  %v11431_v23 = vld [vmem:[%s13432_s26] sm:$0xff] }
 0x2b2   :  { %13434 = vst [vmem:[#allocation80_spill] sm:$0xff] %v11431_v23  ;;  %vm426_vm2 = vcmp.gt.f32.partialorder %v11431_v23, 0.0 }
 0x2b3   :  { %10132 = vrsqrt.f32 %v797_v24  ;;  %v11434_v24 = vld [vmem:[%s13432_s26 + $0x8] sm:$0xff]  ;;  %s13520_s26 = sld [smem:[#allocation71_spill]] }
 0x2b4   :  { %13435 = vst [vmem:[#allocation81_spill] sm:$0xff] %v11434_v24  ;;  %vm427_vm4 = vcmp.gt.f32.partialorder %v11434_v24, 0.0 }
 0x2b9   :  { %v10131_v25 = vpop.eup %10130 }
 0x2ba   :  { %v800_v26 = vmul.f32 %v10131_v25, %v784_v6  ;;  %v423_v6 = vpack.c.bf16 %v11384_v0, %v11384_v0 }
 0x2bc   :  { %v808_v30 = vmul.f32 %v8518_v27, %v800_v26  ;;  %v1022_v15 = vpack.i.b16 %v423_v6, %v423_v6 }
 0x2bd   :  { %v10133_v28 = vpop.eup %10132 }
 0x2be   :  { %v801_v29 = vmul.f32 %v10133_v28, %v785_v10  ;;  %v816_v33 = vadd.f32 %v8519_v31, %v808_v30  ;;  %v11410_v20 = vrot.slane %v1022_v15, %v11381_v62 }
 0x2c0   :  { %v809_v32 = vmul.f32 %v8518_v27, %v801_v29  ;;  %13433 = vst [vmem:[#allocation79_spill] sm:$0xff] %v11410_v20 }
 0x2c2   :  { %v817_v34 = vadd.f32 %v8519_v31, %v809_v32 }
 0x2c4   :  { %v818_v36 = vpack.c.bf16 %v817_v34, %v816_v33 }
 0x2c6   :  { %9440 = vmatmul.mubr.msk.bf16.vlgmr.msra.gmra.mrb[0].mxu0 %vm774_vm0, %v818_v36  ;;  %9448 = vmatmul.mubr.msk.bf16.vlgmr.msra.gmra.mrb[0].mxu1 %vm774_vm0, %v818_v36 }
 0x2c7   :  { %9452 = vmatpush3.bf16.msra.mxu0 %v9844_v35  ;;  %9455 = vmatprep.mubr.msk.bf16.mxu0 %vm10961_vm1, %v13312_v16 }
 0x2c8   :  { %9453 = vmatprep.subr.bf16.mxu0 %v13312_v16  ;;  %9461 = vmatprep.mubr.msk.bf16.mxu1 %vm10961_vm1, %v13312_v16 }
 0x2cb   :  { %9454 = vmatpush3.bf16.msra.mxu0 %v9845_v37 }
 0x2cc   :  { %9465 = vmatprep.subr.bf16.mxu0 %v13312_v16 }
 0x2ce   :  { %9456 = vmatmul.mubr.msk.bf16.vlgmr.msra.gmra.mrb[4].mxu0 %vm774_vm0, %v818_v36 }
 0x2cf   :  { %9467 = vmatprep.mubr.msk.bf16.mxu0 %vm10961_vm1, %v13312_v16 }
 0x399   :  { %v874_v42 = vpop.f32.mrb[0].mxu0  ;;  %v933_v44 = vpop.f32.mrb[0].mxu1 }
 0x39a   :  { %v9441_v45 = vpop.f32.mrb[1].mxu0  ;;  %v9449_v46 = vpop.f32.mrb[1].mxu1  ;;  %v875_v52 = vadd.f32 %v8520_v41, %v874_v42  ;;  %v934_v53 = vadd.f32 %v8524_v43, %v933_v44 }
 0x39b   :  { %v877_v49 = vpop.f32.mrb[2].mxu0  ;;  %v936_v51 = vpop.f32.mrb[2].mxu1 }
 0x39c   :  { %v878_v54 = vadd.f32 %v8520_v41, %v877_v49  ;;  %v937_v55 = vadd.f32 %v8524_v43, %v936_v51  ;;  %v9442_v56 = vpop.f32.mrb[3].mxu0  ;;  %v9450_v57 = vpop.f32.mrb[3].mxu1 }
 0x39e   :  { %v999_v58 = vpack.c.bf16 %v878_v54, %v875_v52  ;;  %v1032_v59 = vpack.c.bf16 %v937_v55, %v934_v53 }
 0x3a0   :  { %v1038_v3 = vsel %vm774_vm0, %v1032_v59, 0  ;;  %v1028_v17 = vmul.bf16 %v11393_v7, %v999_v58  ;;  %v1029_v18 = vmul.bf16 %v11396_v8, %v999_v58  ;;  %v1030_v21 = vmul.bf16 %v11407_v19, %v999_v58 }
 0x3a1   :  { %v992_v2 = vpop.f32.mrb[4].mxu0  ;;  %9460 = vmatpush3.bf16.xpose.msra.mxu1 %v1038_v3  ;;  %9466 = vmatpush3.bf16.xpose.msra.mxu0 %v1038_v3  ;;  %v1031_v22 = vmul.bf16 %v11410_v20, %v999_v58 }
 0x3a2   :  { %v9457_v5 = vpop.f32.mrb[5].mxu0  ;;  %9471 = vmatprep.subr.bf16.mxu1 %v13312_v16  ;;  %9477 = vmatprep.subr.bf16.mxu0 %v13312_v16  ;;  %v993_v10 = vadd.f32 %v8528_v1, %v992_v2 }
 0x3a3   :  { %v995_v9 = vpop.f32.mrb[6].mxu0 }
 0x3a4   :  { %v996_v11 = vadd.f32 %v8528_v1, %v995_v9  ;;  %v9458_v12 = vpop.f32.mrb[7].mxu0 }
 0x3a6   :  { %v11400_v13 = vpack.c.bf16 %v996_v11, %v993_v10 }
 0x3a8   :  { %9462 = vmatmul.mubr.msk.bf16.vlgmr.msra.gmra.mrb[4].mxu1 %vm774_vm0, %v1028_v17  ;;  %9468 = vmatmul.mubr.msk.bf16.vlgmr.msra.gmra.mrb[8].mxu0 %vm774_vm0, %v1029_v18 }
 0x3a9   :  { %9472 = vmatpush3.bf16.xpose.msra.mxu1 %v1038_v3  ;;  %9478 = vmatpush3.bf16.xpose.msra.mxu0 %v1038_v3 }
 0x3aa   :  { %9473 = vmatprep.mubr.msk.bf16.mxu1 %vm10961_vm1, %v13312_v16  ;;  %9479 = vmatprep.mubr.msk.bf16.mxu0 %vm10961_vm1, %v13312_v16 }
 0x3ab   :  { %9483 = vmatprep.subr.bf16.mxu1 %v13312_v16  ;;  %9489 = vmatprep.subr.bf16.mxu0 %v13312_v16 }
 0x3b0   :  { %9474 = vmatmul.mubr.msk.bf16.vlgmr.msra.gmra.mrb[8].mxu1 %vm774_vm0, %v1030_v21  ;;  %9480 = vmatmul.mubr.msk.bf16.vlgmr.msra.gmra.mrb[12].mxu0 %vm774_vm0, %v1031_v22 }
 0x3b1   :  { %9484 = vmatpush3.bf16.msra.mxu1 %v11400_v13  ;;  %9490 = vmatpush3.bf16.msra.mxu0 %v11400_v13 }
 0x3b2   :  { %9485 = vmatprep.mubr.msk.bf16.mxu1 %vm10961_vm1, %v13312_v16  ;;  %9495 = vmatprep.subr.bf16.mxu1 %v13312_v16 }
 0x3b3   :  { %9491 = vmatprep.mubr.msk.bf16.mxu0 %vm10961_vm1, %v13312_v16  ;;  %9501 = vmatprep.subr.bf16.mxu0 %v13312_v16 }
 0x47b   :  { %v1074_v25 = vpop.f32.mrb[4].mxu1  ;;  %v1118_v26 = vpop.f32.mrb[8].mxu0 }
 0x47c   :  { %v1213_v27 = vmul.f32 0.35355338, %v1074_v25  ;;  %v9463_v28 = vpop.f32.mrb[5].mxu1  ;;  %v9469_v29 = vpop.f32.mrb[9].mxu0  ;;  %v1215_v30 = vmul.f32 0.35355338, %v1118_v26 }
 0x47d   :  { %v1077_v31 = vpop.f32.mrb[6].mxu1  ;;  %v1121_v32 = vpop.f32.mrb[10].mxu0 }
 0x47e   :  { %v1214_v33 = vmul.f32 0.35355338, %v1077_v31  ;;  %v1216_v34 = vmul.f32 0.35355338, %v1121_v32  ;;  %v9464_v35 = vpop.f32.mrb[7].mxu1  ;;  %v9470_v36 = vpop.f32.mrb[11].mxu0 }
 0x47f   :  { %v1225_v37 = vsel %vm426_vm2, %v1213_v27, -inf  ;;  %v1227_v43 = vsel %vm426_vm2, %v1215_v30, -inf }
 0x480   :  { %v1234_v38 = vsel %vm1233_vm3, %v1225_v37, -inf  ;;  %v1226_v41 = vsel %vm427_vm4, %v1214_v33, -inf  ;;  %v1228_v44 = vsel %vm427_vm4, %v1216_v34, -inf  ;;  %v1240_v49 = vsel %vm1233_vm3, %v1227_v43, -inf }
 0x481   :  { %1235 = vmax.xlane.f32.xlu0 %v1234_v38  ;;  %v1237_v42 = vsel %vm1233_vm3, %v1226_v41, -inf  ;;  %v1243_v55 = vsel %vm1233_vm3, %v1228_v44, -inf }
 0x482   :  { %1238 = vmax.xlane.f32.xlu1 %v1237_v42 }
 0x483   :  { %v1162_v45 = vpop.f32.mrb[8].mxu1  ;;  %v1206_v46 = vpop.f32.mrb[12].mxu0 }
 0x484   :  { %v1217_v47 = vmul.f32 0.35355338, %v1162_v45  ;;  %v9481_v48 = vpop.f32.mrb[13].mxu0  ;;  %v9475_v51 = vpop.f32.mrb[9].mxu1  ;;  %v1219_v52 = vmul.f32 0.35355338, %v1206_v46 }
 0x485   :  { %1241 = vmax.xlane.f32.xlu0 %v1240_v49  ;;  %v1165_v53 = vpop.f32.mrb[10].mxu1  ;;  %v1209_v54 = vpop.f32.mrb[14].mxu0 }
 0x486   :  { %v1218_v56 = vmul.f32 0.35355338, %v1165_v53  ;;  %v1220_v57 = vmul.f32 0.35355338, %v1209_v54  ;;  %v9482_v58 = vpop.f32.mrb[15].mxu0  ;;  %1244 = vmax.xlane.f32.xlu1 %v1243_v55  ;;  %v9476_v59 = vpop.f32.mrb[11].mxu1 }
 0x487   :  { %v1229_v61 = vsel %vm426_vm2, %v1217_v47, -inf  ;;  %v1231_v3 = vsel %vm426_vm2, %v1219_v52, -inf }
 0x488   :  { %v1246_v63 = vsel %vm1233_vm3, %v1229_v61, -inf  ;;  %v1230_v1 = vsel %vm427_vm4, %v1218_v56, -inf  ;;  %v1232_v4 = vsel %vm427_vm4, %v1220_v57, -inf  ;;  %v1252_v5 = vsel %vm1233_vm3, %v1231_v3, -inf }
 0x489   :  { %1247 = vmax.xlane.f32.xlu0 %v1246_v63  ;;  %v1249_v2 = vsel %vm1233_vm3, %v1230_v1, -inf  ;;  %v1255_v6 = vsel %vm1233_vm3, %v1232_v4, -inf  ;;  %v9846_v63 = vld [vmem:[%s13436_s6] sm:$0xff]  }
 0x48a   :  { %1250 = vmax.xlane.f32.xlu1 %v1249_v2 }
 0x48d   :  { %1253 = vmax.xlane.f32.xlu0 %v1252_v5 }
 0x48e   :  { %1256 = vmax.xlane.f32.xlu1 %v1255_v6 }
 0x50e   :  { %v1236_v9 = vpop.xlane.xlu0 %1235 }
 0x50f   :  { %v1258_v10 = vsub.f32 %v1225_v37, %v1236_v9  ;;  %v1239_v11 = vpop.xlane.xlu1 %1238 }
 0x510   :  { %v1259_v12 = vsub.f32 %v1226_v41, %v1239_v11 }
 0x511   :  { %v1266_v14 = vmul.f32 1.442695, %v1258_v10 }
 0x512   :  { %v1268_v15 = vmul.f32 1.442695, %v1259_v12  ;;  %v1242_v17 = vpop.xlane.xlu0 %1241 }
 0x513   :  { %10134 = vpow2.f32 %v1266_v14  ;;  %v1260_v18 = vsub.f32 %v1227_v43, %v1242_v17  ;;  %v1245_v21 = vpop.xlane.xlu1 %1244  ;;  %v11492_v14 = vrot.slane %v11364_v39, %v11381_v62 }
 0x514   :  { %10136 = vpow2.f32 %v1268_v15  ;;  %v1261_v22 = vsub.f32 %v1228_v44, %v1245_v21 }
 0x515   :  { %v1270_v25 = vmul.f32 1.442695, %v1260_v18  ;;  %13437 = vst [vmem:[#allocation82_spill] sm:$0xff] %v11492_v14 }
 0x516   :  { %v1272_v26 = vmul.f32 1.442695, %v1261_v22  ;;  %v1248_v27 = vpop.xlane.xlu0 %1247 }
 0x517   :  { %10138 = vpow2.f32 %v1270_v25  ;;  %v1262_v28 = vsub.f32 %v1229_v61, %v1248_v27  ;;  %v1251_v29 = vpop.xlane.xlu1 %1250  ;;  %v11496_v25 = vrot.slane %v11367_v40, %v11381_v62 }
 0x518   :  { %10140 = vpow2.f32 %v1272_v26  ;;  %v1263_v30 = vsub.f32 %v1230_v1, %v1251_v29  ;;  %v9847_v1 = vld [vmem:[%s13436_s6 + $0x8] sm:$0xff]   ;;  %s13524_s6 = sld [smem:[#allocation72_spill]] }
 0x519   :  { %v1274_v31 = vmul.f32 1.442695, %v1262_v28  ;;  %13438 = vst [vmem:[#allocation83_spill] sm:$0xff] %v11496_v25 }
 0x51a   :  { %v1276_v32 = vmul.f32 1.442695, %v1263_v30  ;;  %v1254_v33 = vpop.xlane.xlu0 %1253 }
 0x51b   :  { %10142 = vpow2.f32 %v1274_v31  ;;  %v1264_v34 = vsub.f32 %v1231_v3, %v1254_v33  ;;  %v1257_v35 = vpop.xlane.xlu1 %1256 }
 0x51c   :  { %10144 = vpow2.f32 %v1276_v32  ;;  %v1265_v36 = vsub.f32 %v1232_v4, %v1257_v35 }
 0x51d   :  { %v10135_v37 = vpop.eup %10134  ;;  %v1278_v38 = vmul.f32 1.442695, %v1264_v34  ;;  %v11501_v34 = vrot.slane %v11378_v60, %v11381_v62  ;;  %v11510_v60 = vrot.slane %v11384_v0, %v11381_v62 }
 0x51e   :  { %v10137_v41 = vpop.eup %10136  ;;  %v1280_v42 = vmul.f32 1.442695, %v1265_v36  ;;  %v1282_v43 = vsel %vm1233_vm3, %v10135_v37, 0.0 }
 0x51f   :  { %10146 = vpow2.f32 %v1278_v38  ;;  %1283 = vadd.xlane.f32.xlu0 %v1282_v43  ;;  %v1285_v44 = vsel %vm1233_vm3, %v10137_v41, 0.0  ;;  %v1306_v45 = vpack.c.bf16 %v10137_v41, %v10135_v37  ;;  %13439 = vst [vmem:[#allocation84_spill] sm:$0xff] %v11501_v34  ;;  %13440 = vst [vmem:[#allocation85_spill] sm:$0xff] %v11510_v60 }
 0x520   :  { %10148 = vpow2.f32 %v1280_v42  ;;  %1286 = vadd.xlane.f32.xlu1 %v1285_v44 }
 0x521   :  { %v10139_v46 = vpop.eup %10138  ;;  %9486 = vmatmul.mubr.msk.bf16.vlgmr.msra.gmra.mrb[12].mxu1 %vm1233_vm3, %v1306_v45 }
 0x522   :  { %v10141_v47 = vpop.eup %10140  ;;  %9496 = vmatpush3.bf16.msra.mxu1 %v11400_v13  ;;  %v1288_v48 = vsel %vm1233_vm3, %v10139_v46, 0.0  ;;  %9497 = vmatprep.mubr.msk.bf16.mxu1 %vm10961_vm1, %v13312_v16 }
 0x523   :  { %1289 = vadd.xlane.f32.xlu0 %v1288_v48  ;;  %v1291_v49 = vsel %vm1233_vm3, %v10141_v47, 0.0  ;;  %v1307_v51 = vpack.c.bf16 %v10141_v47, %v10139_v46  ;;  %9507 = vmatprep.subr.bf16.mxu1 %v13312_v16 }
 0x524   :  { %1292 = vadd.xlane.f32.xlu1 %v1291_v49 }
 0x525   :  { %v10143_v52 = vpop.eup %10142  ;;  %9492 = vmatmul.mubr.msk.bf16.vlgmr.msra.gmra.mrb[16].mxu0 %vm1233_vm3, %v1307_v51 }
 0x526   :  { %v10145_v53 = vpop.eup %10144  ;;  %9502 = vmatpush3.bf16.msra.mxu0 %v11400_v13  ;;  %v1294_v54 = vsel %vm1233_vm3, %v10143_v52, 0.0  ;;  %9503 = vmatprep.mubr.msk.bf16.mxu0 %vm10961_vm1, %v13312_v16 }
 0x527   :  { %1295 = vadd.xlane.f32.xlu0 %v1294_v54  ;;  %v1297_v55 = vsel %vm1233_vm3, %v10145_v53, 0.0  ;;  %v1308_v56 = vpack.c.bf16 %v10145_v53, %v10143_v52  ;;  %9515 = vmatprep.subr.bf16.mxu0 %v13312_v16 }
 0x528   :  { %1298 = vadd.xlane.f32.xlu1 %v1297_v55 }
 0x529   :  { %v10147_v57 = vpop.eup %10146  ;;  %9498 = vmatmul.mubr.msk.bf16.vlgmr.msra.gmra.mrb[16].mxu1 %vm1233_vm3, %v1308_v56 }
 0x52a   :  { %v10149_v58 = vpop.eup %10148  ;;  %v1300_v13 = vsel %vm1233_vm3, %v10147_v57, 0.0  ;;  %9511 = vmatprep.mubr.msk.bf16.mxu1 %vm10961_vm1, %v13312_v16  ;;  %9508 = vmatpush3.bf16.msra.mxu1 %v9846_v63 }
 0x52b   :  { %1301 = vadd.xlane.f32.xlu0 %v1300_v13  ;;  %v1303_v59 = vsel %vm1233_vm3, %v10149_v58, 0.0  ;;  %v1309_v61 = vpack.c.bf16 %v10149_v58, %v10147_v57  ;;  %9509 = vmatprep.subr.bf16.mxu1 %v13312_v16 }
 0x52c   :  { %1304 = vadd.xlane.f32.xlu1 %v1303_v59 }
 0x52d   :  { %9504 = vmatmul.mubr.msk.bf16.vlgmr.msra.gmra.mrb[20].mxu0 %vm1233_vm3, %v1309_v61 }
 0x52e   :  { %9519 = vmatprep.mubr.msk.bf16.mxu0 %vm10961_vm1, %v13312_v16  ;;  %9510 = vmatpush3.bf16.msra.mxu1 %v9847_v1 }
 0x52f   :  { %9523 = vmatprep.subr.bf16.mxu1 %v13312_v16 }
 0x5ac   :  { %v1284_v2 = vpop.xlane.xlu0 %1283 }
 0x5ad   :  { %v1287_v3 = vpop.xlane.xlu1 %1286  ;;  %10150 = vrcp.f32 %v1284_v2 }
 0x5ae   :  { %10152 = vrcp.f32 %v1287_v3 }
 0x5b0   :  { %v1290_v4 = vpop.xlane.xlu0 %1289 }
 0x5b1   :  { %v1293_v5 = vpop.xlane.xlu1 %1292  ;;  %10154 = vrcp.f32 %v1290_v4 }
 0x5b2   :  { %10156 = vrcp.f32 %v1293_v5 }
 0x5b4   :  { %v1296_v6 = vpop.xlane.xlu0 %1295 }
 0x5b5   :  { %v1299_v9 = vpop.xlane.xlu1 %1298  ;;  %10158 = vrcp.f32 %v1296_v6 }
 0x5b6   :  { %10160 = vrcp.f32 %v1299_v9 }
 0x5b7   :  { %v10151_v11 = vpop.eup %10150 }
 0x5b8   :  { %v1302_v10 = vpop.xlane.xlu0 %1301  ;;  %v10153_v21 = vpop.eup %10152 }
 0x5b9   :  { %v1305_v15 = vpop.xlane.xlu1 %1304  ;;  %10162 = vrcp.f32 %v1302_v10 }
 0x5ba   :  { %10164 = vrcp.f32 %v1305_v15 }
 0x5bb   :  { %v10155_v28 = vpop.eup %10154 }
 0x5bc   :  { %v10157_v32 = vpop.eup %10156 }
 0x5bf   :  { %v10159_v38 = vpop.eup %10158 }
 0x5c0   :  { %v10161_v47 = vpop.eup %10160 }
 0x5c3   :  { %v10163_v56 = vpop.eup %10162 }
 0x5c4   :  { %v10165_v63 = vpop.eup %10164 }
 0x5f4   :  { %v1347_v12 = vpop.f32.mrb[12].mxu1 }
 0x5f5   :  { %v1494_v17 = vmul.f32 %v10151_v11, %v1347_v12  ;;  %v9487_v18 = vpop.f32.mrb[13].mxu1 }
 0x5f6   :  { %v1350_v22 = vpop.f32.mrb[14].mxu1 }
 0x5f7   :  { %v1495_v26 = vmul.f32 %v10153_v21, %v1350_v22  ;;  %v9488_v27 = vpop.f32.mrb[15].mxu1  ;;  %v1526_v30 = vmul.f32 %v11492_v14, %v1494_v17  ;;  %v8540_v21 = vld [vmem:[%s13441_s12] ss:$0 sm:$0xff]  ;;  %s13525_s12 = sld [smem:[#allocation74_spill]] }
 0x5f8   :  { %v1391_v29 = vpop.f32.mrb[16].mxu0 }
 0x5f9   :  { %v1496_v31 = vmul.f32 %v10155_v28, %v1391_v29  ;;  %v9493_v39 = vpop.f32.mrb[17].mxu0  ;;  %v1527_v35 = vmul.f32 %v11492_v14, %v1495_v26  ;;  %v1534_v42 = vsel %vm774_vm0, %v1526_v30, 0.0  ;;  %v10538_v29 = vld [vmem:[%s10971_s5] sm:$0xff] }
 0x5fa   :  { %v1394_v33 = vpop.f32.mrb[18].mxu0 }
 0x5fb   :  { %v1528_v40 = vmul.f32 %v11496_v25, %v1496_v31  ;;  %v1497_v36 = vmul.f32 %v10157_v32, %v1394_v33  ;;  %v9494_v37 = vpop.f32.mrb[19].mxu0  ;;  %v1541_v51 = vsel %vm774_vm0, %v1527_v35, 0.0  ;;  %v10539_v32 = vld [vmem:[%s10971_s5 + $0x8] sm:$0xff]  ;;  %s13444_s5 = sld [smem:[#allocation49_spill]] }
 0x5fc   :  { %v1435_v41 = vpop.f32.mrb[16].mxu1 }
 0x5fd   :  { %v1535_v43 = vsel %vm774_vm0, %v1528_v40, 0.0  ;;  %v1529_v44 = vmul.f32 %v11496_v25, %v1497_v36  ;;  %v1498_v45 = vmul.f32 %v10159_v38, %v1435_v41  ;;  %v9499_v46 = vpop.f32.mrb[17].mxu1 }
 0x5fe   :  { %v1536_v48 = vadd.f32 %v1535_v43, %v1534_v42  ;;  %v1438_v49 = vpop.f32.mrb[18].mxu1 }
 0x5ff   :  { %v1542_v52 = vsel %vm774_vm0, %v1529_v44, 0.0  ;;  %v1530_v53 = vmul.f32 %v11501_v34, %v1498_v45  ;;  %v1499_v54 = vmul.f32 %v10161_v47, %v1438_v49  ;;  %v9500_v55 = vpop.f32.mrb[19].mxu1  ;;  %v9849_v49 = vld [vmem:[%s13442_s28 + $0x8] sm:$0xff]  }
 0x600   :  { %v1543_v57 = vadd.f32 %v1542_v52, %v1541_v51  ;;  %v1479_v58 = vpop.f32.mrb[20].mxu0  ;;  %v434_v51 = vld [vmem:[%s13443_s9] sm:$0xff]  ;;  %v435_v52 = vld [vmem:[%s13443_s9 + $0x8] sm:$0xff] }
 0x601   :  { %v1537_v13 = vsel %vm774_vm0, %v1530_v53, 0.0  ;;  %v1531_v59 = vmul.f32 %v11501_v34, %v1499_v54  ;;  %v1500_v61 = vmul.f32 %v10163_v56, %v1479_v58  ;;  %v9505_v0 = vpop.f32.mrb[21].mxu0  ;;  %v11545_v53 = vpack.c.bf16 %v435_v52, %v434_v51  ;;  %v9850_v54 = vld [vmem:[%s13444_s5] sm:$0xff]   ;;  %v9851_v55 = vld [vmem:[%s13444_s5 + $0x8] sm:$0xff]  }
 0x602   :  { %v1538_v1 = vadd.f32 %v1537_v13, %v1536_v48  ;;  %v1482_v2 = vpop.f32.mrb[22].mxu0  ;;  %v9848_v48 = vld [vmem:[%s13442_s28] sm:$0xff]   ;;  %9516 = vmatpush3.bf16.msra.mxu0 %v9850_v54  ;;  %s13526_s28 = sld [smem:[#allocation73_spill]] }
 0x603   :  { %v1544_v3 = vsel %vm774_vm0, %v1531_v59, 0.0  ;;  %v1532_v4 = vmul.f32 %v11510_v60, %v1500_v61  ;;  %v1501_v5 = vmul.f32 %v10165_v63, %v1482_v2  ;;  %v9506_v6 = vpop.f32.mrb[23].mxu0  ;;  %13445 = vst [vmem:[#allocation86_spill] sm:$0xff] %v11545_v53  ;;  %9517 = vmatprep.subr.bf16.mxu0 %v13312_v16  ;;  %v8544_v63 = vld [vmem:[%s13446_s17] ss:$0 sm:$0xff] }
 0x604   :  { %v1545_v9 = vadd.f32 %v1544_v3, %v1543_v57 }
 0x605   :  { %v1539_v10 = vsel %vm774_vm0, %v1532_v4, 0.0  ;;  %v1533_v11 = vmul.f32 %v11510_v60, %v1501_v5  ;;  %v8545_v5 = vld [vmem:[%s13447_s1] ss:$0 sm:$0xff] }
 0x606   :  { %v1540_v12 = vadd.f32 %v1539_v10, %v1538_v1  ;;  %9518 = vmatpush3.bf16.msra.mxu0 %v9851_v55 }
 0x607   :  { %v1546_v15 = vsel %vm774_vm0, %v1533_v11, 0.0  ;;  %9531 = vmatprep.subr.bf16.mxu0 %v13312_v16  ;;  %v9852_v11 = vld [vmem:[%s13448_s0] sm:$0xff]  }
 0x608   :  { %v1547_v17 = vadd.f32 %v1546_v15, %v1545_v9  ;;  %v9853_v15 = vld [vmem:[%s13448_s0 + $0x8] sm:$0xff]  }
 0x60a   :  { %v1548_v18 = vpack.c.bf16 %v1547_v17, %v1540_v12  ;;  %v8550_v17 = vld [vmem:[%s13449_s4] ss:$0 sm:$0xff] }
 0x60c   :  { %9512 = vmatmul.mubr.msk.bf16.vlgmr.msra.gmra.mrb[20].mxu1 %vm774_vm0, %v1548_v18 }
 0x60d   :  { %9527 = vmatprep.mubr.msk.bf16.mxu1 %vm10961_vm1, %v13312_v16  ;;  %9524 = vmatpush3.bf16.msra.mxu1 %v9848_v48 }
 0x60e   :  { %9525 = vmatprep.subr.bf16.mxu1 %v13312_v16 }
 0x611   :  { %9526 = vmatpush3.bf16.msra.mxu1 %v9849_v49 }
 0x612   :  { %9539 = vmatprep.subr.bf16.mxu1 %v13312_v16 }
 0x614   :  { %9528 = vmatmul.mubr.msk.bf16.vlgmr.msra.gmra.mrb[24].mxu1 %vm774_vm0, %v11545_v53 }
 0x615   :  { %9541 = vmatprep.mubr.msk.bf16.mxu1 %vm10961_vm1, %v13312_v16 }
 0x6df   :  { %v1604_v22 = vpop.f32.mrb[20].mxu1 }
 0x6e0   :  { %v1605_v26 = vadd.f32 %v8540_v21, %v1604_v22  ;;  %v9513_v27 = vpop.f32.mrb[21].mxu1 }
 0x6e1   :  { %v1607_v28 = vpop.f32.mrb[22].mxu1 }
 0x6e2   :  { %v11527_v30 = vadd.f32 %v10538_v29, %v1605_v26  ;;  %v1608_v31 = vadd.f32 %v8540_v21, %v1607_v28  ;;  %v9514_v39 = vpop.f32.mrb[23].mxu1 }
 0x6e3   :  { %v8546_v39 = vld [vmem:[%s13450_s3] ss:$0 sm:$0xff] }
 0x6e4   :  { %v11530_v33 = vadd.f32 %v10539_v32, %v1608_v31  ;;  %v1613_v35 = vsel %vm774_vm0, %v11527_v30, 0.0 }
 0x6e5   :  { %1614 = vadd.xlane.f32.xlu0 %v1613_v35 }
 0x6e6   :  { %v1616_v40 = vsel %vm774_vm0, %v11530_v33, 0.0 }
 0x6e7   :  { %1617 = vadd.xlane.f32.xlu1 %v1616_v40  ;;  %v1773_v18 = vpop.f32.mrb[24].mxu1 }
 0x6e8   :  { %v1774_v21 = vadd.f32 %v8550_v17, %v1773_v18  ;;  %v9529_v22 = vpop.f32.mrb[25].mxu1 }
 0x6e9   :  { %v1776_v26 = vpop.f32.mrb[26].mxu1 }
 0x6ea   :  { %v1777_v27 = vadd.f32 %v8550_v17, %v1776_v26  ;;  %v9530_v28 = vpop.f32.mrb[27].mxu1 }
 0x6ec   :  { %v1844_v29 = vpack.c.bf16 %v1777_v27, %v1774_v21 }
 0x6ee   :  { %v1850_v31 = vsel %vm774_vm0, %v1844_v29, 0 }
 0x6ef   :  { %9540 = vmatpush3.bf16.xpose.msra.mxu1 %v1850_v31 }
 0x6f0   :  { %9551 = vmatprep.subr.bf16.mxu1 %v13312_v16 }
 0x772   :  { %v1615_v36 = vpop.xlane.xlu0 %1614 }
 0x773   :  { %v1619_v37 = vmul.f32 0.03125, %v1615_v36 }
 0x774   :  { %v1618_v38 = vpop.xlane.xlu1 %1617 }
 0x775   :  { %v1621_v41 = vsub.f32 %v11527_v30, %v1619_v37  ;;  %v1620_v42 = vmul.f32 0.03125, %v1618_v38 }
 0x777   :  { %v1622_v43 = vsub.f32 %v11530_v33, %v1620_v42  ;;  %v1623_v44 = vmul.f32 %v1621_v41, %v1621_v41  ;;  %v8554_v42 = vld [vmem:[%s13451_s2] ss:$0 sm:$0xff] }
 0x779   :  { %v1625_v45 = vsel %vm774_vm0, %v1623_v44, 0.0  ;;  %v1624_v46 = vmul.f32 %v1622_v43, %v1622_v43 }
 0x77a   :  { %1626 = vadd.xlane.f32.xlu0 %v1625_v45 }
 0x77b   :  { %v1628_v47 = vsel %vm774_vm0, %v1624_v46, 0.0 }
 0x77c   :  { %1629 = vadd.xlane.f32.xlu1 %v1628_v47 }
 0x807   :  { %v1627_v56 = vpop.xlane.xlu0 %1626 }
 0x808   :  { %v1631_v57 = vmul.f32 0.03125, %v1627_v56  ;;  %v11600_v56 = vld [vmem:[%s13452_s8] sm:$0xff] }
 0x809   :  { %v1630_v58 = vpop.xlane.xlu1 %1629  ;;  %13453 = vst [vmem:[#allocation87_spill] sm:$0xff] %v11600_v56  ;;  %vm430_vm5 = vcmp.gt.f32.partialorder %v11600_v56, 0.0 }
 0x80a   :  { %v1633_v13 = vadd.f32 1e-05, %v1631_v57  ;;  %v1632_v59 = vmul.f32 0.03125, %v1630_v58  ;;  %v11603_v57 = vld [vmem:[%s13452_s8 + $0x8] sm:$0xff] }
 0x80b   :  { %13454 = vst [vmem:[#allocation88_spill] sm:$0xff] %v11603_v57  ;;  %vm431_vm6 = vcmp.gt.f32.partialorder %v11603_v57, 0.0 }
 0x80c   :  { %10166 = vrsqrt.f32 %v1633_v13  ;;  %v1634_v61 = vadd.f32 1e-05, %v1632_v59 }
 0x80e   :  { %10168 = vrsqrt.f32 %v1634_v61 }
 0x816   :  { %v10167_v0 = vpop.eup %10166 }
 0x817   :  { %v1637_v1 = vmul.f32 %v10167_v0, %v1621_v41 }
 0x818   :  { %v10169_v2 = vpop.eup %10168 }
 0x819   :  { %v1645_v3 = vmul.f32 %v8544_v63, %v1637_v1  ;;  %v1638_v4 = vmul.f32 %v10169_v2, %v1622_v43 }
 0x81b   :  { %v1646_v6 = vmul.f32 %v8544_v63, %v1638_v4  ;;  %v1653_v9 = vadd.f32 %v8545_v5, %v1645_v3 }
 0x81d   :  { %v1654_v10 = vadd.f32 %v8545_v5, %v1646_v6 }
 0x81f   :  { %v1655_v12 = vpack.c.bf16 %v1654_v10, %v1653_v9 }
 0x821   :  { %9520 = vmatmul.mubr.msk.bf16.vlgmr.msra.gmra.mrb[24].mxu0 %vm774_vm0, %v1655_v12 }
 0x822   :  { %9532 = vmatpush3.bf16.msra.mxu0 %v9852_v11  ;;  %9535 = vmatprep.mubr.msk.bf16.mxu0 %vm10961_vm1, %v13312_v16 }
 0x823   :  { %9533 = vmatprep.subr.bf16.mxu0 %v13312_v16 }
 0x826   :  { %9534 = vmatpush3.bf16.msra.mxu0 %v9853_v15 }
 0x827   :  { %9545 = vmatprep.subr.bf16.mxu0 %v13312_v16 }
 0x829   :  { %9536 = vmatmul.mubr.msk.bf16.vlgmr.msra.gmra.mrb[28].mxu0 %vm774_vm0, %v11545_v53 }
 0x82a   :  { %9547 = vmatprep.mubr.msk.bf16.mxu0 %vm10961_vm1, %v13312_v16 }
 0x82f   :  { %9546 = vmatpush3.bf16.xpose.msra.mxu0 %v1850_v31 }
 0x830   :  { %9557 = vmatprep.subr.bf16.mxu0 %v13312_v16 }
 0x8f4   :  { %v1711_v32 = vpop.f32.mrb[24].mxu0 }
 0x8f5   :  { %v9521_v35 = vpop.f32.mrb[25].mxu0  ;;  %v1712_v36 = vadd.f32 %v8546_v39, %v1711_v32 }
 0x8f6   :  { %v1714_v40 = vpop.f32.mrb[26].mxu0 }
 0x8f7   :  { %v1715_v37 = vadd.f32 %v8546_v39, %v1714_v40  ;;  %v9522_v38 = vpop.f32.mrb[27].mxu0 }
 0x8f9   :  { %v1839_v41 = vpack.c.bf16 %v1715_v37, %v1712_v36 }
 0x8fb   :  { %v1840_v43 = vmul.bf16 %v1839_v41, %v11393_v7  ;;  %v1841_v44 = vmul.bf16 %v1839_v41, %v11396_v8  ;;  %v1842_v54 = vmul.bf16 %v1839_v41, %v11407_v19  ;;  %v1843_v55 = vmul.bf16 %v1839_v41, %v11410_v20 }
 0x8fc   :  { %v1832_v45 = vpop.f32.mrb[28].mxu0 }
 0x8fd   :  { %9542 = vmatmul.mubr.msk.bf16.vlgmr.msra.gmra.mrb[28].mxu1 %vm774_vm0, %v1840_v43  ;;  %9548 = vmatmul.mubr.msk.bf16.vlgmr.msra.gmra.mrb[32].mxu0 %vm774_vm0, %v1841_v44  ;;  %v1833_v46 = vadd.f32 %v8554_v42, %v1832_v45  ;;  %v9537_v47 = vpop.f32.mrb[29].mxu0 }
 0x8fe   :  { %9552 = vmatpush3.bf16.xpose.msra.mxu1 %v1850_v31  ;;  %9558 = vmatpush3.bf16.xpose.msra.mxu0 %v1850_v31  ;;  %v1835_v48 = vpop.f32.mrb[30].mxu0 }
 0x8ff   :  { %9553 = vmatprep.mubr.msk.bf16.mxu1 %vm10961_vm1, %v13312_v16  ;;  %9559 = vmatprep.mubr.msk.bf16.mxu0 %vm10961_vm1, %v13312_v16  ;;  %v1836_v49 = vadd.f32 %v8554_v42, %v1835_v48  ;;  %v9538_v51 = vpop.f32.mrb[31].mxu0 }
 0x900   :  { %9563 = vmatprep.subr.bf16.mxu1 %v13312_v16  ;;  %9569 = vmatprep.subr.bf16.mxu0 %v13312_v16 }
 0x901   :  { %v11585_v52 = vpack.c.bf16 %v1836_v49, %v1833_v46 }
 0x905   :  { %9554 = vmatmul.mubr.msk.bf16.vlgmr.msra.gmra.mrb[32].mxu1 %vm774_vm0, %v1842_v54  ;;  %9560 = vmatmul.mubr.msk.bf16.vlgmr.msra.gmra.mrb[36].mxu0 %vm774_vm0, %v1843_v55 }
 0x906   :  { %9564 = vmatpush3.bf16.msra.mxu1 %v11585_v52  ;;  %9570 = vmatpush3.bf16.msra.mxu0 %v11585_v52 }
 0x907   :  { %9565 = vmatprep.mubr.msk.bf16.mxu1 %vm10961_vm1, %v13312_v16  ;;  %9575 = vmatprep.subr.bf16.mxu1 %v13312_v16 }
 0x908   :  { %9571 = vmatprep.mubr.msk.bf16.mxu0 %vm10961_vm1, %v13312_v16  ;;  %9581 = vmatprep.subr.bf16.mxu0 %v13312_v16 }
 0x9d0   :  { %v1886_v58 = vpop.f32.mrb[28].mxu1  ;;  %v1930_v13 = vpop.f32.mrb[32].mxu0 }
 0x9d1   :  { %v2025_v59 = vmul.f32 0.35355338, %v1886_v58  ;;  %v9543_v61 = vpop.f32.mrb[29].mxu1  ;;  %v9549_v0 = vpop.f32.mrb[33].mxu0  ;;  %v2027_v63 = vmul.f32 0.35355338, %v1930_v13 }
 0x9d2   :  { %v1889_v1 = vpop.f32.mrb[30].mxu1  ;;  %v1933_v2 = vpop.f32.mrb[34].mxu0 }
 0x9d3   :  { %v2026_v3 = vmul.f32 0.35355338, %v1889_v1  ;;  %v2028_v4 = vmul.f32 0.35355338, %v1933_v2  ;;  %v9544_v5 = vpop.f32.mrb[31].mxu1  ;;  %v9550_v6 = vpop.f32.mrb[35].mxu0 }
 0x9d4   :  { %v2037_v9 = vsel %vm430_vm5, %v2025_v59, -inf  ;;  %v2039_v15 = vsel %vm430_vm5, %v2027_v63, -inf }
 0x9d5   :  { %v2045_v10 = vsel %vm1233_vm3, %v2037_v9, -inf  ;;  %v2038_v11 = vsel %vm431_vm6, %v2026_v3, -inf  ;;  %v2040_v17 = vsel %vm431_vm6, %v2028_v4, -inf  ;;  %v2051_v27 = vsel %vm1233_vm3, %v2039_v15, -inf }
 0x9d6   :  { %2046 = vmax.xlane.f32.xlu0 %v2045_v10  ;;  %v2048_v12 = vsel %vm1233_vm3, %v2038_v11, -inf  ;;  %v2054_v32 = vsel %vm1233_vm3, %v2040_v17, -inf }
 0x9d7   :  { %2049 = vmax.xlane.f32.xlu1 %v2048_v12 }
 0x9d8   :  { %v1974_v18 = vpop.f32.mrb[32].mxu1  ;;  %v2018_v21 = vpop.f32.mrb[36].mxu0 }
 0x9d9   :  { %v2029_v22 = vmul.f32 0.35355338, %v1974_v18  ;;  %v9561_v26 = vpop.f32.mrb[37].mxu0  ;;  %v9555_v28 = vpop.f32.mrb[33].mxu1  ;;  %v2031_v29 = vmul.f32 0.35355338, %v2018_v21 }
 0x9da   :  { %2052 = vmax.xlane.f32.xlu0 %v2051_v27  ;;  %v1977_v31 = vpop.f32.mrb[34].mxu1  ;;  %v2021_v39 = vpop.f32.mrb[38].mxu0 }
 0x9db   :  { %v2030_v35 = vmul.f32 0.35355338, %v1977_v31  ;;  %v2032_v40 = vmul.f32 0.35355338, %v2021_v39  ;;  %v9562_v36 = vpop.f32.mrb[39].mxu0  ;;  %2055 = vmax.xlane.f32.xlu1 %v2054_v32  ;;  %v9556_v37 = vpop.f32.mrb[35].mxu1 }
 0x9dc   :  { %v2041_v38 = vsel %vm430_vm5, %v2029_v22, -inf  ;;  %v2043_v44 = vsel %vm430_vm5, %v2031_v29, -inf }
 0x9dd   :  { %v2057_v41 = vsel %vm1233_vm3, %v2041_v38, -inf  ;;  %v2042_v42 = vsel %vm431_vm6, %v2030_v35, -inf  ;;  %v2044_v45 = vsel %vm431_vm6, %v2032_v40, -inf  ;;  %v2063_v46 = vsel %vm1233_vm3, %v2043_v44, -inf }
 0x9de   :  { %2058 = vmax.xlane.f32.xlu0 %v2057_v41  ;;  %v2060_v43 = vsel %vm1233_vm3, %v2042_v42, -inf  ;;  %v2066_v47 = vsel %vm1233_vm3, %v2044_v45, -inf }
 0x9df   :  { %2061 = vmax.xlane.f32.xlu1 %v2060_v43 }
 0x9e2   :  { %2064 = vmax.xlane.f32.xlu0 %v2063_v46  ;;  %v9854_v46 = vld [vmem:[%s13455_s7] sm:$0xff]  }
 0x9e3   :  { %2067 = vmax.xlane.f32.xlu1 %v2066_v47  ;;  %v9855_v47 = vld [vmem:[%s13455_s7 + $0x8] sm:$0xff]  }
 0xa63   :  { %v2047_v48 = vpop.xlane.xlu0 %2046 }
 0xa64   :  { %v2069_v49 = vsub.f32 %v2037_v9, %v2047_v48  ;;  %v2050_v51 = vpop.xlane.xlu1 %2049 }
 0xa65   :  { %v2070_v54 = vsub.f32 %v2038_v11, %v2050_v51 }
 0xa66   :  { %v2077_v55 = vmul.f32 1.442695, %v2069_v49 }
 0xa67   :  { %v2079_v58 = vmul.f32 1.442695, %v2070_v54  ;;  %v2053_v13 = vpop.xlane.xlu0 %2052 }
 0xa68   :  { %10170 = vpow2.f32 %v2077_v55  ;;  %v2071_v59 = vsub.f32 %v2039_v15, %v2053_v13  ;;  %v2056_v61 = vpop.xlane.xlu1 %2055 }
 0xa69   :  { %10172 = vpow2.f32 %v2079_v58  ;;  %v2072_v0 = vsub.f32 %v2040_v17, %v2056_v61 }
 0xa6a   :  { %v2081_v63 = vmul.f32 1.442695, %v2071_v59 }
 0xa6b   :  { %v2083_v1 = vmul.f32 1.442695, %v2072_v0  ;;  %v2059_v2 = vpop.xlane.xlu0 %2058 }
 0xa6c   :  { %10174 = vpow2.f32 %v2081_v63  ;;  %v2073_v3 = vsub.f32 %v2041_v38, %v2059_v2  ;;  %v2062_v4 = vpop.xlane.xlu1 %2061 }
 0xa6d   :  { %10176 = vpow2.f32 %v2083_v1  ;;  %v2074_v5 = vsub.f32 %v2042_v42, %v2062_v4 }
 0xa6e   :  { %v2085_v6 = vmul.f32 1.442695, %v2073_v3 }
 0xa6f   :  { %v2087_v9 = vmul.f32 1.442695, %v2074_v5  ;;  %v2065_v10 = vpop.xlane.xlu0 %2064 }
 0xa70   :  { %10178 = vpow2.f32 %v2085_v6  ;;  %v2075_v11 = vsub.f32 %v2043_v44, %v2065_v10  ;;  %v2068_v12 = vpop.xlane.xlu1 %2067 }
 0xa71   :  { %10180 = vpow2.f32 %v2087_v9  ;;  %v2076_v18 = vsub.f32 %v2044_v45, %v2068_v12 }
 0xa72   :  { %v10171_v15 = vpop.eup %10170  ;;  %v2089_v21 = vmul.f32 1.442695, %v2075_v11 }
 0xa73   :  { %v10173_v22 = vpop.eup %10172  ;;  %v2091_v17 = vmul.f32 1.442695, %v2076_v18  ;;  %v2093_v26 = vsel %vm1233_vm3, %v10171_v15, 0.0 }
 0xa74   :  { %10182 = vpow2.f32 %v2089_v21  ;;  %2094 = vadd.xlane.f32.xlu0 %v2093_v26  ;;  %v2096_v27 = vsel %vm1233_vm3, %v10173_v22, 0.0  ;;  %v2117_v28 = vpack.c.bf16 %v10173_v22, %v10171_v15 }
 0xa75   :  { %10184 = vpow2.f32 %v2091_v17  ;;  %2097 = vadd.xlane.f32.xlu1 %v2096_v27 }
 0xa76   :  { %v10175_v29 = vpop.eup %10174  ;;  %9566 = vmatmul.mubr.msk.bf16.vlgmr.msra.gmra.mrb[36].mxu1 %vm1233_vm3, %v2117_v28 }
 0xa77   :  { %v10177_v31 = vpop.eup %10176  ;;  %9576 = vmatpush3.bf16.msra.mxu1 %v11585_v52  ;;  %v2099_v39 = vsel %vm1233_vm3, %v10175_v29, 0.0  ;;  %9577 = vmatprep.mubr.msk.bf16.mxu1 %vm10961_vm1, %v13312_v16 }
 0xa78   :  { %2100 = vadd.xlane.f32.xlu0 %v2099_v39  ;;  %v2102_v32 = vsel %vm1233_vm3, %v10177_v31, 0.0  ;;  %v2118_v35 = vpack.c.bf16 %v10177_v31, %v10175_v29  ;;  %9587 = vmatprep.subr.bf16.mxu1 %v13312_v16 }
 0xa79   :  { %2103 = vadd.xlane.f32.xlu1 %v2102_v32 }
 0xa7a   :  { %v10179_v40 = vpop.eup %10178  ;;  %9572 = vmatmul.mubr.msk.bf16.vlgmr.msra.gmra.mrb[40].mxu0 %vm1233_vm3, %v2118_v35 }
 0xa7b   :  { %v10181_v36 = vpop.eup %10180  ;;  %9582 = vmatpush3.bf16.msra.mxu0 %v11585_v52  ;;  %v2105_v37 = vsel %vm1233_vm3, %v10179_v40, 0.0  ;;  %9583 = vmatprep.mubr.msk.bf16.mxu0 %vm10961_vm1, %v13312_v16 }
 0xa7c   :  { %2106 = vadd.xlane.f32.xlu0 %v2105_v37  ;;  %v2108_v38 = vsel %vm1233_vm3, %v10181_v36, 0.0  ;;  %v2119_v41 = vpack.c.bf16 %v10181_v36, %v10179_v40 }
 0xa7d   :  { %2109 = vadd.xlane.f32.xlu1 %v2108_v38 }
 0xa7e   :  { %v10183_v42 = vpop.eup %10182  ;;  %9578 = vmatmul.mubr.msk.bf16.vlgmr.msra.gmra.mrb[40].mxu1 %vm1233_vm3, %v2119_v41 }
 0xa7f   :  { %v10185_v43 = vpop.eup %10184  ;;  %v2111_v44 = vsel %vm1233_vm3, %v10183_v42, 0.0  ;;  %9591 = vmatprep.mubr.msk.bf16.mxu1 %vm10961_vm1, %v13312_v16  ;;  %9588 = vmatpush3.bf16.msra.mxu1 %v9854_v46 }
 0xa80   :  { %2112 = vadd.xlane.f32.xlu0 %v2111_v44  ;;  %v2114_v52 = vsel %vm1233_vm3, %v10185_v43, 0.0  ;;  %v2120_v45 = vpack.c.bf16 %v10185_v43, %v10183_v42  ;;  %9589 = vmatprep.subr.bf16.mxu1 %v13312_v16 }
 0xa81   :  { %2115 = vadd.xlane.f32.xlu1 %v2114_v52 }
 0xa82   :  { %9584 = vmatmul.mubr.msk.bf16.vlgmr.msra.gmra.mrb[44].mxu0 %vm1233_vm3, %v2120_v45 }
 0xa83   :  { %9590 = vmatpush3.bf16.msra.mxu1 %v9855_v47 }
 0xb01   :  { %v2095_v48 = vpop.xlane.xlu0 %2094 }
 0xb02   :  { %v2098_v49 = vpop.xlane.xlu1 %2097  ;;  %10186 = vrcp.f32 %v2095_v48 }
 0xb03   :  { %10188 = vrcp.f32 %v2098_v49 }
 0xb05   :  { %v2101_v51 = vpop.xlane.xlu0 %2100 }
 0xb06   :  { %v2104_v54 = vpop.xlane.xlu1 %2103  ;;  %10190 = vrcp.f32 %v2101_v51 }
 0xb07   :  { %10192 = vrcp.f32 %v2104_v54 }
 0xb09   :  { %v2107_v55 = vpop.xlane.xlu0 %2106 }
 0xb0a   :  { %v2110_v58 = vpop.xlane.xlu1 %2109  ;;  %10194 = vrcp.f32 %v2107_v55 }
 0xb0b   :  { %10196 = vrcp.f32 %v2110_v58 }
 0xb0c   :  { %v10187_v59 = vpop.eup %10186 }
 0xb0d   :  { %v2113_v13 = vpop.xlane.xlu0 %2112  ;;  %v10189_v2 = vpop.eup %10188 }
 0xb0e   :  { %v2116_v0 = vpop.xlane.xlu1 %2115  ;;  %10198 = vrcp.f32 %v2113_v13 }
 0xb0f   :  { %10200 = vrcp.f32 %v2116_v0 }
 0xb10   :  { %v10191_v6 = vpop.eup %10190 }
 0xb11   :  { %v10193_v18 = vpop.eup %10192 }
 0xb14   :  { %v10195_v27 = vpop.eup %10194 }
 0xb15   :  { %v10197_v40 = vpop.eup %10196 }
 0xb18   :  { %v10199_v52 = vpop.eup %10198 }
 0xb19   :  { %v10201_v54 = vpop.eup %10200 }
 0xb49   :  { %v2158_v61 = vpop.f32.mrb[36].mxu1 }
 0xb4a   :  { %v2305_v63 = vmul.f32 %v10187_v59, %v2158_v61  ;;  %v9567_v1 = vpop.f32.mrb[37].mxu1 }
 0xb4b   :  { %v2161_v3 = vpop.f32.mrb[38].mxu1 }
 0xb4c   :  { %v2306_v4 = vmul.f32 %v10189_v2, %v2161_v3  ;;  %v9568_v5 = vpop.f32.mrb[39].mxu1  ;;  %v2313_v10 = vmul.f32 %v2305_v63, %v11492_v14 }
 0xb4d   :  { %v2202_v9 = vpop.f32.mrb[40].mxu0 }
 0xb4e   :  { %v2307_v11 = vmul.f32 %v10191_v6, %v2202_v9  ;;  %v9573_v12 = vpop.f32.mrb[41].mxu0  ;;  %v2314_v21 = vmul.f32 %v2306_v4, %v11492_v14  ;;  %v2321_v29 = vsel %vm774_vm0, %v2313_v10, 0.0  ;;  %v8566_v9 = vld [vmem:[%s13456_s10] ss:$0 sm:$0xff] }
 0xb4f   :  { %v2205_v15 = vpop.f32.mrb[42].mxu0 }
 0xb50   :  { %v2315_v22 = vmul.f32 %v2307_v11, %v11496_v25  ;;  %v2308_v17 = vmul.f32 %v10193_v18, %v2205_v15  ;;  %v9574_v26 = vpop.f32.mrb[43].mxu0  ;;  %v2328_v38 = vsel %vm774_vm0, %v2314_v21, 0.0 }
 0xb51   :  { %v2246_v28 = vpop.f32.mrb[40].mxu1 }
 0xb52   :  { %v2322_v31 = vsel %vm774_vm0, %v2315_v22, 0.0  ;;  %v2316_v39 = vmul.f32 %v2308_v17, %v11496_v25  ;;  %v2309_v32 = vmul.f32 %v10195_v27, %v2246_v28  ;;  %v9579_v35 = vpop.f32.mrb[41].mxu1 }
 0xb53   :  { %v2323_v36 = vadd.f32 %v2322_v31, %v2321_v29  ;;  %v2249_v37 = vpop.f32.mrb[42].mxu1 }
 0xb54   :  { %v2329_v41 = vsel %vm774_vm0, %v2316_v39, 0.0  ;;  %v2317_v42 = vmul.f32 %v2309_v32, %v11501_v34  ;;  %v2310_v43 = vmul.f32 %v10197_v40, %v2249_v37  ;;  %v9580_v44 = vpop.f32.mrb[43].mxu1  ;;  %v483_v37 = vld [vmem:[%s13459_s11] sm:$0xff] }
 0xb55   :  { %v2330_v45 = vadd.f32 %v2329_v41, %v2328_v38  ;;  %v2290_v46 = vpop.f32.mrb[44].mxu0  ;;  %v491_v38 = vld [vmem:[%s13459_s11 + $0x40] sm:$0xff]  ;;  %v484_v41 = vld [vmem:[%s13459_s11 + $0x8] sm:$0xff] }
 0xb56   :  { %v2324_v47 = vsel %vm774_vm0, %v2317_v42, 0.0  ;;  %v2318_v48 = vmul.f32 %v2310_v43, %v11501_v34  ;;  %v2311_v49 = vmul.f32 %v10199_v52, %v2290_v46  ;;  %v9585_v51 = vpop.f32.mrb[45].mxu0  ;;  %v8573_v42 = vcombine.high %v483_v37, %v491_v38  ;;  %v492_v43 = vld [vmem:[%s13459_s11 + $0x48] sm:$0xff]  ;;  %v499_v46 = vld [vmem:[%s13459_s11 + $0x80] sm:$0xff] }
 0xb57   :  { %v2325_v55 = vadd.f32 %v2324_v47, %v2323_v36  ;;  %v2293_v58 = vpop.f32.mrb[46].mxu0  ;;  %v8572_v44 = vcombine.low %v483_v37, %v491_v38  ;;  %v8574_v52 = vcombine.low %v484_v41, %v492_v43  ;;  %v507_v47 = vld [vmem:[%s13459_s11 + $0xc0] sm:$0xff]  ;;  %v508_v51 = vld [vmem:[%s13459_s11 + $0xc8] sm:$0xff] }
 0xb58   :  { %v2331_v13 = vsel %vm774_vm0, %v2318_v48, 0.0  ;;  %v2319_v59 = vmul.f32 %v2311_v49, %v11510_v60  ;;  %v2312_v61 = vmul.f32 %v10201_v54, %v2293_v58  ;;  %v9586_v0 = vpop.f32.mrb[47].mxu0  ;;  %2688 = vmatprep.subr.bf16.mxu0 %v8573_v42  ;;  %v500_v48 = vld [vmem:[%s13459_s11 + $0x88] sm:$0xff]  ;;  %v8589_v49 = vcombine.high %v499_v46, %v507_v47 }
 0xb59   :  { %v2332_v63 = vadd.f32 %v2331_v13, %v2330_v45  ;;  %v8575_v45 = vcombine.high %v484_v41, %v492_v43  ;;  %2689 = vmatpush1.bf16.msra.mxu0 %v8572_v44  ;;  %v8588_v54 = vcombine.low %v499_v46, %v507_v47  ;;  %v8591_v58 = vcombine.high %v500_v48, %v508_v51  ;;  %v485_v13 = vld [vmem:[%s13459_s11 + $0x10] sm:$0xff]  ;;  %v495_v43 = vld [vmem:[%s13459_s11 + $0x60] sm:$0xff]  ;;  %v488_v44 = vld [vmem:[%s13459_s11 + $0x28] sm:$0xff] }
 0xb5a   :  { %v2326_v1 = vsel %vm774_vm0, %v2319_v59, 0.0  ;;  %v2320_v2 = vmul.f32 %v2312_v61, %v11510_v60  ;;  %2690 = vmatprep.subr.bf16.mxu0 %v8589_v49  ;;  %v493_v59 = vld [vmem:[%s13459_s11 + $0x50] sm:$0xff]  ;;  %v486_v61 = vld [vmem:[%s13459_s11 + $0x18] sm:$0xff]  ;;  %v13310_v0 = vmov 0   ;;  %v511_v49 = vld [vmem:[%s13459_s11 + $0xe0] sm:$0xff] }
 0xb5b   :  { %v2327_v3 = vadd.f32 %v2326_v1, %v2325_v55  ;;  %2731 = vmatprep.subr.bf16.mxu1 %v8575_v45  ;;  %v8590_v55 = vcombine.low %v500_v48, %v508_v51  ;;  %2720 = vmatprep.mubr.bf16.mxu0 %v13310_v0  ;;  %v494_v1 = vld [vmem:[%s13459_s11 + $0x58] sm:$0xff]  ;;  %v503_v48 = vld [vmem:[%s13459_s11 + $0xa0] sm:$0xff]  ;;  %v504_v51 = vld [vmem:[%s13459_s11 + $0xa8] sm:$0xff] }
 0xb5c   :  { %v2333_v4 = vsel %vm774_vm0, %v2320_v2, 0.0  ;;  %v8576_v2 = vcombine.low %v485_v13, %v493_v59 }
 0xb5d   :  { %v2334_v5 = vadd.f32 %v2333_v4, %v2332_v63  ;;  %2691 = vmatpush1.bf16.msra.mxu0 %v8588_v54  ;;  %v8577_v63 = vcombine.high %v485_v13, %v493_v59  ;;  %v8579_v4 = vcombine.high %v486_v61, %v494_v1  ;;  %v512_v54 = vld [vmem:[%s13459_s11 + $0xe8] sm:$0xff]  ;;  %v8597_v13 = vcombine.high %v503_v48, %v511_v49 }
 0xb5e   :  { %v8599_v59 = vcombine.high %v504_v51, %v512_v54 }
 0xb5f   :  { %v2335_v6 = vpack.c.bf16 %v2334_v5, %v2327_v3  ;;  %v8578_v3 = vcombine.low %v486_v61, %v494_v1  ;;  %2774 = vmatprep.subr.bf16.mxu0 %v8577_v63  ;;  %v489_v61 = vld [vmem:[%s13459_s11 + $0x30] sm:$0xff]  ;;  %v490_v1 = vld [vmem:[%s13459_s11 + $0x38] sm:$0xff] }
 0xb60   :  { %v497_v63 = vld [vmem:[%s13459_s11 + $0x70] sm:$0xff] }
 0xb61   :  { %9592 = vmatmul.mubr.msk.bf16.vlgmr.msra.gmra.mrb[44].mxu1 %vm774_vm0, %v2335_v6 }
 0xb62   :  { %2732 = vmatpush1.bf16.msra.mxu1 %v8574_v52  ;;  %2763 = vmatprep.mubr.bf16.mxu1 %v13310_v0  ;;  %v496_v52 = vld [vmem:[%s13459_s11 + $0x68] sm:$0xff] }
 0xb63   :  { %2733 = vmatprep.subr.bf16.mxu1 %v8591_v58  ;;  %v8583_v47 = vcombine.high %v488_v44, %v496_v52  ;;  %v8582_v58 = vcombine.low %v488_v44, %v496_v52  ;;  %v9869_v44 = vld [vmem:[%s13462_s27 + $0xd8] sm:$0xff]  }
 0xb64   :  { %v9870_v52 = vld [vmem:[%s13462_s27 + $0x18] sm:$0xff]  }
 0xb66   :  { %2734 = vmatpush1.bf16.msra.mxu1 %v8590_v55 }
 0xb67   :  { %2817 = vmatprep.subr.bf16.mxu1 %v8579_v4  ;;  %v8598_v4 = vcombine.low %v504_v51, %v512_v54  ;;  %v9877_v51 = vld [vmem:[%s13462_s27 + $0xe8] sm:$0xff]  }
 0xb68   :  { %v9878_v54 = vld [vmem:[%s13462_s27 + $0x28] sm:$0xff]  }
 0xc34   :  { %v2391_v10 = vpop.f32.mrb[44].mxu1 }
 0xc35   :  { %v2392_v11 = vadd.f32 %v8566_v9, %v2391_v10  ;;  %v9593_v12 = vpop.f32.mrb[45].mxu1 }
 0xc36   :  { %v2394_v18 = vpop.f32.mrb[46].mxu1 }
 0xc37   :  { %v11674_v15 = vadd.f32 %v2392_v11, %v11527_v30  ;;  %v2395_v21 = vadd.f32 %v8566_v9, %v2394_v18  ;;  %v9594_v22 = vpop.f32.mrb[47].mxu1 }
 0xc39   :  { %13457 = vst [vmem:[#allocation89_spill] sm:$0xff] %v11674_v15  ;;  %v11677_v17 = vadd.f32 %v2395_v21, %v11530_v33  ;;  %v2400_v26 = vsel %vm774_vm0, %v11674_v15, 0.0  ;;  %v8570_v21 = vld [vmem:[%s13460_s24] ss:$0 sm:$0xff] }
 0xc3a   :  { %2401 = vadd.xlane.f32.xlu0 %v2400_v26 }
 0xc3b   :  { %13458 = vst [vmem:[#allocation90_spill] sm:$0xff] %v11677_v17  ;;  %v2403_v27 = vsel %vm774_vm0, %v11677_v17, 0.0 }
 0xc3c   :  { %2404 = vadd.xlane.f32.xlu1 %v2403_v27 }
 0xcc7   :  { %v2402_v28 = vpop.xlane.xlu0 %2401 }
 0xcc8   :  { %v2406_v30 = vmul.f32 0.03125, %v2402_v28 }
 0xcc9   :  { %v2405_v29 = vpop.xlane.xlu1 %2404 }
 0xcca   :  { %v2408_v31 = vsub.f32 %v11674_v15, %v2406_v30  ;;  %v2407_v39 = vmul.f32 0.03125, %v2405_v29  ;;  %v8571_v30 = vld [vmem:[%s13461_s15] ss:$0 sm:$0xff] }
 0xccc   :  { %v2409_v33 = vsub.f32 %v11677_v17, %v2407_v39  ;;  %v2410_v32 = vmul.f32 %v2408_v31, %v2408_v31  ;;  %v501_v39 = vld [vmem:[%s13459_s11 + $0x90] sm:$0xff] }
 0xcce   :  { %v2412_v35 = vsel %vm774_vm0, %v2410_v32, 0.0  ;;  %v2411_v40 = vmul.f32 %v2409_v33, %v2409_v33  ;;  %v509_v32 = vld [vmem:[%s13459_s11 + $0xd0] sm:$0xff] }
 0xccf   :  { %2413 = vadd.xlane.f32.xlu0 %v2412_v35  ;;  %v502_v35 = vld [vmem:[%s13459_s11 + $0x98] sm:$0xff]  ;;  %v8593_v41 = vcombine.high %v501_v39, %v509_v32 }
 0xcd0   :  { %v2415_v36 = vsel %vm774_vm0, %v2411_v40, 0.0  ;;  %v510_v40 = vld [vmem:[%s13459_s11 + $0xd8] sm:$0xff] }
 0xcd1   :  { %2416 = vadd.xlane.f32.xlu1 %v2415_v36  ;;  %v8595_v42 = vcombine.high %v502_v35, %v510_v40  ;;  %v8594_v45 = vcombine.low %v502_v35, %v510_v40  ;;  %v9860_v35 = vld [vmem:[%s13462_s27 + $0x48] sm:$0xff]  }
 0xcd2   :  { %v9861_v40 = vld [vmem:[%s13462_s27 + $0xc8] sm:$0xff]  }
 0xd5c   :  { %v2414_v5 = vpop.xlane.xlu0 %2413 }
 0xd5d   :  { %v2418_v6 = vmul.f32 0.03125, %v2414_v5  ;;  %v8585_v5 = vcombine.high %v489_v61, %v497_v63 }
 0xd5e   :  { %v2417_v9 = vpop.xlane.xlu1 %2416 }
 0xd5f   :  { %v2420_v10 = vadd.f32 1e-05, %v2418_v6  ;;  %v2419_v11 = vmul.f32 0.03125, %v2417_v9  ;;  %v505_v9 = vld [vmem:[%s13459_s11 + $0xb0] sm:$0xff] }
 0xd61   :  { %10202 = vrsqrt.f32 %v2420_v10  ;;  %v2421_v12 = vadd.f32 1e-05, %v2419_v11  ;;  %v513_v10 = vld [vmem:[%s13459_s11 + $0xf0] sm:$0xff]  ;;  %v506_v11 = vld [vmem:[%s13459_s11 + $0xb8] sm:$0xff] }
 0xd63   :  { %10204 = vrsqrt.f32 %v2421_v12  ;;  %v514_v12 = vld [vmem:[%s13459_s11 + $0xf8] sm:$0xff] }
 0xd6b   :  { %v10203_v18 = vpop.eup %10202 }
 0xd6c   :  { %v2424_v22 = vmul.f32 %v10203_v18, %v2408_v31  ;;  %v487_v31 = vld [vmem:[%s13459_s11 + $0x20] sm:$0xff]  ;;  %v8584_v18 = vcombine.low %v489_v61, %v497_v63  ;;  %v9883_v61 = vld [vmem:[%s13462_s27 + $0xb0] sm:$0xff]   ;;  %v9884_v63 = vld [vmem:[%s13462_s27 + $0x78] sm:$0xff]  }
 0xd6d   :  { %v10205_v26 = vpop.eup %10204  ;;  %v8581_v46 = vcombine.high %v487_v31, %v495_v43  ;;  %v8580_v55 = vcombine.low %v487_v31, %v495_v43  ;;  %v9867_v31 = vld [vmem:[%s13462_s27 + $0x90] sm:$0xff]   ;;  %v9868_v43 = vld [vmem:[%s13462_s27 + $0x58] sm:$0xff]  }
 0xd6e   :  { %v2432_v27 = vmul.f32 %v8570_v21, %v2424_v22  ;;  %v2425_v28 = vmul.f32 %v10205_v26, %v2409_v33  ;;  %v8592_v33 = vcombine.low %v501_v39, %v509_v32  ;;  %v8601_v22 = vcombine.high %v505_v9, %v513_v10  ;;  %v9858_v39 = vld [vmem:[%s13462_s27] sm:$0xff]  }
 0xd6f   :  { %v8603_v26 = vcombine.high %v506_v11, %v514_v12  ;;  %v9859_v32 = vld [vmem:[%s13462_s27 + $0x80] sm:$0xff]  }
 0xd70   :  { %v2433_v29 = vmul.f32 %v8570_v21, %v2425_v28  ;;  %v2440_v36 = vadd.f32 %v8571_v30, %v2432_v27  ;;  %v8600_v27 = vcombine.low %v505_v9, %v513_v10  ;;  %v8602_v28 = vcombine.low %v506_v11, %v514_v12  ;;  %v515_v9 = vld [vmem:[%s13463_s30] sm:$0xff] }
 0xd71   :  { %v11786_v10 = vsub.s32 1, %v11375_v50  ;;  %v11789_v11 = vsub.s32 3, %v11375_v50  ;;  %v2448_v12 = vrot.slane %v515_v9, %v11381_v62 }
 0xd72   :  { %v2441_v37 = vadd.f32 %v8571_v30, %v2433_v29  ;;  %v9856_v30 = vld [vmem:[%s13462_s27 + $0x40] sm:$0xff]  }
 0xd73   :  { %v9857_v29 = vld [vmem:[%s13462_s27 + $0xc0] sm:$0xff]   ;;  %13465 = vst [vmem:[#allocation92_spill] sm:$0xff] %v11786_v10  ;;  %13466 = vst [vmem:[#allocation93_spill] sm:$0xff] %v11789_v11 }
 0xd74   :  { %v11707_v38 = vpack.c.bf16 %v2441_v37, %v2440_v36  ;;  %v9862_v36 = vld [vmem:[%s13462_s27 + $0x8] sm:$0xff]  }
 0xd75   :  { %v9863_v37 = vld [vmem:[%s13462_s27 + $0x88] sm:$0xff]  }
 0xd76   :  { %8604 = vmatmul.mubr.msk.bf16.vlgmr.msra.gmra.mrb[48].mxu0 %vm774_vm0, %v11707_v38  ;;  %8605 = vmatmul.mubr.msk.bf16.vlgmr.msra.gmra.mrb[48].mxu1 %vm774_vm0, %v11707_v38 }
 0xd77   :  { %2775 = vmatpush1.bf16.msra.mxu0 %v8576_v2  ;;  %2818 = vmatpush1.bf16.msra.mxu1 %v8578_v3  ;;  %v498_v2 = vld [vmem:[%s13459_s11 + $0x78] sm:$0xff]  ;;  %v8596_v3 = vcombine.low %v503_v48, %v511_v49  ;;  %v9875_v48 = vld [vmem:[%s13462_s27 + $0xa0] sm:$0xff]   ;;  %v9876_v49 = vld [vmem:[%s13462_s27 + $0x68] sm:$0xff]  }
 0xd78   :  { %2776 = vmatprep.subr.bf16.mxu0 %v8593_v41  ;;  %2819 = vmatprep.subr.bf16.mxu1 %v8595_v42  ;;  %v8587_v6 = vcombine.high %v490_v1, %v498_v2  ;;  %v8586_v21 = vcombine.low %v490_v1, %v498_v2  ;;  %v9865_v41 = vld [vmem:[%s13462_s27 + $0xd0] sm:$0xff]   ;;  %v9885_v1 = vld [vmem:[%s13462_s27 + $0xf8] sm:$0xff]  }
 0xd79   :  { %2806 = vmatprep.mubr.bf16.mxu0 %v13310_v0  ;;  %2849 = vmatprep.mubr.bf16.mxu1 %v13310_v0  ;;  %v9866_v42 = vld [vmem:[%s13462_s27 + $0x10] sm:$0xff]   ;;  %v9886_v2 = vld [vmem:[%s13462_s27 + $0x38] sm:$0xff]  }
 0xd7b   :  { %2777 = vmatpush1.bf16.msra.mxu0 %v8592_v33  ;;  %2820 = vmatpush1.bf16.msra.mxu1 %v8594_v45  ;;  %v9871_v33 = vld [vmem:[%s13462_s27 + $0x98] sm:$0xff]   ;;  %v9872_v45 = vld [vmem:[%s13462_s27 + $0x60] sm:$0xff]  }
 0xd7c   :  { %2860 = vmatprep.subr.bf16.mxu0 %v8581_v46  ;;  %2903 = vmatprep.subr.bf16.mxu1 %v8583_v47  ;;  %v9873_v46 = vld [vmem:[%s13462_s27 + $0xe0] sm:$0xff]  }
 0xd7d   :  { %v9874_v47 = vld [vmem:[%s13462_s27 + $0x20] sm:$0xff]  }
 0xd7e   :  { %8606 = vmatmul.mubr.msk.bf16.vlgmr.msra.gmra.mrb[52].mxu0 %vm774_vm0, %v11707_v38  ;;  %8607 = vmatmul.mubr.msk.bf16.vlgmr.msra.gmra.mrb[52].mxu1 %vm774_vm0, %v11707_v38 }
 0xd7f   :  { %2861 = vmatpush1.bf16.msra.mxu0 %v8580_v55  ;;  %2904 = vmatpush1.bf16.msra.mxu1 %v8582_v58  ;;  %v9879_v55 = vld [vmem:[%s13462_s27 + $0xa8] sm:$0xff]   ;;  %v9880_v58 = vld [vmem:[%s13462_s27 + $0x70] sm:$0xff]  }
 0xd80   :  { %2862 = vmatprep.subr.bf16.mxu0 %v8597_v13  ;;  %2905 = vmatprep.subr.bf16.mxu1 %v8599_v59  ;;  %v9881_v13 = vld [vmem:[%s13462_s27 + $0xf0] sm:$0xff]  }
 0xd81   :  { %2892 = vmatprep.mubr.bf16.mxu0 %v13310_v0  ;;  %2935 = vmatprep.mubr.bf16.mxu1 %v13310_v0  ;;  %v9882_v59 = vld [vmem:[%s13462_s27 + $0x30] sm:$0xff]  }
 0xd83   :  { %2863 = vmatpush1.bf16.msra.mxu0 %v8596_v3  ;;  %2906 = vmatpush1.bf16.msra.mxu1 %v8598_v4  ;;  %v9887_v3 = vld [vmem:[%s13462_s27 + $0xb8] sm:$0xff]   ;;  %v9888_v4 = vld [vmem:[%s13462_s27 + $0x140] sm:$0xff]  }
 0xd84   :  { %2946 = vmatprep.subr.bf16.mxu0 %v8585_v5  ;;  %2989 = vmatprep.subr.bf16.mxu1 %v8587_v6  ;;  %v9889_v5 = vld [vmem:[%s13462_s27 + $0x1c0] sm:$0xff]   ;;  %v11782_v6 = vsub.s32 2, %v11375_v50 }
 0xd86   :  { %8608 = vmatmul.mubr.msk.bf16.vlgmr.msra.gmra.mrb[56].mxu0 %vm774_vm0, %v11707_v38  ;;  %8609 = vmatmul.mubr.msk.bf16.vlgmr.msra.gmra.mrb[56].mxu1 %vm774_vm0, %v11707_v38  ;;  %13464 = vst [vmem:[#allocation91_spill] sm:$0xff] %v11782_v6 }
 0xd87   :  { %2947 = vmatpush1.bf16.msra.mxu0 %v8584_v18  ;;  %2990 = vmatpush1.bf16.msra.mxu1 %v8586_v21  ;;  %v2456_v18 = vrot.slane %v515_v9, %v11782_v6  ;;  %v11794_v21 = vsub.s32 4, %v11375_v50 }
 0xd88   :  { %2948 = vmatprep.subr.bf16.mxu0 %v8601_v22  ;;  %2991 = vmatprep.subr.bf16.mxu1 %v8603_v26  ;;  %v11797_v22 = vsub.s32 6, %v11375_v50  ;;  %v2452_v26 = vrot.slane %v515_v9, %v11786_v10 }
 0xd89   :  { %2978 = vmatprep.mubr.bf16.mxu0 %v13310_v0  ;;  %3021 = vmatprep.mubr.bf16.mxu1 %v13310_v0  ;;  %13467 = vst [vmem:[#allocation94_spill] sm:$0xff] %v11794_v21 }
 0xd8a   :  { %13468 = vst [vmem:[#allocation95_spill] sm:$0xff] %v11797_v22 }
 0xd8b   :  { %2949 = vmatpush1.bf16.msra.mxu0 %v8600_v27  ;;  %2992 = vmatpush1.bf16.msra.mxu1 %v8602_v28  ;;  %v2460_v27 = vrot.slane %v515_v9, %v11789_v11  ;;  %v11802_v28 = vsub.s32 5, %v11375_v50 }
 0xd8c   :  { %9024 = vmatprep.subr.bf16.mxu0 %v9856_v30  ;;  %9046 = vmatprep.subr.bf16.mxu1 %v9857_v29  ;;  %v11805_v30 = vsub.s32 7, %v11375_v50 }
 0xd8d   :  { %13469 = vst [vmem:[#allocation96_spill] sm:$0xff] %v11802_v28  ;;  %v2468_v50 = vrot.slane %v515_v9, %v11802_v28 }
 0xd8e   :  { %8610 = vmatmul.mubr.msk.bf16.vlgmr.msra.gmra.mrb[60].mxu0 %vm774_vm0, %v11707_v38  ;;  %8611 = vmatmul.mubr.msk.bf16.vlgmr.msra.gmra.mrb[60].mxu1 %vm774_vm0, %v11707_v38  ;;  %v9864_v38 = vld [vmem:[%s13462_s27 + $0x50] sm:$0xff]   ;;  %13470 = vst [vmem:[#allocation97_spill] sm:$0xff] %v11805_v30 }
 0xd8f   :  { %9025 = vmatpush3.bf16.msra.mxu0 %v9858_v39  ;;  %9047 = vmatpush3.bf16.msra.mxu1 %v9859_v32 }
 0xd90   :  { %9026 = vmatprep.subr.bf16.mxu0 %v9860_v35  ;;  %9048 = vmatprep.subr.bf16.mxu1 %v9861_v40 }
 0xd93   :  { %9027 = vmatpush3.bf16.msra.mxu0 %v9862_v36  ;;  %9049 = vmatpush3.bf16.msra.mxu1 %v9863_v37  ;;  %v2464_v37 = vrot.slane %v515_v9, %v11794_v21 }
 0xd94   :  { %9028 = vmatprep.subr.bf16.mxu0 %v9864_v38  ;;  %9050 = vmatprep.subr.bf16.mxu1 %v9865_v41  ;;  %v2472_v38 = vrot.slane %v515_v9, %v11797_v22 }
 0xd97   :  { %9029 = vmatpush3.bf16.msra.mxu0 %v9866_v42  ;;  %9051 = vmatpush3.bf16.msra.mxu1 %v9867_v31 }
 0xd98   :  { %9030 = vmatprep.subr.bf16.mxu0 %v9868_v43  ;;  %9052 = vmatprep.subr.bf16.mxu1 %v9869_v44  ;;  %v11819_v44 = vrot.slane %v515_v9, %v11805_v30 }
 0xd9b   :  { %9031 = vmatpush3.bf16.msra.mxu0 %v9870_v52  ;;  %9053 = vmatpush3.bf16.msra.mxu1 %v9871_v33 }
 0xd9c   :  { %9032 = vmatprep.subr.bf16.mxu0 %v9872_v45  ;;  %9054 = vmatprep.subr.bf16.mxu1 %v9873_v46 }
 0xd9f   :  { %9033 = vmatpush3.bf16.msra.mxu0 %v9874_v47  ;;  %9055 = vmatpush3.bf16.msra.mxu1 %v9875_v48 }
 0xda0   :  { %9034 = vmatprep.subr.bf16.mxu0 %v9876_v49  ;;  %9056 = vmatprep.subr.bf16.mxu1 %v9877_v51 }
 0xda3   :  { %9035 = vmatpush3.bf16.msra.mxu0 %v9878_v54  ;;  %9057 = vmatpush3.bf16.msra.mxu1 %v9879_v55 }
 0xda4   :  { %9036 = vmatprep.subr.bf16.mxu0 %v9880_v58  ;;  %9058 = vmatprep.subr.bf16.mxu1 %v9881_v13 }
 0xda7   :  { %9037 = vmatpush3.bf16.msra.mxu0 %v9882_v59  ;;  %9059 = vmatpush3.bf16.msra.mxu1 %v9883_v61 }
 0xda8   :  { %9038 = vmatprep.subr.bf16.mxu0 %v9884_v63  ;;  %9060 = vmatprep.subr.bf16.mxu1 %v9885_v1 }
 0xdab   :  { %9039 = vmatpush3.bf16.msra.mxu0 %v9886_v2  ;;  %9061 = vmatpush3.bf16.msra.mxu1 %v9887_v3 }
 0xdac   :  { %9068 = vmatprep.subr.bf16.mxu0 %v9888_v4  ;;  %9090 = vmatprep.subr.bf16.mxu1 %v9889_v5 }
 0xe49   :  { %v2722_v29 = vpop.f32.mrb[48].mxu0  ;;  %v2765_v39 = vpop.f32.mrb[48].mxu1 }
 0xe4a   :  { %v11807_v32 = vadd.f32 %v2722_v29, %v2448_v12  ;;  %v11809_v35 = vadd.f32 %v2765_v39, %v2456_v18  ;;  %v2724_v40 = vpop.f32.mrb[49].mxu0  ;;  %v2767_v36 = vpop.f32.mrb[49].mxu1 }
 0xe4b   :  { %v11813_v41 = vadd.f32 %v2724_v40, %v2452_v26  ;;  %v11815_v42 = vadd.f32 %v2767_v36, %v2460_v27  ;;  %v2726_v31 = vpop.f32.mrb[50].mxu0  ;;  %v2769_v43 = vpop.f32.mrb[50].mxu1 }
 0xe4c   :  { %v3032_v52 = vmin.f32 %v11807_v32, 20.0  ;;  %v3034_v33 = vmin.f32 %v11809_v35, 20.0  ;;  %v11823_v45 = vadd.f32 %v2726_v31, %v2448_v12  ;;  %v11825_v46 = vadd.f32 %v2769_v43, %v2456_v18  ;;  %v2728_v47 = vpop.f32.mrb[51].mxu0  ;;  %v2771_v48 = vpop.f32.mrb[51].mxu1 }
 0xe4d   :  { %v3033_v49 = vmin.f32 %v11813_v41, 20.0  ;;  %v3035_v51 = vmin.f32 %v11815_v42, 20.0  ;;  %v11829_v54 = vadd.f32 %v2728_v47, %v2452_v26  ;;  %v11831_v55 = vadd.f32 %v2771_v48, %v2460_v27 }
 0xe4e   :  { %v3064_v58 = vmul.f32 1.442695, %v3032_v52  ;;  %v3068_v13 = vmul.f32 1.442695, %v3034_v33  ;;  %v3048_v59 = vmin.f32 %v11823_v45, 20.0  ;;  %v3050_v61 = vmin.f32 %v11825_v46, 20.0 }
 0xe4f   :  { %13471 = vst [vmem:[#allocation98_spill] sm:$0xff] %v11831_v55  ;;  %v3066_v63 = vmul.f32 1.442695, %v3033_v49  ;;  %v3070_v1 = vmul.f32 1.442695, %v3035_v51  ;;  %v3049_v2 = vmin.f32 %v11829_v54, 20.0 }
 0xe50   :  { %v3051_v3 = vmin.f32 %v11831_v55, 20.0  ;;  %10206 = vpow2.f32 %v3064_v58  ;;  %v3096_v4 = vmul.f32 1.442695, %v3048_v59  ;;  %v3100_v5 = vmul.f32 1.442695, %v3050_v61 }
 0xe51   :  { %10208 = vpow2.f32 %v3068_v13  ;;  %v2808_v9 = vpop.f32.mrb[52].mxu0  ;;  %v2851_v12 = vpop.f32.mrb[52].mxu1  ;;  %v3098_v18 = vmul.f32 1.442695, %v3049_v2 }
 0xe52   :  { %10210 = vpow2.f32 %v3066_v63  ;;  %v11837_v26 = vadd.f32 %v2808_v9, %v2464_v37  ;;  %v11839_v27 = vadd.f32 %v2851_v12, %v2472_v38  ;;  %v2810_v29 = vpop.f32.mrb[53].mxu0  ;;  %v2853_v39 = vpop.f32.mrb[53].mxu1  ;;  %v3102_v40 = vmul.f32 1.442695, %v3051_v3 }
 0xe53   :  { %10212 = vpow2.f32 %v3070_v1  ;;  %v11841_v36 = vadd.f32 %v2810_v29, %v2468_v50  ;;  %v11844_v31 = vadd.f32 %v2853_v39, %v11819_v44  ;;  %v2812_v43 = vpop.f32.mrb[54].mxu0  ;;  %v2855_v52 = vpop.f32.mrb[54].mxu1 }
 0xe54   :  { %10214 = vpow2.f32 %v3096_v4  ;;  %v3036_v33 = vmin.f32 %v11837_v26, 20.0  ;;  %v3038_v47 = vmin.f32 %v11839_v27, 20.0  ;;  %v11848_v48 = vadd.f32 %v2812_v43, %v2464_v37  ;;  %v2814_v49 = vpop.f32.mrb[55].mxu0  ;;  %v2857_v51 = vpop.f32.mrb[55].mxu1 }
 0xe55   :  { %13472 = vst [vmem:[#allocation99_spill] sm:$0xff] %v11841_v36  ;;  %13473 = vst [vmem:[#allocation100_spill] sm:$0xff] %v11844_v31  ;;  %10216 = vpow2.f32 %v3100_v5  ;;  %v3037_v58 = vmin.f32 %v11841_v36, 20.0  ;;  %v3039_v13 = vmin.f32 %v11844_v31, 20.0  ;;  %v11852_v59 = vadd.f32 %v2855_v52, %v2472_v38 }
 0xe56   :  { %10218 = vpow2.f32 %v3098_v18  ;;  %v3072_v61 = vmul.f32 1.442695, %v3036_v33  ;;  %v3076_v63 = vmul.f32 1.442695, %v3038_v47  ;;  %v3052_v1 = vmin.f32 %v11848_v48, 20.0  ;;  %v11861_v18 = vld [vmem:[%s13463_s30 + $0x8] sm:$0xff] }
 0xe57   :  { %10220 = vpow2.f32 %v3102_v40  ;;  %v3074_v2 = vmul.f32 1.442695, %v3037_v58  ;;  %v3054_v37 = vmin.f32 %v11852_v59, 20.0  ;;  %v3078_v3 = vmul.f32 1.442695, %v3039_v13 }
 0xe58   :  { %10222 = vpow2.f32 %v3072_v61  ;;  %v11856_v4 = vadd.f32 %v2814_v49, %v2468_v50  ;;  %v3104_v12 = vmul.f32 1.442695, %v3052_v1  ;;  %v11889_v56 = vadd.f32 %v2857_v51, %v11819_v44 }
 0xe59   :  { %10224 = vpow2.f32 %v3076_v63  ;;  %v2894_v5 = vpop.f32.mrb[56].mxu0  ;;  %v11858_v9 = vpop.f32.mrb[56].mxu1  ;;  %v3108_v52 = vmul.f32 1.442695, %v3054_v37  ;;  %v11882_v37 = vrot.slane %v11861_v18, %v11782_v6  ;;  %v11901_v44 = vrot.slane %v11861_v18, %v11789_v11 }
 0xe5a   :  { %13474 = vst [vmem:[#allocation101_spill] sm:$0xff] %v11856_v4  ;;  %v10207_v38 = vpop.eup %10206  ;;  %10226 = vpow2.f32 %v3074_v2  ;;  %v11863_v29 = vpop.f32.mrb[57].mxu0  ;;  %v3053_v33 = vmin.f32 %v11856_v4, 20.0  ;;  %v11878_v2 = vrot.slane %v11861_v18, %v11381_v62  ;;  %13475 = vst [vmem:[#allocation102_spill] sm:$0xff] %v11889_v56  ;;  %v11905_v51 = vrot.slane %v11861_v18, %v11794_v21 }
 0xe5b   :  { %v11865_v39 = vpop.f32.mrb[57].mxu1  ;;  %v10209_v40 = vpop.eup %10208  ;;  %v3128_v43 = vadd.f32 2.0, %v10207_v38  ;;  %10228 = vpow2.f32 %v3078_v3 }
 0xe5c   :  { %v11868_v50 = vpop.f32.mrb[58].mxu0  ;;  %v11870_v47 = vpop.f32.mrb[58].mxu1  ;;  %v3130_v58 = vadd.f32 2.0, %v10209_v40  ;;  %10230 = vpow2.f32 %v3104_v12  ;;  %v3106_v62 = vmul.f32 1.442695, %v3053_v33  ;;  %v11911_v33 = vrot.slane %v11861_v18, %v11797_v22 }
 0xe5d   :  { %v10211_v49 = vpop.eup %10210  ;;  %v11872_v13 = vpop.f32.mrb[59].mxu0  ;;  %v11874_v63 = vmul.f32 %v10207_v38, %v3128_v43  ;;  %10232 = vpow2.f32 %v3108_v52  ;;  %v11923_v22 = vadd.f32 %v2894_v5, %v11878_v2 }
 0xe5e   :  { %v10213_v61 = vpop.eup %10212  ;;  %v3129_v1 = vadd.f32 2.0, %v10211_v49  ;;  %v11884_v0 = vpop.f32.mrb[59].mxu1  ;;  %v11886_v57 = vmul.f32 %v10209_v40, %v3130_v58  ;;  %v11897_v40 = vrot.slane %v11861_v18, %v11786_v10 }
 0xe5f   :  { %v10215_v16 = vpop.eup %10214  ;;  %v3131_v3 = vadd.f32 2.0, %v10213_v61  ;;  %v3224_v43 = vadd.f32 2.0, %v11874_v63  ;;  %13476 = vst [vmem:[#allocation103_spill] sm:$0xff] %v11923_v22 }
 0xe60   :  { %v10217_v38 = vpop.eup %10216  ;;  %v3144_v53 = vadd.f32 2.0, %v10215_v16  ;;  %v3226_v6 = vadd.f32 2.0, %v11886_v57  ;;  %v11893_v34 = vmul.f32 %v10211_v49, %v3129_v1 }
 0xe61   :  { %v10219_v60 = vpop.eup %10218  ;;  %v3146_v25 = vadd.f32 2.0, %v10217_v38  ;;  %v11907_v52 = vpop.f32.mrb[60].mxu0  ;;  %10234 = vrcp.f32 %v3224_v43  ;;  %v11915_v10 = vmul.f32 %v10213_v61, %v3131_v3 }
 0xe62   :  { %v10221_v12 = vpop.eup %10220  ;;  %v3176_v58 = vmul.f32 %v10215_v16, %v3144_v53  ;;  %v11913_v49 = vpop.f32.mrb[60].mxu1  ;;  %v3055_v53 = vmin.f32 %v11889_v56, 20.0  ;;  %v3145_v23 = vadd.f32 2.0, %v10219_v60  ;;  %10236 = vpow2.f32 %v3106_v62 }
 0xe63   :  { %v10223_v1 = vpop.eup %10222  ;;  %v3178_v16 = vmul.f32 %v10217_v38, %v3146_v25  ;;  %v11918_v11 = vpop.f32.mrb[61].mxu0  ;;  %10238 = vrcp.f32 %v3226_v6  ;;  %v3225_v25 = vadd.f32 2.0, %v11893_v34  ;;  %v3147_v38 = vadd.f32 2.0, %v10221_v12 }
 0xe64   :  { %v11920_v14 = vpop.f32.mrb[61].mxu1  ;;  %v10225_v21 = vpop.eup %10224  ;;  %v3240_v24 = vadd.f32 2.0, %v3176_v58  ;;  %v11934_v7 = vmul.f32 %v10219_v60, %v3145_v23  ;;  %v3132_v62 = vadd.f32 2.0, %v10223_v1  ;;  %v3227_v15 = vadd.f32 2.0, %v11915_v10 }
 0xe65   :  { %v11925_v20 = vpop.f32.mrb[62].mxu0  ;;  %v11927_v19 = vpop.f32.mrb[62].mxu1  ;;  %v3242_v3 = vadd.f32 2.0, %v3178_v16  ;;  %v3134_v5 = vadd.f32 2.0, %v10225_v21  ;;  %v11937_v56 = vmul.f32 %v10221_v12, %v3147_v38  ;;  %v11941_v6 = vadd.f32 %v11858_v9, %v11882_v37 }
 0xe66   :  { %v10227_v61 = vpop.eup %10226  ;;  %v11930_v43 = vpop.f32.mrb[63].mxu0  ;;  %10240 = vrcp.f32 %v3240_v24  ;;  %v3241_v4 = vadd.f32 2.0, %v11934_v7  ;;  %v3164_v31 = vmul.f32 %v10223_v1, %v3132_v62  ;;  %v3110_v23 = vmul.f32 1.442695, %v3055_v53 }
 0xe67   :  { %13477 = vst [vmem:[#allocation104_spill] sm:$0xff] %v11930_v43  ;;  %v11932_v8 = vpop.f32.mrb[63].mxu1  ;;  %v10229_v17 = vpop.eup %10228  ;;  %10242 = vrcp.f32 %v3242_v3  ;;  %13479 = vst [vmem:[#allocation106_spill] sm:$0xff] %v11937_v56  ;;  %v3166_v36 = vmul.f32 %v10225_v21, %v3134_v5  ;;  %v11946_v60 = vadd.f32 %v11863_v29, %v11897_v40  ;;  %v11950_v3 = vrot.slane %v11861_v18, %v11802_v28 }
 0xe68   :  { %13478 = vst [vmem:[#allocation105_spill] sm:$0xff] %v11932_v8  ;;  %13480 = vst [vmem:[#allocation107_spill] sm:$0xff] %v11941_v6  ;;  %v3133_v8 = vadd.f32 2.0, %v10227_v61  ;;  %v10231_v24 = vpop.eup %10230  ;;  %v11954_v12 = vrot.slane %v11861_v18, %v11805_v30  ;;  %10244 = vrcp.f32 %v3225_v25  ;;  %v3243_v1 = vadd.f32 2.0, %v11937_v56 }
 0xe69   :  { %v10233_v9 = vpop.eup %10232  ;;  %v3228_v21 = vadd.f32 2.0, %v3164_v31  ;;  %v3135_v38 = vadd.f32 2.0, %v10229_v17  ;;  %10246 = vrcp.f32 %v3227_v15  ;;  %v3230_v53 = vadd.f32 2.0, %v3166_v36 }
 0xe6a   :  { %v3040_v62 = vmin.f32 %v11923_v22, 20.0  ;;  %v3042_v29 = vmin.f32 %v11941_v6, 20.0  ;;  %v3192_v5 = vmul.f32 %v11874_v63, %v11807_v32  ;;  %10248 = vrcp.f32 %v3241_v4 }
 0xe6b   :  { %v11961_v28 = vmul.f32 %v10227_v61, %v3133_v8  ;;  %v3148_v18 = vadd.f32 2.0, %v10231_v24  ;;  %v10235_v30 = vpop.eup %10234  ;;  %v3194_v25 = vmul.f32 %v11886_v57, %v11809_v35  ;;  %v3208_v56 = vmul.f32 %v3176_v58, %v11823_v45 }
 0xe6c   :  { %10250 = vrcp.f32 %v3228_v21  ;;  %v3150_v15 = vadd.f32 2.0, %v10233_v9  ;;  %v10237_v55 = vpop.eup %10236  ;;  %v3210_v22 = vmul.f32 %v3178_v16, %v11825_v46  ;;  %v11967_v6 = vmul.f32 %v10229_v17, %v3135_v38 }
 0xe6d   :  { %10252 = vrcp.f32 %v3243_v1  ;;  %v3180_v43 = vmul.f32 %v10231_v24, %v3148_v18  ;;  %v10239_v32 = vpop.eup %10238  ;;  %v3196_v8 = vmul.f32 %v3164_v31, %v11837_v26  ;;  %v11971_v4 = vmul.f32 %v3166_v36, %v11839_v27 }
 0xe6e   :  { %10254 = vrcp.f32 %v3230_v53  ;;  %v3182_v63 = vmul.f32 %v10233_v9, %v3150_v15  ;;  %v11973_v35 = vmul.f32 %v10235_v30, %v3192_v5  ;;  %v3229_v45 = vadd.f32 2.0, %v11961_v28  ;;  %v13484_v30 = vld [vmem:[#allocation99_spill] sm:$0xff] }
 0xe6f   :  { %v3244_v58 = vadd.f32 2.0, %v3180_v43  ;;  %10256 = vpow2.f32 %v3110_v23  ;;  %v3149_v61 = vadd.f32 2.0, %v10237_v55  ;;  %v3080_v24 = vmul.f32 1.442695, %v3040_v62 }
 0xe70   :  { %v10241_v57 = vpop.eup %10240  ;;  %v3246_v17 = vadd.f32 2.0, %v3182_v63  ;;  %v11978_v1 = vmul.f32 %v10239_v32, %v3194_v25  ;;  %v3084_v27 = vmul.f32 1.442695, %v3042_v29  ;;  %v3041_v36 = vmin.f32 %v11946_v60, 20.0 }
 0xe71   :  { %v10243_v46 = vpop.eup %10242  ;;  %v11976_v16 = vmul.f32 %v10241_v57, %v3208_v56  ;;  %10258 = vrcp.f32 %v3244_v58  ;;  %v11987_v31 = vadd.f32 %v11865_v39, %v11901_v44  ;;  %v11999_v9 = vadd.f32 %v11870_v47, %v11882_v37 }
 0xe72   :  { %v11980_v26 = vmul.f32 %v10243_v46, %v3210_v22  ;;  %10260 = vrcp.f32 %v3246_v17  ;;  %v11989_v56 = vpop.eup %10244  ;;  %v11995_v22 = vadd.f32 %v11868_v50, %v11878_v2  ;;  %v12003_v38 = vmul.f32 %v10237_v55, %v3149_v61 }
 0xe73   :  { %10262 = vrcp.f32 %v3229_v45  ;;  %v12001_v21 = vpop.eup %10246  ;;  %v3082_v39 = vmul.f32 1.442695, %v3041_v36  ;;  %v3043_v53 = vmin.f32 %v11987_v31, 20.0  ;;  %v3231_v29 = vadd.f32 2.0, %v11967_v6 }
 0xe74   :  { %10264 = vpow2.f32 %v3080_v24  ;;  %v12006_v62 = vpop.eup %10248  ;;  %v3056_v50 = vmin.f32 %v11995_v22, 20.0  ;;  %v3058_v2 = vmin.f32 %v11999_v9, 20.0  ;;  %v3212_v47 = vmul.f32 %v3180_v43, %v11848_v48 }
 0xe75   :  { %10266 = vpow2.f32 %v3084_v27  ;;  %v3086_v37 = vmul.f32 1.442695, %v3043_v53  ;;  %v12014_v55 = vadd.f32 %v11872_v13, %v11897_v40  ;;  %v3214_v25 = vmul.f32 %v3182_v63, %v11852_v59 }
 0xe76   :  { %v10251_v5 = vpop.eup %10250  ;;  %10268 = vpow2.f32 %v3082_v39  ;;  %v3112_v15 = vmul.f32 1.442695, %v3056_v50  ;;  %v3116_v32 = vmul.f32 1.442695, %v3058_v2  ;;  %v12021_v57 = vadd.f32 %v11884_v0, %v11901_v44 }
 0xe77   :  { %v12016_v18 = vpop.eup %10252  ;;  %v3245_v58 = vadd.f32 2.0, %v12003_v38  ;;  %10270 = vpow2.f32 %v3086_v37  ;;  %v3057_v48 = vmin.f32 %v12014_v55, 20.0  ;;  %v12027_v13 = vadd.f32 %v11907_v52, %v11905_v51 }
 0xe78   :  { %v10255_v45 = vpop.eup %10254  ;;  %v12029_v43 = vmul.f32 %v10251_v5, %v3196_v8  ;;  %10272 = vpow2.f32 %v3112_v15  ;;  %v3059_v59 = vmin.f32 %v12021_v57, 20.0  ;;  %v12034_v0 = vadd.f32 %v11913_v49, %v11911_v33 }
 0xe79   :  { %v10257_v40 = vpop.eup %10256  ;;  %10274 = vpow2.f32 %v3116_v32  ;;  %v3114_v63 = vmul.f32 1.442695, %v3057_v48  ;;  %v3044_v46 = vmin.f32 %v12027_v13, 20.0  ;;  %v12040_v8 = vadd.f32 %v11918_v11, %v11950_v3 }
 0xe7a   :  { %v3151_v44 = vadd.f32 2.0, %v10257_v40  ;;  %v3118_v61 = vmul.f32 1.442695, %v3059_v59  ;;  %v3046_v52 = vmin.f32 %v12034_v0, 20.0  ;;  %v12044_v24 = vadd.f32 %v11920_v14, %v11954_v12 }
 0xe7b   :  { %v10259_v17 = vpop.eup %10258  ;;  %10276 = vpow2.f32 %v3114_v63  ;;  %v3088_v39 = vmul.f32 1.442695, %v3044_v46  ;;  %v12053_v50 = vmul.f32 %v10255_v45, %v11971_v4  ;;  %v3045_v11 = vmin.f32 %v12040_v8, 20.0 }
 0xe7c   :  { %v10261_v27 = vpop.eup %10260  ;;  %v12046_v49 = vmul.f32 %v10259_v17, %v3212_v47  ;;  %v12048_v36 = vmul.f32 %v10257_v40, %v3151_v44  ;;  %10278 = vpow2.f32 %v3118_v61  ;;  %v3047_v48 = vmin.f32 %v12044_v24, 20.0 }
 0xe7d   :  { %v12050_v53 = vpop.eup %10262  ;;  %v12055_v2 = vmul.f32 %v10261_v27, %v3214_v25  ;;  %10280 = vrcp.f32 %v3231_v29  ;;  %v3092_v25 = vmul.f32 1.442695, %v3046_v52  ;;  %v3090_v59 = vmul.f32 1.442695, %v3045_v11 }
 0xe7e   :  { %v10265_v5 = vpop.eup %10264  ;;  %v3247_v47 = vadd.f32 2.0, %v12048_v36  ;;  %10282 = vrcp.f32 %v3245_v58  ;;  %v12068_v44 = vadd.f32 %v11927_v19, %v11911_v33  ;;  %v3094_v58 = vmul.f32 1.442695, %v3047_v48 }
 0xe7f   :  { %v10267_v37 = vpop.eup %10266  ;;  %v3136_v32 = vadd.f32 2.0, %v10265_v5  ;;  %10284 = vpow2.f32 %v3088_v39  ;;  %v12077_v39 = vadd.f32 %v11925_v20, %v11905_v51 }
 0xe80   :  { %v10269_v4 = vpop.eup %10268  ;;  %v3138_v45 = vadd.f32 2.0, %v10267_v37  ;;  %10286 = vrcp.f32 %v3247_v47 }
 0xe81   :  { %v12064_v40 = vmul.f32 %v10265_v5, %v3136_v32  ;;  %v3137_v29 = vadd.f32 2.0, %v10269_v4  ;;  %v10271_v63 = vpop.eup %10270  ;;  %10288 = vpow2.f32 %v3092_v25  ;;  %v3193_v32 = vmul.f32 %v11893_v34, %v11813_v41 }
 0xe82   :  { %v12070_v46 = vmul.f32 %v10267_v37, %v3138_v45  ;;  %v10273_v17 = vpop.eup %10272  ;;  %v3139_v52 = vadd.f32 2.0, %v10271_v63  ;;  %10290 = vpow2.f32 %v3090_v59  ;;  %v3195_v59 = vmul.f32 %v11915_v10, %v11815_v42 }
 0xe83   :  { %v3232_v61 = vadd.f32 2.0, %v12064_v40  ;;  %v12073_v27 = vmul.f32 %v10269_v4, %v3137_v29  ;;  %v10275_v11 = vpop.eup %10274  ;;  %v3152_v19 = vadd.f32 2.0, %v10273_v17  ;;  %10292 = vpow2.f32 %v3094_v58 }
 0xe84   :  { %v3234_v5 = vadd.f32 2.0, %v12070_v46  ;;  %v3171_v47 = vmul.f32 %v10271_v63, %v3139_v52  ;;  %v3154_v45 = vadd.f32 2.0, %v10275_v11  ;;  %v3060_v29 = vmin.f32 %v12077_v39, 20.0  ;;  %v13481_v52 = vld [vmem:[#allocation104_spill] sm:$0xff] }
 0xe85   :  { %v3233_v33 = vadd.f32 2.0, %v12073_v27  ;;  %v10277_v37 = vpop.eup %10276  ;;  %v3184_v4 = vmul.f32 %v10273_v17, %v3152_v19  ;;  %10294 = vrcp.f32 %v3232_v61  ;;  %v3209_v34 = vmul.f32 %v11934_v7, %v11829_v54  ;;  %v13483_v19 = vld [vmem:[#allocation106_spill] sm:$0xff] }
 0xe86   :  { %v10279_v48 = vpop.eup %10278  ;;  %v3235_v20 = vadd.f32 2.0, %v3171_v47  ;;  %v3153_v51 = vadd.f32 2.0, %v10277_v37  ;;  %10296 = vrcp.f32 %v3234_v5  ;;  %v3186_v14 = vmul.f32 %v10275_v11, %v3154_v45  ;;  %v13482_v11 = vld [vmem:[#allocation98_spill] sm:$0xff] }
 0xe87   :  { %v10281_v15 = vpop.eup %10280  ;;  %v3248_v25 = vadd.f32 2.0, %v3184_v4  ;;  %v3155_v23 = vadd.f32 2.0, %v10279_v48  ;;  %10298 = vrcp.f32 %v3233_v33  ;;  %v12092_v5 = vadd.f32 %v13481_v52, %v11950_v3  ;;  %v13485_v3 = vld [vmem:[#allocation100_spill] sm:$0xff] }
 0xe88   :  { %v10283_v63 = vpop.eup %10282  ;;  %v3185_v41 = vmul.f32 %v10277_v37, %v3153_v51  ;;  %v3250_v17 = vadd.f32 2.0, %v3186_v14  ;;  %v3211_v45 = vmul.f32 %v13483_v19, %v13482_v11  ;;  %v3197_v10 = vmul.f32 %v11961_v28, %v13484_v30  ;;  %v13486_v30 = vld [vmem:[#allocation101_spill] sm:$0xff] }
 0xe89   :  { %v12088_v58 = vpop.eup %10284  ;;  %10300 = vrcp.f32 %v3248_v25  ;;  %v3187_v61 = vmul.f32 %v10279_v48, %v3155_v23  ;;  %v3120_v33 = vmul.f32 1.442695, %v3060_v29  ;;  %v3062_v37 = vmin.f32 %v12068_v44, 20.0 }
 0xe8a   :  { %10302 = vrcp.f32 %v3235_v20  ;;  %v3249_v42 = vadd.f32 2.0, %v3185_v41  ;;  %v10287_v7 = vpop.eup %10286  ;;  %v3289_v23 = vmul.f32 %v11989_v56, %v3193_v32  ;;  %v3291_v48 = vmul.f32 %v12001_v21, %v3195_v59 }
 0xe8b   :  { %10304 = vrcp.f32 %v3250_v17  ;;  %v3251_v54 = vadd.f32 2.0, %v3187_v61  ;;  %v3199_v51 = vmul.f32 %v11967_v6, %v13485_v3  ;;  %v12103_v25 = vpop.eup %10288  ;;  %v3305_v28 = vmul.f32 %v12006_v62, %v3209_v34  ;;  %v13487_v6 = vld [vmem:[#allocation105_spill] sm:$0xff] }
 0xe8c   :  { %10306 = vrcp.f32 %v3249_v42  ;;  %v3213_v20 = vmul.f32 %v12003_v38, %v13486_v30  ;;  %v3061_v29 = vmin.f32 %v12092_v5, 20.0  ;;  %v12109_v17 = vpop.eup %10290  ;;  %v3307_v56 = vmul.f32 %v12016_v18, %v3211_v45  ;;  %v13488_v38 = vld [vmem:[#allocation102_spill] sm:$0xff]  ;;  %v13489_v18 = vld [vmem:[#allocation103_spill] sm:$0xff] }
 0xe8d   :  { %10308 = vrcp.f32 %v3251_v54  ;;  %v12113_v21 = vmul.f32 %v12050_v53, %v3197_v10  ;;  %v12115_v32 = vmul.f32 %v10281_v15, %v3199_v51  ;;  %v12119_v59 = vadd.f32 %v13487_v6, %v11954_v12  ;;  %v12121_v62 = vpop.eup %10292  ;;  %v13490_v15 = vld [vmem:[#allocation107_spill] sm:$0xff] }
 0xe8e   :  { %v3309_v34 = vmul.f32 %v10283_v63, %v3213_v20  ;;  %v3215_v52 = vmul.f32 %v12048_v36, %v13488_v38  ;;  %10310 = vpow2.f32 %v3120_v33  ;;  %v3124_v11 = vmul.f32 1.442695, %v3062_v37  ;;  %v9890_v30 = vld [vmem:[%s13462_s27 + $0x100] sm:$0xff]   ;;  %v9896_v38 = vld [vmem:[%s13462_s27 + $0x150] sm:$0xff]  }
 0xe8f   :  { %v10295_v19 = vpop.eup %10294  ;;  %v3200_v53 = vmul.f32 %v12064_v40, %v13489_v18  ;;  %v3202_v45 = vmul.f32 %v12070_v46, %v13490_v15  ;;  %v3201_v12 = vmul.f32 %v12073_v27, %v11946_v60  ;;  %v3203_v10 = vmul.f32 %v3171_v47, %v11987_v31  ;;  %v9891_v60 = vld [vmem:[%s13462_s27 + $0x180] sm:$0xff]  }
 0xe90   :  { %v10297_v63 = vpop.eup %10296  ;;  %v3311_v42 = vmul.f32 %v10287_v7, %v3215_v52  ;;  %v3216_v36 = vmul.f32 %v3184_v4, %v11995_v22  ;;  %v3140_v54 = vadd.f32 2.0, %v12088_v58  ;;  %v3122_v33 = vmul.f32 1.442695, %v3061_v29  ;;  %v9892_v4 = vld [vmem:[%s13462_s27 + $0x148] sm:$0xff]   ;;  %v9897_v52 = vld [vmem:[%s13462_s27 + $0x1d0] sm:$0xff]  }
 0xe91   :  { %v10299_v37 = vpop.eup %10298  ;;  %v3218_v40 = vmul.f32 %v3186_v14, %v11999_v9  ;;  %v3063_v3 = vmin.f32 %v12119_v59, 20.0  ;;  %v3321_v46 = vpack.c.bf16 %v3305_v28, %v3289_v23  ;;  %v3323_v51 = vpack.c.bf16 %v3307_v56, %v3291_v48  ;;  %v9893_v7 = vld [vmem:[%s13462_s27 + $0x1c8] sm:$0xff]  }
 0xe92   :  { %v12138_v31 = vmul.f32 %v10295_v19, %v3200_v53  ;;  %v3217_v47 = vmul.f32 %v3185_v41, %v12014_v55  ;;  %v3219_v22 = vmul.f32 %v3187_v61, %v12021_v57  ;;  %10312 = vpow2.f32 %v3124_v11 }
 0xe93   :  { %v10301_v27 = vpop.eup %10300  ;;  %10314 = vpow2.f32 %v3122_v33  ;;  %v3126_v9 = vmul.f32 1.442695, %v3063_v3  ;;  %4142 = vmatprep.mubr.bf16.mxu0 %v3321_v46  ;;  %4183 = vmatprep.mubr.bf16.mxu1 %v3323_v51  ;;  %v3325_v14 = vpack.c.bf16 %v3309_v34, %v12113_v21  ;;  %v12148_v48 = vmul.f32 %v12088_v58, %v3140_v54  ;;  %v9900_v33 = vld [vmem:[%s13462_s27 + $0x158] sm:$0xff]  }
 0xe94   :  { %v10303_v20 = vpop.eup %10302  ;;  %v12144_v29 = vmul.f32 %v10301_v27, %v3216_v36  ;;  %v3142_v55 = vadd.f32 2.0, %v12103_v25  ;;  %v3141_v57 = vadd.f32 2.0, %v12109_v17  ;;  %v13491_v41 = vpack.c.bf16 %v11976_v16, %v11973_v35  ;;  %v9894_v35 = vld [vmem:[%s13462_s27 + $0x108] sm:$0xff]   ;;  %v9899_v36 = vld [vmem:[%s13462_s27 + $0x190] sm:$0xff]   ;;  %v9903_v27 = vld [vmem:[%s13462_s27 + $0x198] sm:$0xff]  }
 0xe95   :  { %v10305_v23 = vpop.eup %10304  ;;  %v13492_v61 = vpack.c.bf16 %v11980_v26, %v11978_v1  ;;  %v3327_v28 = vpack.c.bf16 %v3311_v42, %v12115_v32  ;;  %v12159_v21 = vmul.f32 %v10297_v63, %v3202_v45  ;;  %10316 = vpow2.f32 %v3126_v9  ;;  %v9895_v16 = vld [vmem:[%s13462_s27 + $0x188] sm:$0xff]   ;;  %v9898_v42 = vld [vmem:[%s13462_s27 + $0x110] sm:$0xff]  }
 0xe96   :  { %4143 = vmatmul.mubr.bf16.vlgmr.msra.gmra.mrb[64].mxu0 %v13491_v41  ;;  %v10307_v56 = vpop.eup %10306  ;;  %v3328_v58 = vpack.c.bf16 %v12144_v29, %v12138_v31  ;;  %v12163_v6 = vmul.f32 %v10305_v23, %v3218_v40  ;;  %v12167_v1 = vmul.f32 %v10299_v37, %v3201_v12  ;;  %v3143_v32 = vadd.f32 2.0, %v12121_v62  ;;  %v9901_v37 = vld [vmem:[%s13462_s27 + $0x1d8] sm:$0xff]   ;;  %v9907_v41 = vld [vmem:[%s13462_s27 + $0x1a0] sm:$0xff]   ;;  %v9961_v31 = vld [vmem:[%s13462_s27 + $0x3d0] sm:$0xff]  }
 0xe97   :  { %4184 = vmatmul.mubr.bf16.vlgmr.msra.gmra.mrb[64].mxu1 %v13492_v61  ;;  %9069 = vmatpush3.bf16.msra.mxu0 %v9890_v30  ;;  %v10309_v34 = vpop.eup %10308  ;;  %v12169_v26 = vmul.f32 %v10307_v56, %v3217_v47  ;;  %v12174_v11 = vmul.f32 %v10303_v20, %v3203_v10  ;;  %v12181_v15 = vmul.f32 %v12103_v25, %v3142_v55  ;;  %v3236_v12 = vadd.f32 2.0, %v12148_v48  ;;  %v9908_v56 = vld [vmem:[%s13462_s27 + $0x168] sm:$0xff]   ;;  %v9962_v29 = vld [vmem:[%s13462_s27 + $0x310] sm:$0xff]  }
 0xe98   :  { %9091 = vmatpush3.bf16.msra.mxu1 %v9891_v60  ;;  %9070 = vmatprep.subr.bf16.mxu0 %v9892_v4  ;;  %v3330_v19 = vpack.c.bf16 %v12163_v6, %v12159_v21  ;;  %v12178_v18 = vmul.f32 %v10309_v34, %v3219_v22  ;;  %v10311_v53 = vpop.eup %10310  ;;  %v12187_v10 = vmul.f32 %v12109_v17, %v3141_v57  ;;  %v9904_v4 = vld [vmem:[%s13462_s27 + $0x160] sm:$0xff]   ;;  %v9910_v34 = vld [vmem:[%s13462_s27 + $0x128] sm:$0xff]   ;;  %v9963_v21 = vld [vmem:[%s13462_s27 + $0x390] sm:$0xff]  }
 0xe99   :  { %9092 = vmatprep.subr.bf16.mxu1 %v9893_v7  ;;  %4224 = vmatprep.mubr.bf16.mxu0 %v3325_v14  ;;  %v3329_v45 = vpack.c.bf16 %v12169_v26, %v12167_v1  ;;  %v3156_v63 = vadd.f32 2.0, %v10311_v53  ;;  %v12194_v25 = vmul.f32 %v12121_v62, %v3143_v32  ;;  %v3238_v3 = vadd.f32 2.0, %v12181_v15  ;;  %v9902_v62 = vld [vmem:[%s13462_s27 + $0x118] sm:$0xff]   ;;  %v9905_v7 = vld [vmem:[%s13462_s27 + $0x1e0] sm:$0xff]   ;;  %v9911_v32 = vld [vmem:[%s13462_s27 + $0x1a8] sm:$0xff]  }
 0xe9a   :  { %4265 = vmatprep.mubr.bf16.mxu1 %v3327_v28  ;;  %v3331_v54 = vpack.c.bf16 %v12178_v18, %v12174_v11  ;;  %10318 = vrcp.f32 %v3236_v12  ;;  %v3237_v51 = vadd.f32 2.0, %v12187_v10  ;;  %v9906_v57 = vld [vmem:[%s13462_s27 + $0x120] sm:$0xff]   ;;  %v3204_v12 = vmul.f32 %v12148_v48, %v12027_v13  ;;  %v9931_v1 = vld [vmem:[%s13462_s27 + $0x290] sm:$0xff]   ;;  %v9932_v26 = vld [vmem:[%s13462_s27 + $0x258] sm:$0xff]  }
 0xe9b   :  { %9071 = vmatpush3.bf16.msra.mxu0 %v9894_v35  ;;  %v3188_v40 = vmul.f32 %v10311_v53, %v3156_v63  ;;  %v3239_v47 = vadd.f32 2.0, %v12194_v25  ;;  %v9909_v35 = vld [vmem:[%s13462_s27 + $0x1e8] sm:$0xff]   ;;  %v9933_v11 = vld [vmem:[%s13462_s27 + $0x2d8] sm:$0xff]  }
 0xe9c   :  { %9093 = vmatpush3.bf16.msra.mxu1 %v9895_v16  ;;  %9072 = vmatprep.subr.bf16.mxu0 %v9896_v38  ;;  %v10313_v17 = vpop.eup %10312  ;;  %v9912_v38 = vld [vmem:[%s13462_s27 + $0x170] sm:$0xff]   ;;  %v9934_v18 = vld [vmem:[%s13462_s27 + $0x218] sm:$0xff]  }
 0xe9d   :  { %9094 = vmatprep.subr.bf16.mxu1 %v9897_v52  ;;  %v10315_v46 = vpop.eup %10314  ;;  %v3252_v30 = vadd.f32 2.0, %v3188_v40  ;;  %v3158_v60 = vadd.f32 2.0, %v10313_v17  ;;  %v9913_v52 = vld [vmem:[%s13462_s27 + $0x1f0] sm:$0xff]   ;;  %v3220_v63 = vmul.f32 %v3188_v40, %v12077_v39  ;;  %v3206_v39 = vmul.f32 %v12181_v15, %v12034_v0  ;;  %v9920_v15 = vld [vmem:[%s13462_s27 + $0x240] sm:$0xff]   ;;  %v9965_v6 = vld [vmem:[%s13462_s27 + $0x3d8] sm:$0xff]  }
 0xe9e   :  { %v3157_v22 = vadd.f32 2.0, %v10315_v46 }
 0xe9f   :  { %9073 = vmatpush3.bf16.msra.mxu0 %v9898_v42  ;;  %v10317_v20 = vpop.eup %10316  ;;  %10320 = vrcp.f32 %v3252_v30  ;;  %v3190_v9 = vmul.f32 %v10313_v17, %v3158_v60 }
 0xea0   :  { %9095 = vmatpush3.bf16.msra.mxu1 %v9899_v36  ;;  %9074 = vmatprep.subr.bf16.mxu0 %v9900_v33  ;;  %10322 = vrcp.f32 %v3238_v3  ;;  %v3189_v14 = vmul.f32 %v10315_v46, %v3157_v22  ;;  %v3159_v23 = vadd.f32 2.0, %v10317_v20  ;;  %v9914_v36 = vld [vmem:[%s13462_s27 + $0x130] sm:$0xff]   ;;  %v9916_v46 = vld [vmem:[%s13462_s27 + $0x178] sm:$0xff]  }
 0xea1   :  { %9096 = vmatprep.subr.bf16.mxu1 %v9901_v37  ;;  %10324 = vrcp.f32 %v3237_v51  ;;  %v3254_v55 = vadd.f32 2.0, %v3190_v9  ;;  %v9915_v33 = vld [vmem:[%s13462_s27 + $0x1b0] sm:$0xff]   ;;  %v9917_v51 = vld [vmem:[%s13462_s27 + $0x1f8] sm:$0xff]   ;;  %v3222_v40 = vmul.f32 %v3190_v9, %v12068_v44  ;;  %v9921_v44 = vld [vmem:[%s13462_s27 + $0x2c0] sm:$0xff]  }
 0xea2   :  { %10326 = vrcp.f32 %v3239_v47  ;;  %v3253_v61 = vadd.f32 2.0, %v3189_v14  ;;  %v3191_v28 = vmul.f32 %v10317_v20, %v3159_v23  ;;  %v9918_v47 = vld [vmem:[%s13462_s27 + $0x138] sm:$0xff]  }
 0xea3   :  { %9075 = vmatpush3.bf16.msra.mxu0 %v9902_v62  ;;  %10328 = vrcp.f32 %v3254_v55  ;;  %v3205_v62 = vmul.f32 %v12187_v10, %v12040_v8  ;;  %v9919_v22 = vld [vmem:[%s13462_s27 + $0x1b8] sm:$0xff]   ;;  %v3207_v8 = vmul.f32 %v12194_v25, %v12044_v24  ;;  %v9924_v25 = vld [vmem:[%s13462_s27 + $0x248] sm:$0xff]  }
 0xea4   :  { %9097 = vmatpush3.bf16.msra.mxu1 %v9903_v27  ;;  %9076 = vmatprep.subr.bf16.mxu0 %v9904_v4  ;;  %10330 = vrcp.f32 %v3253_v61  ;;  %v3255_v16 = vadd.f32 2.0, %v3191_v28  ;;  %v10319_v53 = vpop.eup %10318  ;;  %v3221_v27 = vmul.f32 %v3189_v14, %v12092_v5  ;;  %v3223_v10 = vmul.f32 %v3191_v28, %v12119_v59  ;;  %v9923_v59 = vld [vmem:[%s13462_s27 + $0x280] sm:$0xff]  }
 0xea5   :  { %9098 = vmatprep.subr.bf16.mxu1 %v9905_v7  ;;  %v12218_v17 = vmul.f32 %v10319_v53, %v3204_v12  ;;  %v13493_v28 = vpack.c.bf16 %v12046_v49, %v12029_v43  ;;  %v9927_v43 = vld [vmem:[%s13462_s27 + $0x288] sm:$0xff]   ;;  %v9928_v49 = vld [vmem:[%s13462_s27 + $0x250] sm:$0xff]  }
 0xea6   :  { %10332 = vrcp.f32 %v3255_v16  ;;  %v9937_v16 = vld [vmem:[%s13462_s27 + $0x2e0] sm:$0xff]   ;;  %v9942_v53 = vld [vmem:[%s13462_s27 + $0x228] sm:$0xff]  }
 0xea7   :  { %9077 = vmatpush3.bf16.msra.mxu0 %v9906_v57  ;;  %v9922_v57 = vld [vmem:[%s13462_s27 + $0x200] sm:$0xff]   ;;  %v9943_v12 = vld [vmem:[%s13462_s27 + $0x2a8] sm:$0xff]  }
 0xea8   :  { %9099 = vmatpush3.bf16.msra.mxu1 %v9907_v41  ;;  %9078 = vmatprep.subr.bf16.mxu0 %v9908_v56  ;;  %v9925_v41 = vld [vmem:[%s13462_s27 + $0x2c8] sm:$0xff]   ;;  %v13494_v56 = vpack.c.bf16 %v12055_v2, %v12053_v50  ;;  %v9929_v50 = vld [vmem:[%s13462_s27 + $0x2d0] sm:$0xff]  }
 0xea9   :  { %9100 = vmatprep.subr.bf16.mxu1 %v9909_v35  ;;  %v10321_v42 = vpop.eup %10320  ;;  %v9926_v35 = vld [vmem:[%s13462_s27 + $0x208] sm:$0xff]   ;;  %v9930_v2 = vld [vmem:[%s13462_s27 + $0x210] sm:$0xff]  }
 0xeaa   :  { %v10323_v37 = vpop.eup %10322  ;;  %v12220_v3 = vmul.f32 %v10321_v42, %v3220_v63  ;;  %v9944_v63 = vld [vmem:[%s13462_s27 + $0x270] sm:$0xff]  }
 0xeab   :  { %9079 = vmatpush3.bf16.msra.mxu0 %v9910_v34  ;;  %v10325_v30 = vpop.eup %10324  ;;  %v12234_v7 = vmul.f32 %v10323_v37, %v3206_v39  ;;  %v9938_v34 = vld [vmem:[%s13462_s27 + $0x220] sm:$0xff]   ;;  %v9945_v42 = vld [vmem:[%s13462_s27 + $0x2f0] sm:$0xff]   ;;  %v9948_v37 = vld [vmem:[%s13462_s27 + $0x278] sm:$0xff]  }
 0xeac   :  { %9101 = vmatpush3.bf16.msra.mxu1 %v9911_v32  ;;  %9080 = vmatprep.subr.bf16.mxu0 %v9912_v38  ;;  %v10327_v13 = vpop.eup %10326  ;;  %v3332_v48 = vpack.c.bf16 %v12220_v3, %v12218_v17  ;;  %v12240_v20 = vmul.f32 %v10325_v30, %v3205_v62  ;;  %v9939_v32 = vld [vmem:[%s13462_s27 + $0x2a0] sm:$0xff]   ;;  %v9940_v38 = vld [vmem:[%s13462_s27 + $0x268] sm:$0xff]   ;;  %v9951_v30 = vld [vmem:[%s13462_s27 + $0x2b8] sm:$0xff]  }
 0xead   :  { %9102 = vmatprep.subr.bf16.mxu1 %v9913_v52  ;;  %v10329_v60 = vpop.eup %10328  ;;  %v12249_v23 = vmul.f32 %v10327_v13, %v3207_v8  ;;  %v9941_v52 = vld [vmem:[%s13462_s27 + $0x2e8] sm:$0xff]   ;;  %v9952_v13 = vld [vmem:[%s13462_s27 + $0x340] sm:$0xff]  }
 0xeae   :  { %v10331_v4 = vpop.eup %10330  ;;  %v12236_v0 = vmul.f32 %v10329_v60, %v3222_v40  ;;  %v9953_v39 = vld [vmem:[%s13462_s27 + $0x3c0] sm:$0xff]   ;;  %v9956_v62 = vld [vmem:[%s13462_s27 + $0x348] sm:$0xff]  }
 0xeaf   :  { %9081 = vmatpush3.bf16.msra.mxu0 %v9914_v36  ;;  %v12244_v5 = vmul.f32 %v10331_v4, %v3221_v27  ;;  %v9946_v36 = vld [vmem:[%s13462_s27 + $0x230] sm:$0xff]   ;;  %v9954_v40 = vld [vmem:[%s13462_s27 + $0x300] sm:$0xff]   ;;  %v9957_v27 = vld [vmem:[%s13462_s27 + $0x3c8] sm:$0xff]  }
 0xeb0   :  { %9103 = vmatpush3.bf16.msra.mxu1 %v9915_v33  ;;  %9082 = vmatprep.subr.bf16.mxu0 %v9916_v46  ;;  %v10333_v9 = vpop.eup %10332  ;;  %v3334_v14 = vpack.c.bf16 %v12236_v0, %v12234_v7  ;;  %v9947_v33 = vld [vmem:[%s13462_s27 + $0x2b0] sm:$0xff]   ;;  %v9949_v46 = vld [vmem:[%s13462_s27 + $0x2f8] sm:$0xff]   ;;  %v9955_v60 = vld [vmem:[%s13462_s27 + $0x380] sm:$0xff]  }
 0xeb1   :  { %9104 = vmatprep.subr.bf16.mxu1 %v9917_v51  ;;  %v12251_v55 = vmul.f32 %v10333_v9, %v3223_v10  ;;  %v3333_v24 = vpack.c.bf16 %v12244_v5, %v12240_v20  ;;  %v9950_v51 = vld [vmem:[%s13462_s27 + $0x238] sm:$0xff]   ;;  %v9960_v4 = vld [vmem:[%s13462_s27 + $0x350] sm:$0xff]   ;;  %v9969_v20 = vld [vmem:[%s13462_s27 + $0x3e0] sm:$0xff]  }
 0xeb2   :  { %v9970_v8 = vld [vmem:[%s13462_s27 + $0x320] sm:$0xff]   ;;  %v9972_v10 = vld [vmem:[%s13462_s27 + $0x368] sm:$0xff]  }
 0xeb3   :  { %9083 = vmatpush3.bf16.msra.mxu0 %v9918_v47  ;;  %v3335_v61 = vpack.c.bf16 %v12251_v55, %v12249_v23  ;;  %v9958_v47 = vld [vmem:[%s13462_s27 + $0x308] sm:$0xff]   ;;  %v9971_v5 = vld [vmem:[%s13462_s27 + $0x3a0] sm:$0xff]  }
 0xeb4   :  { %9105 = vmatpush3.bf16.msra.mxu1 %v9919_v22  ;;  %9112 = vmatprep.subr.bf16.mxu0 %v9920_v15  ;;  %v9959_v22 = vld [vmem:[%s13462_s27 + $0x388] sm:$0xff]   ;;  %v9967_v15 = vld [vmem:[%s13462_s27 + $0x398] sm:$0xff]  }
 0xeb5   :  { %9134 = vmatprep.subr.bf16.mxu1 %v9921_v44  ;;  %v9968_v44 = vld [vmem:[%s13462_s27 + $0x360] sm:$0xff]   ;;  %v9973_v9 = vld [vmem:[%s13462_s27 + $0x3e8] sm:$0xff]  }
 0xeb6   :  { %4225 = vmatmul.mubr.bf16.vlgmr.msra.gmra.mrb[68].mxu0 %v13493_v28  ;;  %v9974_v23 = vld [vmem:[%s13462_s27 + $0x328] sm:$0xff]   ;;  %v9982_v28 = vld [vmem:[%s13462_s27 + $0x338] sm:$0xff]  }
 0xeb7   :  { %4266 = vmatmul.mubr.bf16.vlgmr.msra.gmra.mrb[68].mxu1 %v13494_v56  ;;  %9113 = vmatpush3.bf16.msra.mxu0 %v9922_v57  ;;  %v9975_v55 = vld [vmem:[%s13462_s27 + $0x3a8] sm:$0xff]   ;;  %v9976_v57 = vld [vmem:[%s13462_s27 + $0x370] sm:$0xff]   ;;  %v9983_v56 = vld [vmem:[%s13462_s27 + $0x3b8] sm:$0xff]  }
 0xeb8   :  { %4306 = vmatprep.mubr.bf16.mxu0 %v3329_v45  ;;  %9135 = vmatpush3.bf16.msra.mxu1 %v9923_v59  ;;  %v9935_v45 = vld [vmem:[%s13462_s27 + $0x298] sm:$0xff]   ;;  %v9978_v59 = vld [vmem:[%s13462_s27 + $0x330] sm:$0xff]  }
 0xeb9   :  { %4347 = vmatprep.mubr.bf16.mxu1 %v3331_v54  ;;  %9114 = vmatprep.subr.bf16.mxu0 %v9924_v25  ;;  %v9936_v54 = vld [vmem:[%s13462_s27 + $0x260] sm:$0xff]   ;;  %v9979_v25 = vld [vmem:[%s13462_s27 + $0x3b0] sm:$0xff]  }
 0xeba   :  { %9136 = vmatprep.subr.bf16.mxu1 %v9925_v41  ;;  %v9980_v41 = vld [vmem:[%s13462_s27 + $0x378] sm:$0xff]  }
 0xebb   :  { %9115 = vmatpush3.bf16.msra.mxu0 %v9926_v35  ;;  %v13496_v35 = vmov 0.0  }
 0xebc   :  { %9137 = vmatpush3.bf16.msra.mxu1 %v9927_v43  ;;  %9116 = vmatprep.subr.bf16.mxu0 %v9928_v49 }
 0xebd   :  { %9138 = vmatprep.subr.bf16.mxu1 %v9929_v50  ;;  %v8612_v50 = vld [vmem:[%s13495_s25] ss:$0 sm:$0xff] }
 0xebf   :  { %9117 = vmatpush3.bf16.msra.mxu0 %v9930_v2 }
 0xec0   :  { %9139 = vmatpush3.bf16.msra.mxu1 %v9931_v1  ;;  %9118 = vmatprep.subr.bf16.mxu0 %v9932_v26 }
 0xec1   :  { %9140 = vmatprep.subr.bf16.mxu1 %v9933_v11 }
 0xec3   :  { %9119 = vmatpush3.bf16.msra.mxu0 %v9934_v18 }
 0xec4   :  { %9141 = vmatpush3.bf16.msra.mxu1 %v9935_v45  ;;  %9120 = vmatprep.subr.bf16.mxu0 %v9936_v54 }
 0xec5   :  { %9142 = vmatprep.subr.bf16.mxu1 %v9937_v16 }
 0xec7   :  { %9121 = vmatpush3.bf16.msra.mxu0 %v9938_v34 }
 0xec8   :  { %9143 = vmatpush3.bf16.msra.mxu1 %v9939_v32  ;;  %9122 = vmatprep.subr.bf16.mxu0 %v9940_v38 }
 0xec9   :  { %9144 = vmatprep.subr.bf16.mxu1 %v9941_v52 }
 0xecb   :  { %9123 = vmatpush3.bf16.msra.mxu0 %v9942_v53 }
 0xecc   :  { %9145 = vmatpush3.bf16.msra.mxu1 %v9943_v12  ;;  %9124 = vmatprep.subr.bf16.mxu0 %v9944_v63 }
 0xecd   :  { %9146 = vmatprep.subr.bf16.mxu1 %v9945_v42 }
 0xecf   :  { %9125 = vmatpush3.bf16.msra.mxu0 %v9946_v36 }
 0xed0   :  { %9147 = vmatpush3.bf16.msra.mxu1 %v9947_v33  ;;  %9126 = vmatprep.subr.bf16.mxu0 %v9948_v37 }
 0xed1   :  { %9148 = vmatprep.subr.bf16.mxu1 %v9949_v46 }
 0xed3   :  { %9127 = vmatpush3.bf16.msra.mxu0 %v9950_v51 }
 0xed4   :  { %9149 = vmatpush3.bf16.msra.mxu1 %v9951_v30  ;;  %9156 = vmatprep.subr.bf16.mxu0 %v9952_v13 }
 0xed5   :  { %9178 = vmatprep.subr.bf16.mxu1 %v9953_v39 }
 0xed6   :  { %4307 = vmatmul.mubr.bf16.vlgmr.msra.gmra.mrb[72].mxu0 %v3328_v58  ;;  %v9964_v58 = vld [vmem:[%s13462_s27 + $0x358] sm:$0xff]  }
 0xed7   :  { %4348 = vmatmul.mubr.bf16.vlgmr.msra.gmra.mrb[72].mxu1 %v3330_v19  ;;  %9157 = vmatpush3.bf16.msra.mxu0 %v9954_v40  ;;  %v9966_v19 = vld [vmem:[%s13462_s27 + $0x318] sm:$0xff]  }
 0xed8   :  { %4388 = vmatprep.mubr.bf16.mxu0 %v3333_v24  ;;  %9179 = vmatpush3.bf16.msra.mxu1 %v9955_v60  ;;  %v9977_v24 = vld [vmem:[%s13462_s27 + $0x3f0] sm:$0xff]  }
 0xed9   :  { %4429 = vmatprep.mubr.bf16.mxu1 %v3335_v61  ;;  %9158 = vmatprep.subr.bf16.mxu0 %v9956_v62  ;;  %v9981_v61 = vld [vmem:[%s13462_s27 + $0x3f8] sm:$0xff]  }
 0xeda   :  { %9180 = vmatprep.subr.bf16.mxu1 %v9957_v27 }
 0xedb   :  { %9159 = vmatpush3.bf16.msra.mxu0 %v9958_v47 }
 0xedc   :  { %9181 = vmatpush3.bf16.msra.mxu1 %v9959_v22  ;;  %9160 = vmatprep.subr.bf16.mxu0 %v9960_v4 }
 0xedd   :  { %9182 = vmatprep.subr.bf16.mxu1 %v9961_v31 }
 0xedf   :  { %9161 = vmatpush3.bf16.msra.mxu0 %v9962_v29 }
 0xee0   :  { %9183 = vmatpush3.bf16.msra.mxu1 %v9963_v21  ;;  %9162 = vmatprep.subr.bf16.mxu0 %v9964_v58 }
 0xee1   :  { %9184 = vmatprep.subr.bf16.mxu1 %v9965_v6 }
 0xee3   :  { %9163 = vmatpush3.bf16.msra.mxu0 %v9966_v19 }
 0xee4   :  { %9185 = vmatpush3.bf16.msra.mxu1 %v9967_v15  ;;  %9164 = vmatprep.subr.bf16.mxu0 %v9968_v44 }
 0xee5   :  { %9186 = vmatprep.subr.bf16.mxu1 %v9969_v20 }
 0xee7   :  { %9165 = vmatpush3.bf16.msra.mxu0 %v9970_v8 }
 0xee8   :  { %9187 = vmatpush3.bf16.msra.mxu1 %v9971_v5  ;;  %9166 = vmatprep.subr.bf16.mxu0 %v9972_v10 }
 0xee9   :  { %9188 = vmatprep.subr.bf16.mxu1 %v9973_v9 }
 0xeeb   :  { %9167 = vmatpush3.bf16.msra.mxu0 %v9974_v23 }
 0xeec   :  { %9189 = vmatpush3.bf16.msra.mxu1 %v9975_v55  ;;  %9168 = vmatprep.subr.bf16.mxu0 %v9976_v57 }
 0xeed   :  { %9190 = vmatprep.subr.bf16.mxu1 %v9977_v24 }
 0xeef   :  { %9169 = vmatpush3.bf16.msra.mxu0 %v9978_v59 }
 0xef0   :  { %9191 = vmatpush3.bf16.msra.mxu1 %v9979_v25  ;;  %9170 = vmatprep.subr.bf16.mxu0 %v9980_v41 }
 0xef1   :  { %9192 = vmatprep.subr.bf16.mxu1 %v9981_v61 }
 0xef3   :  { %9171 = vmatpush3.bf16.msra.mxu0 %v9982_v28 }
 0xef4   :  { %9193 = vmatpush3.bf16.msra.mxu1 %v9983_v56  ;;  %9595 = vmatprep.subr.bf16.mxu0 %v13496_v35 }
 0xef5   :  { %9603 = vmatprep.subr.bf16.mxu1 %v13496_v35 }
 0xef6   :  { %4389 = vmatmul.mubr.bf16.vlgmr.msra.gmra.mrb[76].mxu0 %v3332_v48 }
 0xef7   :  { %4430 = vmatmul.mubr.bf16.vlgmr.msra.gmra.mrb[76].mxu1 %v3334_v14  ;;  %9599 = vmatprep.mubr.msk.bf16.mxu0 %vm10961_vm1, %v13496_v35 }
 0xef8   :  { %9607 = vmatprep.mubr.msk.bf16.mxu1 %vm10961_vm1, %v13496_v35 }
 0xf69   :  { %v9040_v43 = vpop.f32.mrb[64].mxu0 }
 0xf6a   :  { %v9062_v49 = vpop.f32.mrb[64].mxu1  ;;  %v9041_v2 = vpop.f32.mrb[65].mxu0 }
 0xf6b   :  { %v9063_v1 = vpop.f32.mrb[65].mxu1  ;;  %v9042_v26 = vadd.f32 %v9041_v2, %v9040_v43  ;;  %v9043_v18 = vpop.f32.mrb[66].mxu0 }
 0xf6c   :  { %v9064_v11 = vadd.f32 %v9063_v1, %v9062_v49  ;;  %v9065_v17 = vpop.f32.mrb[66].mxu1  ;;  %v9044_v3 = vpop.f32.mrb[67].mxu0  ;;  %v13497_v49 = vld [vmem:[#allocation89_spill] sm:$0xff]  ;;  %v13498_v1 = vld [vmem:[#allocation90_spill] sm:$0xff] }
 0xf6d   :  { %v9066_v48 = vpop.f32.mrb[67].mxu1  ;;  %v4145_v45 = vadd.f32 %v9042_v26, %v8612_v50  ;;  %v9045_v7 = vadd.f32 %v9044_v3, %v9043_v18 }
 0xf6e   :  { %v9067_v0 = vadd.f32 %v9066_v48, %v9065_v17 }
 0xf6f   :  { %v4186_v14 = vadd.f32 %v9064_v11, %v4145_v45  ;;  %v4148_v54 = vadd.f32 %v9045_v7, %v8612_v50 }
 0xf71   :  { %v4189_v16 = vadd.f32 %v9067_v0, %v4148_v54 }
 0xf89   :  { %v9084_v34 = vpop.f32.mrb[68].mxu0 }
 0xf8a   :  { %v9106_v32 = vpop.f32.mrb[68].mxu1  ;;  %v9085_v38 = vpop.f32.mrb[69].mxu0 }
 0xf8b   :  { %v9107_v52 = vpop.f32.mrb[69].mxu1  ;;  %v9086_v53 = vadd.f32 %v9085_v38, %v9084_v34  ;;  %v9087_v63 = vpop.f32.mrb[70].mxu0  ;;  %v9985_v38 = vld [vmem:[%s13500_s21] sm:$0xff]  }
 0xf8c   :  { %v9108_v12 = vadd.f32 %v9107_v52, %v9106_v32  ;;  %v9109_v42 = vpop.f32.mrb[70].mxu1  ;;  %v9088_v36 = vpop.f32.mrb[71].mxu0  ;;  %v9984_v32 = vld [vmem:[%s13499_s29] sm:$0xff]   ;;  %9604 = vmatpush3.bf16.msra.mxu1 %v9985_v38  ;;  %v9986_v52 = vld [vmem:[%s13499_s29 + $0x8] sm:$0xff]  }
 0xf8d   :  { %v9110_v33 = vpop.f32.mrb[71].mxu1  ;;  %v4227_v37 = vadd.f32 %v9086_v53, %v4186_v14  ;;  %v9089_v46 = vadd.f32 %v9088_v36, %v9087_v63  ;;  %9596 = vmatpush3.bf16.msra.mxu0 %v9984_v32  ;;  %v9987_v53 = vld [vmem:[%s13500_s21 + $0x8] sm:$0xff]   ;;  %9605 = vmatprep.subr.bf16.mxu1 %v13496_v35 }
 0xf8e   :  { %v9111_v51 = vadd.f32 %v9110_v33, %v9109_v42  ;;  %9597 = vmatprep.subr.bf16.mxu0 %v13496_v35 }
 0xf8f   :  { %v4268_v30 = vadd.f32 %v9108_v12, %v4227_v37  ;;  %v4230_v13 = vadd.f32 %v9089_v46, %v4189_v16 }
 0xf90   :  { %9606 = vmatpush3.bf16.msra.mxu1 %v9987_v53 }
 0xf91   :  { %v4271_v39 = vadd.f32 %v9111_v51, %v4230_v13  ;;  %9598 = vmatpush3.bf16.msra.mxu0 %v9986_v52  ;;  %9619 = vmatprep.subr.bf16.mxu1 %v13496_v35  ;;  %v8741_v51 = vld [vmem:[%s13501_s16] ss:$0 sm:$0xff] }
 0xf92   :  { %9611 = vmatprep.subr.bf16.mxu0 %v13496_v35 }
 0xfa9   :  { %v9128_v40 = vpop.f32.mrb[72].mxu0 }
 0xfaa   :  { %v9150_v60 = vpop.f32.mrb[72].mxu1  ;;  %v9129_v62 = vpop.f32.mrb[73].mxu0 }
 0xfab   :  { %v9130_v27 = vadd.f32 %v9129_v62, %v9128_v40  ;;  %v9151_v47 = vpop.f32.mrb[73].mxu1  ;;  %v9131_v22 = vpop.f32.mrb[74].mxu0 }
 0xfac   :  { %v9152_v4 = vadd.f32 %v9151_v47, %v9150_v60  ;;  %v9153_v31 = vpop.f32.mrb[74].mxu1  ;;  %v9132_v29 = vpop.f32.mrb[75].mxu0  ;;  %v8742_v60 = vld [vmem:[#allocation2] ss:$0 sm:$0xff] }
 0xfad   :  { %v4309_v21 = vadd.f32 %v9130_v27, %v4268_v30  ;;  %v9133_v58 = vadd.f32 %v9132_v29, %v9131_v22  ;;  %v9154_v6 = vpop.f32.mrb[75].mxu1  ;;  %v9988_v22 = vld [vmem:[%s13502_s20] sm:$0xff]  }
 0xfae   :  { %v9155_v19 = vadd.f32 %v9154_v6, %v9153_v31  ;;  %v9989_v31 = vld [vmem:[%s13502_s20 + $0x8] sm:$0xff]   ;;  %v8743_v29 = vld [vmem:[#allocation4] ss:$0 sm:$0xff] }
 0xfaf   :  { %v4350_v15 = vadd.f32 %v9152_v4, %v4309_v21  ;;  %v4312_v44 = vadd.f32 %v9133_v58, %v4271_v39  ;;  %v8747_v58 = vld [vmem:[#allocation6] ss:$0 sm:$0xff] }
 0xfb1   :  { %v4353_v20 = vadd.f32 %v9155_v19, %v4312_v44 }
 0xfc9   :  { %v9172_v8 = vpop.f32.mrb[76].mxu0 }
 0xfca   :  { %v9194_v5 = vpop.f32.mrb[76].mxu1  ;;  %v9173_v10 = vpop.f32.mrb[77].mxu0 }
 0xfcb   :  { %v9174_v9 = vadd.f32 %v9173_v10, %v9172_v8  ;;  %v9195_v23 = vpop.f32.mrb[77].mxu1  ;;  %v9175_v55 = vpop.f32.mrb[78].mxu0 }
 0xfcc   :  { %v9196_v57 = vadd.f32 %v9195_v23, %v9194_v5  ;;  %v9197_v24 = vpop.f32.mrb[78].mxu1  ;;  %v9176_v59 = vpop.f32.mrb[79].mxu0 }
 0xfcd   :  { %v4391_v25 = vadd.f32 %v9174_v9, %v4350_v15  ;;  %v9177_v41 = vadd.f32 %v9176_v59, %v9175_v55  ;;  %v9198_v61 = vpop.f32.mrb[79].mxu1  ;;  %v8751_v59 = vld [vmem:[#allocation7] ss:$0 sm:$0xff] }
 0xfce   :  { %v9199_v28 = vadd.f32 %v9198_v61, %v9197_v24 }
 0xfcf   :  { %v4432_v56 = vadd.f32 %v9196_v57, %v4391_v25  ;;  %v4394_v43 = vadd.f32 %v9177_v41, %v4353_v20 }
 0xfd1   :  { %v12357_v50 = vadd.f32 %v4432_v56, %v13497_v49  ;;  %v4435_v2 = vadd.f32 %v9199_v28, %v4394_v43 }
 0xfd3   :  { %v12360_v26 = vadd.f32 %v4435_v2, %v13498_v1  ;;  %v4777_v11 = vsel %vm774_vm0, %v12357_v50, 0.0  ;;  %v13503_v1 = vld [vmem:[#allocation76_spill] sm:$0xff] }
 0xfd4   :  { %4778 = vadd.xlane.f32.xlu0 %v4777_v11 }
 0xfd5   :  { %v4780_v18 = vsel %vm774_vm0, %v12360_v26, 0.0 }
 0xfd6   :  { %4781 = vadd.xlane.f32.xlu1 %v4780_v18  ;;  %v13504_v18 = vld [vmem:[#allocation77_spill] sm:$0xff] }
0x1061   :  { %v4779_v17 = vpop.xlane.xlu0 %4778 }
0x1062   :  { %v4783_v3 = vmul.f32 0.03125, %v4779_v17 }
0x1063   :  { %v4782_v48 = vpop.xlane.xlu1 %4781 }
0x1064   :  { %v4785_v45 = vsub.f32 %v12357_v50, %v4783_v3  ;;  %v4784_v7 = vmul.f32 0.03125, %v4782_v48  ;;  %v13505_v3 = vld [vmem:[#allocation78_spill] sm:$0xff] }
0x1066   :  { %v4786_v0 = vsub.f32 %v12360_v26, %v4784_v7  ;;  %v4787_v14 = vmul.f32 %v4785_v45, %v4785_v45 }
0x1068   :  { %v4789_v54 = vsel %vm774_vm0, %v4787_v14, 0.0  ;;  %v4788_v16 = vmul.f32 %v4786_v0, %v4786_v0 }
0x1069   :  { %4790 = vadd.xlane.f32.xlu0 %v4789_v54 }
0x106a   :  { %v4792_v34 = vsel %vm774_vm0, %v4788_v16, 0.0 }
0x106b   :  { %4793 = vadd.xlane.f32.xlu1 %v4792_v34 }
0x10f6   :  { %v4791_v12 = vpop.xlane.xlu0 %4790 }
0x10f7   :  { %v4795_v63 = vmul.f32 0.03125, %v4791_v12 }
0x10f8   :  { %v4794_v42 = vpop.xlane.xlu1 %4793 }
0x10f9   :  { %v4797_v36 = vadd.f32 1e-05, %v4795_v63  ;;  %v4796_v33 = vmul.f32 0.03125, %v4794_v42 }
0x10fb   :  { %10334 = vrsqrt.f32 %v4797_v36  ;;  %v4798_v37 = vadd.f32 1e-05, %v4796_v33 }
0x10fd   :  { %10336 = vrsqrt.f32 %v4798_v37 }
0x1105   :  { %v10335_v46 = vpop.eup %10334 }
0x1106   :  { %v4801_v30 = vmul.f32 %v10335_v46, %v4785_v45  ;;  %v13506_v45 = vld [vmem:[#allocation79_spill] sm:$0xff] }
0x1107   :  { %v10337_v13 = vpop.eup %10336 }
0x1108   :  { %v4809_v39 = vmul.f32 %v8741_v51, %v4801_v30  ;;  %v4802_v40 = vmul.f32 %v10337_v13, %v4786_v0 }
0x110a   :  { %v4810_v62 = vmul.f32 %v8741_v51, %v4802_v40  ;;  %v4817_v27 = vadd.f32 %v8742_v60, %v4809_v39 }
0x110c   :  { %v4818_v47 = vadd.f32 %v8742_v60, %v4810_v62 }
0x110e   :  { %v4819_v4 = vpack.c.bf16 %v4818_v47, %v4817_v27 }
0x1110   :  { %9600 = vmatmul.mubr.msk.bf16.vlgmr.msra.gmra.mrb[80].mxu0 %vm774_vm0, %v4819_v4  ;;  %9608 = vmatmul.mubr.msk.bf16.vlgmr.msra.gmra.mrb[80].mxu1 %vm774_vm0, %v4819_v4 }
0x1111   :  { %9612 = vmatpush3.bf16.msra.mxu0 %v9988_v22  ;;  %9615 = vmatprep.mubr.msk.bf16.mxu0 %vm10961_vm1, %v13496_v35 }
0x1112   :  { %9613 = vmatprep.subr.bf16.mxu0 %v13496_v35  ;;  %9621 = vmatprep.mubr.msk.bf16.mxu1 %vm10961_vm1, %v13496_v35 }
0x1115   :  { %9614 = vmatpush3.bf16.msra.mxu0 %v9989_v31 }
0x1116   :  { %9625 = vmatprep.subr.bf16.mxu0 %v13496_v35 }
0x1118   :  { %9616 = vmatmul.mubr.msk.bf16.vlgmr.msra.gmra.mrb[84].mxu0 %vm774_vm0, %v4819_v4 }
0x1119   :  { %9627 = vmatprep.mubr.msk.bf16.mxu0 %vm10961_vm1, %v13496_v35 }
0x11e3   :  { %v4875_v21 = vpop.f32.mrb[80].mxu0  ;;  %v4934_v6 = vpop.f32.mrb[80].mxu1 }
0x11e4   :  { %v9601_v19 = vpop.f32.mrb[81].mxu0  ;;  %v9609_v15 = vpop.f32.mrb[81].mxu1  ;;  %v4876_v8 = vadd.f32 %v8743_v29, %v4875_v21  ;;  %v4935_v5 = vadd.f32 %v8747_v58, %v4934_v6 }
0x11e5   :  { %v4878_v44 = vpop.f32.mrb[82].mxu0  ;;  %v4937_v20 = vpop.f32.mrb[82].mxu1 }
0x11e6   :  { %v4879_v10 = vadd.f32 %v8743_v29, %v4878_v44  ;;  %v4938_v9 = vadd.f32 %v8747_v58, %v4937_v20  ;;  %v9602_v23 = vpop.f32.mrb[83].mxu0  ;;  %v9610_v55 = vpop.f32.mrb[83].mxu1 }
0x11e8   :  { %v5000_v57 = vpack.c.bf16 %v4879_v10, %v4876_v8  ;;  %v5005_v24 = vpack.c.bf16 %v4938_v9, %v4935_v5 }
0x11ea   :  { %v5011_v41 = vsel %vm774_vm0, %v5005_v24, 0  ;;  %v5001_v11 = vmul.bf16 %v5000_v57, %v13503_v1  ;;  %v5002_v17 = vmul.bf16 %v5000_v57, %v13504_v18  ;;  %v5003_v48 = vmul.bf16 %v5000_v57, %v13505_v3 }
0x11eb   :  { %v4993_v25 = vpop.f32.mrb[84].mxu0  ;;  %9620 = vmatpush3.bf16.xpose.msra.mxu1 %v5011_v41  ;;  %9626 = vmatpush3.bf16.xpose.msra.mxu0 %v5011_v41  ;;  %v5004_v7 = vmul.bf16 %v5000_v57, %v13506_v45 }
0x11ec   :  { %v9617_v61 = vpop.f32.mrb[85].mxu0  ;;  %9631 = vmatprep.subr.bf16.mxu1 %v13496_v35  ;;  %9637 = vmatprep.subr.bf16.mxu0 %v13496_v35  ;;  %v4994_v56 = vadd.f32 %v8751_v59, %v4993_v25 }
0x11ed   :  { %v4996_v28 = vpop.f32.mrb[86].mxu0 }
0x11ee   :  { %v4997_v43 = vadd.f32 %v8751_v59, %v4996_v28  ;;  %v9618_v49 = vpop.f32.mrb[87].mxu0 }
0x11f0   :  { %v12395_v2 = vpack.c.bf16 %v4997_v43, %v4994_v56 }
0x11f2   :  { %9622 = vmatmul.mubr.msk.bf16.vlgmr.msra.gmra.mrb[84].mxu1 %vm774_vm0, %v5001_v11  ;;  %9628 = vmatmul.mubr.msk.bf16.vlgmr.msra.gmra.mrb[88].mxu0 %vm774_vm0, %v5002_v17 }
0x11f3   :  { %9632 = vmatpush3.bf16.xpose.msra.mxu1 %v5011_v41  ;;  %9638 = vmatpush3.bf16.xpose.msra.mxu0 %v5011_v41 }
0x11f4   :  { %9633 = vmatprep.mubr.msk.bf16.mxu1 %vm10961_vm1, %v13496_v35  ;;  %9639 = vmatprep.mubr.msk.bf16.mxu0 %vm10961_vm1, %v13496_v35 }
0x11f5   :  { %9643 = vmatprep.subr.bf16.mxu1 %v13496_v35  ;;  %9649 = vmatprep.subr.bf16.mxu0 %v13496_v35 }
0x11fa   :  { %9634 = vmatmul.mubr.msk.bf16.vlgmr.msra.gmra.mrb[88].mxu1 %vm774_vm0, %v5003_v48  ;;  %9640 = vmatmul.mubr.msk.bf16.vlgmr.msra.gmra.mrb[92].mxu0 %vm774_vm0, %v5004_v7 }
0x11fb   :  { %9644 = vmatpush3.bf16.msra.mxu1 %v12395_v2  ;;  %9650 = vmatpush3.bf16.msra.mxu0 %v12395_v2 }
0x11fc   :  { %9645 = vmatprep.mubr.msk.bf16.mxu1 %vm10961_vm1, %v13496_v35  ;;  %9655 = vmatprep.subr.bf16.mxu1 %v13496_v35 }
0x11fd   :  { %9651 = vmatprep.mubr.msk.bf16.mxu0 %vm10961_vm1, %v13496_v35  ;;  %9661 = vmatprep.subr.bf16.mxu0 %v13496_v35 }
0x12c5   :  { %v5047_v0 = vpop.f32.mrb[84].mxu1  ;;  %v5091_v14 = vpop.f32.mrb[88].mxu0 }
0x12c6   :  { %v5186_v54 = vmul.f32 0.35355338, %v5047_v0  ;;  %v9623_v16 = vpop.f32.mrb[85].mxu1  ;;  %v9629_v34 = vpop.f32.mrb[89].mxu0  ;;  %v5188_v32 = vmul.f32 0.35355338, %v5091_v14 }
0x12c7   :  { %v5050_v38 = vpop.f32.mrb[86].mxu1  ;;  %v5094_v52 = vpop.f32.mrb[90].mxu0 }
0x12c8   :  { %v5187_v53 = vmul.f32 0.35355338, %v5050_v38  ;;  %v5189_v12 = vmul.f32 0.35355338, %v5094_v52  ;;  %v9624_v63 = vpop.f32.mrb[87].mxu1  ;;  %v9630_v42 = vpop.f32.mrb[91].mxu0 }
0x12c9   :  { %v5194_v33 = vsel %vm426_vm2, %v5186_v54, -inf  ;;  %v5196_v13 = vsel %vm426_vm2, %v5188_v32, -inf }
0x12ca   :  { %v5202_v37 = vsel %vm1233_vm3, %v5194_v33, -inf  ;;  %v5195_v51 = vsel %vm427_vm4, %v5187_v53, -inf  ;;  %v5197_v39 = vsel %vm427_vm4, %v5189_v12, -inf  ;;  %v5208_v47 = vsel %vm1233_vm3, %v5196_v13, -inf }
0x12cb   :  { %5203 = vmax.xlane.f32.xlu0 %v5202_v37  ;;  %v5205_v30 = vsel %vm1233_vm3, %v5195_v51, -inf  ;;  %v5211_v21 = vsel %vm1233_vm3, %v5197_v39, -inf }
0x12cc   :  { %5206 = vmax.xlane.f32.xlu1 %v5205_v30 }
0x12cd   :  { %v5135_v40 = vpop.f32.mrb[88].mxu1  ;;  %v5179_v60 = vpop.f32.mrb[92].mxu0 }
0x12ce   :  { %v5190_v62 = vmul.f32 0.35355338, %v5135_v40  ;;  %v9635_v27 = vpop.f32.mrb[89].mxu1  ;;  %v9641_v22 = vpop.f32.mrb[93].mxu0  ;;  %v5192_v4 = vmul.f32 0.35355338, %v5179_v60 }
0x12cf   :  { %5209 = vmax.xlane.f32.xlu0 %v5208_v47  ;;  %v5138_v31 = vpop.f32.mrb[90].mxu1  ;;  %v5182_v29 = vpop.f32.mrb[94].mxu0 }
0x12d0   :  { %v5191_v58 = vmul.f32 0.35355338, %v5138_v31  ;;  %v5193_v6 = vmul.f32 0.35355338, %v5182_v29  ;;  %v9636_v19 = vpop.f32.mrb[91].mxu1  ;;  %5212 = vmax.xlane.f32.xlu1 %v5211_v21  ;;  %v9642_v15 = vpop.f32.mrb[95].mxu0 }
0x12d1   :  { %v5198_v44 = vsel %vm426_vm2, %v5190_v62, -inf  ;;  %v5200_v10 = vsel %vm426_vm2, %v5192_v4, -inf  ;;  %v9990_v21 = vld [vmem:[%s13509_s18] sm:$0xff]  }
0x12d2   :  { %v5214_v20 = vsel %vm1233_vm3, %v5198_v44, -inf  ;;  %v5199_v8 = vsel %vm427_vm4, %v5191_v58, -inf  ;;  %v5201_v9 = vsel %vm427_vm4, %v5193_v6, -inf  ;;  %v5220_v23 = vsel %vm1233_vm3, %v5200_v10, -inf  ;;  %v9991_v58 = vld [vmem:[%s13509_s18 + $0x8] sm:$0xff]  }
0x12d3   :  { %5215 = vmax.xlane.f32.xlu0 %v5214_v20  ;;  %v5217_v5 = vsel %vm1233_vm3, %v5199_v8, -inf  ;;  %v5223_v55 = vsel %vm1233_vm3, %v5201_v9, -inf }
0x12d4   :  { %5218 = vmax.xlane.f32.xlu1 %v5217_v5 }
0x12d7   :  { %5221 = vmax.xlane.f32.xlu0 %v5220_v23 }
0x12d8   :  { %5224 = vmax.xlane.f32.xlu1 %v5223_v55 }
0x1358   :  { %v5204_v57 = vpop.xlane.xlu0 %5203 }
0x1359   :  { %v5226_v24 = vsub.f32 %v5194_v33, %v5204_v57  ;;  %v5207_v59 = vpop.xlane.xlu1 %5206 }
0x135a   :  { %v5227_v25 = vsub.f32 %v5195_v51, %v5207_v59 }
0x135b   :  { %v5234_v41 = vmul.f32 1.442695, %v5226_v24 }
0x135c   :  { %v5236_v61 = vmul.f32 1.442695, %v5227_v25  ;;  %v5210_v28 = vpop.xlane.xlu0 %5209 }
0x135d   :  { %10338 = vpow2.f32 %v5234_v41  ;;  %v5228_v56 = vsub.f32 %v5196_v13, %v5210_v28  ;;  %v5213_v43 = vpop.xlane.xlu1 %5212 }
0x135e   :  { %10340 = vpow2.f32 %v5236_v61  ;;  %v5229_v49 = vsub.f32 %v5197_v39, %v5213_v43 }
0x135f   :  { %v5238_v11 = vmul.f32 1.442695, %v5228_v56  ;;  %v13510_v56 = vld [vmem:[#allocation82_spill] sm:$0xff] }
0x1360   :  { %v5240_v17 = vmul.f32 1.442695, %v5229_v49  ;;  %v5216_v48 = vpop.xlane.xlu0 %5215 }
0x1361   :  { %10342 = vpow2.f32 %v5238_v11  ;;  %v5230_v7 = vsub.f32 %v5198_v44, %v5216_v48  ;;  %v5219_v0 = vpop.xlane.xlu1 %5218 }
0x1362   :  { %10344 = vpow2.f32 %v5240_v17  ;;  %v5231_v14 = vsub.f32 %v5199_v8, %v5219_v0  ;;  %v13511_v0 = vld [vmem:[#allocation83_spill] sm:$0xff] }
0x1363   :  { %v5242_v54 = vmul.f32 1.442695, %v5230_v7 }
0x1364   :  { %v5244_v16 = vmul.f32 1.442695, %v5231_v14  ;;  %v5222_v34 = vpop.xlane.xlu0 %5221 }
0x1365   :  { %10346 = vpow2.f32 %v5242_v54  ;;  %v5232_v32 = vsub.f32 %v5200_v10, %v5222_v34  ;;  %v5225_v38 = vpop.xlane.xlu1 %5224 }
0x1366   :  { %10348 = vpow2.f32 %v5244_v16  ;;  %v5233_v52 = vsub.f32 %v5201_v9, %v5225_v38 }
0x1367   :  { %v10339_v53 = vpop.eup %10338  ;;  %v5246_v12 = vmul.f32 1.442695, %v5232_v32 }
0x1368   :  { %v10341_v63 = vpop.eup %10340  ;;  %v5248_v42 = vmul.f32 1.442695, %v5233_v52  ;;  %v5250_v36 = vsel %vm1233_vm3, %v10339_v53, 0.0 }
0x1369   :  { %10350 = vpow2.f32 %v5246_v12  ;;  %5251 = vadd.xlane.f32.xlu0 %v5250_v36  ;;  %v5253_v33 = vsel %vm1233_vm3, %v10341_v63, 0.0  ;;  %v5274_v37 = vpack.c.bf16 %v10341_v63, %v10339_v53 }
0x136a   :  { %10352 = vpow2.f32 %v5248_v42  ;;  %5254 = vadd.xlane.f32.xlu1 %v5253_v33 }
0x136b   :  { %v10343_v46 = vpop.eup %10342  ;;  %9646 = vmatmul.mubr.msk.bf16.vlgmr.msra.gmra.mrb[92].mxu1 %vm1233_vm3, %v5274_v37 }
0x136c   :  { %v10345_v51 = vpop.eup %10344  ;;  %9656 = vmatpush3.bf16.msra.mxu1 %v12395_v2  ;;  %v5256_v30 = vsel %vm1233_vm3, %v10343_v46, 0.0  ;;  %9657 = vmatprep.mubr.msk.bf16.mxu1 %vm10961_vm1, %v13496_v35 }
0x136d   :  { %5257 = vadd.xlane.f32.xlu0 %v5256_v30  ;;  %v5259_v13 = vsel %vm1233_vm3, %v10345_v51, 0.0  ;;  %v5275_v39 = vpack.c.bf16 %v10345_v51, %v10343_v46  ;;  %9667 = vmatprep.subr.bf16.mxu1 %v13496_v35  ;;  %v13512_v51 = vld [vmem:[#allocation84_spill] sm:$0xff] }
0x136e   :  { %5260 = vadd.xlane.f32.xlu1 %v5259_v13 }
0x136f   :  { %v10347_v40 = vpop.eup %10346  ;;  %9652 = vmatmul.mubr.msk.bf16.vlgmr.msra.gmra.mrb[96].mxu0 %vm1233_vm3, %v5275_v39 }
0x1370   :  { %v10349_v60 = vpop.eup %10348  ;;  %9662 = vmatpush3.bf16.msra.mxu0 %v12395_v2  ;;  %v5262_v62 = vsel %vm1233_vm3, %v10347_v40, 0.0  ;;  %9663 = vmatprep.mubr.msk.bf16.mxu0 %vm10961_vm1, %v13496_v35 }
0x1371   :  { %5263 = vadd.xlane.f32.xlu0 %v5262_v62  ;;  %v5265_v27 = vsel %vm1233_vm3, %v10349_v60, 0.0  ;;  %v5276_v47 = vpack.c.bf16 %v10349_v60, %v10347_v40  ;;  %9675 = vmatprep.subr.bf16.mxu0 %v13496_v35 }
0x1372   :  { %5266 = vadd.xlane.f32.xlu1 %v5265_v27 }
0x1373   :  { %v10351_v22 = vpop.eup %10350  ;;  %9658 = vmatmul.mubr.msk.bf16.vlgmr.msra.gmra.mrb[96].mxu1 %vm1233_vm3, %v5276_v47 }
0x1374   :  { %v10353_v4 = vpop.eup %10352  ;;  %v5268_v2 = vsel %vm1233_vm3, %v10351_v22, 0.0  ;;  %9671 = vmatprep.mubr.msk.bf16.mxu1 %vm10961_vm1, %v13496_v35  ;;  %9668 = vmatpush3.bf16.msra.mxu1 %v9990_v21 }
0x1375   :  { %5269 = vadd.xlane.f32.xlu0 %v5268_v2  ;;  %v5271_v31 = vsel %vm1233_vm3, %v10353_v4, 0.0  ;;  %v5277_v29 = vpack.c.bf16 %v10353_v4, %v10351_v22  ;;  %9669 = vmatprep.subr.bf16.mxu1 %v13496_v35 }
0x1376   :  { %5272 = vadd.xlane.f32.xlu1 %v5271_v31 }
0x1377   :  { %9664 = vmatmul.mubr.msk.bf16.vlgmr.msra.gmra.mrb[100].mxu0 %vm1233_vm3, %v5277_v29 }
0x1378   :  { %9679 = vmatprep.mubr.msk.bf16.mxu0 %vm10961_vm1, %v13496_v35  ;;  %9670 = vmatpush3.bf16.msra.mxu1 %v9991_v58  ;;  %v13513_v58 = vld [vmem:[#allocation85_spill] sm:$0xff] }
0x1379   :  { %9683 = vmatprep.subr.bf16.mxu1 %v13496_v35 }
0x13f6   :  { %v5252_v6 = vpop.xlane.xlu0 %5251 }
0x13f7   :  { %v5255_v19 = vpop.xlane.xlu1 %5254  ;;  %10354 = vrcp.f32 %v5252_v6 }
0x13f8   :  { %10356 = vrcp.f32 %v5255_v19 }
0x13fa   :  { %v5258_v15 = vpop.xlane.xlu0 %5257 }
0x13fb   :  { %v5261_v44 = vpop.xlane.xlu1 %5260  ;;  %10358 = vrcp.f32 %v5258_v15 }
0x13fc   :  { %10360 = vrcp.f32 %v5261_v44 }
0x13fe   :  { %v5264_v20 = vpop.xlane.xlu0 %5263 }
0x13ff   :  { %v5267_v8 = vpop.xlane.xlu1 %5266  ;;  %10362 = vrcp.f32 %v5264_v20 }
0x1400   :  { %10364 = vrcp.f32 %v5267_v8 }
0x1401   :  { %v10355_v10 = vpop.eup %10354 }
0x1402   :  { %v5270_v5 = vpop.xlane.xlu0 %5269  ;;  %v10357_v24 = vpop.eup %10356 }
0x1403   :  { %v5273_v23 = vpop.xlane.xlu1 %5272  ;;  %10366 = vrcp.f32 %v5270_v5 }
0x1404   :  { %10368 = vrcp.f32 %v5273_v23 }
0x1405   :  { %v10359_v61 = vpop.eup %10358 }
0x1406   :  { %v10361_v17 = vpop.eup %10360 }
0x1409   :  { %v10363_v34 = vpop.eup %10362 }
0x140a   :  { %v10365_v42 = vpop.eup %10364 }
0x140d   :  { %v10367_v40 = vpop.eup %10366 }
0x140e   :  { %v10369_v2 = vpop.eup %10368 }
0x143e   :  { %v5315_v9 = vpop.f32.mrb[92].mxu1 }
0x143f   :  { %v5462_v55 = vmul.f32 %v10355_v10, %v5315_v9  ;;  %v9647_v57 = vpop.f32.mrb[93].mxu1 }
0x1440   :  { %v5318_v59 = vpop.f32.mrb[94].mxu1 }
0x1441   :  { %v5463_v25 = vmul.f32 %v10357_v24, %v5318_v59  ;;  %v9648_v41 = vpop.f32.mrb[95].mxu1  ;;  %v5470_v43 = vmul.f32 %v5462_v55, %v13510_v56  ;;  %v8763_v55 = vld [vmem:[#allocation9] ss:$0 sm:$0xff] }
0x1442   :  { %v5359_v28 = vpop.f32.mrb[96].mxu0 }
0x1443   :  { %v5464_v49 = vmul.f32 %v10359_v61, %v5359_v28  ;;  %v9653_v11 = vpop.f32.mrb[97].mxu0  ;;  %v5471_v7 = vmul.f32 %v5463_v25, %v13510_v56  ;;  %v5478_v38 = vsel %vm774_vm0, %v5470_v43, 0.0 }
0x1444   :  { %v5362_v48 = vpop.f32.mrb[98].mxu0 }
0x1445   :  { %v5472_v14 = vmul.f32 %v5464_v49, %v13511_v0  ;;  %v5465_v54 = vmul.f32 %v10361_v17, %v5362_v48  ;;  %v9654_v16 = vpop.f32.mrb[99].mxu0  ;;  %v5485_v37 = vsel %vm774_vm0, %v5471_v7, 0.0 }
0x1446   :  { %v5403_v32 = vpop.f32.mrb[96].mxu1 }
0x1447   :  { %v5479_v52 = vsel %vm774_vm0, %v5472_v14, 0.0  ;;  %v5473_v53 = vmul.f32 %v5465_v54, %v13511_v0  ;;  %v5466_v12 = vmul.f32 %v10363_v34, %v5403_v32  ;;  %v9659_v63 = vpop.f32.mrb[97].mxu1 }
0x1448   :  { %v5480_v36 = vadd.f32 %v5479_v52, %v5478_v38  ;;  %v5406_v33 = vpop.f32.mrb[98].mxu1  ;;  %v9992_v38 = vld [vmem:[%s13514_s13] sm:$0xff]   ;;  %v9993_v52 = vld [vmem:[%s13514_s13 + $0x8] sm:$0xff]   ;;  %v13516_v63 = vld [vmem:[#allocation86_spill] sm:$0xff] }
0x1449   :  { %v5486_v46 = vsel %vm774_vm0, %v5473_v53, 0.0  ;;  %v5474_v30 = vmul.f32 %v5466_v12, %v13512_v51  ;;  %v5467_v13 = vmul.f32 %v10365_v42, %v5406_v33  ;;  %v9660_v39 = vpop.f32.mrb[99].mxu1  ;;  %v9994_v53 = vld [vmem:[%s13515_s22] sm:$0xff]   ;;  %v9995_v12 = vld [vmem:[%s13515_s22 + $0x8] sm:$0xff]  }
0x144a   :  { %v5487_v60 = vadd.f32 %v5486_v46, %v5485_v37  ;;  %v5447_v62 = vpop.f32.mrb[100].mxu0  ;;  %9676 = vmatpush3.bf16.msra.mxu0 %v9994_v53  ;;  %v8767_v39 = vld [vmem:[#allocation10] ss:$0 sm:$0xff] }
0x144b   :  { %v5481_v27 = vsel %vm774_vm0, %v5474_v30, 0.0  ;;  %v5475_v47 = vmul.f32 %v5467_v13, %v13512_v51  ;;  %v5468_v22 = vmul.f32 %v10367_v40, %v5447_v62  ;;  %v9665_v4 = vpop.f32.mrb[101].mxu0  ;;  %9677 = vmatprep.subr.bf16.mxu0 %v13496_v35 }
0x144c   :  { %v5482_v31 = vadd.f32 %v5481_v27, %v5480_v36  ;;  %v5450_v29 = vpop.f32.mrb[102].mxu0 }
0x144d   :  { %v5488_v21 = vsel %vm774_vm0, %v5475_v47, 0.0  ;;  %v5476_v6 = vmul.f32 %v5468_v22, %v13513_v58  ;;  %v5469_v19 = vmul.f32 %v10369_v2, %v5450_v29  ;;  %v9666_v15 = vpop.f32.mrb[103].mxu0  ;;  %v8768_v47 = vld [vmem:[#allocation12] ss:$0 sm:$0xff] }
0x144e   :  { %v5489_v44 = vadd.f32 %v5488_v21, %v5487_v60  ;;  %9678 = vmatpush3.bf16.msra.mxu0 %v9995_v12  ;;  %v9997_v21 = vld [vmem:[%s13517_s23 + $0x8] sm:$0xff]  }
0x144f   :  { %v5483_v20 = vsel %vm774_vm0, %v5476_v6, 0.0  ;;  %v5477_v8 = vmul.f32 %v5469_v19, %v13513_v58  ;;  %9691 = vmatprep.subr.bf16.mxu0 %v13496_v35  ;;  %v8773_v6 = vld [vmem:[#allocation15] ss:$0 sm:$0xff] }
0x1450   :  { %v5484_v5 = vadd.f32 %v5483_v20, %v5482_v31  ;;  %v9996_v31 = vld [vmem:[%s13517_s23] sm:$0xff]  }
0x1451   :  { %v5490_v10 = vsel %vm774_vm0, %v5477_v8, 0.0 }
0x1452   :  { %v5491_v9 = vadd.f32 %v5490_v10, %v5489_v44 }
0x1454   :  { %v5492_v23 = vpack.c.bf16 %v5491_v9, %v5484_v5 }
0x1456   :  { %9672 = vmatmul.mubr.msk.bf16.vlgmr.msra.gmra.mrb[100].mxu1 %vm774_vm0, %v5492_v23  ;;  %v8769_v23 = vld [vmem:[#allocation13] ss:$0 sm:$0xff] }
0x1457   :  { %9687 = vmatprep.mubr.msk.bf16.mxu1 %vm10961_vm1, %v13496_v35  ;;  %9684 = vmatpush3.bf16.msra.mxu1 %v9992_v38 }
0x1458   :  { %9685 = vmatprep.subr.bf16.mxu1 %v13496_v35 }
0x145b   :  { %9686 = vmatpush3.bf16.msra.mxu1 %v9993_v52 }
0x145c   :  { %9699 = vmatprep.subr.bf16.mxu1 %v13496_v35 }
0x145e   :  { %9688 = vmatmul.mubr.msk.bf16.vlgmr.msra.gmra.mrb[104].mxu1 %vm774_vm0, %v13516_v63 }
0x145f   :  { %9701 = vmatprep.mubr.msk.bf16.mxu1 %vm10961_vm1, %v13496_v35 }
0x1529   :  { %v5548_v57 = vpop.f32.mrb[100].mxu1 }
0x152a   :  { %v5549_v24 = vadd.f32 %v8763_v55, %v5548_v57  ;;  %v9673_v59 = vpop.f32.mrb[101].mxu1 }
0x152b   :  { %v5551_v25 = vpop.f32.mrb[102].mxu1 }
0x152c   :  { %v12491_v41 = vadd.f32 %v5549_v24, %v12357_v50  ;;  %v5552_v61 = vadd.f32 %v8763_v55, %v5551_v25  ;;  %v9674_v28 = vpop.f32.mrb[103].mxu1 }
0x152e   :  { %v12494_v43 = vadd.f32 %v5552_v61, %v12360_v26  ;;  %v5557_v49 = vsel %vm774_vm0, %v12491_v41, 0.0 }
0x152f   :  { %5558 = vadd.xlane.f32.xlu0 %v5557_v49  ;;  %v8777_v49 = vld [vmem:[#allocation16] ss:$0 sm:$0xff] }
0x1530   :  { %v5560_v11 = vsel %vm774_vm0, %v12494_v43, 0.0 }
0x1531   :  { %5561 = vadd.xlane.f32.xlu1 %v5560_v11  ;;  %v5714_v19 = vpop.f32.mrb[104].mxu1 }
0x1532   :  { %v5715_v15 = vadd.f32 %v8773_v6, %v5714_v19  ;;  %v9689_v44 = vpop.f32.mrb[105].mxu1 }
0x1533   :  { %v5717_v20 = vpop.f32.mrb[106].mxu1 }
0x1534   :  { %v5718_v8 = vadd.f32 %v8773_v6, %v5717_v20  ;;  %v9690_v5 = vpop.f32.mrb[107].mxu1 }
0x1536   :  { %v5785_v10 = vpack.c.bf16 %v5718_v8, %v5715_v15 }
0x1538   :  { %v5791_v9 = vsel %vm774_vm0, %v5785_v10, 0 }
0x1539   :  { %9700 = vmatpush3.bf16.xpose.msra.mxu1 %v5791_v9 }
0x153a   :  { %9711 = vmatprep.subr.bf16.mxu1 %v13496_v35 }
0x15bc   :  { %v5559_v17 = vpop.xlane.xlu0 %5558 }
0x15bd   :  { %v5563_v48 = vmul.f32 0.03125, %v5559_v17 }
0x15be   :  { %v5562_v50 = vpop.xlane.xlu1 %5561 }
0x15bf   :  { %v5565_v7 = vsub.f32 %v12491_v41, %v5563_v48  ;;  %v5564_v14 = vmul.f32 0.03125, %v5562_v50 }
0x15c1   :  { %v5566_v26 = vsub.f32 %v12494_v43, %v5564_v14  ;;  %v5567_v54 = vmul.f32 %v5565_v7, %v5565_v7 }
0x15c3   :  { %v5569_v16 = vsel %vm774_vm0, %v5567_v54, 0.0  ;;  %v5568_v34 = vmul.f32 %v5566_v26, %v5566_v26 }
0x15c4   :  { %5570 = vadd.xlane.f32.xlu0 %v5569_v16 }
0x15c5   :  { %v5572_v32 = vsel %vm774_vm0, %v5568_v34, 0.0 }
0x15c6   :  { %5573 = vadd.xlane.f32.xlu1 %v5572_v32 }
0x1651   :  { %v5571_v42 = vpop.xlane.xlu0 %5570 }
0x1652   :  { %v5575_v36 = vmul.f32 0.03125, %v5571_v42 }
0x1653   :  { %v5574_v33 = vpop.xlane.xlu1 %5573 }
0x1654   :  { %v5577_v37 = vadd.f32 1e-05, %v5575_v36  ;;  %v5576_v46 = vmul.f32 0.03125, %v5574_v33 }
0x1656   :  { %10370 = vrsqrt.f32 %v5577_v37  ;;  %v5578_v30 = vadd.f32 1e-05, %v5576_v46 }
0x1658   :  { %10372 = vrsqrt.f32 %v5578_v30 }
0x1660   :  { %v10371_v13 = vpop.eup %10370 }
0x1661   :  { %v5581_v40 = vmul.f32 %v10371_v13, %v5565_v7 }
0x1662   :  { %v10373_v60 = vpop.eup %10372 }
0x1663   :  { %v5589_v62 = vmul.f32 %v8767_v39, %v5581_v40  ;;  %v5582_v27 = vmul.f32 %v10373_v60, %v5566_v26 }
0x1665   :  { %v5590_v22 = vmul.f32 %v8767_v39, %v5582_v27  ;;  %v5597_v4 = vadd.f32 %v8768_v47, %v5589_v62 }
0x1667   :  { %v5598_v2 = vadd.f32 %v8768_v47, %v5590_v22 }
0x1669   :  { %v5599_v29 = vpack.c.bf16 %v5598_v2, %v5597_v4 }
0x166b   :  { %9680 = vmatmul.mubr.msk.bf16.vlgmr.msra.gmra.mrb[104].mxu0 %vm774_vm0, %v5599_v29 }
0x166c   :  { %9692 = vmatpush3.bf16.msra.mxu0 %v9996_v31  ;;  %9695 = vmatprep.mubr.msk.bf16.mxu0 %vm10961_vm1, %v13496_v35 }
0x166d   :  { %9693 = vmatprep.subr.bf16.mxu0 %v13496_v35 }
0x1670   :  { %9694 = vmatpush3.bf16.msra.mxu0 %v9997_v21 }
0x1671   :  { %9705 = vmatprep.subr.bf16.mxu0 %v13496_v35 }
0x1673   :  { %9696 = vmatmul.mubr.msk.bf16.vlgmr.msra.gmra.mrb[108].mxu0 %vm774_vm0, %v13516_v63 }
0x1674   :  { %9707 = vmatprep.mubr.msk.bf16.mxu0 %vm10961_vm1, %v13496_v35 }
0x1679   :  { %9706 = vmatpush3.bf16.xpose.msra.mxu0 %v5791_v9 }
0x167a   :  { %9717 = vmatprep.subr.bf16.mxu0 %v13496_v35 }
0x173e   :  { %v5655_v55 = vpop.f32.mrb[104].mxu0 }
0x173f   :  { %v9681_v57 = vpop.f32.mrb[105].mxu0  ;;  %v5656_v59 = vadd.f32 %v8769_v23, %v5655_v55 }
0x1740   :  { %v5658_v24 = vpop.f32.mrb[106].mxu0 }
0x1741   :  { %v5659_v25 = vadd.f32 %v8769_v23, %v5658_v24  ;;  %v9682_v61 = vpop.f32.mrb[107].mxu0 }
0x1743   :  { %v5780_v28 = vpack.c.bf16 %v5659_v25, %v5656_v59 }
0x1745   :  { %v5781_v11 = vmul.bf16 %v5780_v28, %v13503_v1  ;;  %v5782_v17 = vmul.bf16 %v5780_v28, %v13504_v18  ;;  %v5783_v54 = vmul.bf16 %v5780_v28, %v13505_v3  ;;  %v5784_v16 = vmul.bf16 %v5780_v28, %v13506_v45 }
0x1746   :  { %v5773_v48 = vpop.f32.mrb[108].mxu0 }
0x1747   :  { %9702 = vmatmul.mubr.msk.bf16.vlgmr.msra.gmra.mrb[108].mxu1 %vm774_vm0, %v5781_v11  ;;  %9708 = vmatmul.mubr.msk.bf16.vlgmr.msra.gmra.mrb[112].mxu0 %vm774_vm0, %v5782_v17  ;;  %v5774_v50 = vadd.f32 %v8777_v49, %v5773_v48  ;;  %v9697_v7 = vpop.f32.mrb[109].mxu0 }
0x1748   :  { %9712 = vmatpush3.bf16.xpose.msra.mxu1 %v5791_v9  ;;  %9718 = vmatpush3.bf16.xpose.msra.mxu0 %v5791_v9  ;;  %v5776_v14 = vpop.f32.mrb[110].mxu0 }
0x1749   :  { %9713 = vmatprep.mubr.msk.bf16.mxu1 %vm10961_vm1, %v13496_v35  ;;  %9719 = vmatprep.mubr.msk.bf16.mxu0 %vm10961_vm1, %v13496_v35  ;;  %v5777_v26 = vadd.f32 %v8777_v49, %v5776_v14  ;;  %v9698_v1 = vpop.f32.mrb[111].mxu0 }
0x174a   :  { %9723 = vmatprep.subr.bf16.mxu1 %v13496_v35  ;;  %9729 = vmatprep.subr.bf16.mxu0 %v13496_v35 }
0x174b   :  { %v12540_v18 = vpack.c.bf16 %v5777_v26, %v5774_v50 }
0x174f   :  { %9714 = vmatmul.mubr.msk.bf16.vlgmr.msra.gmra.mrb[112].mxu1 %vm774_vm0, %v5783_v54  ;;  %9720 = vmatmul.mubr.msk.bf16.vlgmr.msra.gmra.mrb[116].mxu0 %vm774_vm0, %v5784_v16 }
0x1750   :  { %9724 = vmatpush3.bf16.msra.mxu1 %v12540_v18  ;;  %9730 = vmatpush3.bf16.msra.mxu0 %v12540_v18 }
0x1751   :  { %9725 = vmatprep.mubr.msk.bf16.mxu1 %vm10961_vm1, %v13496_v35  ;;  %9735 = vmatprep.subr.bf16.mxu1 %v13496_v35 }
0x1752   :  { %9731 = vmatprep.mubr.msk.bf16.mxu0 %vm10961_vm1, %v13496_v35  ;;  %9741 = vmatprep.subr.bf16.mxu0 %v13496_v35 }
0x181a   :  { %v5827_v3 = vpop.f32.mrb[108].mxu1  ;;  %v5871_v45 = vpop.f32.mrb[112].mxu0 }
0x181b   :  { %v5966_v34 = vmul.f32 0.35355338, %v5827_v3  ;;  %v9703_v32 = vpop.f32.mrb[109].mxu1  ;;  %v9709_v38 = vpop.f32.mrb[113].mxu0  ;;  %v5968_v52 = vmul.f32 0.35355338, %v5871_v45 }
0x181c   :  { %v5830_v53 = vpop.f32.mrb[110].mxu1  ;;  %v5874_v12 = vpop.f32.mrb[114].mxu0 }
0x181d   :  { %v5967_v63 = vmul.f32 0.35355338, %v5830_v53  ;;  %v5969_v42 = vmul.f32 0.35355338, %v5874_v12  ;;  %v9704_v36 = vpop.f32.mrb[111].mxu1  ;;  %v9710_v33 = vpop.f32.mrb[115].mxu0 }
0x181e   :  { %v5974_v46 = vsel %vm430_vm5, %v5966_v34, -inf  ;;  %v5976_v60 = vsel %vm430_vm5, %v5968_v52, -inf }
0x181f   :  { %v5982_v30 = vsel %vm1233_vm3, %v5974_v46, -inf  ;;  %v5975_v39 = vsel %vm431_vm6, %v5967_v63, -inf  ;;  %v5977_v62 = vsel %vm431_vm6, %v5969_v42, -inf  ;;  %v5988_v2 = vsel %vm1233_vm3, %v5976_v60, -inf }
0x1820   :  { %5983 = vmax.xlane.f32.xlu0 %v5982_v30  ;;  %v5985_v40 = vsel %vm1233_vm3, %v5975_v39, -inf  ;;  %v5991_v19 = vsel %vm1233_vm3, %v5977_v62, -inf }
0x1821   :  { %5986 = vmax.xlane.f32.xlu1 %v5985_v40 }
0x1822   :  { %v5915_v27 = vpop.f32.mrb[112].mxu1  ;;  %v5959_v47 = vpop.f32.mrb[116].mxu0 }
0x1823   :  { %v5970_v22 = vmul.f32 0.35355338, %v5915_v27  ;;  %v9715_v4 = vpop.f32.mrb[113].mxu1  ;;  %v9721_v31 = vpop.f32.mrb[117].mxu0  ;;  %v5972_v29 = vmul.f32 0.35355338, %v5959_v47 }
0x1824   :  { %5989 = vmax.xlane.f32.xlu0 %v5988_v2  ;;  %v5918_v21 = vpop.f32.mrb[114].mxu1  ;;  %v5962_v6 = vpop.f32.mrb[118].mxu0 }
0x1825   :  { %v5971_v15 = vmul.f32 0.35355338, %v5918_v21  ;;  %v5973_v44 = vmul.f32 0.35355338, %v5962_v6  ;;  %v9716_v20 = vpop.f32.mrb[115].mxu1  ;;  %5992 = vmax.xlane.f32.xlu1 %v5991_v19  ;;  %v9722_v8 = vpop.f32.mrb[119].mxu0 }
0x1826   :  { %v5978_v5 = vsel %vm430_vm5, %v5970_v22, -inf  ;;  %v5980_v55 = vsel %vm430_vm5, %v5972_v29, -inf  ;;  %v13521_v19 = vmov 0  }
0x1827   :  { %v5994_v10 = vsel %vm1233_vm3, %v5978_v5, -inf  ;;  %v5979_v9 = vsel %vm431_vm6, %v5971_v15, -inf  ;;  %v5981_v57 = vsel %vm431_vm6, %v5973_v44, -inf  ;;  %v6000_v24 = vsel %vm1233_vm3, %v5980_v55, -inf  ;;  %v9998_v15 = vld [vmem:[%s13520_s26] sm:$0xff]   ;;  %v9999_v44 = vld [vmem:[%s13520_s26 + $0x8] sm:$0xff]  }
0x1828   :  { %5995 = vmax.xlane.f32.xlu0 %v5994_v10  ;;  %v5997_v23 = vsel %vm1233_vm3, %v5979_v9, -inf  ;;  %v6003_v59 = vsel %vm1233_vm3, %v5981_v57, -inf }
0x1829   :  { %5998 = vmax.xlane.f32.xlu1 %v5997_v23 }
0x182c   :  { %6001 = vmax.xlane.f32.xlu0 %v6000_v24 }
0x182d   :  { %6004 = vmax.xlane.f32.xlu1 %v6003_v59 }
0x18ad   :  { %v5984_v25 = vpop.xlane.xlu0 %5983 }
0x18ae   :  { %v6006_v61 = vsub.f32 %v5974_v46, %v5984_v25  ;;  %v5987_v28 = vpop.xlane.xlu1 %5986 }
0x18af   :  { %v6007_v49 = vsub.f32 %v5975_v39, %v5987_v28 }
0x18b0   :  { %v6014_v11 = vmul.f32 1.442695, %v6006_v61 }
0x18b1   :  { %v6016_v17 = vmul.f32 1.442695, %v6007_v49  ;;  %v5990_v48 = vpop.xlane.xlu0 %5989 }
0x18b2   :  { %10374 = vpow2.f32 %v6014_v11  ;;  %v6008_v50 = vsub.f32 %v5976_v60, %v5990_v48  ;;  %v5993_v7 = vpop.xlane.xlu1 %5992 }
0x18b3   :  { %10376 = vpow2.f32 %v6016_v17  ;;  %v6009_v14 = vsub.f32 %v5977_v62, %v5993_v7 }
0x18b4   :  { %v6018_v26 = vmul.f32 1.442695, %v6008_v50 }
0x18b5   :  { %v6020_v1 = vmul.f32 1.442695, %v6009_v14  ;;  %v5996_v54 = vpop.xlane.xlu0 %5995 }
0x18b6   :  { %10378 = vpow2.f32 %v6018_v26  ;;  %v6010_v16 = vsub.f32 %v5978_v5, %v5996_v54  ;;  %v5999_v3 = vpop.xlane.xlu1 %5998 }
0x18b7   :  { %10380 = vpow2.f32 %v6020_v1  ;;  %v6011_v45 = vsub.f32 %v5979_v9, %v5999_v3 }
0x18b8   :  { %v6022_v34 = vmul.f32 1.442695, %v6010_v16 }
0x18b9   :  { %v6024_v32 = vmul.f32 1.442695, %v6011_v45  ;;  %v6002_v38 = vpop.xlane.xlu0 %6001 }
0x18ba   :  { %10382 = vpow2.f32 %v6022_v34  ;;  %v6012_v52 = vsub.f32 %v5980_v55, %v6002_v38  ;;  %v6005_v53 = vpop.xlane.xlu1 %6004 }
0x18bb   :  { %10384 = vpow2.f32 %v6024_v32  ;;  %v6013_v12 = vsub.f32 %v5981_v57, %v6005_v53 }
0x18bc   :  { %v10375_v63 = vpop.eup %10374  ;;  %v6026_v42 = vmul.f32 1.442695, %v6012_v52 }
0x18bd   :  { %v10377_v36 = vpop.eup %10376  ;;  %v6028_v33 = vmul.f32 1.442695, %v6013_v12  ;;  %v6030_v37 = vsel %vm1233_vm3, %v10375_v63, 0.0 }
0x18be   :  { %10386 = vpow2.f32 %v6026_v42  ;;  %6031 = vadd.xlane.f32.xlu0 %v6030_v37  ;;  %v6033_v46 = vsel %vm1233_vm3, %v10377_v36, 0.0  ;;  %v6054_v30 = vpack.c.bf16 %v10377_v36, %v10375_v63 }
0x18bf   :  { %10388 = vpow2.f32 %v6028_v33  ;;  %6034 = vadd.xlane.f32.xlu1 %v6033_v46 }
0x18c0   :  { %v10379_v13 = vpop.eup %10378  ;;  %9726 = vmatmul.mubr.msk.bf16.vlgmr.msra.gmra.mrb[116].mxu1 %vm1233_vm3, %v6054_v30 }
0x18c1   :  { %v10381_v39 = vpop.eup %10380  ;;  %9736 = vmatpush3.bf16.msra.mxu1 %v12540_v18  ;;  %v6036_v40 = vsel %vm1233_vm3, %v10379_v13, 0.0  ;;  %9737 = vmatprep.mubr.msk.bf16.mxu1 %vm10961_vm1, %v13496_v35 }
0x18c2   :  { %6037 = vadd.xlane.f32.xlu0 %v6036_v40  ;;  %v6039_v60 = vsel %vm1233_vm3, %v10381_v39, 0.0  ;;  %v6055_v62 = vpack.c.bf16 %v10381_v39, %v10379_v13  ;;  %9747 = vmatprep.subr.bf16.mxu1 %v13496_v35 }
0x18c3   :  { %6040 = vadd.xlane.f32.xlu1 %v6039_v60 }
0x18c4   :  { %v10383_v27 = vpop.eup %10382  ;;  %9732 = vmatmul.mubr.msk.bf16.vlgmr.msra.gmra.mrb[120].mxu0 %vm1233_vm3, %v6055_v62 }
0x18c5   :  { %v10385_v47 = vpop.eup %10384  ;;  %9742 = vmatpush3.bf16.msra.mxu0 %v12540_v18  ;;  %v6042_v22 = vsel %vm1233_vm3, %v10383_v27, 0.0  ;;  %9743 = vmatprep.mubr.msk.bf16.mxu0 %vm10961_vm1, %v13496_v35 }
0x18c6   :  { %6043 = vadd.xlane.f32.xlu0 %v6042_v22  ;;  %v6045_v4 = vsel %vm1233_vm3, %v10385_v47, 0.0  ;;  %v6056_v2 = vpack.c.bf16 %v10385_v47, %v10383_v27 }
0x18c7   :  { %6046 = vadd.xlane.f32.xlu1 %v6045_v4 }
0x18c8   :  { %v10387_v31 = vpop.eup %10386  ;;  %9738 = vmatmul.mubr.msk.bf16.vlgmr.msra.gmra.mrb[120].mxu1 %vm1233_vm3, %v6056_v2 }
0x18c9   :  { %v10389_v29 = vpop.eup %10388  ;;  %v6048_v21 = vsel %vm1233_vm3, %v10387_v31, 0.0  ;;  %9751 = vmatprep.mubr.msk.bf16.mxu1 %vm10961_vm1, %v13496_v35  ;;  %9748 = vmatpush3.bf16.msra.mxu1 %v9998_v15 }
0x18ca   :  { %6049 = vadd.xlane.f32.xlu0 %v6048_v21  ;;  %v6051_v18 = vsel %vm1233_vm3, %v10389_v29, 0.0  ;;  %v6057_v6 = vpack.c.bf16 %v10389_v29, %v10387_v31  ;;  %9749 = vmatprep.subr.bf16.mxu1 %v13496_v35 }
0x18cb   :  { %6052 = vadd.xlane.f32.xlu1 %v6051_v18 }
0x18cc   :  { %9744 = vmatmul.mubr.msk.bf16.vlgmr.msra.gmra.mrb[124].mxu0 %vm1233_vm3, %v6057_v6 }
0x18cd   :  { %6657 = vmatprep.mubr.bf16.mxu0 %v13521_v19  ;;  %9750 = vmatpush3.bf16.msra.mxu1 %v9999_v44 }
0x194b   :  { %v6032_v20 = vpop.xlane.xlu0 %6031 }
0x194c   :  { %v6035_v8 = vpop.xlane.xlu1 %6034  ;;  %10390 = vrcp.f32 %v6032_v20 }
0x194d   :  { %10392 = vrcp.f32 %v6035_v8 }
0x194f   :  { %v6038_v5 = vpop.xlane.xlu0 %6037 }
0x1950   :  { %v6041_v10 = vpop.xlane.xlu1 %6040  ;;  %10394 = vrcp.f32 %v6038_v5 }
0x1951   :  { %10396 = vrcp.f32 %v6041_v10 }
0x1953   :  { %v6044_v9 = vpop.xlane.xlu0 %6043 }
0x1954   :  { %v6047_v23 = vpop.xlane.xlu1 %6046  ;;  %10398 = vrcp.f32 %v6044_v9  ;;  %v8789_v9 = vld [vmem:[#allocation18] ss:$0 sm:$0xff] }
0x1955   :  { %10400 = vrcp.f32 %v6047_v23 }
0x1956   :  { %v10391_v57 = vpop.eup %10390 }
0x1957   :  { %v6050_v55 = vpop.xlane.xlu0 %6049  ;;  %v10393_v28 = vpop.eup %10392 }
0x1958   :  { %v6053_v59 = vpop.xlane.xlu1 %6052  ;;  %10402 = vrcp.f32 %v6050_v55 }
0x1959   :  { %10404 = vrcp.f32 %v6053_v59 }
0x195a   :  { %v10395_v48 = vpop.eup %10394 }
0x195b   :  { %v10397_v1 = vpop.eup %10396 }
0x195e   :  { %v10399_v32 = vpop.eup %10398 }
0x195f   :  { %v10401_v36 = vpop.eup %10400 }
0x1962   :  { %v10403_v40 = vpop.eup %10402 }
0x1963   :  { %v10405_v4 = vpop.eup %10404 }
0x1993   :  { %v6095_v24 = vpop.f32.mrb[116].mxu1 }
0x1994   :  { %v6242_v25 = vmul.f32 %v10391_v57, %v6095_v24  ;;  %v9727_v61 = vpop.f32.mrb[117].mxu1 }
0x1995   :  { %v6098_v49 = vpop.f32.mrb[118].mxu1 }
0x1996   :  { %v6243_v11 = vmul.f32 %v10393_v28, %v6098_v49  ;;  %v9728_v17 = vpop.f32.mrb[119].mxu1  ;;  %v6250_v7 = vmul.f32 %v6242_v25, %v13510_v56 }
0x1997   :  { %v6139_v50 = vpop.f32.mrb[120].mxu0 }
0x1998   :  { %v6244_v14 = vmul.f32 %v10395_v48, %v6139_v50  ;;  %v9733_v26 = vpop.f32.mrb[121].mxu0  ;;  %v6251_v16 = vmul.f32 %v6243_v11, %v13510_v56  ;;  %v6258_v52 = vsel %vm774_vm0, %v6250_v7, 0.0 }
0x1999   :  { %v6142_v54 = vpop.f32.mrb[122].mxu0 }
0x199a   :  { %v6252_v3 = vmul.f32 %v6244_v14, %v13511_v0  ;;  %v6245_v45 = vmul.f32 %v10397_v1, %v6142_v54  ;;  %v9734_v34 = vpop.f32.mrb[123].mxu0  ;;  %v6265_v46 = vsel %vm774_vm0, %v6251_v16, 0.0  ;;  %v4486_v54 = vld [vmem:[%s13524_s6] sm:$0xff] }
0x199b   :  { %v6183_v38 = vpop.f32.mrb[120].mxu1  ;;  %v4494_v16 = vld [vmem:[%s13524_s6 + $0x40] sm:$0xff] }
0x199c   :  { %v6259_v53 = vsel %vm774_vm0, %v6252_v3, 0.0  ;;  %v6253_v12 = vmul.f32 %v6245_v45, %v13511_v0  ;;  %v6246_v63 = vmul.f32 %v10399_v32, %v6183_v38  ;;  %v9739_v42 = vpop.f32.mrb[121].mxu1  ;;  %v4487_v3 = vld [vmem:[%s13524_s6 + $0x8] sm:$0xff]  ;;  %v8795_v45 = vcombine.low %v4486_v54, %v4494_v16  ;;  %v4502_v38 = vld [vmem:[%s13524_s6 + $0x80] sm:$0xff] }
0x199d   :  { %v6260_v33 = vadd.f32 %v6259_v53, %v6258_v52  ;;  %v6186_v37 = vpop.f32.mrb[122].mxu1  ;;  %v8796_v34 = vcombine.high %v4486_v54, %v4494_v16  ;;  %v4495_v32 = vld [vmem:[%s13524_s6 + $0x48] sm:$0xff]  ;;  %v4510_v52 = vld [vmem:[%s13524_s6 + $0xc0] sm:$0xff] }
0x199e   :  { %v6266_v56 = vsel %vm774_vm0, %v6253_v12, 0.0  ;;  %v6254_v30 = vmul.f32 %v6246_v63, %v13512_v51  ;;  %v6247_v13 = vmul.f32 %v10401_v36, %v6186_v37  ;;  %v9740_v39 = vpop.f32.mrb[123].mxu1  ;;  %v8797_v53 = vcombine.low %v4487_v3, %v4495_v32  ;;  %v4503_v42 = vld [vmem:[%s13524_s6 + $0x88] sm:$0xff]  ;;  %v4488_v37 = vld [vmem:[%s13524_s6 + $0x10] sm:$0xff] }
0x199f   :  { %v6267_v60 = vadd.f32 %v6266_v56, %v6265_v46  ;;  %v6227_v62 = vpop.f32.mrb[124].mxu0  ;;  %v8798_v12 = vcombine.high %v4487_v3, %v4495_v32  ;;  %v8812_v63 = vcombine.high %v4502_v38, %v4510_v52  ;;  %v4511_v36 = vld [vmem:[%s13524_s6 + $0xc8] sm:$0xff]  ;;  %6625 = vmatprep.subr.bf16.mxu0 %v8796_v34  ;;  %v4496_v46 = vld [vmem:[%s13524_s6 + $0x50] sm:$0xff]  ;;  %v4489_v56 = vld [vmem:[%s13524_s6 + $0x18] sm:$0xff] }
0x19a0   :  { %v6261_v27 = vsel %vm774_vm0, %v6254_v30, 0.0  ;;  %v6255_v0 = vmul.f32 %v6247_v13, %v13512_v51  ;;  %v6248_v47 = vmul.f32 %v10403_v40, %v6227_v62  ;;  %v9745_v22 = vpop.f32.mrb[125].mxu0  ;;  %6626 = vmatpush1.bf16.msra.mxu0 %v8795_v45  ;;  %v8811_v30 = vcombine.low %v4502_v38, %v4510_v52  ;;  %v4497_v39 = vld [vmem:[%s13524_s6 + $0x58] sm:$0xff]  ;;  %v4492_v45 = vld [vmem:[%s13524_s6 + $0x30] sm:$0xff] }
0x19a1   :  { %v6262_v2 = vadd.f32 %v6261_v27, %v6260_v33  ;;  %v6230_v31 = vpop.f32.mrb[126].mxu0  ;;  %v8814_v33 = vcombine.high %v4503_v42, %v4511_v36  ;;  %6668 = vmatprep.subr.bf16.mxu1 %v8798_v12  ;;  %v8799_v13 = vcombine.low %v4488_v37, %v4496_v46  ;;  %6627 = vmatprep.subr.bf16.mxu0 %v8812_v63  ;;  %v4500_v34 = vld [vmem:[%s13524_s6 + $0x70] sm:$0xff]  ;;  %v4493_v32 = vld [vmem:[%s13524_s6 + $0x38] sm:$0xff] }
0x19a2   :  { %v6268_v29 = vsel %vm774_vm0, %v6255_v0, 0.0  ;;  %v6256_v21 = vmul.f32 %v6248_v47, %v13513_v58  ;;  %v6249_v18 = vmul.f32 %v10405_v4, %v6230_v31  ;;  %v9746_v6 = vpop.f32.mrb[127].mxu0  ;;  %v8813_v40 = vcombine.low %v4503_v42, %v4511_v36  ;;  %v4501_v38 = vld [vmem:[%s13524_s6 + $0x78] sm:$0xff]  ;;  %v4508_v42 = vld [vmem:[%s13524_s6 + $0xb0] sm:$0xff] }
0x19a3   :  { %v6269_v15 = vadd.f32 %v6268_v29, %v6267_v60  ;;  %v8800_v60 = vcombine.high %v4488_v37, %v4496_v46  ;;  %v8801_v62 = vcombine.low %v4489_v56, %v4497_v39  ;;  %v8802_v27 = vcombine.high %v4489_v56, %v4497_v39  ;;  %v4516_v36 = vld [vmem:[%s13524_s6 + $0xf0] sm:$0xff]  ;;  %v4517_v37 = vld [vmem:[%s13524_s6 + $0xf8] sm:$0xff] }
0x19a4   :  { %v6263_v44 = vsel %vm774_vm0, %v6256_v21, 0.0  ;;  %v6257_v20 = vmul.f32 %v6249_v18, %v13513_v58  ;;  %6628 = vmatpush1.bf16.msra.mxu0 %v8811_v30  ;;  %v8793_v21 = vld [vmem:[#allocation19] ss:$0 sm:$0xff]  ;;  %v8808_v12 = vcombine.high %v4492_v45, %v4500_v34  ;;  %v8810_v63 = vcombine.high %v4493_v32, %v4501_v38 }
0x19a5   :  { %v6264_v8 = vadd.f32 %v6263_v44, %v6262_v2  ;;  %6711 = vmatprep.subr.bf16.mxu0 %v8800_v60  ;;  %v8807_v46 = vcombine.low %v4492_v45, %v4500_v34  ;;  %v8809_v56 = vcombine.low %v4493_v32, %v4501_v38  ;;  %v8824_v30 = vcombine.high %v4508_v42, %v4516_v36  ;;  %v10000_v60 = vld [vmem:[%s13525_s12 + $0x40] sm:$0xff]  }
0x19a6   :  { %v6270_v5 = vsel %vm774_vm0, %v6257_v20, 0.0  ;;  %v8794_v20 = vld [vmem:[#allocation21] ss:$0 sm:$0xff]  ;;  %v8823_v39 = vcombine.low %v4508_v42, %v4516_v36  ;;  %v13532_v42 = vld [vmem:[#allocation95_spill] sm:$0xff] }
0x19a7   :  { %v6271_v51 = vadd.f32 %v6270_v5, %v6269_v15  ;;  %v4504_v5 = vld [vmem:[%s13524_s6 + $0x90] sm:$0xff] }
0x19a9   :  { %v6272_v10 = vpack.c.bf16 %v6271_v51, %v6264_v8  ;;  %v4512_v51 = vld [vmem:[%s13524_s6 + $0xd0] sm:$0xff] }
0x19ab   :  { %9752 = vmatmul.mubr.msk.bf16.vlgmr.msra.gmra.mrb[124].mxu1 %vm774_vm0, %v6272_v10  ;;  %v4505_v10 = vld [vmem:[%s13524_s6 + $0x98] sm:$0xff] }
0x19ac   :  { %6700 = vmatprep.mubr.bf16.mxu1 %v13521_v19  ;;  %6669 = vmatpush1.bf16.msra.mxu1 %v8797_v53 }
0x19ad   :  { %6670 = vmatprep.subr.bf16.mxu1 %v8814_v33  ;;  %v4509_v33 = vld [vmem:[%s13524_s6 + $0xb8] sm:$0xff] }
0x19b0   :  { %6671 = vmatpush1.bf16.msra.mxu1 %v8813_v40  ;;  %v8825_v40 = vcombine.low %v4509_v33, %v4517_v37 }
0x19b1   :  { %6754 = vmatprep.subr.bf16.mxu1 %v8802_v27  ;;  %v10002_v27 = vld [vmem:[%s13525_s12] sm:$0xff]  }
0x1a7e   :  { %v6328_v23 = vpop.f32.mrb[124].mxu1 }
0x1a7f   :  { %v6329_v55 = vadd.f32 %v8789_v9, %v6328_v23  ;;  %v9753_v57 = vpop.f32.mrb[125].mxu1 }
0x1a80   :  { %v6331_v24 = vpop.f32.mrb[126].mxu1 }
0x1a81   :  { %v12622_v59 = vadd.f32 %v6329_v55, %v12491_v41  ;;  %v6332_v25 = vadd.f32 %v8789_v9, %v6331_v24  ;;  %v9754_v61 = vpop.f32.mrb[127].mxu1  ;;  %v4513_v9 = vld [vmem:[%s13524_s6 + $0xd8] sm:$0xff]  ;;  %v8816_v24 = vcombine.high %v4504_v5, %v4512_v51 }
0x1a82   :  { %v4490_v61 = vld [vmem:[%s13524_s6 + $0x20] sm:$0xff] }
0x1a83   :  { %13522 = vst [vmem:[#allocation104_spill] sm:$0xff] %v12622_v59  ;;  %v12625_v58 = vadd.f32 %v6332_v25, %v12494_v43  ;;  %v6337_v28 = vsel %vm774_vm0, %v12622_v59, 0.0  ;;  %v8818_v25 = vcombine.high %v4505_v10, %v4513_v9 }
0x1a84   :  { %6338 = vadd.xlane.f32.xlu0 %v6337_v28  ;;  %v4498_v28 = vld [vmem:[%s13524_s6 + $0x60] sm:$0xff] }
0x1a85   :  { %13523 = vst [vmem:[#allocation98_spill] sm:$0xff] %v12625_v58  ;;  %v6340_v49 = vsel %vm774_vm0, %v12625_v58, 0.0 }
0x1a86   :  { %6341 = vadd.xlane.f32.xlu1 %v6340_v49  ;;  %v4491_v49 = vld [vmem:[%s13524_s6 + $0x28] sm:$0xff] }
0x1b11   :  { %v6339_v11 = vpop.xlane.xlu0 %6338 }
0x1b12   :  { %v6343_v17 = vmul.f32 0.03125, %v6339_v11  ;;  %v4499_v11 = vld [vmem:[%s13524_s6 + $0x68] sm:$0xff] }
0x1b13   :  { %v6342_v41 = vpop.xlane.xlu1 %6341  ;;  %v8805_v54 = vcombine.low %v4491_v49, %v4499_v11 }
0x1b14   :  { %v6345_v48 = vsub.f32 %v12622_v59, %v6343_v17  ;;  %v6344_v43 = vmul.f32 0.03125, %v6342_v41  ;;  %v8815_v17 = vcombine.low %v4504_v5, %v4512_v51  ;;  %v8817_v41 = vcombine.low %v4505_v10, %v4513_v9  ;;  %v10018_v5 = vld [vmem:[%s13525_s12 + $0x20] sm:$0xff]   ;;  %v10020_v10 = vld [vmem:[%s13525_s12 + $0x68] sm:$0xff]  }
0x1b15   :  { %v10019_v51 = vld [vmem:[%s13525_s12 + $0xa0] sm:$0xff]   ;;  %v10021_v9 = vld [vmem:[%s13525_s12 + $0xe8] sm:$0xff]  }
0x1b16   :  { %v6346_v50 = vsub.f32 %v12625_v58, %v6344_v43  ;;  %v6347_v7 = vmul.f32 %v6345_v48, %v6345_v48  ;;  %v8806_v43 = vcombine.high %v4491_v49, %v4499_v11  ;;  %v10029_v49 = vld [vmem:[%s13525_s12 + $0xf8] sm:$0xff]  }
0x1b17   :  { %v10030_v11 = vld [vmem:[%s13525_s12 + $0x38] sm:$0xff]  }
0x1b18   :  { %v6349_v14 = vsel %vm774_vm0, %v6347_v7, 0.0  ;;  %v6348_v26 = vmul.f32 %v6346_v50, %v6346_v50  ;;  %v4514_v7 = vld [vmem:[%s13524_s6 + $0xe0] sm:$0xff] }
0x1b19   :  { %6350 = vadd.xlane.f32.xlu0 %v6349_v14  ;;  %v4507_v14 = vld [vmem:[%s13524_s6 + $0xa8] sm:$0xff] }
0x1b1a   :  { %v6352_v1 = vsel %vm774_vm0, %v6348_v26, 0.0  ;;  %v4515_v26 = vld [vmem:[%s13524_s6 + $0xe8] sm:$0xff] }
0x1b1b   :  { %6353 = vadd.xlane.f32.xlu1 %v6352_v1  ;;  %v8803_v1 = vcombine.low %v4490_v61, %v4498_v28  ;;  %v8822_v3 = vcombine.high %v4507_v14, %v4515_v26  ;;  %v8821_v53 = vcombine.low %v4507_v14, %v4515_v26  ;;  %v13528_v14 = vld [vmem:[#allocation91_spill] sm:$0xff] }
0x1ba6   :  { %v6351_v0 = vpop.xlane.xlu0 %6350 }
0x1ba7   :  { %v6355_v47 = vmul.f32 0.03125, %v6351_v0  ;;  %v10003_v0 = vld [vmem:[%s13525_s12 + $0x80] sm:$0xff]  }
0x1ba8   :  { %v6354_v22 = vpop.xlane.xlu1 %6353 }
0x1ba9   :  { %v6357_v4 = vadd.f32 1e-05, %v6355_v47  ;;  %v6356_v2 = vmul.f32 0.03125, %v6354_v22  ;;  %v10005_v47 = vld [vmem:[%s13525_s12 + $0xc8] sm:$0xff]  }
0x1baa   :  { %v10006_v22 = vld [vmem:[%s13525_s12 + $0x8] sm:$0xff]  }
0x1bab   :  { %10406 = vrsqrt.f32 %v6357_v4  ;;  %v6358_v31 = vadd.f32 1e-05, %v6356_v2  ;;  %v10007_v4 = vld [vmem:[%s13525_s12 + $0x88] sm:$0xff]   ;;  %v10008_v2 = vld [vmem:[%s13525_s12 + $0x50] sm:$0xff]  }
0x1bad   :  { %10408 = vrsqrt.f32 %v6358_v31  ;;  %v10009_v31 = vld [vmem:[%s13525_s12 + $0xd0] sm:$0xff]  }
0x1bb5   :  { %v10407_v29 = vpop.eup %10406 }
0x1bb6   :  { %v6361_v18 = vmul.f32 %v10407_v29, %v6345_v48  ;;  %v8804_v48 = vcombine.high %v4490_v61, %v4498_v28  ;;  %v10010_v29 = vld [vmem:[%s13525_s12 + $0x10] sm:$0xff]   ;;  %v10028_v28 = vld [vmem:[%s13525_s12 + $0x78] sm:$0xff]  }
0x1bb7   :  { %v10409_v6 = vpop.eup %10408  ;;  %v10027_v61 = vld [vmem:[%s13525_s12 + $0xb0] sm:$0xff]  }
0x1bb8   :  { %v6369_v15 = vmul.f32 %v8793_v21, %v6361_v18  ;;  %v6362_v44 = vmul.f32 %v10409_v6, %v6346_v50  ;;  %v4506_v50 = vld [vmem:[%s13524_s6 + $0xa0] sm:$0xff]  ;;  %v10012_v18 = vld [vmem:[%s13525_s12 + $0x58] sm:$0xff]  }
0x1bb9   :  { %v8820_v16 = vcombine.high %v4506_v50, %v4514_v7  ;;  %v8819_v52 = vcombine.low %v4506_v50, %v4514_v7  ;;  %v10013_v6 = vld [vmem:[%s13525_s12 + $0xd8] sm:$0xff]  }
0x1bba   :  { %v6370_v8 = vmul.f32 %v8793_v21, %v6362_v44  ;;  %v6377_v23 = vadd.f32 %v8794_v20, %v6369_v15  ;;  %v10011_v21 = vld [vmem:[%s13525_s12 + $0x90] sm:$0xff]   ;;  %v10014_v15 = vld [vmem:[%s13525_s12 + $0x18] sm:$0xff]  }
0x1bbb   :  { %v10015_v44 = vld [vmem:[%s13525_s12 + $0x98] sm:$0xff]  }
0x1bbc   :  { %v6378_v55 = vadd.f32 %v8794_v20, %v6370_v8  ;;  %v10016_v20 = vld [vmem:[%s13525_s12 + $0x60] sm:$0xff]  }
0x1bbd   :  { %v10017_v8 = vld [vmem:[%s13525_s12 + $0xe0] sm:$0xff]  }
0x1bbe   :  { %v12651_v57 = vpack.c.bf16 %v6378_v55, %v6377_v23  ;;  %v10022_v23 = vld [vmem:[%s13525_s12 + $0x28] sm:$0xff]   ;;  %v13527_v50 = vld [vmem:[#allocation75_spill] sm:$0xff] }
0x1bbf   :  { %v10023_v55 = vld [vmem:[%s13525_s12 + $0xa8] sm:$0xff]  }
0x1bc0   :  { %8827 = vmatmul.mubr.msk.bf16.vlgmr.msra.gmra.mrb[128].mxu0 %vm774_vm0, %v12651_v57  ;;  %8828 = vmatmul.mubr.msk.bf16.vlgmr.msra.gmra.mrb[128].mxu1 %vm774_vm0, %v12651_v57 }
0x1bc1   :  { %6712 = vmatpush1.bf16.msra.mxu0 %v8799_v13  ;;  %6755 = vmatpush1.bf16.msra.mxu1 %v8801_v62  ;;  %v8826_v13 = vcombine.high %v4509_v33, %v4517_v37  ;;  %v10001_v62 = vld [vmem:[%s13525_s12 + $0xc0] sm:$0xff]  }
0x1bc2   :  { %6713 = vmatprep.subr.bf16.mxu0 %v8816_v24  ;;  %6756 = vmatprep.subr.bf16.mxu1 %v8818_v25  ;;  %v10025_v24 = vld [vmem:[%s13525_s12 + $0xf0] sm:$0xff]  }
0x1bc3   :  { %6743 = vmatprep.mubr.bf16.mxu0 %v13521_v19  ;;  %6786 = vmatprep.mubr.bf16.mxu1 %v13521_v19  ;;  %v10026_v25 = vld [vmem:[%s13525_s12 + $0x30] sm:$0xff]  }
0x1bc5   :  { %6714 = vmatpush1.bf16.msra.mxu0 %v8815_v17  ;;  %6757 = vmatpush1.bf16.msra.mxu1 %v8817_v41  ;;  %v10031_v17 = vld [vmem:[%s13525_s12 + $0xb8] sm:$0xff]   ;;  %v10032_v41 = vld [vmem:[%s13525_s12 + $0x140] sm:$0xff]  }
0x1bc6   :  { %6797 = vmatprep.subr.bf16.mxu0 %v8804_v48  ;;  %6840 = vmatprep.subr.bf16.mxu1 %v8806_v43  ;;  %v10033_v48 = vld [vmem:[%s13525_s12 + $0x1c0] sm:$0xff]  }
0x1bc7   :  { %v4518_v43 = vld [vmem:[%s13526_s28] sm:$0xff] }
0x1bc8   :  { %8829 = vmatmul.mubr.msk.bf16.vlgmr.msra.gmra.mrb[132].mxu0 %vm774_vm0, %v12651_v57  ;;  %8830 = vmatmul.mubr.msk.bf16.vlgmr.msra.gmra.mrb[132].mxu1 %vm774_vm0, %v12651_v57  ;;  %v6385_v7 = vrot.slane %v4518_v43, %v13527_v50  ;;  %v6393_v26 = vrot.slane %v4518_v43, %v13528_v14  ;;  %v6409_v36 = vrot.slane %v4518_v43, %v13532_v42 }
0x1bc9   :  { %6798 = vmatpush1.bf16.msra.mxu0 %v8803_v1  ;;  %6841 = vmatpush1.bf16.msra.mxu1 %v8805_v54  ;;  %v13529_v1 = vld [vmem:[#allocation92_spill] sm:$0xff] }
0x1bca   :  { %6799 = vmatprep.subr.bf16.mxu0 %v8820_v16  ;;  %6842 = vmatprep.subr.bf16.mxu1 %v8822_v3  ;;  %v6389_v54 = vrot.slane %v4518_v43, %v13529_v1  ;;  %v13530_v16 = vld [vmem:[#allocation93_spill] sm:$0xff] }
0x1bcb   :  { %6829 = vmatprep.mubr.bf16.mxu0 %v13521_v19  ;;  %6872 = vmatprep.mubr.bf16.mxu1 %v13521_v19  ;;  %v6397_v3 = vrot.slane %v4518_v43, %v13530_v16 }
0x1bcd   :  { %6800 = vmatpush1.bf16.msra.mxu0 %v8819_v52  ;;  %6843 = vmatpush1.bf16.msra.mxu1 %v8821_v53 }
0x1bce   :  { %6883 = vmatprep.subr.bf16.mxu0 %v8808_v12  ;;  %6926 = vmatprep.subr.bf16.mxu1 %v8810_v63  ;;  %v13531_v12 = vld [vmem:[#allocation94_spill] sm:$0xff] }
0x1bcf   :  { %v6401_v63 = vrot.slane %v4518_v43, %v13531_v12 }
0x1bd0   :  { %8831 = vmatmul.mubr.msk.bf16.vlgmr.msra.gmra.mrb[136].mxu0 %vm774_vm0, %v12651_v57  ;;  %8832 = vmatmul.mubr.msk.bf16.vlgmr.msra.gmra.mrb[136].mxu1 %vm774_vm0, %v12651_v57 }
0x1bd1   :  { %6884 = vmatpush1.bf16.msra.mxu0 %v8807_v46  ;;  %6927 = vmatpush1.bf16.msra.mxu1 %v8809_v56 }
0x1bd2   :  { %6885 = vmatprep.subr.bf16.mxu0 %v8824_v30  ;;  %6928 = vmatprep.subr.bf16.mxu1 %v8826_v13  ;;  %v13533_v30 = vld [vmem:[#allocation96_spill] sm:$0xff] }
0x1bd3   :  { %6915 = vmatprep.mubr.bf16.mxu0 %v13521_v19  ;;  %6958 = vmatprep.mubr.bf16.mxu1 %v13521_v19  ;;  %v10004_v19 = vld [vmem:[%s13525_s12 + $0x48] sm:$0xff]   ;;  %v6405_v13 = vrot.slane %v4518_v43, %v13533_v30 }
0x1bd5   :  { %6886 = vmatpush1.bf16.msra.mxu0 %v8823_v39  ;;  %6929 = vmatpush1.bf16.msra.mxu1 %v8825_v40  ;;  %v13534_v39 = vld [vmem:[#allocation97_spill] sm:$0xff] }
0x1bd6   :  { %9256 = vmatprep.subr.bf16.mxu0 %v10000_v60  ;;  %9278 = vmatprep.subr.bf16.mxu1 %v10001_v62  ;;  %v12742_v40 = vrot.slane %v4518_v43, %v13534_v39 }
0x1bd8   :  { %8833 = vmatmul.mubr.msk.bf16.vlgmr.msra.gmra.mrb[140].mxu0 %vm774_vm0, %v12651_v57  ;;  %8834 = vmatmul.mubr.msk.bf16.vlgmr.msra.gmra.mrb[140].mxu1 %vm774_vm0, %v12651_v57  ;;  %v10024_v57 = vld [vmem:[%s13525_s12 + $0x70] sm:$0xff]  }
0x1bd9   :  { %9257 = vmatpush3.bf16.msra.mxu0 %v10002_v27  ;;  %9279 = vmatpush3.bf16.msra.mxu1 %v10003_v0 }
0x1bda   :  { %9258 = vmatprep.subr.bf16.mxu0 %v10004_v19  ;;  %9280 = vmatprep.subr.bf16.mxu1 %v10005_v47 }
0x1bdd   :  { %9259 = vmatpush3.bf16.msra.mxu0 %v10006_v22  ;;  %9281 = vmatpush3.bf16.msra.mxu1 %v10007_v4 }
0x1bde   :  { %9260 = vmatprep.subr.bf16.mxu0 %v10008_v2  ;;  %9282 = vmatprep.subr.bf16.mxu1 %v10009_v31 }
0x1be1   :  { %9261 = vmatpush3.bf16.msra.mxu0 %v10010_v29  ;;  %9283 = vmatpush3.bf16.msra.mxu1 %v10011_v21 }
0x1be2   :  { %9262 = vmatprep.subr.bf16.mxu0 %v10012_v18  ;;  %9284 = vmatprep.subr.bf16.mxu1 %v10013_v6 }
0x1be5   :  { %9263 = vmatpush3.bf16.msra.mxu0 %v10014_v15  ;;  %9285 = vmatpush3.bf16.msra.mxu1 %v10015_v44 }
0x1be6   :  { %9264 = vmatprep.subr.bf16.mxu0 %v10016_v20  ;;  %9286 = vmatprep.subr.bf16.mxu1 %v10017_v8 }
0x1be9   :  { %9265 = vmatpush3.bf16.msra.mxu0 %v10018_v5  ;;  %9287 = vmatpush3.bf16.msra.mxu1 %v10019_v51 }
0x1bea   :  { %9266 = vmatprep.subr.bf16.mxu0 %v10020_v10  ;;  %9288 = vmatprep.subr.bf16.mxu1 %v10021_v9 }
0x1bed   :  { %9267 = vmatpush3.bf16.msra.mxu0 %v10022_v23  ;;  %9289 = vmatpush3.bf16.msra.mxu1 %v10023_v55 }
0x1bee   :  { %9268 = vmatprep.subr.bf16.mxu0 %v10024_v57  ;;  %9290 = vmatprep.subr.bf16.mxu1 %v10025_v24 }
0x1bf1   :  { %9269 = vmatpush3.bf16.msra.mxu0 %v10026_v25  ;;  %9291 = vmatpush3.bf16.msra.mxu1 %v10027_v61 }
0x1bf2   :  { %9270 = vmatprep.subr.bf16.mxu0 %v10028_v28  ;;  %9292 = vmatprep.subr.bf16.mxu1 %v10029_v49 }
0x1bf5   :  { %9271 = vmatpush3.bf16.msra.mxu0 %v10030_v11  ;;  %9293 = vmatpush3.bf16.msra.mxu1 %v10031_v17 }
0x1bf6   :  { %9300 = vmatprep.subr.bf16.mxu0 %v10032_v41  ;;  %9322 = vmatprep.subr.bf16.mxu1 %v10033_v48 }
0x1c93   :  { %v6659_v45 = vpop.f32.mrb[128].mxu0  ;;  %v6702_v34 = vpop.f32.mrb[128].mxu1 }
0x1c94   :  { %v12730_v32 = vadd.f32 %v6659_v45, %v6385_v7  ;;  %v12732_v38 = vadd.f32 %v6702_v34, %v6393_v26  ;;  %v6661_v52 = vpop.f32.mrb[129].mxu0  ;;  %v6704_v53 = vpop.f32.mrb[129].mxu1 }
0x1c95   :  { %v12736_v33 = vadd.f32 %v6661_v52, %v6389_v54  ;;  %v12738_v37 = vadd.f32 %v6704_v53, %v6397_v3  ;;  %v6663_v46 = vpop.f32.mrb[130].mxu0  ;;  %v6706_v56 = vpop.f32.mrb[130].mxu1 }
0x1c96   :  { %v6969_v60 = vmin.f32 %v12730_v32, 20.0  ;;  %v6971_v62 = vmin.f32 %v12732_v38, 20.0  ;;  %v12746_v27 = vadd.f32 %v6663_v46, %v6385_v7  ;;  %v12748_v0 = vadd.f32 %v6706_v56, %v6393_v26  ;;  %v6665_v19 = vpop.f32.mrb[131].mxu0  ;;  %v6708_v47 = vpop.f32.mrb[131].mxu1 }
0x1c97   :  { %v6970_v22 = vmin.f32 %v12736_v33, 20.0  ;;  %v6972_v4 = vmin.f32 %v12738_v37, 20.0  ;;  %v12752_v2 = vadd.f32 %v6665_v19, %v6389_v54  ;;  %v12754_v31 = vadd.f32 %v6708_v47, %v6397_v3 }
0x1c98   :  { %v7001_v29 = vmul.f32 1.442695, %v6969_v60  ;;  %v7005_v21 = vmul.f32 1.442695, %v6971_v62  ;;  %v6985_v18 = vmin.f32 %v12746_v27, 20.0  ;;  %v6987_v6 = vmin.f32 %v12748_v0, 20.0 }
0x1c99   :  { %13535 = vst [vmem:[#allocation106_spill] sm:$0xff] %v12754_v31  ;;  %v7003_v15 = vmul.f32 1.442695, %v6970_v22  ;;  %v7007_v44 = vmul.f32 1.442695, %v6972_v4  ;;  %v6986_v20 = vmin.f32 %v12752_v2, 20.0 }
0x1c9a   :  { %v6988_v8 = vmin.f32 %v12754_v31, 20.0  ;;  %10410 = vpow2.f32 %v7001_v29  ;;  %v7033_v5 = vmul.f32 1.442695, %v6985_v18  ;;  %v7037_v51 = vmul.f32 1.442695, %v6987_v6  ;;  %v12784_v22 = vld [vmem:[%s13526_s28 + $0x8] sm:$0xff] }
0x1c9b   :  { %10412 = vpow2.f32 %v7005_v21  ;;  %v6745_v10 = vpop.f32.mrb[132].mxu0  ;;  %v6788_v9 = vpop.f32.mrb[132].mxu1  ;;  %v7035_v23 = vmul.f32 1.442695, %v6986_v20 }
0x1c9c   :  { %10414 = vpow2.f32 %v7003_v15  ;;  %v12760_v55 = vadd.f32 %v6745_v10, %v6401_v63  ;;  %v12762_v57 = vadd.f32 %v6788_v9, %v6409_v36  ;;  %v6747_v24 = vpop.f32.mrb[133].mxu0  ;;  %v6790_v25 = vpop.f32.mrb[133].mxu1  ;;  %v7039_v61 = vmul.f32 1.442695, %v6988_v8 }
0x1c9d   :  { %10416 = vpow2.f32 %v7007_v44  ;;  %v12764_v28 = vadd.f32 %v6747_v24, %v6405_v13  ;;  %v12767_v49 = vadd.f32 %v6790_v25, %v12742_v40  ;;  %v6749_v11 = vpop.f32.mrb[134].mxu0  ;;  %v6792_v17 = vpop.f32.mrb[134].mxu1  ;;  %v12805_v24 = vrot.slane %v12784_v22, %v13528_v14 }
0x1c9e   :  { %10418 = vpow2.f32 %v7033_v5  ;;  %v6973_v41 = vmin.f32 %v12760_v55, 20.0  ;;  %v6975_v48 = vmin.f32 %v12762_v57, 20.0  ;;  %v12771_v43 = vadd.f32 %v6749_v11, %v6401_v63  ;;  %v6751_v7 = vpop.f32.mrb[135].mxu0  ;;  %v6794_v26 = vpop.f32.mrb[135].mxu1 }
0x1c9f   :  { %13536 = vst [vmem:[#allocation99_spill] sm:$0xff] %v12764_v28  ;;  %13537 = vst [vmem:[#allocation100_spill] sm:$0xff] %v12767_v49  ;;  %10420 = vpow2.f32 %v7037_v51  ;;  %v6974_v54 = vmin.f32 %v12764_v28, 20.0  ;;  %v6976_v3 = vmin.f32 %v12767_v49, 20.0  ;;  %v12775_v45 = vadd.f32 %v6792_v17, %v6409_v36 }
0x1ca0   :  { %10422 = vpow2.f32 %v7035_v23  ;;  %v7009_v34 = vmul.f32 1.442695, %v6973_v41  ;;  %v7013_v52 = vmul.f32 1.442695, %v6975_v48  ;;  %v6989_v53 = vmin.f32 %v12771_v43, 20.0 }
0x1ca1   :  { %10424 = vpow2.f32 %v7039_v61  ;;  %v7011_v46 = vmul.f32 1.442695, %v6974_v54  ;;  %v6991_v63 = vmin.f32 %v12775_v45, 20.0  ;;  %v7015_v56 = vmul.f32 1.442695, %v6976_v3 }
0x1ca2   :  { %10426 = vpow2.f32 %v7009_v34  ;;  %v12779_v60 = vadd.f32 %v6751_v7, %v6405_v13  ;;  %v7041_v47 = vmul.f32 1.442695, %v6989_v53  ;;  %v12801_v23 = vrot.slane %v12784_v22, %v13527_v50 }
0x1ca3   :  { %10428 = vpow2.f32 %v7013_v52  ;;  %v6831_v62 = vpop.f32.mrb[136].mxu0  ;;  %v12781_v19 = vpop.f32.mrb[136].mxu1  ;;  %v7045_v6 = vmul.f32 1.442695, %v6991_v63  ;;  %v12812_v41 = vadd.f32 %v6794_v26, %v12742_v40  ;;  %v12820_v53 = vrot.slane %v12784_v22, %v13529_v1 }
0x1ca4   :  { %13538 = vst [vmem:[#allocation101_spill] sm:$0xff] %v12779_v60  ;;  %v10411_v36 = vpop.eup %10410  ;;  %10430 = vpow2.f32 %v7011_v46  ;;  %v12786_v4 = vpop.f32.mrb[137].mxu0  ;;  %v6990_v15 = vmin.f32 %v12779_v60, 20.0  ;;  %v12824_v40 = vrot.slane %v12784_v22, %v13530_v16  ;;  %v12828_v26 = vrot.slane %v12784_v22, %v13531_v12 }
0x1ca5   :  { %v12788_v29 = vpop.f32.mrb[137].mxu1  ;;  %v10413_v21 = vpop.eup %10412  ;;  %v7065_v18 = vadd.f32 2.0, %v10411_v36  ;;  %10432 = vpow2.f32 %v7015_v56  ;;  %13539 = vst [vmem:[#allocation105_spill] sm:$0xff] %v12812_v41  ;;  %v6992_v16 = vmin.f32 %v12812_v41, 20.0 }
0x1ca6   :  { %v12791_v13 = vpop.f32.mrb[138].mxu0  ;;  %v12793_v44 = vpop.f32.mrb[138].mxu1  ;;  %v7067_v8 = vadd.f32 2.0, %v10413_v21  ;;  %10434 = vpow2.f32 %v7041_v47  ;;  %v7043_v50 = vmul.f32 1.442695, %v6990_v15 }
0x1ca7   :  { %v10415_v20 = vpop.eup %10414  ;;  %v12795_v5 = vpop.f32.mrb[139].mxu0  ;;  %v12797_v10 = vmul.f32 %v10411_v36, %v7065_v18  ;;  %10436 = vpow2.f32 %v7045_v6  ;;  %v12834_v36 = vrot.slane %v12784_v22, %v13532_v42  ;;  %v12846_v42 = vadd.f32 %v6831_v62, %v12801_v23 }
0x1ca8   :  { %v10417_v51 = vpop.eup %10416  ;;  %v7066_v9 = vadd.f32 2.0, %v10415_v20  ;;  %v12807_v25 = vpop.f32.mrb[139].mxu1  ;;  %v12809_v11 = vmul.f32 %v10413_v21, %v7067_v8 }
0x1ca9   :  { %v10419_v61 = vpop.eup %10418  ;;  %v7068_v17 = vadd.f32 2.0, %v10417_v51  ;;  %v7161_v7 = vadd.f32 2.0, %v12797_v10  ;;  %13540 = vst [vmem:[#allocation102_spill] sm:$0xff] %v12846_v42 }
0x1caa   :  { %v10421_v48 = vpop.eup %10420  ;;  %v7081_v54 = vadd.f32 2.0, %v10419_v61  ;;  %v7163_v14 = vadd.f32 2.0, %v12809_v11  ;;  %v12816_v34 = vmul.f32 %v10415_v20, %v7066_v9 }
0x1cab   :  { %v10423_v3 = vpop.eup %10422  ;;  %v7083_v52 = vadd.f32 2.0, %v10421_v48  ;;  %v12830_v56 = vpop.f32.mrb[140].mxu0  ;;  %10438 = vrcp.f32 %v7161_v7  ;;  %v12838_v21 = vmul.f32 %v10417_v51, %v7068_v17 }
0x1cac   :  { %v10425_v46 = vpop.eup %10424  ;;  %v7113_v63 = vmul.f32 %v10419_v61, %v7081_v54  ;;  %v12836_v47 = vpop.f32.mrb[140].mxu1  ;;  %v7082_v8 = vadd.f32 2.0, %v10423_v3  ;;  %10440 = vpow2.f32 %v7043_v50  ;;  %v7162_v17 = vadd.f32 2.0, %v12816_v34 }
0x1cad   :  { %v10427_v1 = vpop.eup %10426  ;;  %v7115_v18 = vmul.f32 %v10421_v48, %v7083_v52  ;;  %v12841_v6 = vpop.f32.mrb[141].mxu0  ;;  %10442 = vrcp.f32 %v7163_v14  ;;  %v7084_v7 = vadd.f32 2.0, %v10425_v46  ;;  %v7164_v35 = vadd.f32 2.0, %v12838_v21 }
0x1cae   :  { %v12843_v15 = vpop.f32.mrb[141].mxu1  ;;  %v10429_v12 = vpop.eup %10428  ;;  %v7177_v20 = vadd.f32 2.0, %v7113_v63  ;;  %v12857_v58 = vmul.f32 %v10423_v3, %v7082_v8  ;;  %v7069_v50 = vadd.f32 2.0, %v10427_v1  ;;  %v12864_v14 = vadd.f32 %v12781_v19, %v12805_v24 }
0x1caf   :  { %v12848_v9 = vpop.f32.mrb[142].mxu0  ;;  %v12850_v61 = vpop.f32.mrb[142].mxu1  ;;  %v7179_v48 = vadd.f32 2.0, %v7115_v18  ;;  %v7071_v62 = vadd.f32 2.0, %v10429_v12  ;;  %v12860_v41 = vmul.f32 %v10425_v46, %v7084_v7  ;;  %v7047_v3 = vmul.f32 1.442695, %v6992_v16 }
0x1cb0   :  { %v10431_v51 = vpop.eup %10430  ;;  %v12853_v54 = vpop.f32.mrb[143].mxu0  ;;  %10444 = vrcp.f32 %v7177_v20  ;;  %13544 = vst [vmem:[#allocation90_spill] sm:$0xff] %v12864_v14  ;;  %v7178_v60 = vadd.f32 2.0, %v12857_v58  ;;  %v7101_v49 = vmul.f32 %v10427_v1, %v7069_v50  ;;  %v12869_v8 = vadd.f32 %v12786_v4, %v12820_v53 }
0x1cb1   :  { %13541 = vst [vmem:[#allocation103_spill] sm:$0xff] %v12853_v54  ;;  %v12855_v52 = vpop.f32.mrb[143].mxu1  ;;  %v10433_v59 = vpop.eup %10432  ;;  %10446 = vrcp.f32 %v7179_v48  ;;  %13543 = vst [vmem:[#allocation89_spill] sm:$0xff] %v12860_v41  ;;  %v7103_v28 = vmul.f32 %v10429_v12, %v7071_v62  ;;  %v12873_v48 = vrot.slane %v12784_v22, %v13533_v30  ;;  %v12877_v46 = vrot.slane %v12784_v22, %v13534_v39 }
0x1cb2   :  { %13542 = vst [vmem:[#allocation107_spill] sm:$0xff] %v12855_v52  ;;  %v7070_v52 = vadd.f32 2.0, %v10431_v51  ;;  %v10435_v20 = vpop.eup %10434  ;;  %10448 = vrcp.f32 %v7162_v17  ;;  %v7180_v1 = vadd.f32 2.0, %v12860_v41  ;;  %v7165_v12 = vadd.f32 2.0, %v7101_v49 }
0x1cb3   :  { %v10437_v19 = vpop.eup %10436  ;;  %v7072_v7 = vadd.f32 2.0, %v10433_v59  ;;  %10450 = vrcp.f32 %v7164_v35  ;;  %v7167_v16 = vadd.f32 2.0, %v7103_v28  ;;  %v6977_v50 = vmin.f32 %v12846_v42, 20.0 }
0x1cb4   :  { %v6979_v4 = vmin.f32 %v12864_v14, 20.0  ;;  %v7129_v30 = vmul.f32 %v12797_v10, %v12730_v32  ;;  %10452 = vrcp.f32 %v7178_v60  ;;  %v12884_v62 = vmul.f32 %v10431_v51, %v7070_v52 }
0x1cb5   :  { %v7085_v39 = vadd.f32 2.0, %v10435_v20  ;;  %v10439_v22 = vpop.eup %10438  ;;  %v7131_v17 = vmul.f32 %v12809_v11, %v12732_v38  ;;  %v7145_v41 = vmul.f32 %v7113_v63, %v12746_v27  ;;  %10454 = vrcp.f32 %v7165_v12 }
0x1cb6   :  { %v7087_v35 = vadd.f32 2.0, %v10437_v19  ;;  %v10441_v31 = vpop.eup %10440  ;;  %v7147_v42 = vmul.f32 %v7115_v18, %v12748_v0  ;;  %10456 = vrcp.f32 %v7180_v1  ;;  %v12890_v14 = vmul.f32 %v10433_v59, %v7072_v7 }
0x1cb7   :  { %v7117_v54 = vmul.f32 %v10435_v20, %v7085_v39  ;;  %v10443_v32 = vpop.eup %10442  ;;  %v7133_v60 = vmul.f32 %v7101_v49, %v12760_v55  ;;  %v12894_v10 = vmul.f32 %v7103_v28, %v12762_v57  ;;  %10458 = vrcp.f32 %v7167_v16  ;;  %v13548_v28 = vld [vmem:[#allocation99_spill] sm:$0xff] }
0x1cb8   :  { %v7119_v51 = vmul.f32 %v10437_v19, %v7087_v35  ;;  %v12896_v11 = vmul.f32 %v10439_v22, %v7129_v30  ;;  %v7166_v27 = vadd.f32 2.0, %v12884_v62  ;;  %10460 = vpow2.f32 %v7047_v3 }
0x1cb9   :  { %v7181_v63 = vadd.f32 2.0, %v7117_v54  ;;  %v7086_v52 = vadd.f32 2.0, %v10441_v31  ;;  %v7017_v20 = vmul.f32 1.442695, %v6977_v50  ;;  %v12901_v1 = vmul.f32 %v10443_v32, %v7131_v17 }
0x1cba   :  { %v10445_v38 = vpop.eup %10444  ;;  %v7183_v59 = vadd.f32 2.0, %v7119_v51  ;;  %v7021_v57 = vmul.f32 1.442695, %v6979_v4  ;;  %v6978_v49 = vmin.f32 %v12869_v8, 20.0  ;;  %v12910_v3 = vadd.f32 %v12788_v29, %v12824_v40 }
0x1cbb   :  { %v10447_v0 = vpop.eup %10446  ;;  %v12899_v18 = vmul.f32 %v10445_v38, %v7145_v41  ;;  %10462 = vrcp.f32 %v7181_v63  ;;  %v12922_v12 = vadd.f32 %v12793_v44, %v12805_v24  ;;  %v12926_v16 = vmul.f32 %v10441_v31, %v7086_v52 }
0x1cbc   :  { %v12903_v55 = vmul.f32 %v10447_v0, %v7147_v42  ;;  %10464 = vrcp.f32 %v7183_v59  ;;  %v12912_v41 = vpop.eup %10448  ;;  %v12918_v42 = vadd.f32 %v12791_v13, %v12801_v23  ;;  %v7019_v29 = vmul.f32 1.442695, %v6978_v49 }
0x1cbd   :  { %10466 = vrcp.f32 %v7166_v27  ;;  %v12924_v7 = vpop.eup %10450  ;;  %v6980_v50 = vmin.f32 %v12910_v3, 20.0  ;;  %v7168_v30 = vadd.f32 2.0, %v12890_v14  ;;  %v6995_v23 = vmin.f32 %v12922_v12, 20.0 }
0x1cbe   :  { %10468 = vpow2.f32 %v7017_v20  ;;  %v12929_v4 = vpop.eup %10452  ;;  %v6993_v13 = vmin.f32 %v12918_v42, 20.0  ;;  %v7149_v44 = vmul.f32 %v7117_v54, %v12771_v43  ;;  %v12937_v31 = vadd.f32 %v12795_v5, %v12820_v53 }
0x1cbf   :  { %10470 = vpow2.f32 %v7021_v57  ;;  %v10455_v39 = vpop.eup %10454  ;;  %v7023_v24 = vmul.f32 1.442695, %v6980_v50  ;;  %v7151_v17 = vmul.f32 %v7119_v51, %v12775_v45  ;;  %v7053_v32 = vmul.f32 1.442695, %v6995_v23 }
0x1cc0   :  { %10472 = vpow2.f32 %v7019_v29  ;;  %v12939_v22 = vpop.eup %10456  ;;  %v7049_v35 = vmul.f32 1.442695, %v6993_v13  ;;  %v12944_v38 = vadd.f32 %v12807_v25, %v12824_v40  ;;  %v7182_v63 = vadd.f32 2.0, %v12926_v16 }
0x1cc1   :  { %v10459_v27 = vpop.eup %10458  ;;  %10474 = vpow2.f32 %v7023_v24  ;;  %v6994_v43 = vmin.f32 %v12937_v31, 20.0  ;;  %v12950_v5 = vadd.f32 %v12830_v56, %v12828_v26  ;;  %v12952_v54 = vmul.f32 %v10455_v39, %v7133_v60 }
0x1cc2   :  { %v10461_v53 = vpop.eup %10460  ;;  %10476 = vpow2.f32 %v7049_v35  ;;  %v6996_v45 = vmin.f32 %v12944_v38, 20.0  ;;  %v12957_v25 = vadd.f32 %v12836_v47, %v12834_v36  ;;  %v12963_v60 = vadd.f32 %v12841_v6, %v12873_v48 }
0x1cc3   :  { %v7088_v40 = vadd.f32 2.0, %v10461_v53  ;;  %10478 = vpow2.f32 %v7053_v32  ;;  %v7051_v51 = vmul.f32 1.442695, %v6994_v43  ;;  %v6981_v0 = vmin.f32 %v12950_v5, 20.0 }
0x1cc4   :  { %v7055_v52 = vmul.f32 1.442695, %v6996_v45  ;;  %v6983_v56 = vmin.f32 %v12957_v25, 20.0  ;;  %v12967_v20 = vadd.f32 %v12843_v15, %v12877_v46  ;;  %v12976_v13 = vmul.f32 %v10459_v27, %v12894_v10 }
0x1cc5   :  { %v10463_v59 = vpop.eup %10462  ;;  %v12971_v49 = vmul.f32 %v10461_v53, %v7088_v40  ;;  %10480 = vpow2.f32 %v7051_v51  ;;  %v7025_v29 = vmul.f32 1.442695, %v6981_v0  ;;  %v6982_v6 = vmin.f32 %v12963_v60, 20.0 }
0x1cc6   :  { %v10465_v57 = vpop.eup %10464  ;;  %v12969_v47 = vmul.f32 %v10463_v59, %v7149_v44  ;;  %10482 = vpow2.f32 %v7055_v52  ;;  %v6984_v43 = vmin.f32 %v12967_v20, 20.0  ;;  %v12991_v40 = vadd.f32 %v12850_v61, %v12834_v36 }
0x1cc7   :  { %v12973_v50 = vpop.eup %10466  ;;  %v12978_v23 = vmul.f32 %v10465_v57, %v7151_v17  ;;  %10484 = vrcp.f32 %v7168_v30  ;;  %v7184_v44 = vadd.f32 2.0, %v12971_v49  ;;  %v7029_v17 = vmul.f32 1.442695, %v6983_v56 }
0x1cc8   :  { %v10469_v39 = vpop.eup %10468  ;;  %10486 = vrcp.f32 %v7182_v63  ;;  %v7027_v45 = vmul.f32 1.442695, %v6982_v6  ;;  %v7031_v63 = vmul.f32 1.442695, %v6984_v43 }
0x1cc9   :  { %v10471_v24 = vpop.eup %10470  ;;  %v7073_v32 = vadd.f32 2.0, %v10469_v39  ;;  %10488 = vpow2.f32 %v7025_v29  ;;  %v13000_v29 = vadd.f32 %v12848_v9, %v12828_v26 }
0x1cca   :  { %v10473_v10 = vpop.eup %10472  ;;  %v7075_v27 = vadd.f32 2.0, %v10471_v24  ;;  %10490 = vrcp.f32 %v7184_v44 }
0x1ccb   :  { %v12987_v53 = vmul.f32 %v10469_v39, %v7073_v32  ;;  %v7074_v30 = vadd.f32 2.0, %v10473_v10  ;;  %v10475_v51 = vpop.eup %10474  ;;  %10492 = vpow2.f32 %v7029_v17  ;;  %v7130_v32 = vmul.f32 %v12816_v34, %v12736_v33 }
0x1ccc   :  { %v12993_v0 = vmul.f32 %v10471_v24, %v7075_v27  ;;  %v10477_v59 = vpop.eup %10476  ;;  %v7076_v56 = vadd.f32 2.0, %v10475_v51  ;;  %10494 = vpow2.f32 %v7027_v45  ;;  %v7132_v45 = vmul.f32 %v12838_v21, %v12738_v37 }
0x1ccd   :  { %v7169_v52 = vadd.f32 2.0, %v12987_v53  ;;  %v12996_v57 = vmul.f32 %v10473_v10, %v7074_v30  ;;  %v10479_v6 = vpop.eup %10478  ;;  %v7089_v36 = vadd.f32 2.0, %v10477_v59  ;;  %10496 = vpow2.f32 %v7031_v63 }
0x1cce   :  { %v7171_v39 = vadd.f32 2.0, %v12993_v0  ;;  %v7108_v44 = vmul.f32 %v10475_v51, %v7076_v56  ;;  %v7091_v27 = vadd.f32 2.0, %v10479_v6  ;;  %v6997_v30 = vmin.f32 %v13000_v29, 20.0  ;;  %v13545_v56 = vld [vmem:[#allocation103_spill] sm:$0xff] }
0x1ccf   :  { %v7170_v61 = vadd.f32 2.0, %v12996_v57  ;;  %v10481_v24 = vpop.eup %10480  ;;  %v7121_v10 = vmul.f32 %v10477_v59, %v7089_v36  ;;  %10498 = vrcp.f32 %v7169_v52  ;;  %v7146_v33 = vmul.f32 %v12857_v58, %v12752_v2  ;;  %v13547_v36 = vld [vmem:[#allocation89_spill] sm:$0xff] }
0x1cd0   :  { %v10483_v43 = vpop.eup %10482  ;;  %v7172_v26 = vadd.f32 2.0, %v7108_v44  ;;  %v7090_v9 = vadd.f32 2.0, %v10481_v24  ;;  %10500 = vrcp.f32 %v7171_v39  ;;  %v7123_v15 = vmul.f32 %v10479_v6, %v7091_v27  ;;  %v13546_v6 = vld [vmem:[#allocation106_spill] sm:$0xff] }
0x1cd1   :  { %v10485_v35 = vpop.eup %10484  ;;  %v7185_v17 = vadd.f32 2.0, %v7121_v10  ;;  %v7092_v19 = vadd.f32 2.0, %v10483_v43  ;;  %10502 = vrcp.f32 %v7170_v61  ;;  %v13015_v39 = vadd.f32 %v13545_v56, %v12873_v48  ;;  %v13549_v48 = vld [vmem:[#allocation100_spill] sm:$0xff] }
0x1cd2   :  { %v10487_v51 = vpop.eup %10486  ;;  %v7122_v34 = vmul.f32 %v10481_v24, %v7090_v9  ;;  %v7187_v59 = vadd.f32 2.0, %v7123_v15  ;;  %v7148_v27 = vmul.f32 %v13547_v36, %v13546_v6  ;;  %v7134_v37 = vmul.f32 %v12884_v62, %v13548_v28  ;;  %v13550_v28 = vld [vmem:[#allocation101_spill] sm:$0xff] }
0x1cd3   :  { %v13011_v63 = vpop.eup %10488  ;;  %10504 = vrcp.f32 %v7185_v17  ;;  %v7124_v52 = vmul.f32 %v10483_v43, %v7092_v19  ;;  %v7057_v61 = vmul.f32 1.442695, %v6997_v30  ;;  %v6999_v24 = vmin.f32 %v12991_v40, 20.0 }
0x1cd4   :  { %10506 = vrcp.f32 %v7172_v26  ;;  %v7186_v21 = vadd.f32 2.0, %v7122_v34  ;;  %v10491_v58 = vpop.eup %10490  ;;  %v7226_v19 = vmul.f32 %v12912_v41, %v7130_v32  ;;  %v7228_v43 = vmul.f32 %v12924_v7, %v7132_v45 }
0x1cd5   :  { %10508 = vrcp.f32 %v7187_v59  ;;  %v7188_v2 = vadd.f32 2.0, %v7124_v52  ;;  %v7136_v9 = vmul.f32 %v12890_v14, %v13549_v48  ;;  %v13026_v17 = vpop.eup %10492  ;;  %v7242_v62 = vmul.f32 %v12929_v4, %v7146_v33  ;;  %v13551_v14 = vld [vmem:[#allocation107_spill] sm:$0xff] }
0x1cd6   :  { %10510 = vrcp.f32 %v7186_v21  ;;  %v7150_v26 = vmul.f32 %v12926_v16, %v13550_v28  ;;  %v6998_v30 = vmin.f32 %v13015_v39, 20.0  ;;  %v13032_v59 = vpop.eup %10494  ;;  %v7244_v41 = vmul.f32 %v12939_v22, %v7148_v27  ;;  %v13552_v16 = vld [vmem:[#allocation105_spill] sm:$0xff]  ;;  %v13553_v22 = vld [vmem:[#allocation102_spill] sm:$0xff]  ;;  %v10034_v28 = vld [vmem:[%s13525_s12 + $0x100] sm:$0xff]  }
0x1cd7   :  { %10512 = vrcp.f32 %v7188_v2  ;;  %v13036_v7 = vmul.f32 %v12973_v50, %v7134_v37  ;;  %v13038_v32 = vmul.f32 %v10485_v35, %v7136_v9  ;;  %v13042_v45 = vadd.f32 %v13551_v14, %v12877_v46  ;;  %v13044_v4 = vpop.eup %10496  ;;  %v13554_v35 = vld [vmem:[#allocation90_spill] sm:$0xff] }
0x1cd8   :  { %v7246_v33 = vmul.f32 %v10487_v51, %v7150_v26  ;;  %v7152_v56 = vmul.f32 %v12971_v49, %v13552_v16  ;;  %10514 = vpow2.f32 %v7057_v61  ;;  %v7061_v6 = vmul.f32 1.442695, %v6999_v24  ;;  %v10040_v16 = vld [vmem:[%s13525_s12 + $0x150] sm:$0xff]  }
0x1cd9   :  { %v10499_v36 = vpop.eup %10498  ;;  %v7137_v50 = vmul.f32 %v12987_v53, %v13553_v22  ;;  %v7139_v27 = vmul.f32 %v12993_v0, %v13554_v35  ;;  %v7138_v46 = vmul.f32 %v12996_v57, %v12869_v8  ;;  %v7140_v37 = vmul.f32 %v7108_v44, %v12910_v3  ;;  %v10035_v8 = vld [vmem:[%s13525_s12 + $0x180] sm:$0xff]  }
0x1cda   :  { %v10501_v51 = vpop.eup %10500  ;;  %v7248_v21 = vmul.f32 %v10491_v58, %v7152_v56  ;;  %v7153_v49 = vmul.f32 %v7121_v10, %v12918_v42  ;;  %v7077_v2 = vadd.f32 2.0, %v13011_v63  ;;  %v7059_v61 = vmul.f32 1.442695, %v6998_v30  ;;  %v10036_v10 = vld [vmem:[%s13525_s12 + $0x148] sm:$0xff]   ;;  %v10041_v56 = vld [vmem:[%s13525_s12 + $0x1d0] sm:$0xff]  }
0x1cdb   :  { %v10503_v24 = vpop.eup %10502  ;;  %v7155_v53 = vmul.f32 %v7123_v15, %v12922_v12  ;;  %v7000_v48 = vmin.f32 %v13042_v45, 20.0  ;;  %v7258_v0 = vpack.c.bf16 %v7242_v62, %v7226_v19  ;;  %v7260_v9 = vpack.c.bf16 %v7244_v41, %v7228_v43  ;;  %v10037_v58 = vld [vmem:[%s13525_s12 + $0x1c8] sm:$0xff]  }
0x1cdc   :  { %v13061_v3 = vmul.f32 %v10499_v36, %v7137_v50  ;;  %v7154_v44 = vmul.f32 %v7122_v34, %v12937_v31  ;;  %v7156_v42 = vmul.f32 %v7124_v52, %v12944_v38  ;;  %10516 = vpow2.f32 %v7061_v6 }
0x1cdd   :  { %v10505_v57 = vpop.eup %10504  ;;  %10518 = vpow2.f32 %v7059_v61  ;;  %v7063_v12 = vmul.f32 1.442695, %v7000_v48  ;;  %8079 = vmatprep.mubr.bf16.mxu0 %v7258_v0  ;;  %8120 = vmatprep.mubr.bf16.mxu1 %v7260_v9  ;;  %v7262_v15 = vpack.c.bf16 %v7246_v33, %v13036_v7  ;;  %v13071_v43 = vmul.f32 %v13011_v63, %v7077_v2  ;;  %v10044_v61 = vld [vmem:[%s13525_s12 + $0x158] sm:$0xff]  }
0x1cde   :  { %v10507_v26 = vpop.eup %10506  ;;  %v13067_v30 = vmul.f32 %v10505_v57, %v7153_v49  ;;  %v7079_v31 = vadd.f32 2.0, %v13026_v17  ;;  %v7078_v38 = vadd.f32 2.0, %v13032_v59  ;;  %v13555_v34 = vpack.c.bf16 %v12899_v18, %v12896_v11  ;;  %v10038_v11 = vld [vmem:[%s13525_s12 + $0x108] sm:$0xff]   ;;  %v10043_v49 = vld [vmem:[%s13525_s12 + $0x190] sm:$0xff]   ;;  %v10047_v57 = vld [vmem:[%s13525_s12 + $0x198] sm:$0xff]  }
0x1cdf   :  { %v10509_v19 = vpop.eup %10508  ;;  %v13556_v52 = vpack.c.bf16 %v12903_v55, %v12901_v1  ;;  %v7264_v62 = vpack.c.bf16 %v7248_v21, %v13038_v32  ;;  %v13082_v7 = vmul.f32 %v10501_v51, %v7139_v27  ;;  %10520 = vpow2.f32 %v7063_v12  ;;  %v10039_v18 = vld [vmem:[%s13525_s12 + $0x188] sm:$0xff]   ;;  %v10042_v21 = vld [vmem:[%s13525_s12 + $0x110] sm:$0xff]  }
0x1ce0   :  { %8080 = vmatmul.mubr.bf16.vlgmr.msra.gmra.mrb[144].mxu0 %v13555_v34  ;;  %v10511_v41 = vpop.eup %10510  ;;  %v7265_v63 = vpack.c.bf16 %v13067_v30, %v13061_v3  ;;  %v13086_v14 = vmul.f32 %v10509_v19, %v7155_v53  ;;  %v13090_v1 = vmul.f32 %v10503_v24, %v7138_v46  ;;  %v7080_v32 = vadd.f32 2.0, %v13044_v4  ;;  %v10045_v24 = vld [vmem:[%s13525_s12 + $0x1d8] sm:$0xff]   ;;  %v10051_v34 = vld [vmem:[%s13525_s12 + $0x1a0] sm:$0xff]   ;;  %v10105_v3 = vld [vmem:[%s13525_s12 + $0x3d0] sm:$0xff]  }
0x1ce1   :  { %8121 = vmatmul.mubr.bf16.vlgmr.msra.gmra.mrb[144].mxu1 %v13556_v52  ;;  %9301 = vmatpush3.bf16.msra.mxu0 %v10034_v28  ;;  %v10513_v33 = vpop.eup %10512  ;;  %v13092_v55 = vmul.f32 %v10511_v41, %v7154_v44  ;;  %v13097_v6 = vmul.f32 %v10507_v26, %v7140_v37  ;;  %v13104_v35 = vmul.f32 %v13026_v17, %v7079_v31  ;;  %v7173_v46 = vadd.f32 2.0, %v13071_v43  ;;  %v10052_v41 = vld [vmem:[%s13525_s12 + $0x168] sm:$0xff]   ;;  %v10106_v30 = vld [vmem:[%s13525_s12 + $0x310] sm:$0xff]  }
0x1ce2   :  { %9323 = vmatpush3.bf16.msra.mxu1 %v10035_v8  ;;  %9302 = vmatprep.subr.bf16.mxu0 %v10036_v10  ;;  %v7267_v36 = vpack.c.bf16 %v13086_v14, %v13082_v7  ;;  %v13101_v22 = vmul.f32 %v10513_v33, %v7156_v42  ;;  %v10515_v50 = vpop.eup %10514  ;;  %v13110_v37 = vmul.f32 %v13032_v59, %v7078_v38  ;;  %v10048_v10 = vld [vmem:[%s13525_s12 + $0x160] sm:$0xff]   ;;  %v10054_v33 = vld [vmem:[%s13525_s12 + $0x128] sm:$0xff]   ;;  %v10107_v7 = vld [vmem:[%s13525_s12 + $0x390] sm:$0xff]  }
0x1ce3   :  { %9324 = vmatprep.subr.bf16.mxu1 %v10037_v58  ;;  %8161 = vmatprep.mubr.bf16.mxu0 %v7262_v15  ;;  %v7266_v27 = vpack.c.bf16 %v13092_v55, %v13090_v1  ;;  %v7093_v51 = vadd.f32 2.0, %v10515_v50  ;;  %v13117_v17 = vmul.f32 %v13044_v4, %v7080_v32  ;;  %v7175_v48 = vadd.f32 2.0, %v13104_v35  ;;  %v10046_v4 = vld [vmem:[%s13525_s12 + $0x118] sm:$0xff]   ;;  %v10049_v58 = vld [vmem:[%s13525_s12 + $0x1e0] sm:$0xff]   ;;  %v10055_v32 = vld [vmem:[%s13525_s12 + $0x1a8] sm:$0xff]  }
0x1ce4   :  { %8202 = vmatprep.mubr.bf16.mxu1 %v7264_v62  ;;  %v7268_v2 = vpack.c.bf16 %v13101_v22, %v13097_v6  ;;  %10522 = vrcp.f32 %v7173_v46  ;;  %v7174_v9 = vadd.f32 2.0, %v13110_v37  ;;  %v10050_v38 = vld [vmem:[%s13525_s12 + $0x120] sm:$0xff]   ;;  %v7141_v46 = vmul.f32 %v13071_v43, %v12950_v5  ;;  %v10075_v1 = vld [vmem:[%s13525_s12 + $0x290] sm:$0xff]   ;;  %v10076_v55 = vld [vmem:[%s13525_s12 + $0x258] sm:$0xff]  }
0x1ce5   :  { %9303 = vmatpush3.bf16.msra.mxu0 %v10038_v11  ;;  %v7125_v53 = vmul.f32 %v10515_v50, %v7093_v51  ;;  %v7176_v44 = vadd.f32 2.0, %v13117_v17  ;;  %v10053_v11 = vld [vmem:[%s13525_s12 + $0x1e8] sm:$0xff]   ;;  %v10077_v6 = vld [vmem:[%s13525_s12 + $0x2d8] sm:$0xff]  }
0x1ce6   :  { %9325 = vmatpush3.bf16.msra.mxu1 %v10039_v18  ;;  %9304 = vmatprep.subr.bf16.mxu0 %v10040_v16  ;;  %v10517_v59 = vpop.eup %10516  ;;  %v10056_v16 = vld [vmem:[%s13525_s12 + $0x170] sm:$0xff]   ;;  %v10078_v22 = vld [vmem:[%s13525_s12 + $0x218] sm:$0xff]  }
0x1ce7   :  { %9326 = vmatprep.subr.bf16.mxu1 %v10041_v56  ;;  %v10519_v0 = vpop.eup %10518  ;;  %v7189_v28 = vadd.f32 2.0, %v7125_v53  ;;  %v7095_v8 = vadd.f32 2.0, %v10517_v59  ;;  %v10057_v56 = vld [vmem:[%s13525_s12 + $0x1f0] sm:$0xff]   ;;  %v7157_v51 = vmul.f32 %v7125_v53, %v13000_v29  ;;  %v7143_v29 = vmul.f32 %v13104_v35, %v12957_v25  ;;  %v10064_v35 = vld [vmem:[%s13525_s12 + $0x240] sm:$0xff]   ;;  %v10109_v14 = vld [vmem:[%s13525_s12 + $0x3d8] sm:$0xff]  }
0x1ce8   :  { %v7094_v42 = vadd.f32 2.0, %v10519_v0 }
0x1ce9   :  { %9305 = vmatpush3.bf16.msra.mxu0 %v10042_v21  ;;  %v10521_v26 = vpop.eup %10520  ;;  %10524 = vrcp.f32 %v7189_v28  ;;  %v7127_v12 = vmul.f32 %v10517_v59, %v7095_v8 }
0x1cea   :  { %9327 = vmatpush3.bf16.msra.mxu1 %v10043_v49  ;;  %9306 = vmatprep.subr.bf16.mxu0 %v10044_v61  ;;  %10526 = vrcp.f32 %v7175_v48  ;;  %v7126_v15 = vmul.f32 %v10519_v0, %v7094_v42  ;;  %v7096_v19 = vadd.f32 2.0, %v10521_v26  ;;  %v10058_v49 = vld [vmem:[%s13525_s12 + $0x130] sm:$0xff]   ;;  %v10060_v0 = vld [vmem:[%s13525_s12 + $0x178] sm:$0xff]  }
0x1ceb   :  { %9328 = vmatprep.subr.bf16.mxu1 %v10045_v24  ;;  %10528 = vrcp.f32 %v7174_v9  ;;  %v7191_v31 = vadd.f32 2.0, %v7127_v12  ;;  %v10059_v61 = vld [vmem:[%s13525_s12 + $0x1b0] sm:$0xff]   ;;  %v10061_v9 = vld [vmem:[%s13525_s12 + $0x1f8] sm:$0xff]   ;;  %v7159_v53 = vmul.f32 %v7127_v12, %v12991_v40  ;;  %v10065_v40 = vld [vmem:[%s13525_s12 + $0x2c0] sm:$0xff]  }
0x1cec   :  { %10530 = vrcp.f32 %v7176_v44  ;;  %v7190_v52 = vadd.f32 2.0, %v7126_v15  ;;  %v7128_v62 = vmul.f32 %v10521_v26, %v7096_v19  ;;  %v10062_v44 = vld [vmem:[%s13525_s12 + $0x138] sm:$0xff]  }
0x1ced   :  { %9307 = vmatpush3.bf16.msra.mxu0 %v10046_v4  ;;  %10532 = vrcp.f32 %v7191_v31  ;;  %v7142_v4 = vmul.f32 %v13110_v37, %v12963_v60  ;;  %v10063_v42 = vld [vmem:[%s13525_s12 + $0x1b8] sm:$0xff]   ;;  %v7144_v60 = vmul.f32 %v13117_v17, %v12967_v20  ;;  %v10068_v17 = vld [vmem:[%s13525_s12 + $0x248] sm:$0xff]  }
0x1cee   :  { %9329 = vmatpush3.bf16.msra.mxu1 %v10047_v57  ;;  %9308 = vmatprep.subr.bf16.mxu0 %v10048_v10  ;;  %10534 = vrcp.f32 %v7190_v52  ;;  %v7192_v18 = vadd.f32 2.0, %v7128_v62  ;;  %v10523_v50 = vpop.eup %10522  ;;  %v7158_v57 = vmul.f32 %v7126_v15, %v13015_v39  ;;  %v7160_v37 = vmul.f32 %v7128_v62, %v13042_v45  ;;  %v10067_v45 = vld [vmem:[%s13525_s12 + $0x280] sm:$0xff]  }
0x1cef   :  { %9330 = vmatprep.subr.bf16.mxu1 %v10049_v58  ;;  %v13141_v59 = vmul.f32 %v10523_v50, %v7141_v46  ;;  %v13557_v62 = vpack.c.bf16 %v12969_v47, %v12952_v54  ;;  %v10071_v54 = vld [vmem:[%s13525_s12 + $0x288] sm:$0xff]   ;;  %v10072_v47 = vld [vmem:[%s13525_s12 + $0x250] sm:$0xff]  }
0x1cf0   :  { %10536 = vrcp.f32 %v7192_v18  ;;  %v10081_v18 = vld [vmem:[%s13525_s12 + $0x2e0] sm:$0xff]   ;;  %v10086_v50 = vld [vmem:[%s13525_s12 + $0x228] sm:$0xff]  }
0x1cf1   :  { %9309 = vmatpush3.bf16.msra.mxu0 %v10050_v38  ;;  %v10066_v38 = vld [vmem:[%s13525_s12 + $0x200] sm:$0xff]   ;;  %v10087_v46 = vld [vmem:[%s13525_s12 + $0x2a8] sm:$0xff]  }
0x1cf2   :  { %9331 = vmatpush3.bf16.msra.mxu1 %v10051_v34  ;;  %9310 = vmatprep.subr.bf16.mxu0 %v10052_v41  ;;  %v10069_v34 = vld [vmem:[%s13525_s12 + $0x2c8] sm:$0xff]   ;;  %v13558_v41 = vpack.c.bf16 %v12978_v23, %v12976_v13  ;;  %v10073_v13 = vld [vmem:[%s13525_s12 + $0x2d0] sm:$0xff]  }
0x1cf3   :  { %9332 = vmatprep.subr.bf16.mxu1 %v10053_v11  ;;  %v10525_v21 = vpop.eup %10524  ;;  %v10070_v11 = vld [vmem:[%s13525_s12 + $0x208] sm:$0xff]   ;;  %v10074_v23 = vld [vmem:[%s13525_s12 + $0x210] sm:$0xff]  }
0x1cf4   :  { %v10527_v24 = vpop.eup %10526  ;;  %v13143_v48 = vmul.f32 %v10525_v21, %v7157_v51  ;;  %v10088_v51 = vld [vmem:[%s13525_s12 + $0x270] sm:$0xff]  }
0x1cf5   :  { %9311 = vmatpush3.bf16.msra.mxu0 %v10054_v33  ;;  %v10529_v28 = vpop.eup %10528  ;;  %v13157_v58 = vmul.f32 %v10527_v24, %v7143_v29  ;;  %v10082_v33 = vld [vmem:[%s13525_s12 + $0x220] sm:$0xff]   ;;  %v10089_v21 = vld [vmem:[%s13525_s12 + $0x2f0] sm:$0xff]   ;;  %v10092_v24 = vld [vmem:[%s13525_s12 + $0x278] sm:$0xff]  }
0x1cf6   :  { %9333 = vmatpush3.bf16.msra.mxu1 %v10055_v32  ;;  %9312 = vmatprep.subr.bf16.mxu0 %v10056_v16  ;;  %v10531_v5 = vpop.eup %10530  ;;  %v7269_v43 = vpack.c.bf16 %v13143_v48, %v13141_v59  ;;  %v13163_v26 = vmul.f32 %v10529_v28, %v7142_v4  ;;  %v10083_v32 = vld [vmem:[%s13525_s12 + $0x2a0] sm:$0xff]   ;;  %v10084_v16 = vld [vmem:[%s13525_s12 + $0x268] sm:$0xff]   ;;  %v10095_v28 = vld [vmem:[%s13525_s12 + $0x2b8] sm:$0xff]  }
0x1cf7   :  { %9334 = vmatprep.subr.bf16.mxu1 %v10057_v56  ;;  %v10533_v8 = vpop.eup %10532  ;;  %v13172_v19 = vmul.f32 %v10531_v5, %v7144_v60  ;;  %v10085_v56 = vld [vmem:[%s13525_s12 + $0x2e8] sm:$0xff]   ;;  %v10096_v5 = vld [vmem:[%s13525_s12 + $0x340] sm:$0xff]  }
0x1cf8   :  { %v10535_v10 = vpop.eup %10534  ;;  %v13159_v25 = vmul.f32 %v10533_v8, %v7159_v53  ;;  %v10097_v29 = vld [vmem:[%s13525_s12 + $0x3c0] sm:$0xff]   ;;  %v10100_v4 = vld [vmem:[%s13525_s12 + $0x348] sm:$0xff]  }
0x1cf9   :  { %9313 = vmatpush3.bf16.msra.mxu0 %v10058_v49  ;;  %v13167_v39 = vmul.f32 %v10535_v10, %v7158_v57  ;;  %v10090_v49 = vld [vmem:[%s13525_s12 + $0x230] sm:$0xff]   ;;  %v10098_v53 = vld [vmem:[%s13525_s12 + $0x300] sm:$0xff]   ;;  %v10101_v57 = vld [vmem:[%s13525_s12 + $0x3c8] sm:$0xff]  }
0x1cfa   :  { %9335 = vmatpush3.bf16.msra.mxu1 %v10059_v61  ;;  %9314 = vmatprep.subr.bf16.mxu0 %v10060_v0  ;;  %v10537_v12 = vpop.eup %10536  ;;  %v7271_v15 = vpack.c.bf16 %v13159_v25, %v13157_v58  ;;  %v10091_v61 = vld [vmem:[%s13525_s12 + $0x2b0] sm:$0xff]   ;;  %v10093_v0 = vld [vmem:[%s13525_s12 + $0x2f8] sm:$0xff]   ;;  %v10099_v8 = vld [vmem:[%s13525_s12 + $0x380] sm:$0xff]  }
0x1cfb   :  { %9336 = vmatprep.subr.bf16.mxu1 %v10061_v9  ;;  %v13174_v31 = vmul.f32 %v10537_v12, %v7160_v37  ;;  %v7270_v20 = vpack.c.bf16 %v13167_v39, %v13163_v26  ;;  %v10094_v9 = vld [vmem:[%s13525_s12 + $0x238] sm:$0xff]   ;;  %v10104_v10 = vld [vmem:[%s13525_s12 + $0x350] sm:$0xff]   ;;  %v10113_v26 = vld [vmem:[%s13525_s12 + $0x3e0] sm:$0xff]  }
0x1cfc   :  { %v10114_v60 = vld [vmem:[%s13525_s12 + $0x320] sm:$0xff]   ;;  %v10116_v37 = vld [vmem:[%s13525_s12 + $0x368] sm:$0xff]  }
0x1cfd   :  { %9315 = vmatpush3.bf16.msra.mxu0 %v10062_v44  ;;  %v7272_v52 = vpack.c.bf16 %v13174_v31, %v13172_v19  ;;  %v10102_v44 = vld [vmem:[%s13525_s12 + $0x308] sm:$0xff]   ;;  %v10115_v39 = vld [vmem:[%s13525_s12 + $0x3a0] sm:$0xff]  }
0x1cfe   :  { %9337 = vmatpush3.bf16.msra.mxu1 %v10063_v42  ;;  %9344 = vmatprep.subr.bf16.mxu0 %v10064_v35  ;;  %v10103_v42 = vld [vmem:[%s13525_s12 + $0x388] sm:$0xff]   ;;  %v10111_v35 = vld [vmem:[%s13525_s12 + $0x398] sm:$0xff]  }
0x1cff   :  { %9366 = vmatprep.subr.bf16.mxu1 %v10065_v40  ;;  %v10112_v40 = vld [vmem:[%s13525_s12 + $0x360] sm:$0xff]   ;;  %v10117_v12 = vld [vmem:[%s13525_s12 + $0x3e8] sm:$0xff]  }
0x1d00   :  { %8162 = vmatmul.mubr.bf16.vlgmr.msra.gmra.mrb[148].mxu0 %v13557_v62  ;;  %v10118_v19 = vld [vmem:[%s13525_s12 + $0x328] sm:$0xff]   ;;  %v10126_v62 = vld [vmem:[%s13525_s12 + $0x338] sm:$0xff]  }
0x1d01   :  { %8203 = vmatmul.mubr.bf16.vlgmr.msra.gmra.mrb[148].mxu1 %v13558_v41  ;;  %9345 = vmatpush3.bf16.msra.mxu0 %v10066_v38  ;;  %v10119_v31 = vld [vmem:[%s13525_s12 + $0x3a8] sm:$0xff]   ;;  %v10120_v38 = vld [vmem:[%s13525_s12 + $0x370] sm:$0xff]   ;;  %v10127_v41 = vld [vmem:[%s13525_s12 + $0x3b8] sm:$0xff]  }
0x1d02   :  { %8243 = vmatprep.mubr.bf16.mxu0 %v7266_v27  ;;  %9367 = vmatpush3.bf16.msra.mxu1 %v10067_v45  ;;  %v10079_v27 = vld [vmem:[%s13525_s12 + $0x298] sm:$0xff]   ;;  %v10122_v45 = vld [vmem:[%s13525_s12 + $0x330] sm:$0xff]  }
0x1d03   :  { %8284 = vmatprep.mubr.bf16.mxu1 %v7268_v2  ;;  %9346 = vmatprep.subr.bf16.mxu0 %v10068_v17  ;;  %v10080_v2 = vld [vmem:[%s13525_s12 + $0x260] sm:$0xff]   ;;  %v10123_v17 = vld [vmem:[%s13525_s12 + $0x3b0] sm:$0xff]  }
0x1d04   :  { %9368 = vmatprep.subr.bf16.mxu1 %v10069_v34  ;;  %v10124_v34 = vld [vmem:[%s13525_s12 + $0x378] sm:$0xff]  }
0x1d05   :  { %9347 = vmatpush3.bf16.msra.mxu0 %v10070_v11  ;;  %v13559_v11 = vmov 0.0  }
0x1d06   :  { %9369 = vmatpush3.bf16.msra.mxu1 %v10071_v54  ;;  %9348 = vmatprep.subr.bf16.mxu0 %v10072_v47  ;;  %v10128_v54 = vld [vmem:[%s11256_s19] sm:$0xff]   ;;  %v10129_v47 = vld [vmem:[%s11256_s19 + $0x8] sm:$0xff]  }
0x1d07   :  { %9370 = vmatprep.subr.bf16.mxu1 %v10073_v13 }
0x1d09   :  { %9349 = vmatpush3.bf16.msra.mxu0 %v10074_v23 }
0x1d0a   :  { %9371 = vmatpush3.bf16.msra.mxu1 %v10075_v1  ;;  %9350 = vmatprep.subr.bf16.mxu0 %v10076_v55  ;;  %v8835_v1 = vld [vmem:[#allocation22] ss:$0 sm:$0xff] }
0x1d0b   :  { %9372 = vmatprep.subr.bf16.mxu1 %v10077_v6 }
0x1d0d   :  { %9351 = vmatpush3.bf16.msra.mxu0 %v10078_v22 }
0x1d0e   :  { %9373 = vmatpush3.bf16.msra.mxu1 %v10079_v27  ;;  %9352 = vmatprep.subr.bf16.mxu0 %v10080_v2 }
0x1d0f   :  { %9374 = vmatprep.subr.bf16.mxu1 %v10081_v18 }
0x1d11   :  { %9353 = vmatpush3.bf16.msra.mxu0 %v10082_v33 }
0x1d12   :  { %9375 = vmatpush3.bf16.msra.mxu1 %v10083_v32  ;;  %9354 = vmatprep.subr.bf16.mxu0 %v10084_v16 }
0x1d13   :  { %9376 = vmatprep.subr.bf16.mxu1 %v10085_v56 }
0x1d15   :  { %9355 = vmatpush3.bf16.msra.mxu0 %v10086_v50 }
0x1d16   :  { %9377 = vmatpush3.bf16.msra.mxu1 %v10087_v46  ;;  %9356 = vmatprep.subr.bf16.mxu0 %v10088_v51 }
0x1d17   :  { %9378 = vmatprep.subr.bf16.mxu1 %v10089_v21 }
0x1d19   :  { %9357 = vmatpush3.bf16.msra.mxu0 %v10090_v49 }
0x1d1a   :  { %9379 = vmatpush3.bf16.msra.mxu1 %v10091_v61  ;;  %9358 = vmatprep.subr.bf16.mxu0 %v10092_v24 }
0x1d1b   :  { %9380 = vmatprep.subr.bf16.mxu1 %v10093_v0 }
0x1d1d   :  { %9359 = vmatpush3.bf16.msra.mxu0 %v10094_v9 }
0x1d1e   :  { %9381 = vmatpush3.bf16.msra.mxu1 %v10095_v28  ;;  %9388 = vmatprep.subr.bf16.mxu0 %v10096_v5 }
0x1d1f   :  { %9410 = vmatprep.subr.bf16.mxu1 %v10097_v29 }
0x1d20   :  { %8244 = vmatmul.mubr.bf16.vlgmr.msra.gmra.mrb[152].mxu0 %v7265_v63  ;;  %v10108_v63 = vld [vmem:[%s13525_s12 + $0x358] sm:$0xff]  }
0x1d21   :  { %8285 = vmatmul.mubr.bf16.vlgmr.msra.gmra.mrb[152].mxu1 %v7267_v36  ;;  %9389 = vmatpush3.bf16.msra.mxu0 %v10098_v53  ;;  %v10110_v36 = vld [vmem:[%s13525_s12 + $0x318] sm:$0xff]  }
0x1d22   :  { %8325 = vmatprep.mubr.bf16.mxu0 %v7270_v20  ;;  %9411 = vmatpush3.bf16.msra.mxu1 %v10099_v8  ;;  %v10121_v20 = vld [vmem:[%s13525_s12 + $0x3f0] sm:$0xff]  }
0x1d23   :  { %8366 = vmatprep.mubr.bf16.mxu1 %v7272_v52  ;;  %9390 = vmatprep.subr.bf16.mxu0 %v10100_v4  ;;  %v10125_v52 = vld [vmem:[%s13525_s12 + $0x3f8] sm:$0xff]  }
0x1d24   :  { %9412 = vmatprep.subr.bf16.mxu1 %v10101_v57 }
0x1d25   :  { %9391 = vmatpush3.bf16.msra.mxu0 %v10102_v44 }
0x1d26   :  { %9413 = vmatpush3.bf16.msra.mxu1 %v10103_v42  ;;  %9392 = vmatprep.subr.bf16.mxu0 %v10104_v10 }
0x1d27   :  { %9414 = vmatprep.subr.bf16.mxu1 %v10105_v3 }
0x1d29   :  { %9393 = vmatpush3.bf16.msra.mxu0 %v10106_v30 }
0x1d2a   :  { %9415 = vmatpush3.bf16.msra.mxu1 %v10107_v7  ;;  %9394 = vmatprep.subr.bf16.mxu0 %v10108_v63 }
0x1d2b   :  { %9416 = vmatprep.subr.bf16.mxu1 %v10109_v14 }
0x1d2d   :  { %9395 = vmatpush3.bf16.msra.mxu0 %v10110_v36 }
0x1d2e   :  { %9417 = vmatpush3.bf16.msra.mxu1 %v10111_v35  ;;  %9396 = vmatprep.subr.bf16.mxu0 %v10112_v40 }
0x1d2f   :  { %9418 = vmatprep.subr.bf16.mxu1 %v10113_v26 }
0x1d31   :  { %9397 = vmatpush3.bf16.msra.mxu0 %v10114_v60 }
0x1d32   :  { %9419 = vmatpush3.bf16.msra.mxu1 %v10115_v39  ;;  %9398 = vmatprep.subr.bf16.mxu0 %v10116_v37 }
0x1d33   :  { %9420 = vmatprep.subr.bf16.mxu1 %v10117_v12 }
0x1d35   :  { %9399 = vmatpush3.bf16.msra.mxu0 %v10118_v19 }
0x1d36   :  { %9421 = vmatpush3.bf16.msra.mxu1 %v10119_v31  ;;  %9400 = vmatprep.subr.bf16.mxu0 %v10120_v38 }
0x1d37   :  { %9422 = vmatprep.subr.bf16.mxu1 %v10121_v20 }
0x1d39   :  { %9401 = vmatpush3.bf16.msra.mxu0 %v10122_v45 }
0x1d3a   :  { %9423 = vmatpush3.bf16.msra.mxu1 %v10123_v17  ;;  %9402 = vmatprep.subr.bf16.mxu0 %v10124_v34 }
0x1d3b   :  { %9424 = vmatprep.subr.bf16.mxu1 %v10125_v52 }
0x1d3d   :  { %9403 = vmatpush3.bf16.msra.mxu0 %v10126_v62 }
0x1d3e   :  { %9425 = vmatpush3.bf16.msra.mxu1 %v10127_v41  ;;  %9755 = vmatprep.subr.bf16.mxu0 %v13559_v11 }
0x1d40   :  { %8326 = vmatmul.mubr.bf16.vlgmr.msra.gmra.mrb[156].mxu0 %v7269_v43 }
0x1d41   :  { %8367 = vmatmul.mubr.bf16.vlgmr.msra.gmra.mrb[156].mxu1 %v7271_v15  ;;  %9759 = vmatprep.mubr.msk.bf16.mxu0 %vm10961_vm1, %v13559_v11 }
0x1d42   :  { %9756 = vmatpush3.bf16.msra.mxu0 %v10128_v54 }
0x1d43   :  { %9757 = vmatprep.subr.bf16.mxu0 %v13559_v11 }
0x1d46   :  { %9758 = vmatpush3.bf16.msra.mxu0 %v10129_v47 }
0x1db3   :  { %v9272_v13 = vpop.f32.mrb[144].mxu0 }
0x1db4   :  { %v9294_v23 = vpop.f32.mrb[144].mxu1  ;;  %v9273_v55 = vpop.f32.mrb[145].mxu0 }
0x1db5   :  { %v9295_v6 = vpop.f32.mrb[145].mxu1  ;;  %v9274_v59 = vadd.f32 %v9273_v55, %v9272_v13  ;;  %v9275_v43 = vpop.f32.mrb[146].mxu0  ;;  %v13561_v55 = vld [vmem:[#allocation98_spill] sm:$0xff] }
0x1db6   :  { %v9296_v48 = vadd.f32 %v9295_v6, %v9294_v23  ;;  %v9297_v22 = vpop.f32.mrb[146].mxu1  ;;  %v9276_v58 = vpop.f32.mrb[147].mxu0  ;;  %v13560_v23 = vld [vmem:[#allocation104_spill] sm:$0xff] }
0x1db7   :  { %v9298_v25 = vpop.f32.mrb[147].mxu1  ;;  %v8082_v15 = vadd.f32 %v9274_v59, %v8835_v1  ;;  %v9277_v27 = vadd.f32 %v9276_v58, %v9275_v43 }
0x1db8   :  { %v9299_v2 = vadd.f32 %v9298_v25, %v9297_v22 }
0x1db9   :  { %v8123_v18 = vadd.f32 %v9296_v48, %v8082_v15  ;;  %v8085_v33 = vadd.f32 %v9277_v27, %v8835_v1  ;;  %v8964_v48 = vld [vmem:[#allocation24] ss:$0 sm:$0xff] }
0x1dbb   :  { %v8126_v32 = vadd.f32 %v9299_v2, %v8085_v33 }
0x1dd3   :  { %v9316_v16 = vpop.f32.mrb[148].mxu0 }
0x1dd4   :  { %v9338_v56 = vpop.f32.mrb[148].mxu1  ;;  %v9317_v50 = vpop.f32.mrb[149].mxu0 }
0x1dd5   :  { %v9339_v46 = vpop.f32.mrb[149].mxu1  ;;  %v9318_v51 = vadd.f32 %v9317_v50, %v9316_v16  ;;  %v9319_v49 = vpop.f32.mrb[150].mxu0 }
0x1dd6   :  { %v9340_v21 = vadd.f32 %v9339_v46, %v9338_v56  ;;  %v9341_v61 = vpop.f32.mrb[150].mxu1  ;;  %v9320_v24 = vpop.f32.mrb[151].mxu0 }
0x1dd7   :  { %v9342_v0 = vpop.f32.mrb[151].mxu1  ;;  %v8164_v9 = vadd.f32 %v9318_v51, %v8123_v18  ;;  %v9321_v28 = vadd.f32 %v9320_v24, %v9319_v49 }
0x1dd8   :  { %v9343_v5 = vadd.f32 %v9342_v0, %v9341_v61 }
0x1dd9   :  { %v8205_v29 = vadd.f32 %v9340_v21, %v8164_v9  ;;  %v8167_v53 = vadd.f32 %v9321_v28, %v8126_v32 }
0x1ddb   :  { %v8208_v8 = vadd.f32 %v9343_v5, %v8167_v53 }
0x1df3   :  { %v9360_v4 = vpop.f32.mrb[152].mxu0 }
0x1df4   :  { %v9382_v57 = vpop.f32.mrb[152].mxu1  ;;  %v9361_v44 = vpop.f32.mrb[153].mxu0 }
0x1df5   :  { %v9362_v42 = vadd.f32 %v9361_v44, %v9360_v4  ;;  %v9383_v10 = vpop.f32.mrb[153].mxu1  ;;  %v9363_v3 = vpop.f32.mrb[154].mxu0 }
0x1df6   :  { %v9384_v30 = vadd.f32 %v9383_v10, %v9382_v57  ;;  %v9385_v7 = vpop.f32.mrb[154].mxu1  ;;  %v9364_v63 = vpop.f32.mrb[155].mxu0 }
0x1df7   :  { %v8246_v14 = vadd.f32 %v9362_v42, %v8205_v29  ;;  %v9365_v36 = vadd.f32 %v9364_v63, %v9363_v3  ;;  %v9386_v35 = vpop.f32.mrb[155].mxu1 }
0x1df8   :  { %v9387_v40 = vadd.f32 %v9386_v35, %v9385_v7 }
0x1df9   :  { %v8287_v26 = vadd.f32 %v9384_v30, %v8246_v14  ;;  %v8249_v60 = vadd.f32 %v9365_v36, %v8208_v8 }
0x1dfb   :  { %v8290_v39 = vadd.f32 %v9387_v40, %v8249_v60 }
0x1e13   :  { %v9404_v37 = vpop.f32.mrb[156].mxu0 }
0x1e14   :  { %v9426_v12 = vpop.f32.mrb[156].mxu1  ;;  %v9405_v19 = vpop.f32.mrb[157].mxu0 }
0x1e15   :  { %v9406_v31 = vadd.f32 %v9405_v19, %v9404_v37  ;;  %v9427_v38 = vpop.f32.mrb[157].mxu1  ;;  %v9407_v20 = vpop.f32.mrb[158].mxu0 }
0x1e16   :  { %v9428_v45 = vadd.f32 %v9427_v38, %v9426_v12  ;;  %v9429_v17 = vpop.f32.mrb[158].mxu1  ;;  %v9408_v34 = vpop.f32.mrb[159].mxu0 }
0x1e17   :  { %v8328_v52 = vadd.f32 %v9406_v31, %v8287_v26  ;;  %v9409_v62 = vadd.f32 %v9408_v34, %v9407_v20  ;;  %v9430_v41 = vpop.f32.mrb[159].mxu1 }
0x1e18   :  { %v9431_v11 = vadd.f32 %v9430_v41, %v9429_v17 }
0x1e19   :  { %v8369_v54 = vadd.f32 %v9428_v45, %v8328_v52  ;;  %v8331_v47 = vadd.f32 %v9409_v62, %v8290_v39 }
0x1e1b   :  { %v8372_v13 = vadd.f32 %v9431_v11, %v8331_v47  ;;  %v8375_v1 = vadd.f32 %v8369_v54, %v13560_v23 }
0x1e1d   :  { %v8376_v6 = vadd.f32 %v8372_v13, %v13561_v55 }
0x1e1f   :  { %v8382_v59 = vpack.c.bf16 %v8376_v6, %v8375_v1 }
0x1e21   :  { %9760 = vmatmul.mubr.msk.bf16.vlgmr.msra.gmra.mrb[160].mxu0 %vm774_vm0, %v8382_v59 }
0x1ef4   :  { %v8438_v43 = vpop.f32.mrb[160].mxu0 }
0x1ef5   :  { %v8439_v22 = vadd.f32 %v8964_v48, %v8438_v43  ;;  %v9761_v58 = vpop.f32.mrb[161].mxu0 }
0x1ef6   :  { %v8441_v25 = vpop.f32.mrb[162].mxu0 }
0x1ef7   :  { %8445 = vst [vmem:[%s11266_s14] sm:$0xff] %v8439_v22  ;;  %v8442_v15 = vadd.f32 %v8964_v48, %v8441_v25  ;;  %v9762_v27 = vpop.f32.mrb[163].mxu0 }
0x1ef9   :  { %8446 = vst [vmem:[%s11266_s14 + $0x8] sm:$0xff] %v8442_v15 }
0x1efa   :  { %8451 = vsyncpa [#allocation3], 1 }
0x1efb   :  { %8452 = vsyncpa [#allocation5], 1 }
0x1efc   :  { %8453 = vsyncpa [#allocation8], 1 }
0x1efd   :  { %8454 = vsyncpa [#allocation11], 1 }
0x1efe   :  { %8455 = vsyncpa [#allocation14], 1 }
0x1eff   :  { %8456 = vsyncpa [#allocation17], 1 }
0x1f00   :  { %8457 = vsyncpa [#allocation20], 1 }
0x1f01   :  { %8458 = vsyncpa [#allocation23], 1 }

</bundles_post_ra>
